<compile_context>
chip_gen: v7x
topology: tpu7x:2x2x1
jax: 0.10.0
libtpu: 0.0.40
codegen_flags: <defaults>
</compile_context>

<pallas_src>
import jax
import jax.numpy as jnp
from jax.experimental import pallas as pl
from jax.experimental.pallas import tpu as pltpu

EPS = 1e-5
_TILE_CAP = 2048                      # max point tile (review: v6e/v7x sweet spot)
_VMEM_LIMIT = 48 * 1024 * 1024        # < v7x 64 MiB physical; lifts v5e 16 MiB default


# --------------------------------------------------------------------------
# In-kernel helpers
# --------------------------------------------------------------------------
def _relu(x):
    return jnp.maximum(x, 0.0)


def _mm(h, w_ref, b_ref):
    """bf16 MXU matmul with f32 accumulation + f32 bias."""
    y = jnp.dot(h.astype(jnp.bfloat16), w_ref[...],
                preferred_element_type=jnp.float32)
    return y + b_ref[...]


def _tile_max_update(h, acc_ref):
    """Fold this point tile into the (8, C) running max (pure VPU)."""
    tile_max = jnp.max(h.reshape(-1, 8, h.shape[-1]), axis=0)   # (8, C)
    n = pl.program_id(1)

    @pl.when(n == 0)
    def _():
        acc_ref[...] = tile_max

    @pl.when(n > 0)
    def _():
        acc_ref[...] = jnp.maximum(acc_ref[...], tile_max)


def _is_last_tile():
    return pl.program_id(1) == pl.num_programs(1) - 1


def _fc_head(g, fw1, fb1, fw2, fb2, fw3, fb3):
    """Fused STN FC tail 1024 -> 512 -> 256 -> k*k (eye already folded in fb3)."""
    z = _relu(_mm(g, fw1, fb1))
    z = _relu(_mm(z, fw2, fb2))
    return _mm(z, fw3, fb3)


# --------------------------------------------------------------------------
# Kernel A: STN3  (3 -> 64 -> 128 -> 1024 -> max -> FC -> 3x3)
# --------------------------------------------------------------------------
def _stn3_kernel(x_ref, w1_ref, b1_ref, w2_ref, b2_ref, w3_ref, b3_ref,
                 fw1_ref, fb1_ref, fw2_ref, fb2_ref, fw3_ref, fb3_ref,
                 o_ref, acc_ref):
    h = x_ref[...]                                 # (tn, 3)
    h = _relu(_mm(h, w1_ref, b1_ref))              # (tn, 64)  K=3 underutilizes MXU, stays fused
    h = _relu(_mm(h, w2_ref, b2_ref))              # (tn, 128)
    h = _relu(_mm(h, w3_ref, b3_ref))              # (tn, 1024)
    _tile_max_update(h, acc_ref)

    @pl.when(_is_last_tile())
    def _():
        g = jnp.max(acc_ref[...], axis=0, keepdims=True)     # (1, 1024), single XLU collapse
        o_ref[...] = _fc_head(g, fw1_ref, fb1_ref, fw2_ref, fb2_ref,
                              fw3_ref, fb3_ref)               # (1, 9)


def stn3_head(x, p, *, tn, dim_sem):
    B, N, C = x.shape
    kk = 9
    out = pl.pallas_call(
        _stn3_kernel,
        out_shape=jax.ShapeDtypeStruct((B, 1, kk), jnp.float32),
        grid=(B, N // tn),
        in_specs=[
            pl.BlockSpec((None, tn, C), lambda b, n: (b, n, 0)),
            pl.BlockSpec((C, 64), lambda b, n: (0, 0)),
            pl.BlockSpec((1, 64), lambda b, n: (0, 0)),
            pl.BlockSpec((64, 128), lambda b, n: (0, 0)),
            pl.BlockSpec((1, 128), lambda b, n: (0, 0)),
            pl.BlockSpec((128, 1024), lambda b, n: (0, 0)),
            pl.BlockSpec((1, 1024), lambda b, n: (0, 0)),
            pl.BlockSpec((1024, 512), lambda b, n: (0, 0)),
            pl.BlockSpec((1, 512), lambda b, n: (0, 0)),
            pl.BlockSpec((512, 256), lambda b, n: (0, 0)),
            pl.BlockSpec((1, 256), lambda b, n: (0, 0)),
            pl.BlockSpec((256, kk), lambda b, n: (0, 0)),
            pl.BlockSpec((1, kk), lambda b, n: (0, 0)),
        ],
        out_specs=pl.BlockSpec((None, 1, kk), lambda b, n: (b, 0, 0)),
        scratch_shapes=[pltpu.VMEM((8, 1024), jnp.float32)],
        compiler_params=pltpu.CompilerParams(
            dimension_semantics=dim_sem, vmem_limit_bytes=_VMEM_LIMIT),
    )(x, p['w1'], p['b1'], p['w2'], p['b2'], p['w3'], p['b3'],
      p['fw1'], p['fb1'], p['fw2'], p['fb2'], p['fw3'], p['fb3'])
    return out.reshape(B, 3, 3)


# --------------------------------------------------------------------------
# Kernel B: fSTN  (composed conv1 -> 64 -> 64 -> 128 -> 1024 -> max -> FC -> 64x64)
# --------------------------------------------------------------------------
def _fstn_kernel(x_ref, w1c_ref, b1_ref,
                 cw1_ref, cb1_ref, cw2_ref, cb2_ref, cw3_ref, cb3_ref,
                 fw1_ref, fb1_ref, fw2_ref, fb2_ref, fw3_ref, fb3_ref,
                 o_ref, acc_ref):
    h = x_ref[...]                                  # (tn, 3)
    h = _relu(_mm(h, w1c_ref, b1_ref))              # encoder conv1 (trans folded): (tn, 64)
    h = _relu(_mm(h, cw1_ref, cb1_ref))             # (tn, 64)
    h = _relu(_mm(h, cw2_ref, cb2_ref))             # (tn, 128)
    h = _relu(_mm(h, cw3_ref, cb3_ref))             # (tn, 1024)
    _tile_max_update(h, acc_ref)

    @pl.when(_is_last_tile())
    def _():
        g = jnp.max(acc_ref[...], axis=0, keepdims=True)      # (1, 1024)
        o_ref[...] = _fc_head(g, fw1_ref, fb1_ref, fw2_ref, fb2_ref,
                              fw3_ref, fb3_ref)                # (1, 4096)


def fstn_head(x, w1c, b1, p, *, tn, dim_sem):
    B, N, C = x.shape
    kk = 64 * 64
    out = pl.pallas_call(
        _fstn_kernel,
        out_shape=jax.ShapeDtypeStruct((B, 1, kk), jnp.float32),
        grid=(B, N // tn),
        in_specs=[
            pl.BlockSpec((None, tn, C), lambda b, n: (b, n, 0)),
            pl.BlockSpec((None, C, 64), lambda b, n: (b, 0, 0)),
            pl.BlockSpec((1, 64), lambda b, n: (0, 0)),
            pl.BlockSpec((64, 64), lambda b, n: (0, 0)),
            pl.BlockSpec((1, 64), lambda b, n: (0, 0)),
            pl.BlockSpec((64, 128), lambda b, n: (0, 0)),
            pl.BlockSpec((1, 128), lambda b, n: (0, 0)),
            pl.BlockSpec((128, 1024), lambda b, n: (0, 0)),
            pl.BlockSpec((1, 1024), lambda b, n: (0, 0)),
            pl.BlockSpec((1024, 512), lambda b, n: (0, 0)),
            pl.BlockSpec((1, 512), lambda b, n: (0, 0)),
            pl.BlockSpec((512, 256), lambda b, n: (0, 0)),
            pl.BlockSpec((1, 256), lambda b, n: (0, 0)),
            pl.BlockSpec((256, kk), lambda b, n: (0, 0)),
            pl.BlockSpec((1, kk), lambda b, n: (0, 0)),
        ],
        out_specs=pl.BlockSpec((None, 1, kk), lambda b, n: (b, 0, 0)),
        scratch_shapes=[pltpu.VMEM((8, 1024), jnp.float32)],
        compiler_params=pltpu.CompilerParams(
            dimension_semantics=dim_sem, vmem_limit_bytes=_VMEM_LIMIT),
    )(x, w1c, b1, p['w1'], p['b1'], p['w2'], p['b2'], p['w3'], p['b3'],
      p['fw1'], p['fb1'], p['fw2'], p['fb2'], p['fw3'], p['fb3'])
    return out.reshape(B, 64, 64)


# --------------------------------------------------------------------------
# Kernel C: main trunk  (composed conv1 -> composed conv2 -> 1024 -> max)
# --------------------------------------------------------------------------
def _trunk_kernel(x_ref, w1c_ref, b1_ref, w2c_ref, b2_ref, w3_ref, b3_ref,
                  o_ref, acc_ref):
    h = x_ref[...]                                  # (tn, 3)
    h = _relu(_mm(h, w1c_ref, b1_ref))              # (tn, 64)
    h = _relu(_mm(h, w2c_ref, b2_ref))              # (tn, 128)
    h = _mm(h, w3_ref, b3_ref)                      # (tn, 1024), bn3 but no relu
    _tile_max_update(h, acc_ref)

    @pl.when(_is_last_tile())
    def _():
        o_ref[...] = jnp.max(acc_ref[...], axis=0, keepdims=True)  # (1, 1024)


def trunk_head(x, w1c, b1, w2c, b2, w3, b3, *, tn, dim_sem):
    B, N, C = x.shape
    out = pl.pallas_call(
        _trunk_kernel,
        out_shape=jax.ShapeDtypeStruct((B, 1, 1024), jnp.float32),
        grid=(B, N // tn),
        in_specs=[
            pl.BlockSpec((None, tn, C), lambda b, n: (b, n, 0)),
            pl.BlockSpec((None, C, 64), lambda b, n: (b, 0, 0)),
            pl.BlockSpec((1, 64), lambda b, n: (0, 0)),
            pl.BlockSpec((None, 64, 128), lambda b, n: (b, 0, 0)),
            pl.BlockSpec((1, 128), lambda b, n: (0, 0)),
            pl.BlockSpec((128, 1024), lambda b, n: (0, 0)),
            pl.BlockSpec((1, 1024), lambda b, n: (0, 0)),
        ],
        out_specs=pl.BlockSpec((None, 1, 1024), lambda b, n: (b, 0, 0)),
        scratch_shapes=[pltpu.VMEM((8, 1024), jnp.float32)],
        compiler_params=pltpu.CompilerParams(
            dimension_semantics=dim_sem, vmem_limit_bytes=_VMEM_LIMIT),
    )(x, w1c, b1, w2c, b2, w3, b3)
    return out.reshape(B, 1024)


# --------------------------------------------------------------------------
# Parameter construction (deterministic, synthetic) with BN + bias folding
# --------------------------------------------------------------------------
def _init_conv_bn(key, cin, cout, std=0.05, dtype=jnp.bfloat16):
    """Conv1d(cin,cout,1)/Linear + BatchNorm1d(cout) folded to (w', b')."""
    kw, kb, kg, kbe, km = jax.random.split(key, 5)
    w = jax.random.normal(kw, (cin, cout), jnp.float32) * std
    b = jax.random.normal(kb, (cout,), jnp.float32) * std
    gamma = 1.0 + 0.1 * jax.random.normal(kg, (cout,), jnp.float32)
    beta = 0.1 * jax.random.normal(kbe, (cout,), jnp.float32)
    mean = 0.1 * jax.random.normal(km, (cout,), jnp.float32)
    var = jnp.ones((cout,), jnp.float32)
    scale = gamma / jnp.sqrt(var + EPS)
    bias = beta + (b - mean) * scale
    w_folded = w * scale[None, :]
    return w_folded.astype(dtype), bias.reshape(1, cout).astype(jnp.float32)


def init_stn_params(key, k):
    keys = jax.random.split(key, 6)
    p = {}
    p['w1'], p['b1'] = _init_conv_bn(keys[0], k, 64)
    p['w2'], p['b2'] = _init_conv_bn(keys[1], 64, 128)
    p['w3'], p['b3'] = _init_conv_bn(keys[2], 128, 1024)
    p['fw1'], p['fb1'] = _init_conv_bn(keys[3], 1024, 512)
    p['fw2'], p['fb2'] = _init_conv_bn(keys[4], 512, 256)
    kw, kb = jax.random.split(keys[5])
    fw3 = jax.random.normal(kw, (256, k * k), jnp.float32) * 0.05
    fb3 = jax.random.normal(kb, (k * k,), jnp.float32) * 0.05
    p['fw3'] = fw3.astype(jnp.bfloat16)
    # "+ eye(k).flatten()" folded into the final bias.
    p['fb3'] = (fb3 + jnp.eye(k, dtype=jnp.float32).flatten()).reshape(1, k * k)
    return p


def init_encoder_params(key, channel=3):
    keys = jax.random.split(key, 5)
    p = {}
    p['stn'] = init_stn_params(keys[0], 3)
    p['fstn'] = init_stn_params(keys[1], 64)
    # conv1/conv2 weights stay f32: they get composed per-batch with the
    # STN transforms (trans @ w) before being fed to the kernels.
    p['w1'], p['b1'] = _init_conv_bn(keys[2], channel, 64, dtype=jnp.float32)
    p['w2'], p['b2'] = _init_conv_bn(keys[3], 64, 128, dtype=jnp.float32)
    p['w3'], p['b3'] = _init_conv_bn(keys[4], 128, 1024)
    return p


# --------------------------------------------------------------------------
# Tiling / semantics selection
# --------------------------------------------------------------------------
def _round_up(n, m):
    return -(-n // m) * m


def _pick_tiling(n):
    """Return (padded_N, point_tile): biggest tile <= cap with minimal padding."""
    if n <= _TILE_CAP:
        n_pad = _round_up(n, 8)
        return n_pad, n_pad
    best_pad, best_t = None, None
    for t in (2048, 1024, 512, 256, 128):
        n_pad = _round_up(n, t)
        if best_pad is None or n_pad < best_pad:
            best_pad, best_t = n_pad, t
    return best_pad, best_t


def _dim_semantics():
    """Batch axis sharding: CORE_PARALLEL on v7x (2 TensorCores/chip)."""
    try:
        kind = jax.devices()[0].device_kind.lower()
    except Exception:
        kind = ""
    if "v7" in kind or "tpu7" in kind:
        return (pltpu.CORE_PARALLEL, pltpu.ARBITRARY)
    return ("parallel", "arbitrary")


# --------------------------------------------------------------------------
# Forward pass (tiny glue in JAX, heavy compute in 3 fused Pallas kernels)
# --------------------------------------------------------------------------
def pointnet_encoder(x_bcn, params):
    """PointNetEncoder forward.  x_bcn: (B, 3, N) (PyTorch NCL layout)."""
    B, C, N = x_bcn.shape
    assert C == 3, "only channel=3 configuration is implemented"
    n_pad, tn = _pick_tiling(N)
    dim_sem = _dim_semantics()

    x = jnp.transpose(x_bcn, (0, 2, 1)).astype(jnp.float32)       # (B, N, 3)
    if n_pad != N:
        # Pointwise convs + global max are invariant to duplicated points.
        x = jnp.pad(x, ((0, 0), (0, n_pad - N), (0, 0)), mode='edge')

    # --- STN3: input transform (conv head + fused FC head) ------------------
    p3 = params['stn']
    trans = stn3_head(x, p3, tn=tn, dim_sem=dim_sem)              # (B, 3, 3)

    # bmm(x, trans) folded into conv1:  x @ trans @ W1 == x @ (trans @ W1)
    w1c = jnp.einsum('bij,jk->bik', trans,
                     params['w1']).astype(jnp.bfloat16)           # (B, 3, 64)

    # --- fSTN: feature transform (conv head + fused FC head) ----------------
    pf = params['fstn']
    trans_feat = fstn_head(x, w1c, params['b1'], pf,
                           tn=tn, dim_sem=dim_sem)                # (B, 64, 64)

    # bmm(x64, trans_feat) folded into conv2.
    w2c = jnp.einsum('bij,jk->bik', trans_feat,
                     params['w2']).astype(jnp.bfloat16)           # (B, 64, 128)

    # --- main trunk + global max pool ----------------------------------------
    g = trunk_head(x, w1c, params['b1'], w2c, params['b2'],
                   params['w3'], params['b3'],
                   tn=tn, dim_sem=dim_sem)                        # (B, 1024)
    return g, trans_feat


# --------------------------------------------------------------------------
if __name__ == "__main__":
    key = jax.random.PRNGKey(0)
    kparam, kx = jax.random.split(key)

    params = init_encoder_params(kparam, channel=3)

    B, C, N = 2, 3, 128
    x = jax.random.normal(kx, (B, C, N), jnp.float32)

    fwd = jax.jit(pointnet_encoder)
    global_feat, trans_feat = fwd(x, params)
    jax.block_until_ready((global_feat, trans_feat))

    assert global_feat.shape == (B, 1024), global_feat.shape
    assert trans_feat.shape == (B, 64, 64), trans_feat.shape
    assert bool(jnp.all(jnp.isfinite(global_feat)))
    assert bool(jnp.all(jnp.isfinite(trans_feat)))

    print("KERNEL_OK")
</pallas_src>

<mosaic_0001>
module attributes {stable_mosaic.version = 11 : i64} {
  func.func @_stn3_kernel(%arg0: i32, %arg1: i32, %arg2: memref<1x128x3xf32, #tpu.memory_space<vmem>>, %arg3: memref<3x64xbf16, #tpu.memory_space<vmem>>, %arg4: memref<1x64xf32, #tpu.memory_space<vmem>>, %arg5: memref<64x128xbf16, #tpu.memory_space<vmem>>, %arg6: memref<1x128xf32, #tpu.memory_space<vmem>>, %arg7: memref<128x1024xbf16, #tpu.memory_space<vmem>>, %arg8: memref<1x1024xf32, #tpu.memory_space<vmem>>, %arg9: memref<1024x512xbf16, #tpu.memory_space<vmem>>, %arg10: memref<1x512xf32, #tpu.memory_space<vmem>>, %arg11: memref<512x256xbf16, #tpu.memory_space<vmem>>, %arg12: memref<1x256xf32, #tpu.memory_space<vmem>>, %arg13: memref<256x9xbf16, #tpu.memory_space<vmem>>, %arg14: memref<1x9xf32, #tpu.memory_space<vmem>>, %arg15: memref<1x1x9xf32, #tpu.memory_space<vmem>>, %arg16: memref<8x1024xf32, #tpu.memory_space<vmem>>) attributes {dimension_semantics = [#tpu.dimension_semantics<parallel>, #tpu.dimension_semantics<arbitrary>], iteration_bounds = array<i64: 2, 1>, scalar_prefetch = 0 : i64, scratch_operands = 1 : i64, tpu.core_type = #tpu.core_type<tc>, window_params = [{transform_indices = @transform_0, window_bounds = array<i64: 1, 128, 3>}, {pipeline_mode = #tpu.pipeline_mode<synchronous>, transform_indices = @transform_1, window_bounds = array<i64: 3, 64>}, {pipeline_mode = #tpu.pipeline_mode<synchronous>, transform_indices = @transform_2, window_bounds = array<i64: 1, 64>}, {pipeline_mode = #tpu.pipeline_mode<synchronous>, transform_indices = @transform_3, window_bounds = array<i64: 64, 128>}, {pipeline_mode = #tpu.pipeline_mode<synchronous>, transform_indices = @transform_4, window_bounds = array<i64: 1, 128>}, {pipeline_mode = #tpu.pipeline_mode<synchronous>, transform_indices = @transform_5, window_bounds = array<i64: 128, 1024>}, {pipeline_mode = #tpu.pipeline_mode<synchronous>, transform_indices = @transform_6, window_bounds = array<i64: 1, 1024>}, {pipeline_mode = #tpu.pipeline_mode<synchronous>, transform_indices = @transform_7, window_bounds = array<i64: 1024, 512>}, {pipeline_mode = #tpu.pipeline_mode<synchronous>, transform_indices = @transform_8, window_bounds = array<i64: 1, 512>}, {pipeline_mode = #tpu.pipeline_mode<synchronous>, transform_indices = @transform_9, window_bounds = array<i64: 512, 256>}, {pipeline_mode = #tpu.pipeline_mode<synchronous>, transform_indices = @transform_10, window_bounds = array<i64: 1, 256>}, {pipeline_mode = #tpu.pipeline_mode<synchronous>, transform_indices = @transform_11, window_bounds = array<i64: 256, 9>}, {pipeline_mode = #tpu.pipeline_mode<synchronous>, transform_indices = @transform_12, window_bounds = array<i64: 1, 9>}, {transform_indices = @transform_13, window_bounds = array<i64: 1, 1, 9>}]} {
    %c0 = arith.constant 0 : index
    %c0_0 = arith.constant 0 : index
    %c0_1 = arith.constant 0 : index
    %0 = vector.load %arg2[%c0, %c0_0, %c0_1] : memref<1x128x3xf32, #tpu.memory_space<vmem>>, vector<1x128x3xf32>
    %1 = vector.shape_cast %0 : vector<1x128x3xf32> to vector<128x3xf32>
    %2 = arith.truncf %1 : vector<128x3xf32> to vector<128x3xbf16>
    %c0_2 = arith.constant 0 : index
    %c0_3 = arith.constant 0 : index
    %3 = vector.load %arg3[%c0_2, %c0_3] : memref<3x64xbf16, #tpu.memory_space<vmem>>, vector<3x64xbf16>
    %cst = arith.constant dense<0.000000e+00> : vector<128x64xf32>
    %4 = tpu.matmul %2, %3, %cst {dimension_numbers = #tpu.dot_dimension_numbers<[1], [0], [0], [1], [0, 0, 1, 1], [], []>} : vector<128x3xbf16>, vector<3x64xbf16>, vector<128x64xf32> -> vector<128x64xf32>
    %c0_4 = arith.constant 0 : index
    %c0_5 = arith.constant 0 : index
    %5 = vector.load %arg4[%c0_4, %c0_5] : memref<1x64xf32, #tpu.memory_space<vmem>>, vector<1x64xf32>
    %6 = vector.broadcast %5 : vector<1x64xf32> to vector<128x64xf32>
    %7 = arith.addf %4, %6 : vector<128x64xf32>
    %cst_6 = arith.constant 0.000000e+00 : f32
    %8 = vector.broadcast %cst_6 : f32 to vector<128x64xf32>
    %9 = arith.maximumf %7, %8 : vector<128x64xf32>
    %10 = arith.truncf %9 : vector<128x64xf32> to vector<128x64xbf16>
    %c0_7 = arith.constant 0 : index
    %c0_8 = arith.constant 0 : index
    %11 = vector.load %arg5[%c0_7, %c0_8] : memref<64x128xbf16, #tpu.memory_space<vmem>>, vector<64x128xbf16>
    %cst_9 = arith.constant dense<0.000000e+00> : vector<128x128xf32>
    %12 = tpu.matmul %10, %11, %cst_9 {dimension_numbers = #tpu.dot_dimension_numbers<[1], [0], [0], [1], [0, 0, 1, 1], [], []>} : vector<128x64xbf16>, vector<64x128xbf16>, vector<128x128xf32> -> vector<128x128xf32>
    %c0_10 = arith.constant 0 : index
    %c0_11 = arith.constant 0 : index
    %13 = vector.load %arg6[%c0_10, %c0_11] : memref<1x128xf32, #tpu.memory_space<vmem>>, vector<1x128xf32>
    %14 = vector.broadcast %13 : vector<1x128xf32> to vector<128x128xf32>
    %15 = arith.addf %12, %14 : vector<128x128xf32>
    %cst_12 = arith.constant 0.000000e+00 : f32
    %16 = vector.broadcast %cst_12 : f32 to vector<128x128xf32>
    %17 = arith.maximumf %15, %16 : vector<128x128xf32>
    %18 = arith.truncf %17 : vector<128x128xf32> to vector<128x128xbf16>
    %c0_13 = arith.constant 0 : index
    %c0_14 = arith.constant 0 : index
    %19 = vector.load %arg7[%c0_13, %c0_14] : memref<128x1024xbf16, #tpu.memory_space<vmem>>, vector<128x1024xbf16>
    %cst_15 = arith.constant dense<0.000000e+00> : vector<128x1024xf32>
    %20 = tpu.matmul %18, %19, %cst_15 {dimension_numbers = #tpu.dot_dimension_numbers<[1], [0], [0], [1], [0, 0, 1, 1], [], []>} : vector<128x128xbf16>, vector<128x1024xbf16>, vector<128x1024xf32> -> vector<128x1024xf32>
    %c0_16 = arith.constant 0 : index
    %c0_17 = arith.constant 0 : index
    %21 = vector.load %arg8[%c0_16, %c0_17] : memref<1x1024xf32, #tpu.memory_space<vmem>>, vector<1x1024xf32>
    %22 = vector.broadcast %21 : vector<1x1024xf32> to vector<128x1024xf32>
    %23 = arith.addf %20, %22 : vector<128x1024xf32>
    %cst_18 = arith.constant 0.000000e+00 : f32
    %24 = vector.broadcast %cst_18 : f32 to vector<128x1024xf32>
    %25 = arith.maximumf %23, %24 : vector<128x1024xf32>
    %26 = vector.shape_cast %25 : vector<128x1024xf32> to vector<16x8x1024xf32>
    %cst_19 = arith.constant dense<0xFF800000> : vector<8x1024xf32>
    %27 = vector.multi_reduction <maximumf>, %26, %cst_19 [0] : vector<16x8x1024xf32> to vector<8x1024xf32>
    %c0_i32 = arith.constant 0 : i32
    %28 = arith.cmpi eq, %arg1, %c0_i32 : i32
    %29 = arith.extui %28 : i1 to i32
    %c0_i32_20 = arith.constant 0 : i32
    %30 = arith.cmpi ne, %29, %c0_i32_20 : i32
    scf.if %30 {
      %c0_25 = arith.constant 0 : index
      %c0_26 = arith.constant 0 : index
      %37 = vector.load %arg16[%c0_25, %c0_26] : memref<8x1024xf32, #tpu.memory_space<vmem>>, vector<8x1024xf32>
      tpu.vector_store %arg16[%c0_25, %c0_26], %27 {strides = array<i32>} : memref<8x1024xf32, #tpu.memory_space<vmem>>, vector<8x1024xf32>,
    } else {
    }
    %c0_i32_21 = arith.constant 0 : i32
    %31 = arith.cmpi sgt, %arg1, %c0_i32_21 : i32
    %32 = arith.extui %31 : i1 to i32
    %c0_i32_22 = arith.constant 0 : i32
    %33 = arith.cmpi ne, %32, %c0_i32_22 : i32
    scf.if %33 {
      %c0_25 = arith.constant 0 : index
      %c0_26 = arith.constant 0 : index
      %37 = vector.load %arg16[%c0_25, %c0_26] : memref<8x1024xf32, #tpu.memory_space<vmem>>, vector<8x1024xf32>
      %38 = arith.maximumf %37, %27 : vector<8x1024xf32>
      %c0_27 = arith.constant 0 : index
      %c0_28 = arith.constant 0 : index
      %39 = vector.load %arg16[%c0_27, %c0_28] : memref<8x1024xf32, #tpu.memory_space<vmem>>, vector<8x1024xf32>
      tpu.vector_store %arg16[%c0_27, %c0_28], %38 {strides = array<i32>} : memref<8x1024xf32, #tpu.memory_space<vmem>>, vector<8x1024xf32>,
    } else {
    }
    %c0_i32_23 = arith.constant 0 : i32
    %34 = arith.cmpi eq, %arg1, %c0_i32_23 : i32
    %35 = arith.extui %34 : i1 to i32
    %c0_i32_24 = arith.constant 0 : i32
    %36 = arith.cmpi ne, %35, %c0_i32_24 : i32
    scf.if %36 {
      %c0_25 = arith.constant 0 : index
      %c0_26 = arith.constant 0 : index
      %37 = vector.load %arg16[%c0_25, %c0_26] : memref<8x1024xf32, #tpu.memory_space<vmem>>, vector<8x1024xf32>
      %cst_27 = arith.constant dense<0xFF800000> : vector<1024xf32>
      %38 = vector.multi_reduction <maximumf>, %37, %cst_27 [0] : vector<8x1024xf32> to vector<1024xf32>
      %39 = vector.shape_cast %38 : vector<1024xf32> to vector<1x1024xf32>
      %40 = arith.truncf %39 : vector<1x1024xf32> to vector<1x1024xbf16>
      %c0_28 = arith.constant 0 : index
      %c0_29 = arith.constant 0 : index
      %41 = vector.load %arg9[%c0_28, %c0_29] : memref<1024x512xbf16, #tpu.memory_space<vmem>>, vector<1024x512xbf16>
      %cst_30 = arith.constant dense<0.000000e+00> : vector<1x512xf32>
      %42 = tpu.matmul %40, %41, %cst_30 {dimension_numbers = #tpu.dot_dimension_numbers<[1], [0], [0], [1], [0, 0, 1, 1], [], []>} : vector<1x1024xbf16>, vector<1024x512xbf16>, vector<1x512xf32> -> vector<1x512xf32>
      %c0_31 = arith.constant 0 : index
      %c0_32 = arith.constant 0 : index
      %43 = vector.load %arg10[%c0_31, %c0_32] : memref<1x512xf32, #tpu.memory_space<vmem>>, vector<1x512xf32>
      %44 = arith.addf %42, %43 : vector<1x512xf32>
      %cst_33 = arith.constant 0.000000e+00 : f32
      %45 = vector.broadcast %cst_33 : f32 to vector<1x512xf32>
      %46 = arith.maximumf %44, %45 : vector<1x512xf32>
      %47 = arith.truncf %46 : vector<1x512xf32> to vector<1x512xbf16>
      %c0_34 = arith.constant 0 : index
      %c0_35 = arith.constant 0 : index
      %48 = vector.load %arg11[%c0_34, %c0_35] : memref<512x256xbf16, #tpu.memory_space<vmem>>, vector<512x256xbf16>
      %cst_36 = arith.constant dense<0.000000e+00> : vector<1x256xf32>
      %49 = tpu.matmul %47, %48, %cst_36 {dimension_numbers = #tpu.dot_dimension_numbers<[1], [0], [0], [1], [0, 0, 1, 1], [], []>} : vector<1x512xbf16>, vector<512x256xbf16>, vector<1x256xf32> -> vector<1x256xf32>
      %c0_37 = arith.constant 0 : index
      %c0_38 = arith.constant 0 : index
      %50 = vector.load %arg12[%c0_37, %c0_38] : memref<1x256xf32, #tpu.memory_space<vmem>>, vector<1x256xf32>
      %51 = arith.addf %49, %50 : vector<1x256xf32>
      %cst_39 = arith.constant 0.000000e+00 : f32
      %52 = vector.broadcast %cst_39 : f32 to vector<1x256xf32>
      %53 = arith.maximumf %51, %52 : vector<1x256xf32>
      %54 = arith.truncf %53 : vector<1x256xf32> to vector<1x256xbf16>
      %c0_40 = arith.constant 0 : index
      %c0_41 = arith.constant 0 : index
      %55 = vector.load %arg13[%c0_40, %c0_41] : memref<256x9xbf16, #tpu.memory_space<vmem>>, vector<256x9xbf16>
      %cst_42 = arith.constant dense<0.000000e+00> : vector<1x9xf32>
      %56 = tpu.matmul %54, %55, %cst_42 {dimension_numbers = #tpu.dot_dimension_numbers<[1], [0], [0], [1], [0, 0, 1, 1], [], []>} : vector<1x256xbf16>, vector<256x9xbf16>, vector<1x9xf32> -> vector<1x9xf32>
      %c0_43 = arith.constant 0 : index
      %c0_44 = arith.constant 0 : index
      %57 = vector.load %arg14[%c0_43, %c0_44] : memref<1x9xf32, #tpu.memory_space<vmem>>, vector<1x9xf32>
      %58 = arith.addf %56, %57 : vector<1x9xf32>
      %c0_45 = arith.constant 0 : index
      %c0_46 = arith.constant 0 : index
      %c0_47 = arith.constant 0 : index
      %59 = vector.load %arg15[%c0_45, %c0_46, %c0_47] : memref<1x1x9xf32, #tpu.memory_space<vmem>>, vector<1x1x9xf32>
      %60 = vector.shape_cast %59 : vector<1x1x9xf32> to vector<1x9xf32>
      %61 = vector.shape_cast %58 : vector<1x9xf32> to vector<1x1x9xf32>
      tpu.vector_store %arg15[%c0_45, %c0_46, %c0_47], %61 {strides = array<i32>} : memref<1x1x9xf32, #tpu.memory_space<vmem>>, vector<1x1x9xf32>,
    } else {
    }
    return
  }
  func.func @transform_0(%arg0: i32, %arg1: i32) -> (i32, i32, i32) {
    %c0_i32 = arith.constant 0 : i32
    %c0_i32_0 = arith.constant 0 : i32
    return %arg0, %arg1, %c0_i32 : i32, i32, i32
  }
  func.func @transform_1(%arg0: i32, %arg1: i32) -> (i32, i32) {
    %c0_i32 = arith.constant 0 : i32
    %c0_i32_0 = arith.constant 0 : i32
    %c0_i32_1 = arith.constant 0 : i32
    return %c0_i32, %c0_i32_0 : i32, i32
  }
  func.func @transform_2(%arg0: i32, %arg1: i32) -> (i32, i32) {
    %c0_i32 = arith.constant 0 : i32
    %c0_i32_0 = arith.constant 0 : i32
    %c0_i32_1 = arith.constant 0 : i32
    return %c0_i32, %c0_i32_0 : i32, i32
  }
  func.func @transform_3(%arg0: i32, %arg1: i32) -> (i32, i32) {
    %c0_i32 = arith.constant 0 : i32
    %c0_i32_0 = arith.constant 0 : i32
    %c0_i32_1 = arith.constant 0 : i32
    return %c0_i32, %c0_i32_0 : i32, i32
  }
  func.func @transform_4(%arg0: i32, %arg1: i32) -> (i32, i32) {
    %c0_i32 = arith.constant 0 : i32
    %c0_i32_0 = arith.constant 0 : i32
    %c0_i32_1 = arith.constant 0 : i32
    return %c0_i32, %c0_i32_0 : i32, i32
  }
  func.func @transform_5(%arg0: i32, %arg1: i32) -> (i32, i32) {
    %c0_i32 = arith.constant 0 : i32
    %c0_i32_0 = arith.constant 0 : i32
    %c0_i32_1 = arith.constant 0 : i32
    return %c0_i32, %c0_i32_0 : i32, i32
  }
  func.func @transform_6(%arg0: i32, %arg1: i32) -> (i32, i32) {
    %c0_i32 = arith.constant 0 : i32
    %c0_i32_0 = arith.constant 0 : i32
    %c0_i32_1 = arith.constant 0 : i32
    return %c0_i32, %c0_i32_0 : i32, i32
  }
  func.func @transform_7(%arg0: i32, %arg1: i32) -> (i32, i32) {
    %c0_i32 = arith.constant 0 : i32
    %c0_i32_0 = arith.constant 0 : i32
    %c0_i32_1 = arith.constant 0 : i32
    return %c0_i32, %c0_i32_0 : i32, i32
  }
  func.func @transform_8(%arg0: i32, %arg1: i32) -> (i32, i32) {
    %c0_i32 = arith.constant 0 : i32
    %c0_i32_0 = arith.constant 0 : i32
    %c0_i32_1 = arith.constant 0 : i32
    return %c0_i32, %c0_i32_0 : i32, i32
  }
  func.func @transform_9(%arg0: i32, %arg1: i32) -> (i32, i32) {
    %c0_i32 = arith.constant 0 : i32
    %c0_i32_0 = arith.constant 0 : i32
    %c0_i32_1 = arith.constant 0 : i32
    return %c0_i32, %c0_i32_0 : i32, i32
  }
  func.func @transform_10(%arg0: i32, %arg1: i32) -> (i32, i32) {
    %c0_i32 = arith.constant 0 : i32
    %c0_i32_0 = arith.constant 0 : i32
    %c0_i32_1 = arith.constant 0 : i32
    return %c0_i32, %c0_i32_0 : i32, i32
  }
  func.func @transform_11(%arg0: i32, %arg1: i32) -> (i32, i32) {
    %c0_i32 = arith.constant 0 : i32
    %c0_i32_0 = arith.constant 0 : i32
    %c0_i32_1 = arith.constant 0 : i32
    return %c0_i32, %c0_i32_0 : i32, i32
  }
  func.func @transform_12(%arg0: i32, %arg1: i32) -> (i32, i32) {
    %c0_i32 = arith.constant 0 : i32
    %c0_i32_0 = arith.constant 0 : i32
    %c0_i32_1 = arith.constant 0 : i32
    return %c0_i32, %c0_i32_0 : i32, i32
  }
  func.func @transform_13(%arg0: i32, %arg1: i32) -> (i32, i32, i32) {
    %c0_i32 = arith.constant 0 : i32
    %c0_i32_0 = arith.constant 0 : i32
    %c0_i32_1 = arith.constant 0 : i32
    return %arg0, %c0_i32, %c0_i32_0 : i32, i32, i32
  }
}

module attributes {stable_mosaic.version = 11 : i64} {
  func.func @_fstn_kernel(%arg0: i32, %arg1: i32, %arg2: memref<1x128x3xf32, #tpu.memory_space<vmem>>, %arg3: memref<1x3x64xbf16, #tpu.memory_space<vmem>>, %arg4: memref<1x64xf32, #tpu.memory_space<vmem>>, %arg5: memref<64x64xbf16, #tpu.memory_space<vmem>>, %arg6: memref<1x64xf32, #tpu.memory_space<vmem>>, %arg7: memref<64x128xbf16, #tpu.memory_space<vmem>>, %arg8: memref<1x128xf32, #tpu.memory_space<vmem>>, %arg9: memref<128x1024xbf16, #tpu.memory_space<vmem>>, %arg10: memref<1x1024xf32, #tpu.memory_space<vmem>>, %arg11: memref<1024x512xbf16, #tpu.memory_space<vmem>>, %arg12: memref<1x512xf32, #tpu.memory_space<vmem>>, %arg13: memref<512x256xbf16, #tpu.memory_space<vmem>>, %arg14: memref<1x256xf32, #tpu.memory_space<vmem>>, %arg15: memref<256x4096xbf16, #tpu.memory_space<vmem>>, %arg16: memref<1x4096xf32, #tpu.memory_space<vmem>>, %arg17: memref<1x1x4096xf32, #tpu.memory_space<vmem>>, %arg18: memref<8x1024xf32, #tpu.memory_space<vmem>>) attributes {dimension_semantics = [#tpu.dimension_semantics<parallel>, #tpu.dimension_semantics<arbitrary>], iteration_bounds = array<i64: 2, 1>, scalar_prefetch = 0 : i64, scratch_operands = 1 : i64, tpu.core_type = #tpu.core_type<tc>, window_params = [{transform_indices = @transform_0, window_bounds = array<i64: 1, 128, 3>}, {transform_indices = @transform_1, window_bounds = array<i64: 1, 3, 64>}, {pipeline_mode = #tpu.pipeline_mode<synchronous>, transform_indices = @transform_2, window_bounds = array<i64: 1, 64>}, {pipeline_mode = #tpu.pipeline_mode<synchronous>, transform_indices = @transform_3, window_bounds = array<i64: 64, 64>}, {pipeline_mode = #tpu.pipeline_mode<synchronous>, transform_indices = @transform_4, window_bounds = array<i64: 1, 64>}, {pipeline_mode = #tpu.pipeline_mode<synchronous>, transform_indices = @transform_5, window_bounds = array<i64: 64, 128>}, {pipeline_mode = #tpu.pipeline_mode<synchronous>, transform_indices = @transform_6, window_bounds = array<i64: 1, 128>}, {pipeline_mode = #tpu.pipeline_mode<synchronous>, transform_indices = @transform_7, window_bounds = array<i64: 128, 1024>}, {pipeline_mode = #tpu.pipeline_mode<synchronous>, transform_indices = @transform_8, window_bounds = array<i64: 1, 1024>}, {pipeline_mode = #tpu.pipeline_mode<synchronous>, transform_indices = @transform_9, window_bounds = array<i64: 1024, 512>}, {pipeline_mode = #tpu.pipeline_mode<synchronous>, transform_indices = @transform_10, window_bounds = array<i64: 1, 512>}, {pipeline_mode = #tpu.pipeline_mode<synchronous>, transform_indices = @transform_11, window_bounds = array<i64: 512, 256>}, {pipeline_mode = #tpu.pipeline_mode<synchronous>, transform_indices = @transform_12, window_bounds = array<i64: 1, 256>}, {pipeline_mode = #tpu.pipeline_mode<synchronous>, transform_indices = @transform_13, window_bounds = array<i64: 256, 4096>}, {pipeline_mode = #tpu.pipeline_mode<synchronous>, transform_indices = @transform_14, window_bounds = array<i64: 1, 4096>}, {transform_indices = @transform_15, window_bounds = array<i64: 1, 1, 4096>}]} {
    %c0 = arith.constant 0 : index
    %c0_0 = arith.constant 0 : index
    %c0_1 = arith.constant 0 : index
    %0 = vector.load %arg2[%c0, %c0_0, %c0_1] : memref<1x128x3xf32, #tpu.memory_space<vmem>>, vector<1x128x3xf32>
    %1 = vector.shape_cast %0 : vector<1x128x3xf32> to vector<128x3xf32>
    %2 = arith.truncf %1 : vector<128x3xf32> to vector<128x3xbf16>
    %c0_2 = arith.constant 0 : index
    %c0_3 = arith.constant 0 : index
    %c0_4 = arith.constant 0 : index
    %3 = vector.load %arg3[%c0_2, %c0_3, %c0_4] : memref<1x3x64xbf16, #tpu.memory_space<vmem>>, vector<1x3x64xbf16>
    %4 = vector.shape_cast %3 : vector<1x3x64xbf16> to vector<3x64xbf16>
    %cst = arith.constant dense<0.000000e+00> : vector<128x64xf32>
    %5 = tpu.matmul %2, %4, %cst {dimension_numbers = #tpu.dot_dimension_numbers<[1], [0], [0], [1], [0, 0, 1, 1], [], []>} : vector<128x3xbf16>, vector<3x64xbf16>, vector<128x64xf32> -> vector<128x64xf32>
    %c0_5 = arith.constant 0 : index
    %c0_6 = arith.constant 0 : index
    %6 = vector.load %arg4[%c0_5, %c0_6] : memref<1x64xf32, #tpu.memory_space<vmem>>, vector<1x64xf32>
    %7 = vector.broadcast %6 : vector<1x64xf32> to vector<128x64xf32>
    %8 = arith.addf %5, %7 : vector<128x64xf32>
    %cst_7 = arith.constant 0.000000e+00 : f32
    %9 = vector.broadcast %cst_7 : f32 to vector<128x64xf32>
    %10 = arith.maximumf %8, %9 : vector<128x64xf32>
    %11 = arith.truncf %10 : vector<128x64xf32> to vector<128x64xbf16>
    %c0_8 = arith.constant 0 : index
    %c0_9 = arith.constant 0 : index
    %12 = vector.load %arg5[%c0_8, %c0_9] : memref<64x64xbf16, #tpu.memory_space<vmem>>, vector<64x64xbf16>
    %cst_10 = arith.constant dense<0.000000e+00> : vector<128x64xf32>
    %13 = tpu.matmul %11, %12, %cst_10 {dimension_numbers = #tpu.dot_dimension_numbers<[1], [0], [0], [1], [0, 0, 1, 1], [], []>} : vector<128x64xbf16>, vector<64x64xbf16>, vector<128x64xf32> -> vector<128x64xf32>
    %c0_11 = arith.constant 0 : index
    %c0_12 = arith.constant 0 : index
    %14 = vector.load %arg6[%c0_11, %c0_12] : memref<1x64xf32, #tpu.memory_space<vmem>>, vector<1x64xf32>
    %15 = vector.broadcast %14 : vector<1x64xf32> to vector<128x64xf32>
    %16 = arith.addf %13, %15 : vector<128x64xf32>
    %cst_13 = arith.constant 0.000000e+00 : f32
    %17 = vector.broadcast %cst_13 : f32 to vector<128x64xf32>
    %18 = arith.maximumf %16, %17 : vector<128x64xf32>
    %19 = arith.truncf %18 : vector<128x64xf32> to vector<128x64xbf16>
    %c0_14 = arith.constant 0 : index
    %c0_15 = arith.constant 0 : index
    %20 = vector.load %arg7[%c0_14, %c0_15] : memref<64x128xbf16, #tpu.memory_space<vmem>>, vector<64x128xbf16>
    %cst_16 = arith.constant dense<0.000000e+00> : vector<128x128xf32>
    %21 = tpu.matmul %19, %20, %cst_16 {dimension_numbers = #tpu.dot_dimension_numbers<[1], [0], [0], [1], [0, 0, 1, 1], [], []>} : vector<128x64xbf16>, vector<64x128xbf16>, vector<128x128xf32> -> vector<128x128xf32>
    %c0_17 = arith.constant 0 : index
    %c0_18 = arith.constant 0 : index
    %22 = vector.load %arg8[%c0_17, %c0_18] : memref<1x128xf32, #tpu.memory_space<vmem>>, vector<1x128xf32>
    %23 = vector.broadcast %22 : vector<1x128xf32> to vector<128x128xf32>
    %24 = arith.addf %21, %23 : vector<128x128xf32>
    %cst_19 = arith.constant 0.000000e+00 : f32
    %25 = vector.broadcast %cst_19 : f32 to vector<128x128xf32>
    %26 = arith.maximumf %24, %25 : vector<128x128xf32>
    %27 = arith.truncf %26 : vector<128x128xf32> to vector<128x128xbf16>
    %c0_20 = arith.constant 0 : index
    %c0_21 = arith.constant 0 : index
    %28 = vector.load %arg9[%c0_20, %c0_21] : memref<128x1024xbf16, #tpu.memory_space<vmem>>, vector<128x1024xbf16>
    %cst_22 = arith.constant dense<0.000000e+00> : vector<128x1024xf32>
    %29 = tpu.matmul %27, %28, %cst_22 {dimension_numbers = #tpu.dot_dimension_numbers<[1], [0], [0], [1], [0, 0, 1, 1], [], []>} : vector<128x128xbf16>, vector<128x1024xbf16>, vector<128x1024xf32> -> vector<128x1024xf32>
    %c0_23 = arith.constant 0 : index
    %c0_24 = arith.constant 0 : index
    %30 = vector.load %arg10[%c0_23, %c0_24] : memref<1x1024xf32, #tpu.memory_space<vmem>>, vector<1x1024xf32>
    %31 = vector.broadcast %30 : vector<1x1024xf32> to vector<128x1024xf32>
    %32 = arith.addf %29, %31 : vector<128x1024xf32>
    %cst_25 = arith.constant 0.000000e+00 : f32
    %33 = vector.broadcast %cst_25 : f32 to vector<128x1024xf32>
    %34 = arith.maximumf %32, %33 : vector<128x1024xf32>
    %35 = vector.shape_cast %34 : vector<128x1024xf32> to vector<16x8x1024xf32>
    %cst_26 = arith.constant dense<0xFF800000> : vector<8x1024xf32>
    %36 = vector.multi_reduction <maximumf>, %35, %cst_26 [0] : vector<16x8x1024xf32> to vector<8x1024xf32>
    %c0_i32 = arith.constant 0 : i32
    %37 = arith.cmpi eq, %arg1, %c0_i32 : i32
    %38 = arith.extui %37 : i1 to i32
    %c0_i32_27 = arith.constant 0 : i32
    %39 = arith.cmpi ne, %38, %c0_i32_27 : i32
    scf.if %39 {
      %c0_32 = arith.constant 0 : index
      %c0_33 = arith.constant 0 : index
      %46 = vector.load %arg18[%c0_32, %c0_33] : memref<8x1024xf32, #tpu.memory_space<vmem>>, vector<8x1024xf32>
      tpu.vector_store %arg18[%c0_32, %c0_33], %36 {strides = array<i32>} : memref<8x1024xf32, #tpu.memory_space<vmem>>, vector<8x1024xf32>,
    } else {
    }
    %c0_i32_28 = arith.constant 0 : i32
    %40 = arith.cmpi sgt, %arg1, %c0_i32_28 : i32
    %41 = arith.extui %40 : i1 to i32
    %c0_i32_29 = arith.constant 0 : i32
    %42 = arith.cmpi ne, %41, %c0_i32_29 : i32
    scf.if %42 {
      %c0_32 = arith.constant 0 : index
      %c0_33 = arith.constant 0 : index
      %46 = vector.load %arg18[%c0_32, %c0_33] : memref<8x1024xf32, #tpu.memory_space<vmem>>, vector<8x1024xf32>
      %47 = arith.maximumf %46, %36 : vector<8x1024xf32>
      %c0_34 = arith.constant 0 : index
      %c0_35 = arith.constant 0 : index
      %48 = vector.load %arg18[%c0_34, %c0_35] : memref<8x1024xf32, #tpu.memory_space<vmem>>, vector<8x1024xf32>
      tpu.vector_store %arg18[%c0_34, %c0_35], %47 {strides = array<i32>} : memref<8x1024xf32, #tpu.memory_space<vmem>>, vector<8x1024xf32>,
    } else {
    }
    %c0_i32_30 = arith.constant 0 : i32
    %43 = arith.cmpi eq, %arg1, %c0_i32_30 : i32
    %44 = arith.extui %43 : i1 to i32
    %c0_i32_31 = arith.constant 0 : i32
    %45 = arith.cmpi ne, %44, %c0_i32_31 : i32
    scf.if %45 {
      %c0_32 = arith.constant 0 : index
      %c0_33 = arith.constant 0 : index
      %46 = vector.load %arg18[%c0_32, %c0_33] : memref<8x1024xf32, #tpu.memory_space<vmem>>, vector<8x1024xf32>
      %cst_34 = arith.constant dense<0xFF800000> : vector<1024xf32>
      %47 = vector.multi_reduction <maximumf>, %46, %cst_34 [0] : vector<8x1024xf32> to vector<1024xf32>
      %48 = vector.shape_cast %47 : vector<1024xf32> to vector<1x1024xf32>
      %49 = arith.truncf %48 : vector<1x1024xf32> to vector<1x1024xbf16>
      %c0_35 = arith.constant 0 : index
      %c0_36 = arith.constant 0 : index
      %50 = vector.load %arg11[%c0_35, %c0_36] : memref<1024x512xbf16, #tpu.memory_space<vmem>>, vector<1024x512xbf16>
      %cst_37 = arith.constant dense<0.000000e+00> : vector<1x512xf32>
      %51 = tpu.matmul %49, %50, %cst_37 {dimension_numbers = #tpu.dot_dimension_numbers<[1], [0], [0], [1], [0, 0, 1, 1], [], []>} : vector<1x1024xbf16>, vector<1024x512xbf16>, vector<1x512xf32> -> vector<1x512xf32>
      %c0_38 = arith.constant 0 : index
      %c0_39 = arith.constant 0 : index
      %52 = vector.load %arg12[%c0_38, %c0_39] : memref<1x512xf32, #tpu.memory_space<vmem>>, vector<1x512xf32>
      %53 = arith.addf %51, %52 : vector<1x512xf32>
      %cst_40 = arith.constant 0.000000e+00 : f32
      %54 = vector.broadcast %cst_40 : f32 to vector<1x512xf32>
      %55 = arith.maximumf %53, %54 : vector<1x512xf32>
      %56 = arith.truncf %55 : vector<1x512xf32> to vector<1x512xbf16>
      %c0_41 = arith.constant 0 : index
      %c0_42 = arith.constant 0 : index
      %57 = vector.load %arg13[%c0_41, %c0_42] : memref<512x256xbf16, #tpu.memory_space<vmem>>, vector<512x256xbf16>
      %cst_43 = arith.constant dense<0.000000e+00> : vector<1x256xf32>
      %58 = tpu.matmul %56, %57, %cst_43 {dimension_numbers = #tpu.dot_dimension_numbers<[1], [0], [0], [1], [0, 0, 1, 1], [], []>} : vector<1x512xbf16>, vector<512x256xbf16>, vector<1x256xf32> -> vector<1x256xf32>
      %c0_44 = arith.constant 0 : index
      %c0_45 = arith.constant 0 : index
      %59 = vector.load %arg14[%c0_44, %c0_45] : memref<1x256xf32, #tpu.memory_space<vmem>>, vector<1x256xf32>
      %60 = arith.addf %58, %59 : vector<1x256xf32>
      %cst_46 = arith.constant 0.000000e+00 : f32
      %61 = vector.broadcast %cst_46 : f32 to vector<1x256xf32>
      %62 = arith.maximumf %60, %61 : vector<1x256xf32>
      %63 = arith.truncf %62 : vector<1x256xf32> to vector<1x256xbf16>
      %c0_47 = arith.constant 0 : index
      %c0_48 = arith.constant 0 : index
      %64 = vector.load %arg15[%c0_47, %c0_48] : memref<256x4096xbf16, #tpu.memory_space<vmem>>, vector<256x4096xbf16>
      %cst_49 = arith.constant dense<0.000000e+00> : vector<1x4096xf32>
      %65 = tpu.matmul %63, %64, %cst_49 {dimension_numbers = #tpu.dot_dimension_numbers<[1], [0], [0], [1], [0, 0, 1, 1], [], []>} : vector<1x256xbf16>, vector<256x4096xbf16>, vector<1x4096xf32> -> vector<1x4096xf32>
      %c0_50 = arith.constant 0 : index
      %c0_51 = arith.constant 0 : index
      %66 = vector.load %arg16[%c0_50, %c0_51] : memref<1x4096xf32, #tpu.memory_space<vmem>>, vector<1x4096xf32>
      %67 = arith.addf %65, %66 : vector<1x4096xf32>
      %c0_52 = arith.constant 0 : index
      %c0_53 = arith.constant 0 : index
      %c0_54 = arith.constant 0 : index
      %68 = vector.load %arg17[%c0_52, %c0_53, %c0_54] : memref<1x1x4096xf32, #tpu.memory_space<vmem>>, vector<1x1x4096xf32>
      %69 = vector.shape_cast %68 : vector<1x1x4096xf32> to vector<1x4096xf32>
      %70 = vector.shape_cast %67 : vector<1x4096xf32> to vector<1x1x4096xf32>
      tpu.vector_store %arg17[%c0_52, %c0_53, %c0_54], %70 {strides = array<i32>} : memref<1x1x4096xf32, #tpu.memory_space<vmem>>, vector<1x1x4096xf32>,
    } else {
    }
    return
  }
  func.func @transform_0(%arg0: i32, %arg1: i32) -> (i32, i32, i32) {
    %c0_i32 = arith.constant 0 : i32
    %c0_i32_0 = arith.constant 0 : i32
    return %arg0, %arg1, %c0_i32 : i32, i32, i32
  }
  func.func @transform_1(%arg0: i32, %arg1: i32) -> (i32, i32, i32) {
    %c0_i32 = arith.constant 0 : i32
    %c0_i32_0 = arith.constant 0 : i32
    %c0_i32_1 = arith.constant 0 : i32
    return %arg0, %c0_i32, %c0_i32_0 : i32, i32, i32
  }
  func.func @transform_2(%arg0: i32, %arg1: i32) -> (i32, i32) {
    %c0_i32 = arith.constant 0 : i32
    %c0_i32_0 = arith.constant 0 : i32
    %c0_i32_1 = arith.constant 0 : i32
    return %c0_i32, %c0_i32_0 : i32, i32
  }
  func.func @transform_3(%arg0: i32, %arg1: i32) -> (i32, i32) {
    %c0_i32 = arith.constant 0 : i32
    %c0_i32_0 = arith.constant 0 : i32
    %c0_i32_1 = arith.constant 0 : i32
    return %c0_i32, %c0_i32_0 : i32, i32
  }
  func.func @transform_4(%arg0: i32, %arg1: i32) -> (i32, i32) {
    %c0_i32 = arith.constant 0 : i32
    %c0_i32_0 = arith.constant 0 : i32
    %c0_i32_1 = arith.constant 0 : i32
    return %c0_i32, %c0_i32_0 : i32, i32
  }
  func.func @transform_5(%arg0: i32, %arg1: i32) -> (i32, i32) {
    %c0_i32 = arith.constant 0 : i32
    %c0_i32_0 = arith.constant 0 : i32
    %c0_i32_1 = arith.constant 0 : i32
    return %c0_i32, %c0_i32_0 : i32, i32
  }
  func.func @transform_6(%arg0: i32, %arg1: i32) -> (i32, i32) {
    %c0_i32 = arith.constant 0 : i32
    %c0_i32_0 = arith.constant 0 : i32
    %c0_i32_1 = arith.constant 0 : i32
    return %c0_i32, %c0_i32_0 : i32, i32
  }
  func.func @transform_7(%arg0: i32, %arg1: i32) -> (i32, i32) {
    %c0_i32 = arith.constant 0 : i32
    %c0_i32_0 = arith.constant 0 : i32
    %c0_i32_1 = arith.constant 0 : i32
    return %c0_i32, %c0_i32_0 : i32, i32
  }
  func.func @transform_8(%arg0: i32, %arg1: i32) -> (i32, i32) {
    %c0_i32 = arith.constant 0 : i32
    %c0_i32_0 = arith.constant 0 : i32
    %c0_i32_1 = arith.constant 0 : i32
    return %c0_i32, %c0_i32_0 : i32, i32
  }
  func.func @transform_9(%arg0: i32, %arg1: i32) -> (i32, i32) {
    %c0_i32 = arith.constant 0 : i32
    %c0_i32_0 = arith.constant 0 : i32
    %c0_i32_1 = arith.constant 0 : i32
    return %c0_i32, %c0_i32_0 : i32, i32
  }
  func.func @transform_10(%arg0: i32, %arg1: i32) -> (i32, i32) {
    %c0_i32 = arith.constant 0 : i32
    %c0_i32_0 = arith.constant 0 : i32
    %c0_i32_1 = arith.constant 0 : i32
    return %c0_i32, %c0_i32_0 : i32, i32
  }
  func.func @transform_11(%arg0: i32, %arg1: i32) -> (i32, i32) {
    %c0_i32 = arith.constant 0 : i32
    %c0_i32_0 = arith.constant 0 : i32
    %c0_i32_1 = arith.constant 0 : i32
    return %c0_i32, %c0_i32_0 : i32, i32
  }
  func.func @transform_12(%arg0: i32, %arg1: i32) -> (i32, i32) {
    %c0_i32 = arith.constant 0 : i32
    %c0_i32_0 = arith.constant 0 : i32
    %c0_i32_1 = arith.constant 0 : i32
    return %c0_i32, %c0_i32_0 : i32, i32
  }
  func.func @transform_13(%arg0: i32, %arg1: i32) -> (i32, i32) {
    %c0_i32 = arith.constant 0 : i32
    %c0_i32_0 = arith.constant 0 : i32
    %c0_i32_1 = arith.constant 0 : i32
    return %c0_i32, %c0_i32_0 : i32, i32
  }
  func.func @transform_14(%arg0: i32, %arg1: i32) -> (i32, i32) {
    %c0_i32 = arith.constant 0 : i32
    %c0_i32_0 = arith.constant 0 : i32
    %c0_i32_1 = arith.constant 0 : i32
    return %c0_i32, %c0_i32_0 : i32, i32
  }
  func.func @transform_15(%arg0: i32, %arg1: i32) -> (i32, i32, i32) {
    %c0_i32 = arith.constant 0 : i32
    %c0_i32_0 = arith.constant 0 : i32
    %c0_i32_1 = arith.constant 0 : i32
    return %arg0, %c0_i32, %c0_i32_0 : i32, i32, i32
  }
}

module attributes {stable_mosaic.version = 11 : i64} {
  func.func @_trunk_kernel(%arg0: i32, %arg1: i32, %arg2: memref<1x128x3xf32, #tpu.memory_space<vmem>>, %arg3: memref<1x3x64xbf16, #tpu.memory_space<vmem>>, %arg4: memref<1x64xf32, #tpu.memory_space<vmem>>, %arg5: memref<1x64x128xbf16, #tpu.memory_space<vmem>>, %arg6: memref<1x128xf32, #tpu.memory_space<vmem>>, %arg7: memref<128x1024xbf16, #tpu.memory_space<vmem>>, %arg8: memref<1x1024xf32, #tpu.memory_space<vmem>>, %arg9: memref<1x1x1024xf32, #tpu.memory_space<vmem>>, %arg10: memref<8x1024xf32, #tpu.memory_space<vmem>>) attributes {dimension_semantics = [#tpu.dimension_semantics<parallel>, #tpu.dimension_semantics<arbitrary>], iteration_bounds = array<i64: 2, 1>, scalar_prefetch = 0 : i64, scratch_operands = 1 : i64, tpu.core_type = #tpu.core_type<tc>, window_params = [{transform_indices = @transform_0, window_bounds = array<i64: 1, 128, 3>}, {transform_indices = @transform_1, window_bounds = array<i64: 1, 3, 64>}, {pipeline_mode = #tpu.pipeline_mode<synchronous>, transform_indices = @transform_2, window_bounds = array<i64: 1, 64>}, {transform_indices = @transform_3, window_bounds = array<i64: 1, 64, 128>}, {pipeline_mode = #tpu.pipeline_mode<synchronous>, transform_indices = @transform_4, window_bounds = array<i64: 1, 128>}, {pipeline_mode = #tpu.pipeline_mode<synchronous>, transform_indices = @transform_5, window_bounds = array<i64: 128, 1024>}, {pipeline_mode = #tpu.pipeline_mode<synchronous>, transform_indices = @transform_6, window_bounds = array<i64: 1, 1024>}, {transform_indices = @transform_7, window_bounds = array<i64: 1, 1, 1024>}]} {
    %c0 = arith.constant 0 : index
    %c0_0 = arith.constant 0 : index
    %c0_1 = arith.constant 0 : index
    %0 = vector.load %arg2[%c0, %c0_0, %c0_1] : memref<1x128x3xf32, #tpu.memory_space<vmem>>, vector<1x128x3xf32>
    %1 = vector.shape_cast %0 : vector<1x128x3xf32> to vector<128x3xf32>
    %2 = arith.truncf %1 : vector<128x3xf32> to vector<128x3xbf16>
    %c0_2 = arith.constant 0 : index
    %c0_3 = arith.constant 0 : index
    %c0_4 = arith.constant 0 : index
    %3 = vector.load %arg3[%c0_2, %c0_3, %c0_4] : memref<1x3x64xbf16, #tpu.memory_space<vmem>>, vector<1x3x64xbf16>
    %4 = vector.shape_cast %3 : vector<1x3x64xbf16> to vector<3x64xbf16>
    %cst = arith.constant dense<0.000000e+00> : vector<128x64xf32>
    %5 = tpu.matmul %2, %4, %cst {dimension_numbers = #tpu.dot_dimension_numbers<[1], [0], [0], [1], [0, 0, 1, 1], [], []>} : vector<128x3xbf16>, vector<3x64xbf16>, vector<128x64xf32> -> vector<128x64xf32>
    %c0_5 = arith.constant 0 : index
    %c0_6 = arith.constant 0 : index
    %6 = vector.load %arg4[%c0_5, %c0_6] : memref<1x64xf32, #tpu.memory_space<vmem>>, vector<1x64xf32>
    %7 = vector.broadcast %6 : vector<1x64xf32> to vector<128x64xf32>
    %8 = arith.addf %5, %7 : vector<128x64xf32>
    %cst_7 = arith.constant 0.000000e+00 : f32
    %9 = vector.broadcast %cst_7 : f32 to vector<128x64xf32>
    %10 = arith.maximumf %8, %9 : vector<128x64xf32>
    %11 = arith.truncf %10 : vector<128x64xf32> to vector<128x64xbf16>
    %c0_8 = arith.constant 0 : index
    %c0_9 = arith.constant 0 : index
    %c0_10 = arith.constant 0 : index
    %12 = vector.load %arg5[%c0_8, %c0_9, %c0_10] : memref<1x64x128xbf16, #tpu.memory_space<vmem>>, vector<1x64x128xbf16>
    %13 = vector.shape_cast %12 : vector<1x64x128xbf16> to vector<64x128xbf16>
    %cst_11 = arith.constant dense<0.000000e+00> : vector<128x128xf32>
    %14 = tpu.matmul %11, %13, %cst_11 {dimension_numbers = #tpu.dot_dimension_numbers<[1], [0], [0], [1], [0, 0, 1, 1], [], []>} : vector<128x64xbf16>, vector<64x128xbf16>, vector<128x128xf32> -> vector<128x128xf32>
    %c0_12 = arith.constant 0 : index
    %c0_13 = arith.constant 0 : index
    %15 = vector.load %arg6[%c0_12, %c0_13] : memref<1x128xf32, #tpu.memory_space<vmem>>, vector<1x128xf32>
    %16 = vector.broadcast %15 : vector<1x128xf32> to vector<128x128xf32>
    %17 = arith.addf %14, %16 : vector<128x128xf32>
    %cst_14 = arith.constant 0.000000e+00 : f32
    %18 = vector.broadcast %cst_14 : f32 to vector<128x128xf32>
    %19 = arith.maximumf %17, %18 : vector<128x128xf32>
    %20 = arith.truncf %19 : vector<128x128xf32> to vector<128x128xbf16>
    %c0_15 = arith.constant 0 : index
    %c0_16 = arith.constant 0 : index
    %21 = vector.load %arg7[%c0_15, %c0_16] : memref<128x1024xbf16, #tpu.memory_space<vmem>>, vector<128x1024xbf16>
    %cst_17 = arith.constant dense<0.000000e+00> : vector<128x1024xf32>
    %22 = tpu.matmul %20, %21, %cst_17 {dimension_numbers = #tpu.dot_dimension_numbers<[1], [0], [0], [1], [0, 0, 1, 1], [], []>} : vector<128x128xbf16>, vector<128x1024xbf16>, vector<128x1024xf32> -> vector<128x1024xf32>
    %c0_18 = arith.constant 0 : index
    %c0_19 = arith.constant 0 : index
    %23 = vector.load %arg8[%c0_18, %c0_19] : memref<1x1024xf32, #tpu.memory_space<vmem>>, vector<1x1024xf32>
    %24 = vector.broadcast %23 : vector<1x1024xf32> to vector<128x1024xf32>
    %25 = arith.addf %22, %24 : vector<128x1024xf32>
    %26 = vector.shape_cast %25 : vector<128x1024xf32> to vector<16x8x1024xf32>
    %cst_20 = arith.constant dense<0xFF800000> : vector<8x1024xf32>
    %27 = vector.multi_reduction <maximumf>, %26, %cst_20 [0] : vector<16x8x1024xf32> to vector<8x1024xf32>
    %c0_i32 = arith.constant 0 : i32
    %28 = arith.cmpi eq, %arg1, %c0_i32 : i32
    %29 = arith.extui %28 : i1 to i32
    %c0_i32_21 = arith.constant 0 : i32
    %30 = arith.cmpi ne, %29, %c0_i32_21 : i32
    scf.if %30 {
      %c0_26 = arith.constant 0 : index
      %c0_27 = arith.constant 0 : index
      %37 = vector.load %arg10[%c0_26, %c0_27] : memref<8x1024xf32, #tpu.memory_space<vmem>>, vector<8x1024xf32>
      tpu.vector_store %arg10[%c0_26, %c0_27], %27 {strides = array<i32>} : memref<8x1024xf32, #tpu.memory_space<vmem>>, vector<8x1024xf32>,
    } else {
    }
    %c0_i32_22 = arith.constant 0 : i32
    %31 = arith.cmpi sgt, %arg1, %c0_i32_22 : i32
    %32 = arith.extui %31 : i1 to i32
    %c0_i32_23 = arith.constant 0 : i32
    %33 = arith.cmpi ne, %32, %c0_i32_23 : i32
    scf.if %33 {
      %c0_26 = arith.constant 0 : index
      %c0_27 = arith.constant 0 : index
      %37 = vector.load %arg10[%c0_26, %c0_27] : memref<8x1024xf32, #tpu.memory_space<vmem>>, vector<8x1024xf32>
      %38 = arith.maximumf %37, %27 : vector<8x1024xf32>
      %c0_28 = arith.constant 0 : index
      %c0_29 = arith.constant 0 : index
      %39 = vector.load %arg10[%c0_28, %c0_29] : memref<8x1024xf32, #tpu.memory_space<vmem>>, vector<8x1024xf32>
      tpu.vector_store %arg10[%c0_28, %c0_29], %38 {strides = array<i32>} : memref<8x1024xf32, #tpu.memory_space<vmem>>, vector<8x1024xf32>,
    } else {
    }
    %c0_i32_24 = arith.constant 0 : i32
    %34 = arith.cmpi eq, %arg1, %c0_i32_24 : i32
    %35 = arith.extui %34 : i1 to i32
    %c0_i32_25 = arith.constant 0 : i32
    %36 = arith.cmpi ne, %35, %c0_i32_25 : i32
    scf.if %36 {
      %c0_26 = arith.constant 0 : index
      %c0_27 = arith.constant 0 : index
      %37 = vector.load %arg10[%c0_26, %c0_27] : memref<8x1024xf32, #tpu.memory_space<vmem>>, vector<8x1024xf32>
      %cst_28 = arith.constant dense<0xFF800000> : vector<1024xf32>
      %38 = vector.multi_reduction <maximumf>, %37, %cst_28 [0] : vector<8x1024xf32> to vector<1024xf32>
      %39 = vector.shape_cast %38 : vector<1024xf32> to vector<1x1024xf32>
      %c0_29 = arith.constant 0 : index
      %c0_30 = arith.constant 0 : index
      %c0_31 = arith.constant 0 : index
      %40 = vector.load %arg9[%c0_29, %c0_30, %c0_31] : memref<1x1x1024xf32, #tpu.memory_space<vmem>>, vector<1x1x1024xf32>
      %41 = vector.shape_cast %40 : vector<1x1x1024xf32> to vector<1x1024xf32>
      %42 = vector.shape_cast %39 : vector<1x1024xf32> to vector<1x1x1024xf32>
      tpu.vector_store %arg9[%c0_29, %c0_30, %c0_31], %42 {strides = array<i32>} : memref<1x1x1024xf32, #tpu.memory_space<vmem>>, vector<1x1x1024xf32>,
    } else {
    }
    return
  }
  func.func @transform_0(%arg0: i32, %arg1: i32) -> (i32, i32, i32) {
    %c0_i32 = arith.constant 0 : i32
    %c0_i32_0 = arith.constant 0 : i32
    return %arg0, %arg1, %c0_i32 : i32, i32, i32
  }
  func.func @transform_1(%arg0: i32, %arg1: i32) -> (i32, i32, i32) {
    %c0_i32 = arith.constant 0 : i32
    %c0_i32_0 = arith.constant 0 : i32
    %c0_i32_1 = arith.constant 0 : i32
    return %arg0, %c0_i32, %c0_i32_0 : i32, i32, i32
  }
  func.func @transform_2(%arg0: i32, %arg1: i32) -> (i32, i32) {
    %c0_i32 = arith.constant 0 : i32
    %c0_i32_0 = arith.constant 0 : i32
    %c0_i32_1 = arith.constant 0 : i32
    return %c0_i32, %c0_i32_0 : i32, i32
  }
  func.func @transform_3(%arg0: i32, %arg1: i32) -> (i32, i32, i32) {
    %c0_i32 = arith.constant 0 : i32
    %c0_i32_0 = arith.constant 0 : i32
    %c0_i32_1 = arith.constant 0 : i32
    return %arg0, %c0_i32, %c0_i32_0 : i32, i32, i32
  }
  func.func @transform_4(%arg0: i32, %arg1: i32) -> (i32, i32) {
    %c0_i32 = arith.constant 0 : i32
    %c0_i32_0 = arith.constant 0 : i32
    %c0_i32_1 = arith.constant 0 : i32
    return %c0_i32, %c0_i32_0 : i32, i32
  }
  func.func @transform_5(%arg0: i32, %arg1: i32) -> (i32, i32) {
    %c0_i32 = arith.constant 0 : i32
    %c0_i32_0 = arith.constant 0 : i32
    %c0_i32_1 = arith.constant 0 : i32
    return %c0_i32, %c0_i32_0 : i32, i32
  }
  func.func @transform_6(%arg0: i32, %arg1: i32) -> (i32, i32) {
    %c0_i32 = arith.constant 0 : i32
    %c0_i32_0 = arith.constant 0 : i32
    %c0_i32_1 = arith.constant 0 : i32
    return %c0_i32, %c0_i32_0 : i32, i32
  }
  func.func @transform_7(%arg0: i32, %arg1: i32) -> (i32, i32, i32) {
    %c0_i32 = arith.constant 0 : i32
    %c0_i32_0 = arith.constant 0 : i32
    %c0_i32_1 = arith.constant 0 : i32
    return %arg0, %c0_i32, %c0_i32_0 : i32, i32, i32
  }
}

</mosaic_0001>

<bundles_post_ra>
// kernel: pointnet_encoder.3
= control target key start
LH: loop header
LB: loop body
LE: loop exit
PB: predicated region body
PF: predicated region fallthrough
CT: control target
= control target key end

     0   :  { %s7370_s0 = inlined_call_operand.vmem [shape: f32[2,128,3], index: 0, kind: input, shape index: {}]   ;;  %s7371_s1 = inlined_call_operand.hbm [shape: bf16[3,64], index: 1, kind: input, shape index: {}]   ;;  %s7372_s2 = inlined_call_operand.hbm [shape: f32[1,64], index: 2, kind: input, shape index: {}]   ;;  %s7373_s3 = inlined_call_operand.hbm [shape: bf16[64,128], index: 3, kind: input, shape index: {}]   ;;  %s7374_s4 = inlined_call_operand.hbm [shape: f32[1,128], index: 4, kind: input, shape index: {}]   ;;  %s7375_s5 = inlined_call_operand.hbm [shape: bf16[128,1024], index: 5, kind: input, shape index: {}]   ;;  %s7376_s6 = inlined_call_operand.hbm [shape: f32[1,1024], index: 6, kind: input, shape index: {}]   ;;  %s7377_s7 = inlined_call_operand.hbm [shape: bf16[1024,512], index: 7, kind: input, shape index: {}]   ;;  %s7378_s8 = inlined_call_operand.hbm [shape: f32[1,512], index: 8, kind: input, shape index: {}]   ;;  %s7379_s9 = inlined_call_operand.hbm [shape: bf16[512,256], index: 9, kind: input, shape index: {}]   ;;  %s7380_s10 = inlined_call_operand.hbm [shape: f32[1,256], index: 10, kind: input, shape index: {}]   ;;  %s7381_s11 = inlined_call_operand.vmem [shape: bf16[256,9], index: 11, kind: input, shape index: {}]   ;;  %s7382_s12 = inlined_call_operand.hbm [shape: f32[1,9], index: 12, kind: input, shape index: {}]   ;;  %s7383_s13 = inlined_call_operand.vmem [shape: f32[2,1,9], index: 13, kind: output, shape index: {}]  }
   0x1   :  { %7389 = sst [smem:[#allocation27_spill]] %s7371_s1 }
   0x2   :  { %7390 = sst [smem:[#allocation28_spill]] %s7372_s2 }
   0x3   :  { %7391 = sst [smem:[#allocation29_spill]] %s7381_s11 }
   0x4   :  { %7392 = sst [smem:[#allocation30_spill]] %s7383_s13 }
   0x5   :  { %18 = vsyncpa [#allocation4], 0 }
   0x6   :  { %19 = vsyncpa [#allocation6], 0 }
   0x7   :  { %20 = vsyncpa [#allocation9], 0 }
   0x8   :  { %21 = vsyncpa [#allocation12], 0 }
   0x9   :  { %22 = vsyncpa [#allocation15], 0 }
   0xa   :  { %23 = vsyncpa [#allocation18], 0  ;;  %s6612_s25 = smov 0   ;;  %s6614_s26 = smov 0  }
   0xb   :  { %s6616_s27 = smov 0  }
   0xc LB: > { %7393 = sst [smem:[#allocation26_spill]] %s6519_s27  ;;  %s6521_s28 = smov [#allocation5]   ;;  %s6519_s27 = sphi %s6616_s27, %s29_s27   ;;  %s6515_s26 = sphi %s6614_s26, %s7406_s26   ;;  %s6511_s25 = sphi %s6612_s25, %s7405_s25  }
   0xd   : > { %s376_s29 = sshll.u32 %s6521_s28, 4  ;;  %s4931_s30 = sadd.s32 4294967295, %s6519_s27   ;;  %s6634_s29 = int_to_ptr.vmem [resolvable:$true] %s376_s29 }
   0xe   : > { %p4933_p0 = scmp.ge.s32.totalorder %s6519_s27, 1  ;;  %p352_p1 = scmp.lt.s32.totalorder %s6519_s27, 3 }
   0xf   : > { %p6630_p2 = scmp.eq.s32.totalorder %s4931_s30, 0  ;;  %s6522_s16 = smov [#allocation8]  }
  0x10   : > { %p6636_p3 = pnand %p4933_p0, %p352_p1  ;;  %s400_s17 = sshll.u32 %s6522_s16, 4  ;;  %s6642_s17 = int_to_ptr.vmem [resolvable:$true] %s400_s17 }
  0x11   : > { %s7394_s14 = scalar_select %p6630_p2, 1, 0 }
  0x12   : > { %s7395_s15 = scalar_select %p6636_p3, 1, 0 }
  0x13   : > { %p5564_p4 = pneg %p6636_p3  ;;  %s6523_s18 = smov [#allocation11]  }
  0x14   : > { %s424_s19 = sshll.u32 %s6523_s18, 4  ;;  %s6524_s21 = smov [#allocation14]   ;;  %s6650_s19 = int_to_ptr.vmem [resolvable:$true] %s424_s19 }
  0x15   : > { %p6646_p5 = pnand %p6630_p2, %p5564_p4  ;;  %s448_s22 = sshll.u32 %s6524_s21, 4  ;;  %s6652_s22 = int_to_ptr.vmem [resolvable:$true] %s448_s22 }
  0x16   : > { %s7397_s2 = sld [smem:[#allocation28_spill]] }
  0x17   : > { %p6662_p7 = pneg %p6646_p5 }
  0x1c   : > { %s6165_s28 = scalar_lea.hbm %s7397_s2, 16 }
  0x1d   : > { %p6166_p6 = scmp.ne.s32.totalorder %s7397_s2, %s6165_s28  ;;  %p6172_p10 = scmp.lt.u32.totalorder %s6165_s28, %s7397_s2 }
  0x1f   : > { %p6168_p8 = pnand %p6662_p7, %p6166_p6 }
  0x21   : > { %p6169_p9 = pneg %p6168_p8 }
  0x23   : > { %p6174_p11 = pnand %p6172_p10, %p6169_p9 }
  0x25   : > { %6177 = shalt.err (!%p6174_p11)
}
  0x26   : > { %s6178_s23 = scalar_lea.vmem %s6634_s29, 16  ;;  %s6185_s24 = scalar_lea.vmem %s6634_s29, 32 }
  0x27   : > { %p6179_p12 = scmp.ne.s32.totalorder %s6634_s29, %s6178_s23  ;;  %p6186_p1 = scmp.lt.s32.totalorder %s6634_s29, %s6634_s29 }
  0x28   : > { %p6187_p4 = scmp.lt.s32.totalorder %s6185_s24, %s6178_s23 }
  0x29   : > { %p6181_p13 = pnand %p6179_p12, %p6662_p7 }
  0x2a   : > { %p6188_p6 = por %p6187_p4, %p6186_p1 }
  0x2b   : > { %p6182_p0 = pneg %p6181_p13 }
  0x2d   : > { %p6189_p8 = pnand %p6188_p6, %p6182_p0 }
  0x2f   : > { %6192 = shalt.err (!%p6189_p8)
}
  0x30   : > { %5570 = dma.hbm_to_vmem [thread:$0]  (!%p6646_p5), %s7397_s2, 16, %s6634_s29, [#allocation6]  }
  0x31   : > { %s6193_s21 = scalar_lea.hbm %s7374_s4, 16 }
  0x32   : > { %p6194_p9 = scmp.ne.s32.totalorder %s7374_s4, %s6193_s21  ;;  %p6200_p12 = scmp.lt.u32.totalorder %s6193_s21, %s7374_s4 }
  0x34   : > { %p6196_p10 = pnand %p6194_p9, %p6662_p7 }
  0x36   : > { %p6197_p11 = pneg %p6196_p10 }
  0x38   : > { %p6202_p13 = pnand %p6200_p12, %p6197_p11 }
  0x3a   : > { %6205 = shalt.err (!%p6202_p13)
}
  0x3b   : > { %s6206_s29 = scalar_lea.vmem %s6642_s17, 16  ;;  %s6213_s11 = scalar_lea.vmem %s6642_s17, 32 }
  0x3c   : > { %p6207_p0 = scmp.ne.s32.totalorder %s6642_s17, %s6206_s29  ;;  %p6214_p6 = scmp.lt.s32.totalorder %s6642_s17, %s6642_s17 }
  0x3d   : > { %p6215_p8 = scmp.lt.s32.totalorder %s6213_s11, %s6206_s29 }
  0x3e   : > { %p6209_p1 = pnand %p6207_p0, %p6662_p7 }
  0x3f   : > { %p6216_p9 = por %p6215_p8, %p6214_p6 }
  0x40   : > { %p6210_p4 = pneg %p6209_p1 }
  0x42   : > { %p6217_p10 = pnand %p6216_p9, %p6210_p4 }
  0x44   : > { %6220 = shalt.err (!%p6217_p10)
}
  0x45   : > { %5576 = dma.hbm_to_vmem [thread:$0]  (!%p6646_p5), %s7374_s4, 16, %s6642_s17, [#allocation9]  }
  0x46   : > { %s6221_s16 = scalar_lea.hbm %s7376_s6, 128 }
  0x47   : > { %p6222_p11 = scmp.ne.s32.totalorder %s7376_s6, %s6221_s16  ;;  %p6228_p0 = scmp.lt.u32.totalorder %s6221_s16, %s7376_s6 }
  0x49   : > { %p6224_p12 = pnand %p6222_p11, %p6662_p7 }
  0x4b   : > { %p6225_p13 = pneg %p6224_p12 }
  0x4d   : > { %p6230_p1 = pnand %p6228_p0, %p6225_p13 }
  0x4f   : > { %6233 = shalt.err (!%p6230_p1)
}
  0x50   : > { %s6234_s17 = scalar_lea.vmem %s6650_s19, 128  ;;  %p6242_p9 = scmp.lt.s32.totalorder %s6650_s19, %s6650_s19 }
  0x51   : > { %p6235_p4 = scmp.ne.s32.totalorder %s6650_s19, %s6234_s17  ;;  %p6243_p10 = scmp.lt.s32.totalorder %s6234_s17, %s6234_s17 }
  0x53   : > { %p6237_p6 = pnand %p6235_p4, %p6662_p7  ;;  %p6244_p11 = por %p6243_p10, %p6242_p9 }
  0x55   : > { %p6238_p8 = pneg %p6237_p6 }
  0x57   : > { %p6245_p12 = pnand %p6244_p11, %p6238_p8 }
  0x59   : > { %6248 = shalt.err (!%p6245_p12)
}
  0x5a   : > { %5582 = dma.hbm_to_vmem [thread:$0]  (!%p6646_p5), %s7376_s6, 128, %s6650_s19, [#allocation12]  }
  0x5b   : > { %s6249_s30 = scalar_lea.hbm %s7378_s8, 64 }
  0x5c   : > { %p6250_p13 = scmp.ne.s32.totalorder %s7378_s8, %s6249_s30  ;;  %p6256_p4 = scmp.lt.u32.totalorder %s6249_s30, %s7378_s8 }
  0x5e   : > { %p6252_p0 = pnand %p6250_p13, %p6662_p7 }
  0x60   : > { %p6253_p1 = pneg %p6252_p0 }
  0x62   : > { %p6258_p6 = pnand %p6256_p4, %p6253_p1 }
  0x64   : > { %6261 = shalt.err (!%p6258_p6)
}
  0x65   : > { %s6262_s19 = scalar_lea.vmem %s6652_s22, 64  ;;  %p6270_p11 = scmp.lt.s32.totalorder %s6652_s22, %s6652_s22 }
  0x66   : > { %p6263_p8 = scmp.ne.s32.totalorder %s6652_s22, %s6262_s19  ;;  %p6271_p12 = scmp.lt.s32.totalorder %s6262_s19, %s6262_s19 }
  0x68   : > { %p6265_p9 = pnand %p6263_p8, %p6662_p7  ;;  %p6272_p13 = por %p6271_p12, %p6270_p11 }
  0x6a   : > { %p6266_p10 = pneg %p6265_p9 }
  0x6c   : > { %p6273_p0 = pnand %p6272_p13, %p6266_p10 }
  0x6e   : > { %6276 = shalt.err (!%p6273_p0)
}
  0x6f   : > { %5588 = dma.hbm_to_vmem [thread:$0]  (!%p6646_p5), %s7378_s8, 64, %s6652_s22, [#allocation15]  }
  0x70   : > { %s6525_s11 = smov [#allocation17]   ;;  %s6277_s30 = scalar_lea.hbm %s7380_s10, 32 }
  0x71   : > { %s472_s13 = sshll.u32 %s6525_s11, 4  ;;  %p6278_p1 = scmp.ne.s32.totalorder %s7380_s10, %s6277_s30  ;;  %s473_s13 = int_to_ptr.vmem [resolvable:$true] %s472_s13 }
  0x72   : > { %p6284_p8 = scmp.lt.u32.totalorder %s6277_s30, %s7380_s10 }
  0x73   : > { %p6280_p4 = pnand %p6278_p1, %p6662_p7 }
  0x75   : > { %p6281_p6 = pneg %p6280_p4 }
  0x77   : > { %p6286_p9 = pnand %p6284_p8, %p6281_p6 }
  0x79   : > { %6289 = shalt.err (!%p6286_p9)
}
  0x7a   : > { %s6290_s22 = scalar_lea.vmem %s473_s13, 32  ;;  %p6298_p13 = scmp.lt.s32.totalorder %s473_s13, %s473_s13 }
  0x7b   : > { %p6291_p10 = scmp.ne.s32.totalorder %s473_s13, %s6290_s22  ;;  %p6299_p0 = scmp.lt.s32.totalorder %s6290_s22, %s6290_s22 }
  0x7d   : > { %p6293_p11 = pnand %p6291_p10, %p6662_p7  ;;  %p6300_p2 = por %p6299_p0, %p6298_p13 }
  0x7f   : > { %p6294_p12 = pneg %p6293_p11 }
  0x81   : > { %p6301_p3 = pnand %p6300_p2, %p6294_p12 }
  0x83   : > { %6304 = shalt.err (!%p6301_p3)
}
  0x84   : > { %5594 = dma.hbm_to_vmem [thread:$0]  (!%p6646_p5), %s7380_s10, 32, %s473_s13, [#allocation18]  }
  0x85   : > { %s41_s17 = sadd.s32 1, %s6515_s26  ;;  %s6526_s11 = smov [#allocation3]  }
  0x86   : > { %p43_p1 = scmp.ge.s32.totalorder %s41_s17, 2  ;;  %s365_s27 = sshll.u32 %s6526_s11, 4  ;;  %s366_s27 = int_to_ptr.vmem [resolvable:$true] %s365_s27 }
  0x87   : > { %s7399_s1 = sld [smem:[#allocation27_spill]] }
  0x88   : > { %s7408_s17 = smov (%p43_p1, %s41_s17), 0 }
  0x8d   : > { %s6305_s16 = scalar_lea.hbm %s7399_s1, 32 }
  0x8e   : > { %p6306_p2 = scmp.ne.s32.totalorder %s7399_s1, %s6305_s16  ;;  %p6312_p6 = scmp.lt.u32.totalorder %s6305_s16, %s7399_s1 }
  0x90   : > { %p6308_p3 = pnand %p6306_p2, %p6662_p7 }
  0x92   : > { %p6309_p4 = pneg %p6308_p3 }
  0x94   : > { %p6314_p8 = pnand %p6312_p6, %p6309_p4 }
  0x96   : > { %6317 = shalt.err (!%p6314_p8)
}
  0x97   : > { %s6318_s22 = scalar_lea.vmem %s366_s27, 32  ;;  %p6326_p12 = scmp.lt.s32.totalorder %s366_s27, %s366_s27 }
  0x98   : > { %p6319_p9 = scmp.ne.s32.totalorder %s366_s27, %s6318_s22  ;;  %p6327_p13 = scmp.lt.s32.totalorder %s6318_s22, %s6318_s22 }
  0x9a   : > { %p6321_p10 = pnand %p6319_p9, %p6662_p7  ;;  %p6328_p0 = por %p6327_p13, %p6326_p12 }
  0x9c   : > { %p6322_p11 = pneg %p6321_p10 }
  0x9e   : > { %p6329_p1 = pnand %p6328_p0, %p6322_p11 }
  0xa0   : > { %6332 = shalt.err (!%p6329_p1)
}
  0xa1   : > { %5567 = dma.hbm_to_vmem [thread:$0]  (!%p6646_p5), %s7399_s1, 32, %s366_s27, [#allocation4]  }
  0xa2   : > { %s6527_s11 = smov [#allocation7]   ;;  %s6333_s21 = scalar_lea.hbm %s7373_s3, 512 }
  0xa3   : > { %s386_s28 = sshll.u32 %s6527_s11, 4  ;;  %p6334_p2 = scmp.ne.s32.totalorder %s7373_s3, %s6333_s21  ;;  %s387_s28 = int_to_ptr.vmem [resolvable:$true] %s386_s28 }
  0xa4   : > { %p6340_p6 = scmp.lt.u32.totalorder %s6333_s21, %s7373_s3 }
  0xa5   : > { %p6336_p3 = pnand %p6334_p2, %p6662_p7 }
  0xa7   : > { %p6337_p4 = pneg %p6336_p3 }
  0xa9   : > { %p6342_p8 = pnand %p6340_p6, %p6337_p4 }
  0xab   : > { %6345 = shalt.err (!%p6342_p8)
}
  0xac   : > { %s6346_s27 = scalar_lea.vmem %s387_s28, 512  ;;  %p6354_p12 = scmp.lt.s32.totalorder %s387_s28, %s387_s28 }
  0xad   : > { %p6347_p9 = scmp.ne.s32.totalorder %s387_s28, %s6346_s27  ;;  %p6355_p13 = scmp.lt.s32.totalorder %s6346_s27, %s6346_s27 }
  0xaf   : > { %p6349_p10 = pnand %p6347_p9, %p6662_p7  ;;  %p6356_p0 = por %p6355_p13, %p6354_p12 }
  0xb1   : > { %p6350_p11 = pneg %p6349_p10 }
  0xb3   : > { %p6357_p1 = pnand %p6356_p0, %p6350_p11 }
  0xb5   : > { %6360 = shalt.err (!%p6357_p1)
}
  0xb6   : > { %s6528_s19 = smov 64   ;;  %s6529_s29 = smov 4  }
  0xb7   : > { %5573 = dma.hbm_to_vmem [thread:$0]  (!%p6646_p5), %s7373_s3, 512, %s387_s28, [#allocation6], %s6528_s19, %s6528_s19, %s6529_s29  }
  0xb8   : > { %s6530_s16 = smov [#allocation10]   ;;  %s6361_s13 = scalar_lea.hbm %s7375_s5, 8192 }
  0xb9   : > { %s410_s21 = sshll.u32 %s6530_s16, 4  ;;  %p6362_p2 = scmp.ne.s32.totalorder %s7375_s5, %s6361_s13  ;;  %s411_s21 = int_to_ptr.vmem [resolvable:$true] %s410_s21 }
  0xba   : > { %p6368_p6 = scmp.lt.u32.totalorder %s6361_s13, %s7375_s5 }
  0xbb   : > { %p6364_p3 = pnand %p6362_p2, %p6662_p7 }
  0xbd   : > { %p6365_p4 = pneg %p6364_p3 }
  0xbf   : > { %p6370_p8 = pnand %p6368_p6, %p6365_p4 }
  0xc1   : > { %6373 = shalt.err (!%p6370_p8)
}
  0xc2   : > { %s6374_s28 = scalar_lea.vmem %s411_s21, 8192  ;;  %p6382_p12 = scmp.lt.s32.totalorder %s411_s21, %s411_s21 }
  0xc3   : > { %p6375_p9 = scmp.ne.s32.totalorder %s411_s21, %s6374_s28  ;;  %p6383_p13 = scmp.lt.s32.totalorder %s6374_s28, %s6374_s28 }
  0xc5   : > { %p6377_p10 = pnand %p6375_p9, %p6662_p7  ;;  %p6384_p0 = por %p6383_p13, %p6382_p12 }
  0xc7   : > { %p6378_p11 = pneg %p6377_p10 }
  0xc9   : > { %p6385_p1 = pnand %p6384_p0, %p6378_p11 }
  0xcb   : > { %6388 = shalt.err (!%p6385_p1)
}
  0xcc   : > { %s6531_s19 = smov 512   ;;  %s6532_s29 = smov 32  }
  0xcd   : > { %5579 = dma.hbm_to_vmem [thread:$0]  (!%p6646_p5), %s7375_s5, 8192, %s411_s21, [#allocation9], %s6531_s19, %s6531_s19, %s6532_s29  }
  0xce   : > { %s6533_s11 = smov [#allocation13]   ;;  %s6389_s24 = scalar_lea.hbm %s7377_s7, 32768 }
  0xcf   : > { %s434_s30 = sshll.u32 %s6533_s11, 4  ;;  %p6390_p2 = scmp.ne.s32.totalorder %s7377_s7, %s6389_s24  ;;  %s435_s30 = int_to_ptr.vmem [resolvable:$true] %s434_s30 }
  0xd0   : > { %p6396_p6 = scmp.lt.u32.totalorder %s6389_s24, %s7377_s7 }
  0xd1   : > { %p6392_p3 = pnand %p6390_p2, %p6662_p7 }
  0xd3   : > { %p6393_p4 = pneg %p6392_p3 }
  0xd5   : > { %p6398_p8 = pnand %p6396_p6, %p6393_p4 }
  0xd7   : > { %6401 = shalt.err (!%p6398_p8)
}
  0xd8   : > { %s6402_s21 = scalar_lea.vmem %s435_s30, 32768  ;;  %p6410_p12 = scmp.lt.s32.totalorder %s435_s30, %s435_s30 }
  0xd9   : > { %p6403_p9 = scmp.ne.s32.totalorder %s435_s30, %s6402_s21  ;;  %p6411_p13 = scmp.lt.s32.totalorder %s6402_s21, %s6402_s21 }
  0xdb   : > { %p6405_p10 = pnand %p6403_p9, %p6662_p7  ;;  %p6412_p0 = por %p6411_p13, %p6410_p12 }
  0xdd   : > { %p6406_p11 = pneg %p6405_p10 }
  0xdf   : > { %p6413_p1 = pnand %p6412_p0, %p6406_p11 }
  0xe1   : > { %6416 = shalt.err (!%p6413_p1)
}
  0xe2   : > { %s6534_s19 = smov 256   ;;  %s6535_s29 = smov 16  }
  0xe3   : > { %5585 = dma.hbm_to_vmem [thread:$0]  (!%p6646_p5), %s7377_s7, 32768, %s435_s30, [#allocation12], %s6534_s19, %s6534_s19, %s6535_s29  }
  0xe4   : > { %s6536_s11 = smov [#allocation16]   ;;  %s6417_s13 = scalar_lea.hbm %s7379_s9, 8192 }
  0xe5   : > { %s458_s16 = sshll.u32 %s6536_s11, 4  ;;  %p6418_p2 = scmp.ne.s32.totalorder %s7379_s9, %s6417_s13  ;;  %s459_s16 = int_to_ptr.vmem [resolvable:$true] %s458_s16 }
  0xe6   : > { %p6424_p6 = scmp.lt.u32.totalorder %s6417_s13, %s7379_s9 }
  0xe7   : > { %p6420_p3 = pnand %p6418_p2, %p6662_p7 }
  0xe9   : > { %p6421_p4 = pneg %p6420_p3 }
  0xeb   : > { %p6426_p8 = pnand %p6424_p6, %p6421_p4 }
  0xed   : > { %6429 = shalt.err (!%p6426_p8)
}
  0xee   : > { %s6430_s30 = scalar_lea.vmem %s459_s16, 8192  ;;  %p6438_p12 = scmp.lt.s32.totalorder %s459_s16, %s459_s16 }
  0xef   : > { %p6431_p9 = scmp.ne.s32.totalorder %s459_s16, %s6430_s30  ;;  %p6439_p13 = scmp.lt.s32.totalorder %s6430_s30, %s6430_s30 }
  0xf1   : > { %p6433_p10 = pnand %p6431_p9, %p6662_p7  ;;  %p6440_p0 = por %p6439_p13, %p6438_p12 }
  0xf3   : > { %p6434_p11 = pneg %p6433_p10 }
  0xf5   : > { %p6441_p1 = pnand %p6440_p0, %p6434_p11 }
  0xf7   : > { %6444 = shalt.err (!%p6441_p1)
}
  0xf8   : > { %s6537_s19 = smov 128   ;;  %s6538_s29 = smov 8  }
  0xf9   : > { %5591 = dma.hbm_to_vmem [thread:$0]  (!%p6646_p5), %s7379_s9, 8192, %s459_s16, [#allocation15], %s6537_s19, %s6537_s19, %s6538_s29  }
  0xfa   : > { %s6539_s11 = smov [#allocation19]   ;;  %s6445_s22 = scalar_lea.hbm %s7382_s12, 16 }
  0xfb   : > { %s486_s23 = sshll.u32 %s6539_s11, 4  ;;  %p6446_p2 = scmp.ne.s32.totalorder %s7382_s12, %s6445_s22  ;;  %s487_s23 = int_to_ptr.vmem [resolvable:$true] %s486_s23 }
  0xfc   : > { %p6452_p6 = scmp.lt.u32.totalorder %s6445_s22, %s7382_s12 }
  0xfd   : > { %p6448_p3 = pnand %p6446_p2, %p6662_p7 }
  0xff   : > { %p6449_p4 = pneg %p6448_p3 }
 0x101   : > { %p6454_p8 = pnand %p6452_p6, %p6449_p4 }
 0x103   : > { %6457 = shalt.err (!%p6454_p8)
}
 0x104   : > { %s6458_s16 = scalar_lea.vmem %s487_s23, 16  ;;  %s6465_s19 = scalar_lea.vmem %s487_s23, 32 }
 0x105   : > { %p6459_p9 = scmp.ne.s32.totalorder %s487_s23, %s6458_s16  ;;  %p6466_p12 = scmp.lt.s32.totalorder %s487_s23, %s487_s23 }
 0x106   : > { %p6467_p13 = scmp.lt.s32.totalorder %s6465_s19, %s6458_s16 }
 0x107   : > { %p6461_p10 = pnand %p6459_p9, %p6662_p7 }
 0x108   : > { %p6468_p0 = por %p6467_p13, %p6466_p12 }
 0x109   : > { %p6462_p11 = pneg %p6461_p10 }
 0x10b   : > { %p6469_p1 = pnand %p6468_p0, %p6462_p11 }
 0x10d   : > { %6472 = shalt.err (!%p6469_p1)
}
 0x10e   : > { %5597 = dma.hbm_to_vmem [thread:$0]  (!%p6646_p5), %s7382_s12, 16, %s487_s23, [#allocation18]  }
 0x10f   : > { %p7400_p2 = scmp.ne.s32.totalorder %s7395_s15, 0 }
 0x110   : > { %p7401_p3 = scmp.ne.s32.totalorder (!%p7400_p2), %s7394_s14, 0 }
 0x111   : > { %512 = sbr.rel (%p7400_p2) target bundleno = 1938 (0x792), region = 72 }
 0x118   : > { %6486 = dma.done.wait (%p7401_p3), [#allocation4], 32  }
 0x119   : > { %6488 = vsyncadd (%p7401_p3), [#allocation4], 4294967264 }
 0x11a   : > { %6490 = dma.done.wait (%p7401_p3), [#allocation6], 528  }
 0x11b   : > { %6492 = vsyncadd (%p7401_p3), [#allocation6], 4294966768 }
 0x11c   : > { %6494 = dma.done.wait (%p7401_p3), [#allocation9], 8208  }
 0x11d   : > { %6496 = vsyncadd (%p7401_p3), [#allocation9], 4294959088 }
 0x11e   : > { %6498 = dma.done.wait (%p7401_p3), [#allocation12], 32896  }
 0x11f   : > { %6500 = vsyncadd (%p7401_p3), [#allocation12], 4294934400 }
 0x120   : > { %6502 = dma.done.wait (%p7401_p3), [#allocation15], 8256  }
 0x121   : > { %6504 = vsyncadd (%p7401_p3), [#allocation15], 4294959040 }
 0x122   : > { %6506 = dma.done.wait (%p7401_p3), [#allocation18], 48  }
 0x123   : > { %6508 = vsyncadd (%p7401_p3), [#allocation18], 4294967248  ;;  %vm669_vm0 = vcmask 1040384   ;;  %p599_p5 = scmp.lt.s32.totalorder %s6511_s25, 1  ;;  %vm670_vm1 = vcmask 1041408   ;;  %v6540_v0 = vmov 65535  }
 0x124   : > { %v671_v1 = vsel %vm669_vm0, 4294967295, %v6540_v0  ;;  %v636_v3 = vld [vmem:[#allocation3] sm:$0x3]  ;;  %vm644_vm2 = vcmask 23552   ;;  %v5665_v16 = vld [vmem:[#allocation7] sm:$0xff]   ;;  %v5666_v19 = vld [vmem:[#allocation7 + $0x8] sm:$0xff]  }
 0x125   : > { %s7410_s25 = smov (!%p599_p5, %s6511_s25), 1  ;;  %v672_v2 = vsel %vm670_vm1, %v671_v1, 0  ;;  %5446 = vmatprep.subr.bf16.mxu1 %v5665_v16  ;;  %v5667_v31 = vld [vmem:[#allocation7 + $0x10] sm:$0xff]   ;;  %v5668_v32 = vld [vmem:[#allocation7 + $0x18] sm:$0xff]   ;;  %v982_v33 = vld [vmem:[#allocation10] sm:$0xff]  ;;  %vm836_vm3 = vcmask 523264  }
 0x126   : > { %s5384_s15 = sshll.u32 %s7410_s25, 7  ;;  %v674_v6 = vand.u32 %v672_v2, %v636_v3  ;;  %5447 = vmatpush3.bf16.msra.mxu1 %v5665_v16  ;;  %v986_v34 = vld [vmem:[#allocation10 + $0x20] sm:$0xff]  ;;  %v6964_v57 = vld [vmem:[#allocation5] ss:$0 sm:$0xff]  ;;  %s7402_s23 = sld [smem:[#allocation29_spill]]  ;;  %vm4760_vm4 = vcmask 65536  }
 0x127   : > { %s6917_s2 = scalar_lea.vmem %s7370_s0, %s5384_s15  ;;  %5448 = vmatprep.subr.bf16.mxu1 %v5666_v19  ;;  %v990_v35 = vld [vmem:[#allocation10 + $0x40] sm:$0xff]  ;;  %v4982_v36 = vcombine.low %v982_v33, %v986_v34  ;;  %v4983_v37 = vcombine.high %v982_v33, %v986_v34  ;;  %s7403_s14 = sld [smem:[#allocation30_spill]] }
 0x128   : > { %v612_v4 = vld [vmem:[%s6917_s2] sm:$0xff]  ;;  %v613_v5 = vld [vmem:[%s6917_s2 + $0x8] sm:$0xff]  ;;  %v614_v8 = vld [vmem:[%s6917_s2 + $0x10] sm:$0xff]  ;;  %5428 = vmatprep.subr.bf16.mxu0 %v674_v6 }
 0x129   : > { %v628_v7 = vpack.c.bf16 %v613_v5, %v612_v4  ;;  %v615_v9 = vld [vmem:[%s6917_s2 + $0x18] sm:$0xff]  ;;  %v616_v10 = vld [vmem:[%s6917_s2 + $0x20] sm:$0xff]  ;;  %v617_v11 = vld [vmem:[%s6917_s2 + $0x28] sm:$0xff]  ;;  %5429 = vmatpush3.bf16.msra.mxu0 %v674_v6 }
 0x12a   : > { %v629_v12 = vpack.c.bf16 %v615_v9, %v614_v8  ;;  %v630_v13 = vpack.c.bf16 %v617_v11, %v616_v10  ;;  %v618_v14 = vld [vmem:[%s6917_s2 + $0x30] sm:$0xff]  ;;  %v619_v15 = vld [vmem:[%s6917_s2 + $0x38] sm:$0xff]  ;;  %v620_v17 = vld [vmem:[%s6917_s2 + $0x40] sm:$0xff]  ;;  %5449 = vmatpush3.bf16.msra.mxu1 %v5666_v19  ;;  %1408 = vmatprep.subr.bf16.mxu0 %v4983_v37 }
 0x12b   : > { %5430 = vmatprep.mubr.msk.bf16.mxu0 %vm644_vm2, %v628_v7  ;;  %v621_v18 = vld [vmem:[%s6917_s2 + $0x48] sm:$0xff]  ;;  %v631_v20 = vpack.c.bf16 %v619_v15, %v618_v14  ;;  %v622_v22 = vld [vmem:[%s6917_s2 + $0x50] sm:$0xff]  ;;  %v623_v23 = vld [vmem:[%s6917_s2 + $0x58] sm:$0xff]  ;;  %5450 = vmatprep.subr.bf16.mxu1 %v5667_v31 }
 0x12c   : > { %5431 = vmatmul.mubr.msk.bf16.vlgmr.msra.gmra.mrb[0].mxu0 %vm644_vm2, %v629_v12  ;;  %v632_v21 = vpack.c.bf16 %v621_v18, %v620_v17  ;;  %v624_v24 = vld [vmem:[%s6917_s2 + $0x60] sm:$0xff]  ;;  %v625_v25 = vld [vmem:[%s6917_s2 + $0x68] sm:$0xff]  ;;  %v633_v26 = vpack.c.bf16 %v623_v23, %v622_v22  ;;  %v626_v28 = vld [vmem:[%s6917_s2 + $0x70] sm:$0xff] }
 0x12d   : > { %5434 = vmatprep.mubr.msk.bf16.mxu0 %vm644_vm2, %v630_v13  ;;  %v634_v27 = vpack.c.bf16 %v625_v25, %v624_v24  ;;  %v627_v29 = vld [vmem:[%s6917_s2 + $0x78] sm:$0xff]  ;;  %v994_v38 = vld [vmem:[#allocation10 + $0x60] sm:$0xff]  ;;  %1409 = vmatpush1.bf16.msra.mxu0 %v4982_v36  ;;  %s610_s11 = scalar_lea.vmem %s7403_s14, %s7410_s25 }
 0x12e   : > { %v635_v30 = vpack.c.bf16 %v627_v29, %v626_v28  ;;  %5451 = vmatpush3.bf16.msra.mxu1 %v5667_v31  ;;  %v4991_v39 = vcombine.high %v990_v35, %v994_v38  ;;  %v998_v40 = vld [vmem:[#allocation10 + $0x80] sm:$0xff]  ;;  %v4990_v42 = vcombine.low %v990_v35, %v994_v38 }
 0x12f   : > { %5452 = vmatprep.subr.bf16.mxu1 %v5668_v32  ;;  %v1002_v41 = vld [vmem:[#allocation10 + $0xa0] sm:$0xff] }
 0x130   : > { %1410 = vmatprep.subr.bf16.mxu0 %v4991_v39  ;;  %v4999_v43 = vcombine.high %v998_v40, %v1002_v41  ;;  %v1006_v44 = vld [vmem:[#allocation10 + $0xc0] sm:$0xff]  ;;  %v6943_v46 = vcombine.low %v998_v40, %v1002_v41 }
 0x131   : > { %v1010_v45 = vld [vmem:[#allocation10 + $0xe0] sm:$0xff]  ;;  %1411 = vmatpush1.bf16.msra.mxu0 %v4990_v42 }
 0x132   : > { %5453 = vmatpush3.bf16.msra.mxu1 %v5668_v32  ;;  %1412 = vmatprep.subr.bf16.mxu0 %v4999_v43  ;;  %v6945_v47 = vcombine.high %v1006_v44, %v1010_v45  ;;  %v1014_v48 = vld [vmem:[#allocation10 + $0x100] sm:$0xff]  ;;  %v6948_v50 = vcombine.low %v1006_v44, %v1010_v45 }
 0x133   : > { %5470 = vmatprep.subr.bf16.mxu1 %v4983_v37  ;;  %v1018_v49 = vld [vmem:[#allocation10 + $0x120] sm:$0xff] }
 0x134   : > { %5435 = vmatmul.mubr.msk.bf16.gmra.mrb[4].mxu0 %vm644_vm2, %v631_v20  ;;  %v6951_v51 = vcombine.high %v1014_v48, %v1018_v49  ;;  %v1022_v52 = vld [vmem:[#allocation10 + $0x140] sm:$0xff]  ;;  %v6954_v54 = vcombine.low %v1014_v48, %v1018_v49 }
 0x135   : > { %5438 = vmatprep.mubr.msk.bf16.mxu0 %vm644_vm2, %v632_v21  ;;  %1413 = vmatpush1.bf16.msra.mxu0 %v6943_v46  ;;  %v1026_v53 = vld [vmem:[#allocation10 + $0x160] sm:$0xff] }
 0x136   : > { %1414 = vmatprep.subr.bf16.mxu0 %v6945_v47  ;;  %v6957_v55 = vcombine.high %v1022_v52, %v1026_v53  ;;  %v6960_v56 = vcombine.low %v1022_v52, %v1026_v53 }
 0x139   : > { %1415 = vmatpush1.bf16.msra.mxu0 %v6948_v50 }
 0x13a   : > { %1416 = vmatprep.subr.bf16.mxu0 %v6951_v51 }
 0x13c   : > { %5439 = vmatmul.mubr.msk.bf16.gmra.mrb[8].mxu0 %vm644_vm2, %v633_v26 }
 0x13d   : > { %5442 = vmatprep.mubr.msk.bf16.mxu0 %vm644_vm2, %v634_v27  ;;  %1417 = vmatpush1.bf16.msra.mxu0 %v6954_v54 }
 0x13e   : > { %1418 = vmatprep.subr.bf16.mxu0 %v6957_v55 }
 0x141   : > { %1419 = vmatpush1.bf16.msra.mxu0 %v6960_v56 }
 0x144   : > { %5443 = vmatmul.mubr.msk.bf16.gmra.mrb[12].mxu0 %vm644_vm2, %v635_v30 }
 0x1ff   : > { %v5432_v58 = vpop.f32.mrb[0].mxu0 }
 0x200   : > { %v719_v59 = vadd.f32 %v5432_v58, %v6964_v57  ;;  %v710_v60 = vpop.f32.mrb[1].mxu0 }
 0x201   : > { %v711_v61 = vadd.f32 %v6964_v57, %v710_v60  ;;  %v5433_v62 = vpop.f32.mrb[2].mxu0 }
 0x202   : > { %v722_v63 = vadd.f32 %v5433_v62, %v6964_v57  ;;  %v713_v0 = vpop.f32.mrb[3].mxu0  ;;  %v775_v2 = vmax.f32 %v719_v59, 0.0  ;;  %v988_v59 = vld [vmem:[#allocation10 + $0x30] sm:$0xff] }
 0x203   : > { %v714_v1 = vadd.f32 %v6964_v57, %v713_v0  ;;  %v773_v4 = vmax.f32 %v711_v61, 0.0  ;;  %v6541_v61 = vmov 0   ;;  %v7001_v0 = vld [vmem:[#allocation10 + $0x28] sm:$0xff] }
 0x204   : > { %v776_v3 = vmax.f32 %v722_v63, 0.0  ;;  %1440 = vmatprep.mubr.bf16.mxu0 %v6541_v61  ;;  %v6999_v63 = vld [vmem:[#allocation10 + $0x8] sm:$0xff] }
 0x205   : > { %v774_v5 = vmax.f32 %v714_v1, 0.0  ;;  %v4985_v1 = vcombine.high %v6999_v63, %v7001_v0 }
 0x206   : > { %v790_v6 = vpack.c.bf16 %v776_v3, %v775_v2  ;;  %v4984_v2 = vcombine.low %v6999_v63, %v7001_v0  ;;  %v7007_v3 = vld [vmem:[#allocation8] ss:$0 sm:$0xff]  ;;  %v1011_v63 = vld [vmem:[#allocation10 + $0xe8] sm:$0xff]  ;;  %v1040_v0 = vld [vmem:[#allocation10 + $0x1d0] sm:$0xff] }
 0x207   : > { %v5436_v7 = vpop.f32.mrb[4].mxu0  ;;  %v789_v8 = vpack.c.bf16 %v774_v5, %v773_v4 }
 0x208   : > { %v735_v9 = vadd.f32 %v5436_v7, %v6964_v57  ;;  %v726_v10 = vpop.f32.mrb[5].mxu0 }
 0x209   : > { %v727_v11 = vadd.f32 %v6964_v57, %v726_v10  ;;  %v5437_v12 = vpop.f32.mrb[6].mxu0  ;;  %5454 = vmatprep.mubr.msk.bf16.mxu1 %vm836_vm3, %v789_v8 }
 0x20a   : > { %v738_v13 = vadd.f32 %v5437_v12, %v6964_v57  ;;  %v729_v14 = vpop.f32.mrb[7].mxu0  ;;  %5455 = vmatmul.mubr.msk.bf16.vlgmr.msra.gmra.mrb[0].mxu1 %vm836_vm3, %v790_v6  ;;  %v779_v16 = vmax.f32 %v735_v9, 0.0 }
 0x20b   : > { %v730_v15 = vadd.f32 %v6964_v57, %v729_v14  ;;  %5478 = vmatpush1.bf16.msra.mxu1 %v4982_v36  ;;  %v777_v18 = vmax.f32 %v727_v11, 0.0  ;;  %v992_v14 = vld [vmem:[#allocation10 + $0x50] sm:$0xff] }
 0x20c   : > { %v780_v17 = vmax.f32 %v738_v13, 0.0  ;;  %5471 = vmatprep.subr.bf16.mxu1 %v4991_v39 }
 0x20d   : > { %v778_v19 = vmax.f32 %v730_v15, 0.0  ;;  %v996_v15 = vld [vmem:[#allocation10 + $0x70] sm:$0xff] }
 0x20e   : > { %v792_v20 = vpack.c.bf16 %v780_v17, %v779_v16 }
 0x20f   : > { %v791_v21 = vpack.c.bf16 %v778_v19, %v777_v18  ;;  %v5440_v22 = vpop.f32.mrb[8].mxu0  ;;  %5479 = vmatpush1.bf16.msra.mxu1 %v4990_v42 }
 0x210   : > { %v751_v23 = vadd.f32 %v5440_v22, %v6964_v57  ;;  %v742_v24 = vpop.f32.mrb[9].mxu0  ;;  %5472 = vmatprep.subr.bf16.mxu1 %v4999_v43 }
 0x211   : > { %v743_v25 = vadd.f32 %v6964_v57, %v742_v24  ;;  %v5441_v26 = vpop.f32.mrb[10].mxu0  ;;  %5458 = vmatprep.mubr.msk.bf16.mxu1 %vm836_vm3, %v791_v21  ;;  %v4995_v21 = vcombine.high %v992_v14, %v996_v15  ;;  %v1000_v24 = vld [vmem:[#allocation10 + $0x90] sm:$0xff] }
 0x212   : > { %v754_v27 = vadd.f32 %v5441_v26, %v6964_v57  ;;  %v745_v28 = vpop.f32.mrb[11].mxu0  ;;  %5459 = vmatmul.mubr.msk.bf16.gmra.mrb[4].mxu1 %vm836_vm3, %v792_v20  ;;  %v783_v30 = vmax.f32 %v751_v23, 0.0 }
 0x213   : > { %v746_v29 = vadd.f32 %v6964_v57, %v745_v28  ;;  %5480 = vmatpush1.bf16.msra.mxu1 %v6943_v46  ;;  %v781_v32 = vmax.f32 %v743_v25, 0.0  ;;  %v1004_v25 = vld [vmem:[#allocation10 + $0xb0] sm:$0xff] }
 0x214   : > { %v784_v31 = vmax.f32 %v754_v27, 0.0  ;;  %5473 = vmatprep.subr.bf16.mxu1 %v6945_v47 }
 0x215   : > { %v782_v33 = vmax.f32 %v746_v29, 0.0 }
 0x216   : > { %v794_v34 = vpack.c.bf16 %v784_v31, %v783_v30  ;;  %v4994_v30 = vcombine.low %v992_v14, %v996_v15  ;;  %v1032_v14 = vld [vmem:[#allocation10 + $0x190] sm:$0xff] }
 0x217   : > { %v793_v35 = vpack.c.bf16 %v782_v33, %v781_v32  ;;  %v5444_v36 = vpop.f32.mrb[12].mxu0  ;;  %5481 = vmatpush1.bf16.msra.mxu1 %v6948_v50  ;;  %v1030_v50 = vld [vmem:[#allocation10 + $0x180] sm:$0xff]  ;;  %v5003_v32 = vcombine.high %v1000_v24, %v1004_v25  ;;  %v1036_v15 = vld [vmem:[#allocation10 + $0x1b0] sm:$0xff] }
 0x218   : > { %v767_v37 = vadd.f32 %v5444_v36, %v6964_v57  ;;  %v758_v38 = vpop.f32.mrb[13].mxu0  ;;  %5474 = vmatprep.subr.bf16.mxu1 %v6951_v51  ;;  %v1034_v51 = vld [vmem:[#allocation10 + $0x1a0] sm:$0xff]  ;;  %v1012_v36 = vld [vmem:[#allocation10 + $0xf0] sm:$0xff] }
 0x219   : > { %v759_v39 = vadd.f32 %v6964_v57, %v758_v38  ;;  %5462 = vmatprep.mubr.msk.bf16.mxu1 %vm836_vm3, %v793_v35  ;;  %v5445_v40 = vpop.f32.mrb[14].mxu0  ;;  %v5031_v52 = vcombine.high %v1030_v50, %v1034_v51  ;;  %v5030_v53 = vcombine.low %v1030_v50, %v1034_v51  ;;  %v1008_v35 = vld [vmem:[#allocation10 + $0xd0] sm:$0xff] }
 0x21a   : > { %v787_v41 = vmax.f32 %v767_v37, 0.0  ;;  %v770_v42 = vadd.f32 %v5445_v40, %v6964_v57  ;;  %5463 = vmatmul.mubr.msk.bf16.gmra.mrb[8].mxu1 %vm836_vm3, %v794_v34  ;;  %v761_v43 = vpop.f32.mrb[15].mxu0  ;;  %v5002_v40 = vcombine.low %v1000_v24, %v1004_v25 }
 0x21b   : > { %v785_v44 = vmax.f32 %v759_v39, 0.0  ;;  %v762_v45 = vadd.f32 %v6964_v57, %v761_v43  ;;  %5482 = vmatpush1.bf16.msra.mxu1 %v6954_v54  ;;  %1420 = vmatprep.subr.bf16.mxu0 %v5031_v52  ;;  %v1038_v54 = vld [vmem:[#allocation10 + $0x1c0] sm:$0xff]  ;;  %v5011_v43 = vcombine.high %v1008_v35, %v1012_v36 }
 0x21c   : > { %v788_v46 = vmax.f32 %v770_v42, 0.0  ;;  %5475 = vmatprep.subr.bf16.mxu1 %v6957_v55  ;;  %1421 = vmatpush1.bf16.msra.mxu0 %v5030_v53  ;;  %v1042_v57 = vld [vmem:[#allocation10 + $0x1e0] sm:$0xff] }
 0x21d   : > { %v786_v47 = vmax.f32 %v762_v45, 0.0  ;;  %v5039_v55 = vcombine.high %v1038_v54, %v1042_v57  ;;  %v5038_v58 = vcombine.low %v1038_v54, %v1042_v57  ;;  %v991_v57 = vld [vmem:[#allocation10 + $0x48] sm:$0xff] }
 0x21e   : > { %v796_v48 = vpack.c.bf16 %v788_v46, %v787_v41  ;;  %v1016_v46 = vld [vmem:[#allocation10 + $0x110] sm:$0xff] }
 0x21f   : > { %v795_v49 = vpack.c.bf16 %v786_v47, %v785_v44  ;;  %5483 = vmatpush1.bf16.msra.mxu1 %v6960_v56  ;;  %1422 = vmatprep.subr.bf16.mxu0 %v5039_v55  ;;  %v984_v56 = vld [vmem:[#allocation10 + $0x10] sm:$0xff] }
 0x220   : > { %5476 = vmatprep.subr.bf16.mxu1 %v5031_v52  ;;  %1423 = vmatpush1.bf16.msra.mxu0 %v5038_v58  ;;  %v4987_v60 = vcombine.high %v984_v56, %v988_v59  ;;  %v4986_v62 = vcombine.low %v984_v56, %v988_v59  ;;  %v1020_v47 = vld [vmem:[#allocation10 + $0x130] sm:$0xff]  ;;  %v5010_v52 = vcombine.low %v1008_v35, %v1012_v36  ;;  %v995_v56 = vld [vmem:[#allocation10 + $0x68] sm:$0xff] }
 0x221   : > { %5466 = vmatprep.mubr.msk.bf16.mxu1 %vm836_vm3, %v795_v49  ;;  %v5019_v54 = vcombine.high %v1016_v46, %v1020_v47  ;;  %v1024_v59 = vld [vmem:[#allocation10 + $0x150] sm:$0xff] }
 0x222   : > { %5467 = vmatmul.mubr.msk.bf16.gmra.mrb[12].mxu1 %vm836_vm3, %v796_v48  ;;  %1634 = vmatprep.subr.bf16.mxu0 %v4987_v60  ;;  %v1028_v60 = vld [vmem:[#allocation10 + $0x170] sm:$0xff] }
 0x223   : > { %5484 = vmatpush1.bf16.msra.mxu1 %v5030_v53  ;;  %1480 = vmatprep.mubr.bf16.mxu1 %v6541_v61  ;;  %v5026_v24 = vcombine.low %v1024_v59, %v1028_v60 }
 0x224   : > { %5477 = vmatprep.subr.bf16.mxu1 %v5039_v55 }
 0x227   : > { %5485 = vmatpush1.bf16.msra.mxu1 %v5038_v58 }
 0x228   : > { %1521 = vmatprep.subr.bf16.mxu1 %v4985_v1 }
 0x2dd   : > { %v5456_v4 = vpop.f32.mrb[0].mxu1 }
 0x2de   : > { %v904_v5 = vadd.f32 %v5456_v4, %v7007_v3  ;;  %v895_v6 = vpop.f32.mrb[1].mxu1 }
 0x2df   : > { %v896_v7 = vadd.f32 %v7007_v3, %v895_v6  ;;  %v5457_v8 = vpop.f32.mrb[2].mxu1 }
 0x2e0   : > { %v907_v9 = vadd.f32 %v5457_v8, %v7007_v3  ;;  %v898_v10 = vpop.f32.mrb[3].mxu1  ;;  %v960_v12 = vmax.f32 %v904_v5, 0.0  ;;  %v5018_v5 = vcombine.low %v1016_v46, %v1020_v47  ;;  %v4993_v8 = vcombine.high %v991_v57, %v995_v56 }
 0x2e1   : > { %v899_v11 = vadd.f32 %v7007_v3, %v898_v10  ;;  %v958_v16 = vmax.f32 %v896_v7, 0.0  ;;  %v999_v10 = vld [vmem:[#allocation10 + $0x88] sm:$0xff] }
 0x2e2   : > { %v961_v13 = vmax.f32 %v907_v9, 0.0  ;;  %v5027_v9 = vcombine.high %v1024_v59, %v1028_v60  ;;  %v993_v60 = vld [vmem:[#allocation10 + $0x58] sm:$0xff] }
 0x2e3   : > { %v959_v17 = vmax.f32 %v899_v11, 0.0 }
 0x2e4   : > { %v7013_v18 = vpack.c.bf16 %v961_v13, %v960_v12  ;;  %v1003_v13 = vld [vmem:[#allocation10 + $0xa8] sm:$0xff] }
 0x2e5   : > { %v7015_v19 = vpack.c.bf16 %v959_v17, %v958_v16  ;;  %v5460_v20 = vpop.f32.mrb[4].mxu1 }
 0x2e6   : > { %v920_v22 = vadd.f32 %v5460_v20, %v7007_v3  ;;  %v911_v23 = vpop.f32.mrb[5].mxu1 }
 0x2e7   : > { %v912_v26 = vadd.f32 %v7007_v3, %v911_v23  ;;  %v5461_v27 = vpop.f32.mrb[6].mxu1  ;;  %1441 = vmatmul.mubr.bf16.vlgmr.msra.gmra.mrb[16].mxu0 %v7015_v19  ;;  %v4992_v23 = vcombine.low %v991_v57, %v995_v56 }
 0x2e8   : > { %v923_v28 = vadd.f32 %v5461_v27, %v7007_v3  ;;  %v914_v29 = vpop.f32.mrb[7].mxu1  ;;  %1635 = vmatpush1.bf16.msra.mxu0 %v4986_v62  ;;  %1450 = vmatprep.mubr.bf16.mxu0 %v6541_v61  ;;  %v964_v33 = vmax.f32 %v920_v22, 0.0  ;;  %v5001_v27 = vcombine.high %v999_v10, %v1003_v13 }
 0x2e9   : > { %v915_v31 = vadd.f32 %v7007_v3, %v914_v29  ;;  %1636 = vmatprep.subr.bf16.mxu0 %v4995_v21  ;;  %v962_v37 = vmax.f32 %v912_v26, 0.0  ;;  %v1007_v29 = vld [vmem:[#allocation10 + $0xc8] sm:$0xff] }
 0x2ea   : > { %v965_v34 = vmax.f32 %v923_v28, 0.0  ;;  %v5035_v28 = vcombine.high %v1032_v14, %v1036_v15  ;;  %v5009_v35 = vcombine.high %v1007_v29, %v1011_v63 }
 0x2eb   : > { %v963_v38 = vmax.f32 %v915_v31, 0.0 }
 0x2ec   : > { %v7023_v39 = vpack.c.bf16 %v965_v34, %v964_v33  ;;  %1637 = vmatpush1.bf16.msra.mxu0 %v4994_v30  ;;  %v5000_v33 = vcombine.low %v999_v10, %v1003_v13 }
 0x2ed   : > { %v7025_v41 = vpack.c.bf16 %v963_v38, %v962_v37  ;;  %v5464_v42 = vpop.f32.mrb[8].mxu1  ;;  %1638 = vmatprep.subr.bf16.mxu0 %v5003_v32  ;;  %v1015_v37 = vld [vmem:[#allocation10 + $0x108] sm:$0xff] }
 0x2ee   : > { %v936_v44 = vadd.f32 %v5464_v42, %v7007_v3  ;;  %v927_v45 = vpop.f32.mrb[9].mxu1  ;;  %v1019_v38 = vld [vmem:[#allocation10 + $0x128] sm:$0xff] }
 0x2ef   : > { %v928_v48 = vadd.f32 %v7007_v3, %v927_v45  ;;  %v5465_v49 = vpop.f32.mrb[10].mxu1  ;;  %1451 = vmatmul.mubr.bf16.gmra.mrb[20].mxu0 %v7013_v18  ;;  %v1027_v45 = vld [vmem:[#allocation10 + $0x168] sm:$0xff]  ;;  %v5016_v46 = vcombine.low %v1015_v37, %v1019_v38 }
 0x2f0   : > { %v939_v50 = vadd.f32 %v5465_v49, %v7007_v3  ;;  %v930_v51 = vpop.f32.mrb[11].mxu1  ;;  %1639 = vmatpush1.bf16.msra.mxu0 %v5002_v40  ;;  %1460 = vmatprep.mubr.bf16.mxu0 %v6541_v61  ;;  %v968_v55 = vmax.f32 %v936_v44, 0.0  ;;  %v5008_v40 = vcombine.low %v1007_v29, %v1011_v63  ;;  %v1023_v44 = vld [vmem:[#allocation10 + $0x148] sm:$0xff]  ;;  %v1041_v29 = vld [vmem:[#allocation10 + $0x1d8] sm:$0xff] }
 0x2f1   : > { %v931_v53 = vadd.f32 %v7007_v3, %v930_v51  ;;  %1640 = vmatprep.subr.bf16.mxu0 %v5011_v43  ;;  %v966_v62 = vmax.f32 %v928_v48, 0.0  ;;  %v5017_v43 = vcombine.high %v1015_v37, %v1019_v38  ;;  %v5025_v47 = vcombine.high %v1023_v44, %v1027_v45  ;;  %v1031_v48 = vld [vmem:[#allocation10 + $0x188] sm:$0xff] }
 0x2f2   : > { %v969_v58 = vmax.f32 %v939_v50, 0.0  ;;  %v1035_v49 = vld [vmem:[#allocation10 + $0x1a8] sm:$0xff]  ;;  %v5024_v50 = vcombine.low %v1023_v44, %v1027_v45 }
 0x2f3   : > { %v967_v1 = vmax.f32 %v931_v53, 0.0  ;;  %v5033_v51 = vcombine.high %v1031_v48, %v1035_v49  ;;  %v1043_v53 = vld [vmem:[#allocation10 + $0x1e8] sm:$0xff] }
 0x2f4   : > { %v7033_v4 = vpack.c.bf16 %v969_v58, %v968_v55  ;;  %1641 = vmatpush1.bf16.msra.mxu0 %v5010_v52  ;;  %v1039_v52 = vld [vmem:[#allocation10 + $0x1c8] sm:$0xff]  ;;  %v985_v55 = vld [vmem:[#allocation10 + $0x18] sm:$0xff] }
 0x2f5   : > { %v7035_v6 = vpack.c.bf16 %v967_v1, %v966_v62  ;;  %v5468_v7 = vpop.f32.mrb[12].mxu1  ;;  %1642 = vmatprep.subr.bf16.mxu0 %v5019_v54  ;;  %v5032_v54 = vcombine.low %v1031_v48, %v1035_v49  ;;  %v5041_v57 = vcombine.high %v1039_v52, %v1043_v53  ;;  %v989_v58 = vld [vmem:[#allocation10 + $0x38] sm:$0xff]  ;;  %v5040_v56 = vcombine.low %v1039_v52, %v1043_v53  ;;  %v5672_v49 = vld [vmem:[#allocation13 + $0x8] ss:$16 sps:$4 sm:$0xff]  }
 0x2f6   : > { %v952_v11 = vadd.f32 %v5468_v7, %v7007_v3  ;;  %v943_v12 = vpop.f32.mrb[13].mxu1  ;;  %v4989_v59 = vcombine.high %v985_v55, %v989_v58  ;;  %v997_v62 = vld [vmem:[#allocation10 + $0x78] sm:$0xff]  ;;  %v4988_v1 = vcombine.low %v985_v55, %v989_v58  ;;  %v5678_v53 = vld [vmem:[#allocation13 + $0x28] ss:$16 sps:$4 sm:$0xff]  }
 0x2f7   : > { %v944_v16 = vadd.f32 %v7007_v3, %v943_v12  ;;  %1461 = vmatmul.mubr.bf16.gmra.mrb[24].mxu0 %v7025_v41  ;;  %1481 = vmatmul.mubr.bf16.vlgmr.msra.gmra.mrb[16].mxu1 %v7035_v6  ;;  %v5469_v17 = vpop.f32.mrb[14].mxu1  ;;  %v1001_v7 = vld [vmem:[#allocation10 + $0x98] sm:$0xff]  ;;  %v5684_v58 = vld [vmem:[#allocation13 + $0x48] ss:$16 sps:$4 sm:$0xff]  }
 0x2f8   : > { %v972_v20 = vmax.f32 %v952_v11, 0.0  ;;  %1522 = vmatpush1.bf16.msra.mxu1 %v4984_v2  ;;  %v955_v21 = vadd.f32 %v5469_v17, %v7007_v3  ;;  %1643 = vmatpush1.bf16.msra.mxu0 %v5018_v5  ;;  %v946_v22 = vpop.f32.mrb[15].mxu1  ;;  %v1044_v2 = vld [vmem:[#allocation10 + $0x1f0] sm:$0xff]  ;;  %v4997_v5 = vcombine.high %v993_v60, %v997_v62  ;;  %v1009_v11 = vld [vmem:[#allocation10 + $0xd8] sm:$0xff] }
 0x2f9   : > { %v970_v25 = vmax.f32 %v944_v16, 0.0  ;;  %v947_v26 = vadd.f32 %v7007_v3, %v946_v22  ;;  %1523 = vmatprep.subr.bf16.mxu1 %v4993_v8  ;;  %1644 = vmatprep.subr.bf16.mxu0 %v5027_v9  ;;  %v5034_v3 = vcombine.low %v1032_v14, %v1036_v15  ;;  %v5043_v36 = vcombine.high %v1040_v0, %v1044_v2  ;;  %v1005_v8 = vld [vmem:[#allocation10 + $0xb8] sm:$0xff] }
 0x2fa   : > { %v973_v30 = vmax.f32 %v955_v21, 0.0  ;;  %1470 = vmatprep.mubr.bf16.mxu0 %v6541_v61  ;;  %1490 = vmatprep.mubr.bf16.mxu1 %v6541_v61  ;;  %v5042_v42 = vcombine.low %v1040_v0, %v1044_v2  ;;  %v4996_v9 = vcombine.low %v993_v60, %v997_v62  ;;  %v5005_v10 = vcombine.high %v1001_v7, %v1005_v8  ;;  %v1013_v12 = vld [vmem:[#allocation10 + $0xf8] sm:$0xff]  ;;  %v5698_v62 = vld [vmem:[#allocation13 + $0x8c] ss:$16 sps:$4 sm:$0xff]  }
 0x2fb   : > { %v971_v31 = vmax.f32 %v947_v26, 0.0  ;;  %v5004_v13 = vcombine.low %v1001_v7, %v1005_v8  ;;  %v5013_v14 = vcombine.high %v1009_v11, %v1013_v12  ;;  %v1017_v15 = vld [vmem:[#allocation10 + $0x118] sm:$0xff]  ;;  %v5012_v17 = vcombine.low %v1009_v11, %v1013_v12  ;;  %v5696_v7 = vld [vmem:[#allocation13 + $0x88] ss:$16 sps:$4 sm:$0xff]   ;;  %v5704_v8 = vld [vmem:[#allocation13 + $0xac] ss:$16 sps:$4 sm:$0xff]  }
 0x2fc   : > { %v7048_v32 = vpack.c.bf16 %v973_v30, %v972_v20  ;;  %1524 = vmatpush1.bf16.msra.mxu1 %v4992_v23  ;;  %1645 = vmatpush1.bf16.msra.mxu0 %v5026_v24  ;;  %v1021_v16 = vld [vmem:[#allocation10 + $0x138] sm:$0xff]  ;;  %v5710_v11 = vld [vmem:[#allocation13 + $0xcc] ss:$16 sps:$4 sm:$0xff]  }
 0x2fd   : > { %v7050_v34 = vpack.c.bf16 %v971_v31, %v970_v25  ;;  %1525 = vmatprep.subr.bf16.mxu1 %v5001_v27  ;;  %1646 = vmatprep.subr.bf16.mxu0 %v5035_v28  ;;  %v5021_v20 = vcombine.high %v1017_v15, %v1021_v16  ;;  %v1025_v21 = vld [vmem:[#allocation10 + $0x158] sm:$0xff]  ;;  %v5020_v23 = vcombine.low %v1017_v15, %v1021_v16  ;;  %v5716_v15 = vld [vmem:[#allocation13 + $0xec] ss:$16 sps:$4 sm:$0xff]  }
 0x2fe   : > { %v1029_v22 = vld [vmem:[#allocation10 + $0x178] sm:$0xff] }
 0x2ff   : > { %1471 = vmatmul.mubr.bf16.gmra.mrb[28].mxu0 %v7023_v39  ;;  %1491 = vmatmul.mubr.bf16.gmra.mrb[20].mxu1 %v7033_v4  ;;  %v5029_v24 = vcombine.high %v1025_v21, %v1029_v22  ;;  %v1033_v25 = vld [vmem:[#allocation10 + $0x198] sm:$0xff]  ;;  %v5028_v27 = vcombine.low %v1025_v21, %v1029_v22 }
 0x300   : > { %1526 = vmatpush1.bf16.msra.mxu1 %v5000_v33  ;;  %1647 = vmatpush1.bf16.msra.mxu0 %v5034_v3  ;;  %v1037_v26 = vld [vmem:[#allocation10 + $0x1b8] sm:$0xff]  ;;  %v5674_v33 = vld [vmem:[#allocation13 + $0xc] ss:$16 sps:$4 sm:$0xff]  }
 0x301   : > { %1527 = vmatprep.subr.bf16.mxu1 %v5009_v35  ;;  %1648 = vmatprep.subr.bf16.mxu0 %v5043_v36  ;;  %v5037_v28 = vcombine.high %v1033_v25, %v1037_v26  ;;  %v1045_v30 = vld [vmem:[#allocation10 + $0x1f8] sm:$0xff]  ;;  %v5036_v63 = vcombine.low %v1033_v25, %v1037_v26  ;;  %v5726_v25 = vld [vmem:[#allocation13 + $0x128] ss:$16 sps:$4 sm:$0xff]  }
 0x302   : > { %1500 = vmatprep.mubr.bf16.mxu1 %v6541_v61  ;;  %1666 = vmatprep.mubr.bf16.mxu0 %v6541_v61  ;;  %v5045_v0 = vcombine.high %v1041_v29, %v1045_v30  ;;  %v5044_v2 = vcombine.low %v1041_v29, %v1045_v30  ;;  %v5671_v31 = vld [vmem:[#allocation13 + $0x4] ss:$16 sps:$4 sm:$0xff]   ;;  %v5669_v3 = vld [vmem:[#allocation13] ss:$16 sps:$4 sm:$0xff]   ;;  %v5740_v29 = vld [vmem:[#allocation13 + $0x16c] ss:$16 sps:$4 sm:$0xff]  }
 0x303   : > { %v5677_v35 = vld [vmem:[#allocation13 + $0x24] ss:$16 sps:$4 sm:$0xff]   ;;  %v5675_v36 = vld [vmem:[#allocation13 + $0x20] ss:$16 sps:$4 sm:$0xff]  }
 0x304   : > { %1528 = vmatpush1.bf16.msra.mxu1 %v5008_v40  ;;  %1649 = vmatpush1.bf16.msra.mxu0 %v5042_v42  ;;  %v5683_v37 = vld [vmem:[#allocation13 + $0x44] ss:$16 sps:$4 sm:$0xff]   ;;  %v5681_v38 = vld [vmem:[#allocation13 + $0x40] ss:$16 sps:$4 sm:$0xff]  }
 0x305   : > { %1529 = vmatprep.subr.bf16.mxu1 %v5017_v43  ;;  %3773 = vmatprep.subr.bf16.mxu0 %v5671_v31  ;;  %v5689_v40 = vld [vmem:[#allocation13 + $0x64] ss:$16 sps:$4 sm:$0xff]   ;;  %v5687_v42 = vld [vmem:[#allocation13 + $0x60] ss:$16 sps:$4 sm:$0xff]   ;;  %v5750_v31 = vld [vmem:[#allocation13 + $0x1a8] ss:$16 sps:$4 sm:$0xff]  }
 0x306   : > { %v5695_v43 = vld [vmem:[#allocation13 + $0x84] ss:$16 sps:$4 sm:$0xff]   ;;  %v5693_v44 = vld [vmem:[#allocation13 + $0x80] ss:$16 sps:$4 sm:$0xff]  }
 0x307   : > { %1501 = vmatmul.mubr.bf16.gmra.mrb[24].mxu1 %v7050_v34  ;;  %1667 = vmatmul.mubr.bf16.vlgmr.msra.gmra.mrb[32].mxu0 %v7015_v19  ;;  %v5701_v45 = vld [vmem:[#allocation13 + $0xa4] ss:$16 sps:$4 sm:$0xff]   ;;  %v5705_v48 = vld [vmem:[#allocation13 + $0xc0] ss:$16 sps:$4 sm:$0xff]  }
 0x308   : > { %1530 = vmatpush1.bf16.msra.mxu1 %v5016_v46  ;;  %1510 = vmatprep.mubr.bf16.mxu1 %v6541_v61  ;;  %v5699_v46 = vld [vmem:[#allocation13 + $0xa0] ss:$16 sps:$4 sm:$0xff]   ;;  %v5743_v12 = vld [vmem:[#allocation13 + $0x184] ss:$16 sps:$4 sm:$0xff]  }
 0x309   : > { %1531 = vmatprep.subr.bf16.mxu1 %v5025_v47  ;;  %1676 = vmatprep.mubr.bf16.mxu0 %v6541_v61  ;;  %v5707_v47 = vld [vmem:[#allocation13 + $0xc4] ss:$16 sps:$4 sm:$0xff]   ;;  %v5711_v52 = vld [vmem:[#allocation13 + $0xe0] ss:$16 sps:$4 sm:$0xff]  }
 0x30a   : > { %3774 = vmatpush1.bf16.msra.mxu0 %v5669_v3  ;;  %v5717_v55 = vld [vmem:[#allocation13 + $0x100] ss:$16 sps:$4 sm:$0xff]   ;;  %v5749_v16 = vld [vmem:[#allocation13 + $0x1a4] ss:$16 sps:$4 sm:$0xff]   ;;  %v5764_v3 = vld [vmem:[#allocation13 + $0x1ec] ss:$16 sps:$4 sm:$0xff]  }
 0x30b   : > { %3775 = vmatprep.subr.bf16.mxu0 %v5677_v35  ;;  %v5723_v60 = vld [vmem:[#allocation13 + $0x120] ss:$16 sps:$4 sm:$0xff]   ;;  %v5755_v21 = vld [vmem:[#allocation13 + $0x1c4] ss:$16 sps:$4 sm:$0xff]   ;;  %v5762_v35 = vld [vmem:[#allocation13 + $0x1e8] ss:$16 sps:$4 sm:$0xff]  }
 0x30c   : > { %1532 = vmatpush1.bf16.msra.mxu1 %v5024_v50  ;;  %v5713_v50 = vld [vmem:[#allocation13 + $0xe4] ss:$16 sps:$4 sm:$0xff]   ;;  %v5753_v22 = vld [vmem:[#allocation13 + $0x1c0] ss:$16 sps:$4 sm:$0xff]  }
 0x30d   : > { %1533 = vmatprep.subr.bf16.mxu1 %v5033_v51  ;;  %v5680_v51 = vld [vmem:[#allocation13 + $0x2c] ss:$16 sps:$4 sm:$0xff]   ;;  %v5759_v26 = vld [vmem:[#allocation13 + $0x1e0] ss:$16 sps:$4 sm:$0xff]   ;;  %v5767_v30 = vld [vmem:[#allocation13 + $0x204] ss:$16 sps:$4 sm:$0xff]  }
 0x30e   : > { %3776 = vmatpush1.bf16.msra.mxu0 %v5675_v36  ;;  %v5770_v36 = vld [vmem:[#allocation13 + $0x20c] ss:$16 sps:$4 sm:$0xff]  }
 0x30f   : > { %1511 = vmatmul.mubr.bf16.gmra.mrb[28].mxu1 %v7048_v32  ;;  %1677 = vmatmul.mubr.bf16.gmra.mrb[36].mxu0 %v7013_v18 }
 0x310   : > { %1534 = vmatpush1.bf16.msra.mxu1 %v5032_v54  ;;  %1553 = vmatprep.mubr.bf16.mxu1 %v6541_v61  ;;  %v5719_v54 = vld [vmem:[#allocation13 + $0x104] ss:$16 sps:$4 sm:$0xff]  }
 0x311   : > { %1535 = vmatprep.subr.bf16.mxu1 %v5041_v57  ;;  %1686 = vmatprep.mubr.bf16.mxu0 %v6541_v61  ;;  %v5686_v57 = vld [vmem:[#allocation13 + $0x4c] ss:$16 sps:$4 sm:$0xff]  }
 0x312   : > { %3777 = vmatprep.subr.bf16.mxu0 %v5683_v37  ;;  %v1048_v37 = vlaneseq }
 0x313   : > { %3778 = vmatpush1.bf16.msra.mxu0 %v5681_v38  ;;  %v7111_v38 = vld [vmem:[#allocation11] sm:$0xff] }
 0x314   : > { %1536 = vmatpush1.bf16.msra.mxu1 %v5040_v56  ;;  %3779 = vmatprep.subr.bf16.mxu0 %v5689_v40  ;;  %v5692_v56 = vld [vmem:[#allocation13 + $0x6c] ss:$16 sps:$4 sm:$0xff]  }
 0x315   : > { %1747 = vmatprep.subr.bf16.mxu1 %v4989_v59  ;;  %v5725_v59 = vld [vmem:[#allocation13 + $0x124] ss:$16 sps:$4 sm:$0xff]  }
 0x317   : > { %1554 = vmatmul.mubr.bf16.vlgmr.msra.gmra.mrb[32].mxu1 %v7015_v19  ;;  %1687 = vmatmul.mubr.bf16.gmra.mrb[40].mxu0 %v7025_v41 }
 0x318   : > { %1563 = vmatprep.mubr.bf16.mxu1 %v6541_v61  ;;  %1696 = vmatprep.mubr.bf16.mxu0 %v6541_v61 }
 0x319   : > { %1748 = vmatpush1.bf16.msra.mxu1 %v4988_v1  ;;  %3780 = vmatpush1.bf16.msra.mxu0 %v5687_v42  ;;  %v5731_v1 = vld [vmem:[#allocation13 + $0x144] ss:$16 sps:$4 sm:$0xff]  }
 0x31a   : > { %1749 = vmatprep.subr.bf16.mxu1 %v4997_v5  ;;  %3781 = vmatprep.subr.bf16.mxu0 %v5695_v43  ;;  %v5729_v5 = vld [vmem:[#allocation13 + $0x140] ss:$16 sps:$4 sm:$0xff]  }
 0x31d   : > { %1750 = vmatpush1.bf16.msra.mxu1 %v4996_v9  ;;  %3782 = vmatpush1.bf16.msra.mxu0 %v5693_v44  ;;  %v5737_v9 = vld [vmem:[#allocation13 + $0x164] ss:$16 sps:$4 sm:$0xff]  }
 0x31e   : > { %1751 = vmatprep.subr.bf16.mxu1 %v5005_v10  ;;  %3783 = vmatprep.subr.bf16.mxu0 %v5701_v45  ;;  %v5702_v10 = vld [vmem:[#allocation13 + $0xa8] ss:$16 sps:$4 sm:$0xff]  }
 0x31f   : > { %1564 = vmatmul.mubr.bf16.gmra.mrb[36].mxu1 %v7013_v18  ;;  %1697 = vmatmul.mubr.bf16.gmra.mrb[44].mxu0 %v7023_v39 }
 0x320   : > { %1573 = vmatprep.mubr.bf16.mxu1 %v6541_v61  ;;  %1706 = vmatprep.mubr.bf16.mxu0 %v6541_v61 }
 0x321   : > { %1752 = vmatpush1.bf16.msra.mxu1 %v5004_v13  ;;  %3784 = vmatpush1.bf16.msra.mxu0 %v5699_v46  ;;  %v5741_v13 = vld [vmem:[#allocation13 + $0x180] ss:$16 sps:$4 sm:$0xff]  }
 0x322   : > { %1753 = vmatprep.subr.bf16.mxu1 %v5013_v14  ;;  %3785 = vmatprep.subr.bf16.mxu0 %v5707_v47  ;;  %v5708_v14 = vld [vmem:[#allocation13 + $0xc8] ss:$16 sps:$4 sm:$0xff]  }
 0x325   : > { %1754 = vmatpush1.bf16.msra.mxu1 %v5012_v17  ;;  %3786 = vmatpush1.bf16.msra.mxu0 %v5705_v48  ;;  %v5714_v17 = vld [vmem:[#allocation13 + $0xe8] ss:$16 sps:$4 sm:$0xff]  }
 0x326   : > { %1755 = vmatprep.subr.bf16.mxu1 %v5021_v20  ;;  %3787 = vmatprep.subr.bf16.mxu0 %v5713_v50  ;;  %v5722_v20 = vld [vmem:[#allocation13 + $0x10c] ss:$16 sps:$4 sm:$0xff]  }
 0x327   : > { %1574 = vmatmul.mubr.bf16.gmra.mrb[40].mxu1 %v7025_v41  ;;  %1707 = vmatmul.mubr.bf16.gmra.mrb[48].mxu0 %v7035_v6 }
 0x328   : > { %1583 = vmatprep.mubr.bf16.mxu1 %v6541_v61  ;;  %1716 = vmatprep.mubr.bf16.mxu0 %v6541_v61 }
 0x329   : > { %1756 = vmatpush1.bf16.msra.mxu1 %v5020_v23  ;;  %3788 = vmatpush1.bf16.msra.mxu0 %v5711_v52  ;;  %v5720_v23 = vld [vmem:[#allocation13 + $0x108] ss:$16 sps:$4 sm:$0xff]  }
 0x32a   : > { %1757 = vmatprep.subr.bf16.mxu1 %v5029_v24  ;;  %3789 = vmatprep.subr.bf16.mxu0 %v5719_v54  ;;  %v5728_v24 = vld [vmem:[#allocation13 + $0x12c] ss:$16 sps:$4 sm:$0xff]  }
 0x32d   : > { %1758 = vmatpush1.bf16.msra.mxu1 %v5028_v27  ;;  %3790 = vmatpush1.bf16.msra.mxu0 %v5717_v55  ;;  %v5734_v27 = vld [vmem:[#allocation13 + $0x14c] ss:$16 sps:$4 sm:$0xff]  }
 0x32e   : > { %1759 = vmatprep.subr.bf16.mxu1 %v5037_v28  ;;  %3791 = vmatprep.subr.bf16.mxu0 %v5725_v59  ;;  %v5732_v28 = vld [vmem:[#allocation13 + $0x148] ss:$16 sps:$4 sm:$0xff]  }
 0x32f   : > { %1584 = vmatmul.mubr.bf16.gmra.mrb[44].mxu1 %v7023_v39  ;;  %1717 = vmatmul.mubr.bf16.gmra.mrb[52].mxu0 %v7033_v4 }
 0x330   : > { %1593 = vmatprep.mubr.bf16.mxu1 %v6541_v61  ;;  %1726 = vmatprep.mubr.bf16.mxu0 %v6541_v61 }
 0x331   : > { %1760 = vmatpush1.bf16.msra.mxu1 %v5036_v63  ;;  %3792 = vmatpush1.bf16.msra.mxu0 %v5723_v60  ;;  %v5746_v63 = vld [vmem:[#allocation13 + $0x18c] ss:$16 sps:$4 sm:$0xff]  }
 0x332   : > { %1761 = vmatprep.subr.bf16.mxu1 %v5045_v0  ;;  %3793 = vmatprep.subr.bf16.mxu0 %v5731_v1  ;;  %v5744_v0 = vld [vmem:[#allocation13 + $0x188] ss:$16 sps:$4 sm:$0xff]  }
 0x335   : > { %1762 = vmatpush1.bf16.msra.mxu1 %v5044_v2  ;;  %3794 = vmatpush1.bf16.msra.mxu0 %v5729_v5  ;;  %v5752_v2 = vld [vmem:[#allocation13 + $0x1ac] ss:$16 sps:$4 sm:$0xff]  }
 0x336   : > { %3937 = vmatprep.subr.bf16.mxu1 %v5674_v33  ;;  %3795 = vmatprep.subr.bf16.mxu0 %v5737_v9  ;;  %v5758_v33 = vld [vmem:[#allocation13 + $0x1cc] ss:$16 sps:$4 sm:$0xff]  }
 0x337   : > { %1594 = vmatmul.mubr.bf16.gmra.mrb[48].mxu1 %v7035_v6  ;;  %1727 = vmatmul.mubr.bf16.gmra.mrb[56].mxu0 %v7050_v34 }
 0x338   : > { %1603 = vmatprep.mubr.bf16.mxu1 %v6541_v61  ;;  %1736 = vmatprep.mubr.bf16.mxu0 %v6541_v61 }
 0x33f   : > { %1604 = vmatmul.mubr.bf16.gmra.mrb[52].mxu1 %v7033_v4  ;;  %1737 = vmatmul.mubr.bf16.gmra.mrb[60].mxu0 %v7048_v32 }
 0x340   : > { %1613 = vmatprep.mubr.bf16.mxu1 %v6541_v61 }
 0x347   : > { %1614 = vmatmul.mubr.bf16.gmra.mrb[56].mxu1 %v7050_v34 }
 0x348   : > { %1623 = vmatprep.mubr.bf16.mxu1 %v6541_v61 }
 0x34f   : > { %1624 = vmatmul.mubr.bf16.gmra.mrb[60].mxu1 %v7048_v32 }
 0x350   : > { %1779 = vmatprep.mubr.bf16.mxu1 %v6541_v61 }
 0x357   : > { %1780 = vmatmul.mubr.bf16.vlgmr.msra.gmra.mrb[64].mxu1 %v7015_v19  ;;  %v5690_v19 = vld [vmem:[#allocation13 + $0x68] ss:$16 sps:$4 sm:$0xff]  }
 0x358   : > { %1789 = vmatprep.mubr.bf16.mxu1 %v6541_v61  ;;  %3938 = vmatpush1.bf16.msra.mxu1 %v5672_v49 }
 0x359   : > { %3939 = vmatprep.subr.bf16.mxu1 %v5680_v51 }
 0x35c   : > { %3940 = vmatpush1.bf16.msra.mxu1 %v5678_v53 }
 0x35d   : > { %3941 = vmatprep.subr.bf16.mxu1 %v5686_v57 }
 0x35f   : > { %1790 = vmatmul.mubr.bf16.gmra.mrb[68].mxu1 %v7013_v18  ;;  %v5735_v18 = vld [vmem:[#allocation13 + $0x160] ss:$16 sps:$4 sm:$0xff]  }
 0x360   : > { %1799 = vmatprep.mubr.bf16.mxu1 %v6541_v61  ;;  %3942 = vmatpush1.bf16.msra.mxu1 %v5684_v58 }
 0x361   : > { %3943 = vmatprep.subr.bf16.mxu1 %v5692_v56  ;;  %3796 = vmatpush1.bf16.msra.mxu0 %v5735_v18 }
 0x362   : > { %3797 = vmatprep.subr.bf16.mxu0 %v5743_v12 }
 0x364   : > { %3944 = vmatpush1.bf16.msra.mxu1 %v5690_v19 }
 0x365   : > { %3945 = vmatprep.subr.bf16.mxu1 %v5698_v62  ;;  %3798 = vmatpush1.bf16.msra.mxu0 %v5741_v13 }
 0x366   : > { %3799 = vmatprep.subr.bf16.mxu0 %v5749_v16 }
 0x367   : > { %1800 = vmatmul.mubr.bf16.gmra.mrb[72].mxu1 %v7025_v41  ;;  %v5747_v41 = vld [vmem:[#allocation13 + $0x1a0] ss:$16 sps:$4 sm:$0xff]  }
 0x368   : > { %1809 = vmatprep.mubr.bf16.mxu1 %v6541_v61  ;;  %3946 = vmatpush1.bf16.msra.mxu1 %v5696_v7 }
 0x369   : > { %3947 = vmatprep.subr.bf16.mxu1 %v5704_v8  ;;  %3800 = vmatpush1.bf16.msra.mxu0 %v5747_v41 }
 0x36a   : > { %3801 = vmatprep.subr.bf16.mxu0 %v5755_v21 }
 0x36c   : > { %3948 = vmatpush1.bf16.msra.mxu1 %v5702_v10 }
 0x36d   : > { %3949 = vmatprep.subr.bf16.mxu1 %v5710_v11  ;;  %3802 = vmatpush1.bf16.msra.mxu0 %v5753_v22 }
 0x36f   : > { %1810 = vmatmul.mubr.bf16.gmra.mrb[76].mxu1 %v7023_v39  ;;  %v5761_v39 = vld [vmem:[#allocation13 + $0x1e4] ss:$16 sps:$4 sm:$0xff]  }
 0x370   : > { %1819 = vmatprep.mubr.bf16.mxu1 %v6541_v61  ;;  %3950 = vmatpush1.bf16.msra.mxu1 %v5708_v14 }
 0x371   : > { %3951 = vmatprep.subr.bf16.mxu1 %v5716_v15  ;;  %3803 = vmatprep.subr.bf16.mxu0 %v5761_v39 }
 0x372   : > { %3804 = vmatpush1.bf16.msra.mxu0 %v5759_v26 }
 0x373   : > { %3814 = vmatprep.subr.bf16.mxu0 %v5767_v30 }
 0x374   : > { %3952 = vmatpush1.bf16.msra.mxu1 %v5714_v17 }
 0x375   : > { %3953 = vmatprep.subr.bf16.mxu1 %v5722_v20 }
 0x377   : > { %1820 = vmatmul.mubr.bf16.gmra.mrb[80].mxu1 %v7035_v6  ;;  %v5738_v6 = vld [vmem:[#allocation13 + $0x168] ss:$16 sps:$4 sm:$0xff]  }
 0x378   : > { %1829 = vmatprep.mubr.bf16.mxu1 %v6541_v61  ;;  %3954 = vmatpush1.bf16.msra.mxu1 %v5720_v23 }
 0x379   : > { %3955 = vmatprep.subr.bf16.mxu1 %v5728_v24 }
 0x37c   : > { %3956 = vmatpush1.bf16.msra.mxu1 %v5726_v25 }
 0x37d   : > { %3957 = vmatprep.subr.bf16.mxu1 %v5734_v27 }
 0x37f   : > { %1830 = vmatmul.mubr.bf16.gmra.mrb[84].mxu1 %v7033_v4  ;;  %v5756_v4 = vld [vmem:[#allocation13 + $0x1c8] ss:$16 sps:$4 sm:$0xff]  }
 0x380   : > { %1839 = vmatprep.mubr.bf16.mxu1 %v6541_v61  ;;  %3958 = vmatpush1.bf16.msra.mxu1 %v5732_v28 }
 0x381   : > { %3959 = vmatprep.subr.bf16.mxu1 %v5740_v29 }
 0x384   : > { %3960 = vmatpush1.bf16.msra.mxu1 %v5738_v6 }
 0x385   : > { %3961 = vmatprep.subr.bf16.mxu1 %v5746_v63 }
 0x387   : > { %1840 = vmatmul.mubr.bf16.gmra.mrb[88].mxu1 %v7050_v34  ;;  %v7106_v34 = vshrl.u32 %v1048_v37, 7 }
 0x388   : > { %1849 = vmatprep.mubr.bf16.mxu1 %v6541_v61  ;;  %3962 = vmatpush1.bf16.msra.mxu1 %v5744_v0 }
 0x389   : > { %3963 = vmatprep.subr.bf16.mxu1 %v5752_v2  ;;  %v7109_v61 = vsub.s32 0, %v7106_v34  ;;  %v7114_v40 = vsub.s32 1, %v7106_v34 }
 0x38b   : > { %v7122_v42 = vrot.slane %v7111_v38, %v7114_v40 }
 0x38c   : > { %3964 = vmatpush1.bf16.msra.mxu1 %v5750_v31 }
 0x38d   : > { %3965 = vmatprep.subr.bf16.mxu1 %v5758_v33 }
 0x38f   : > { %1850 = vmatmul.mubr.bf16.gmra.mrb[92].mxu1 %v7048_v32  ;;  %v7118_v32 = vrot.slane %v7111_v38, %v7109_v61 }
 0x390   : > { %3966 = vmatpush1.bf16.msra.mxu1 %v5756_v4 }
 0x391   : > { %3967 = vmatprep.subr.bf16.mxu1 %v5764_v3 }
 0x394   : > { %3968 = vmatpush1.bf16.msra.mxu1 %v5762_v35  ;;  %v1066_v35 = vsub.s32 4, %v7106_v34 }
 0x395   : > { %3978 = vmatprep.subr.bf16.mxu1 %v5770_v36 }
 0x3ba   : > { %v1442_v43 = vpop.f32.mrb[16].mxu0 }
 0x3bb   : > { %v1443_v44 = vadd.f32 %v1442_v43, %v7118_v32  ;;  %v1444_v45 = vpop.f32.mrb[17].mxu0 }
 0x3bc   : > { %v1445_v46 = vadd.f32 %v1444_v45, %v7122_v42  ;;  %v1446_v47 = vpop.f32.mrb[18].mxu0 }
 0x3bd   : > { %v1447_v48 = vadd.f32 %v1446_v47, %v7118_v32  ;;  %v1448_v49 = vpop.f32.mrb[19].mxu0  ;;  %v1860_v51 = vmax.f32 %v1443_v44, 0.0 }
 0x3be   : > { %v1449_v50 = vadd.f32 %v1448_v49, %v7122_v42  ;;  %v1861_v53 = vmax.f32 %v1445_v46, 0.0  ;;  %v1070_v49 = vsub.s32 5, %v7106_v34 }
 0x3bf   : > { %v1868_v52 = vmax.f32 %v1447_v48, 0.0 }
 0x3c0   : > { %v1869_v54 = vmax.f32 %v1449_v50, 0.0 }
 0x3c1   : > { %v1988_v57 = vmax.f32 %v1860_v51, %v1868_v52 }
 0x3c2   : > { %v2003_v55 = vmax.f32 %v1861_v53, %v1869_v54  ;;  %v1452_v58 = vpop.f32.mrb[20].mxu0  ;;  %v1058_v53 = vsub.s32 2, %v7106_v34 }
 0x3c3   : > { %v1453_v56 = vadd.f32 %v1452_v58, %v7118_v32  ;;  %v1454_v59 = vpop.f32.mrb[21].mxu0  ;;  %v7147_v58 = vrot.slane %v7111_v38, %v1066_v35 }
 0x3c4   : > { %v1455_v60 = vadd.f32 %v1454_v59, %v7122_v42  ;;  %v1456_v19 = vpop.f32.mrb[22].mxu0 }
 0x3c5   : > { %v1876_v62 = vmax.f32 %v1453_v56, 0.0  ;;  %v1457_v1 = vadd.f32 %v1456_v19, %v7118_v32  ;;  %v1458_v5 = vpop.f32.mrb[23].mxu0 }
 0x3c6   : > { %v1877_v7 = vmax.f32 %v1455_v60, 0.0  ;;  %v1459_v8 = vadd.f32 %v1458_v5, %v7122_v42 }
 0x3c7   : > { %v1989_v9 = vmax.f32 %v1988_v57, %v1876_v62  ;;  %v1884_v18 = vmax.f32 %v1457_v1, 0.0 }
 0x3c8   : > { %v2004_v10 = vmax.f32 %v2003_v55, %v1877_v7  ;;  %v1885_v11 = vmax.f32 %v1459_v8, 0.0  ;;  %v7153_v7 = vrot.slane %v7111_v38, %v1070_v49 }
 0x3c9   : > { %v1990_v12 = vmax.f32 %v1989_v9, %v1884_v18 }
 0x3ca   : > { %v2005_v13 = vmax.f32 %v2004_v10, %v1885_v11  ;;  %v1462_v14 = vpop.f32.mrb[24].mxu0  ;;  %v1482_v15 = vpop.f32.mrb[16].mxu1  ;;  %v7158_v11 = vrot.slane %v7111_v38, %v1058_v53 }
 0x3cb   : > { %v1463_v16 = vadd.f32 %v1462_v14, %v7118_v32  ;;  %v1464_v41 = vpop.f32.mrb[25].mxu0  ;;  %v1484_v17 = vpop.f32.mrb[17].mxu1  ;;  %v1483_v44 = vadd.f32 %v1482_v15, %v7118_v32 }
 0x3cc   : > { %v1465_v20 = vadd.f32 %v1464_v41, %v7122_v42  ;;  %v1466_v21 = vpop.f32.mrb[26].mxu0  ;;  %v1486_v22 = vpop.f32.mrb[18].mxu1  ;;  %v1485_v50 = vadd.f32 %v1484_v17, %v7122_v42 }
 0x3cd   : > { %v1892_v23 = vmax.f32 %v1463_v16, 0.0  ;;  %v1467_v24 = vadd.f32 %v1466_v21, %v7118_v32  ;;  %v1468_v39 = vpop.f32.mrb[27].mxu0  ;;  %v1488_v25 = vpop.f32.mrb[19].mxu1  ;;  %v1487_v54 = vadd.f32 %v1486_v22, %v7118_v32  ;;  %v1924_v62 = vmax.f32 %v1483_v44, 0.0 }
 0x3ce   : > { %v1893_v26 = vmax.f32 %v1465_v20, 0.0  ;;  %v1469_v27 = vadd.f32 %v1468_v39, %v7122_v42  ;;  %v1489_v56 = vadd.f32 %v1488_v25, %v7122_v42  ;;  %v1925_v8 = vmax.f32 %v1485_v50, 0.0 }
 0x3cf   : > { %v1991_v28 = vmax.f32 %v1990_v12, %v1892_v23  ;;  %v1900_v29 = vmax.f32 %v1467_v24, 0.0  ;;  %v1062_v12 = vsub.s32 3, %v7106_v34 }
 0x3d0   : > { %v2006_v30 = vmax.f32 %v2005_v13, %v1893_v26  ;;  %v1901_v6 = vmax.f32 %v1469_v27, 0.0  ;;  %v1932_v13 = vmax.f32 %v1487_v54, 0.0  ;;  %v1933_v20 = vmax.f32 %v1489_v56, 0.0 }
 0x3d1   : > { %v1992_v63 = vmax.f32 %v1991_v28, %v1900_v29 }
 0x3d2   : > { %v2007_v0 = vmax.f32 %v2006_v30, %v1901_v6  ;;  %v1472_v2 = vpop.f32.mrb[28].mxu0  ;;  %v1492_v31 = vpop.f32.mrb[20].mxu1 }
 0x3d3   : > { %v1473_v33 = vadd.f32 %v1472_v2, %v7118_v32  ;;  %v1474_v4 = vpop.f32.mrb[29].mxu0  ;;  %v1494_v3 = vpop.f32.mrb[21].mxu1  ;;  %v1493_v59 = vadd.f32 %v1492_v31, %v7118_v32 }
 0x3d4   : > { %v1475_v36 = vadd.f32 %v1474_v4, %v7122_v42  ;;  %v1476_v37 = vpop.f32.mrb[30].mxu0  ;;  %v1496_v43 = vpop.f32.mrb[22].mxu1  ;;  %v1495_v1 = vadd.f32 %v1494_v3, %v7122_v42 }
 0x3d5   : > { %v1908_v45 = vmax.f32 %v1473_v33, 0.0  ;;  %v1477_v46 = vadd.f32 %v1476_v37, %v7118_v32  ;;  %v1478_v47 = vpop.f32.mrb[31].mxu0  ;;  %v1498_v48 = vpop.f32.mrb[23].mxu1  ;;  %v1497_v15 = vadd.f32 %v1496_v43, %v7118_v32  ;;  %v1940_v21 = vmax.f32 %v1493_v59, 0.0 }
 0x3d6   : > { %v1909_v51 = vmax.f32 %v1475_v36, 0.0  ;;  %v1479_v52 = vadd.f32 %v1478_v47, %v7122_v42  ;;  %v1499_v16 = vadd.f32 %v1498_v48, %v7122_v42  ;;  %v1941_v25 = vmax.f32 %v1495_v1, 0.0 }
 0x3d7   : > { %v1993_v57 = vmax.f32 %v1992_v63, %v1908_v45  ;;  %v1916_v55 = vmax.f32 %v1477_v46, 0.0  ;;  %v1948_v31 = vmax.f32 %v1497_v15, 0.0 }
 0x3d8   : > { %v2008_v60 = vmax.f32 %v2007_v0, %v1909_v51  ;;  %v1917_v19 = vmax.f32 %v1479_v52, 0.0  ;;  %v1949_v4 = vmax.f32 %v1499_v16, 0.0 }
 0x3d9   : > { %v1994_v5 = vmax.f32 %v1993_v57, %v1916_v55 }
 0x3da   : > { %v2009_v9 = vmax.f32 %v2008_v60, %v1917_v19  ;;  %v1502_v18 = vpop.f32.mrb[24].mxu1  ;;  %v1668_v10 = vpop.f32.mrb[32].mxu0 }
 0x3db   : > { %v1995_v14 = vmax.f32 %v1994_v5, %v1924_v62  ;;  %v1504_v41 = vpop.f32.mrb[25].mxu1  ;;  %v1670_v17 = vpop.f32.mrb[33].mxu0  ;;  %v1669_v23 = vadd.f32 %v1668_v10, %v7147_v58  ;;  %v1503_v27 = vadd.f32 %v1502_v18, %v7118_v32 }
 0x3dc   : > { %v2010_v22 = vmax.f32 %v2009_v9, %v1925_v8  ;;  %v1506_v24 = vpop.f32.mrb[26].mxu1  ;;  %v1672_v39 = vpop.f32.mrb[34].mxu0  ;;  %v1671_v28 = vadd.f32 %v1670_v17, %v7153_v7  ;;  %v1505_v63 = vadd.f32 %v1504_v41, %v7122_v42 }
 0x3dd   : > { %v1996_v26 = vmax.f32 %v1995_v14, %v1932_v13  ;;  %v1508_v29 = vpop.f32.mrb[27].mxu1  ;;  %v1674_v30 = vpop.f32.mrb[35].mxu0  ;;  %v1507_v0 = vadd.f32 %v1506_v24, %v7118_v32  ;;  %v1673_v2 = vadd.f32 %v1672_v39, %v7147_v58  ;;  %v1864_v36 = vmax.f32 %v1669_v23, 0.0 }
 0x3de   : > { %v2011_v6 = vmax.f32 %v2010_v22, %v1933_v20  ;;  %v1675_v3 = vadd.f32 %v1674_v30, %v7153_v7  ;;  %v1509_v43 = vadd.f32 %v1508_v29, %v7122_v42  ;;  %v1956_v45 = vmax.f32 %v1503_v27, 0.0 }
 0x3df   : > { %v1997_v33 = vmax.f32 %v1996_v26, %v1940_v21  ;;  %v1872_v37 = vmax.f32 %v1673_v2, 0.0  ;;  %v1865_v46 = vmax.f32 %v1671_v28, 0.0  ;;  %v1957_v49 = vmax.f32 %v1505_v63, 0.0 }
 0x3e0   : > { %v2012_v35 = vmax.f32 %v2011_v6, %v1941_v25  ;;  %v1873_v47 = vmax.f32 %v1675_v3, 0.0  ;;  %v1964_v50 = vmax.f32 %v1507_v0, 0.0  ;;  %v1965_v1 = vmax.f32 %v1509_v43, 0.0 }
 0x3e1   : > { %v1998_v44 = vmax.f32 %v1997_v33, %v1948_v31  ;;  %v2048_v51 = vmax.f32 %v1864_v36, %v1872_v37 }
 0x3e2   : > { %v2013_v48 = vmax.f32 %v2012_v35, %v1949_v4  ;;  %v1512_v52 = vpop.f32.mrb[28].mxu1  ;;  %v1678_v54 = vpop.f32.mrb[36].mxu0  ;;  %v2063_v55 = vmax.f32 %v1865_v46, %v1873_v47 }
 0x3e3   : > { %v1999_v57 = vmax.f32 %v1998_v44, %v1956_v45  ;;  %v1513_v56 = vadd.f32 %v1512_v52, %v7118_v32  ;;  %v1679_v59 = vadd.f32 %v1678_v54, %v7147_v58  ;;  %v1514_v60 = vpop.f32.mrb[29].mxu1  ;;  %v1680_v19 = vpop.f32.mrb[37].mxu0 }
 0x3e4   : > { %v2014_v62 = vmax.f32 %v2013_v48, %v1957_v49  ;;  %v1515_v5 = vadd.f32 %v1514_v60, %v7122_v42  ;;  %v1681_v8 = vadd.f32 %v1680_v19, %v7153_v7  ;;  %v1516_v9 = vpop.f32.mrb[30].mxu1  ;;  %v1682_v18 = vpop.f32.mrb[38].mxu0 }
 0x3e5   : > { %v2000_v10 = vmax.f32 %v1999_v57, %v1964_v50  ;;  %v1972_v13 = vmax.f32 %v1513_v56, 0.0  ;;  %v1880_v14 = vmax.f32 %v1679_v59, 0.0  ;;  %v1517_v15 = vadd.f32 %v1516_v9, %v7118_v32  ;;  %v1518_v16 = vpop.f32.mrb[31].mxu1  ;;  %v1684_v41 = vpop.f32.mrb[39].mxu0 }
 0x3e6   : > { %v2015_v17 = vmax.f32 %v2014_v62, %v1965_v1  ;;  %v1973_v20 = vmax.f32 %v1515_v5, 0.0  ;;  %v1881_v21 = vmax.f32 %v1681_v8, 0.0  ;;  %v1683_v22 = vadd.f32 %v1682_v18, %v7147_v58 }
 0x3e7   : > { %v2001_v23 = vmax.f32 %v2000_v10, %v1972_v13  ;;  %v2049_v24 = vmax.f32 %v2048_v51, %v1880_v14  ;;  %v1980_v39 = vmax.f32 %v1517_v15, 0.0  ;;  %v1519_v25 = vadd.f32 %v1518_v16, %v7122_v42 }
 0x3e8   : > { %v2016_v26 = vmax.f32 %v2015_v17, %v1973_v20  ;;  %v2064_v27 = vmax.f32 %v2063_v55, %v1881_v21  ;;  %v1888_v28 = vmax.f32 %v1683_v22, 0.0  ;;  %v1685_v29 = vadd.f32 %v1684_v41, %v7153_v7 }
 0x3e9   : > { %v2002_v30 = vmax.f32 %v2001_v23, %v1980_v39  ;;  %v1981_v6 = vmax.f32 %v1519_v25, 0.0  ;;  %v7182_v32 = vrot.slane %v7111_v38, %v1062_v12 }
 0x3ea   : > { %v2050_v63 = vmax.f32 %v2049_v24, %v1888_v28  ;;  %v1889_v0 = vmax.f32 %v1685_v29, 0.0  ;;  %v1555_v2 = vpop.f32.mrb[32].mxu1  ;;  %v1688_v31 = vpop.f32.mrb[40].mxu0 }
 0x3eb   : > { %v2159_v33 = vrot.slane %v2002_v30, 4  ;;  %v2017_v4 = vmax.f32 %v2016_v26, %v1981_v6  ;;  %v1556_v42 = vadd.f32 %v1555_v2, %v7158_v11  ;;  %v1689_v3 = vadd.f32 %v1688_v31, %v7147_v58  ;;  %v1557_v35 = vpop.f32.mrb[33].mxu1  ;;  %v1690_v36 = vpop.f32.mrb[41].mxu0 }
 0x3ec   : > { %v2065_v37 = vmax.f32 %v2064_v27, %v1889_v0  ;;  %v1691_v43 = vadd.f32 %v1690_v36, %v7153_v7  ;;  %v1559_v44 = vpop.f32.mrb[34].mxu1  ;;  %v1692_v45 = vpop.f32.mrb[42].mxu0  ;;  %v1558_v49 = vadd.f32 %v1557_v35, %v7182_v32 }
 0x3ed   : > { %v2160_v46 = vmax.f32 %v2002_v30, %v2159_v33  ;;  %v2165_v47 = vrot.slane %v2017_v4, 4  ;;  %v1896_v48 = vmax.f32 %v1689_v3, 0.0  ;;  %v1561_v50 = vpop.f32.mrb[35].mxu1  ;;  %v1694_v51 = vpop.f32.mrb[43].mxu0  ;;  %v1862_v52 = vmax.f32 %v1556_v42, 0.0 }
 0x3ee   : > { %v1897_v54 = vmax.f32 %v1691_v43, 0.0  ;;  %v1560_v57 = vadd.f32 %v1559_v44, %v7158_v11  ;;  %v1693_v55 = vadd.f32 %v1692_v45, %v7147_v58  ;;  %v1562_v19 = vadd.f32 %v1561_v50, %v7182_v32 }
 0x3ef   : > { %v2161_v56 = vrot.slane %v2160_v46, 2  ;;  %v2166_v59 = vmax.f32 %v2017_v4, %v2165_v47  ;;  %v2051_v60 = vmax.f32 %v2050_v63, %v1896_v48  ;;  %v1695_v8 = vadd.f32 %v1694_v51, %v7153_v7 }
 0x3f0   : > { %v2066_v62 = vmax.f32 %v2065_v37, %v1897_v54  ;;  %v1870_v1 = vmax.f32 %v1560_v57, 0.0  ;;  %v1904_v5 = vmax.f32 %v1693_v55, 0.0  ;;  %v1863_v10 = vmax.f32 %v1558_v49, 0.0 }
 0x3f1   : > { %v2162_v9 = vmax.f32 %v2160_v46, %v2161_v56  ;;  %v2167_v18 = vrot.slane %v2166_v59, 2  ;;  %v1871_v13 = vmax.f32 %v1562_v19, 0.0  ;;  %v1905_v16 = vmax.f32 %v1695_v8, 0.0 }
 0x3f2   : > { %v2018_v14 = vmax.f32 %v1862_v52, %v1870_v1  ;;  %v2052_v15 = vmax.f32 %v2051_v60, %v1904_v5  ;;  %v1565_v41 = vpop.f32.mrb[36].mxu1  ;;  %v1698_v17 = vpop.f32.mrb[44].mxu0  ;;  %v5765_v5 = vld [vmem:[#allocation13 + $0x200] ss:$16 sps:$4 sm:$0xff]  }
 0x3f3   : > { %v2163_v20 = vrot.slane %v2162_v9, 1  ;;  %v2033_v21 = vmax.f32 %v1863_v10, %v1871_v13  ;;  %v1566_v22 = vadd.f32 %v1565_v41, %v7158_v11  ;;  %v1699_v23 = vadd.f32 %v1698_v17, %v7147_v58  ;;  %v1567_v24 = vpop.f32.mrb[37].mxu1  ;;  %v1700_v39 = vpop.f32.mrb[45].mxu0  ;;  %v5768_v41 = vld [vmem:[#allocation13 + $0x208] ss:$16 sps:$4 sm:$0xff]  }
 0x3f4   : > { %v2067_v25 = vmax.f32 %v2066_v62, %v1905_v16  ;;  %v1568_v26 = vadd.f32 %v1567_v24, %v7182_v32  ;;  %v1701_v27 = vadd.f32 %v1700_v39, %v7153_v7  ;;  %v1569_v28 = vpop.f32.mrb[38].mxu1  ;;  %v1702_v29 = vpop.f32.mrb[46].mxu0  ;;  %v2168_v31 = vmax.f32 %v2166_v59, %v2167_v18  ;;  %v5773_v39 = vld [vmem:[#allocation13 + $0x224] ss:$16 sps:$4 sm:$0xff]  }
 0x3f5   : > { %v1878_v30 = vmax.f32 %v1566_v22, 0.0  ;;  %v1912_v6 = vmax.f32 %v1699_v23, 0.0  ;;  %v1570_v63 = vadd.f32 %v1569_v28, %v7158_v11  ;;  %v1571_v0 = vpop.f32.mrb[39].mxu1  ;;  %v1704_v2 = vpop.f32.mrb[47].mxu0  ;;  %v1703_v42 = vadd.f32 %v1702_v29, %v7147_v58 }
 0x3f6   : > { %v1879_v33 = vmax.f32 %v1568_v26, 0.0  ;;  %v1913_v4 = vmax.f32 %v1701_v27, 0.0  ;;  %v1572_v3 = vadd.f32 %v1571_v0, %v7182_v32  ;;  %v2164_v35 = vmax.f32 %v2162_v9, %v2163_v20 }
 0x3f7   : > { %v2019_v36 = vmax.f32 %v2018_v14, %v1878_v30  ;;  %v2053_v37 = vmax.f32 %v2052_v15, %v1912_v6  ;;  %v1886_v43 = vmax.f32 %v1570_v63, 0.0  ;;  %v1920_v46 = vmax.f32 %v1703_v42, 0.0 }
 0x3f8   : > { %v2034_v44 = vmax.f32 %v2033_v21, %v1879_v33  ;;  %v2068_v45 = vmax.f32 %v2067_v25, %v1913_v4  ;;  %v1887_v47 = vmax.f32 %v1572_v3, 0.0  ;;  %v1705_v49 = vadd.f32 %v1704_v2, %v7153_v7  ;;  %v5776_v25 = vld [vmem:[#allocation13 + $0x22c] ss:$16 sps:$4 sm:$0xff]   ;;  %v5774_v33 = vld [vmem:[#allocation13 + $0x228] ss:$16 sps:$4 sm:$0xff]  }
 0x3f9   : > { %v2020_v48 = vmax.f32 %v2019_v36, %v1886_v43  ;;  %v2169_v50 = vrot.slane %v2168_v31, 1  ;;  %v2054_v51 = vmax.f32 %v2053_v37, %v1920_v46  ;;  %v2207_v1 = vpack.c.bf16 %v2164_v35, %v2164_v35  ;;  %v5779_v36 = vld [vmem:[#allocation13 + $0x244] ss:$16 sps:$4 sm:$0xff]   ;;  %v5782_v37 = vld [vmem:[#allocation13 + $0x24c] ss:$16 sps:$4 sm:$0xff]  }
 0x3fa   : > { %v2035_v52 = vmax.f32 %v2034_v44, %v1887_v47  ;;  %v1575_v54 = vpop.f32.mrb[40].mxu1  ;;  %v1708_v57 = vpop.f32.mrb[48].mxu0  ;;  %v1921_v55 = vmax.f32 %v1705_v49, 0.0  ;;  %v5777_v49 = vld [vmem:[#allocation13 + $0x240] ss:$16 sps:$4 sm:$0xff]  }
 0x3fb   : > { %v1576_v56 = vadd.f32 %v1575_v54, %v7158_v11  ;;  %v1709_v59 = vadd.f32 %v1708_v57, %v7147_v58  ;;  %v2170_v60 = vmax.f32 %v2168_v31, %v2169_v50  ;;  %v1577_v19 = vpop.f32.mrb[41].mxu1  ;;  %v1710_v62 = vpop.f32.mrb[49].mxu0  ;;  %v5771_v31 = vld [vmem:[#allocation13 + $0x220] ss:$16 sps:$4 sm:$0xff]  }
 0x3fc   : > { %v1578_v8 = vadd.f32 %v1577_v19, %v7182_v32  ;;  %v1711_v9 = vadd.f32 %v1710_v62, %v7153_v7  ;;  %v1579_v18 = vpop.f32.mrb[42].mxu1  ;;  %v1712_v10 = vpop.f32.mrb[50].mxu0  ;;  %v2069_v13 = vmax.f32 %v2068_v45, %v1921_v55 }
 0x3fd   : > { %v1894_v14 = vmax.f32 %v1576_v56, 0.0  ;;  %v1928_v15 = vmax.f32 %v1709_v59, 0.0  ;;  %v2208_v16 = vpack.c.bf16 %v2170_v60, %v2170_v60  ;;  %v1581_v17 = vpop.f32.mrb[43].mxu1  ;;  %v1714_v20 = vpop.f32.mrb[51].mxu0  ;;  %v1580_v23 = vadd.f32 %v1579_v18, %v7158_v11  ;;  %v5780_v59 = vld [vmem:[#allocation13 + $0x248] ss:$16 sps:$4 sm:$0xff]  }
 0x3fe   : > { %v1895_v21 = vmax.f32 %v1578_v8, 0.0  ;;  %v1929_v22 = vmax.f32 %v1711_v9, 0.0  ;;  %v1713_v24 = vadd.f32 %v1712_v10, %v7147_v58  ;;  %v1582_v28 = vadd.f32 %v1581_v17, %v7182_v32  ;;  %v5785_v18 = vld [vmem:[#allocation13 + $0x264] ss:$16 sps:$4 sm:$0xff]   ;;  %v5788_v10 = vld [vmem:[#allocation13 + $0x26c] ss:$16 sps:$4 sm:$0xff]  }
 0x3ff   : > { %v2021_v26 = vmax.f32 %v2020_v48, %v1894_v14  ;;  %v2055_v27 = vmax.f32 %v2054_v51, %v1928_v15  ;;  %3805 = vmatprep.mubr.bf16.mxu0 %v2208_v16  ;;  %3969 = vmatprep.mubr.bf16.mxu1 %v2208_v16  ;;  %v1902_v6 = vmax.f32 %v1580_v23, 0.0  ;;  %v1715_v2 = vadd.f32 %v1714_v20, %v7153_v7 }
 0x400   : > { %v2036_v29 = vmax.f32 %v2035_v52, %v1895_v21  ;;  %v2070_v30 = vmax.f32 %v2069_v13, %v1929_v22  ;;  %3806 = vmatmul.mubr.bf16.vlgmr.msra.gmra.mrb[64].mxu0 %v2207_v1  ;;  %3970 = vmatmul.mubr.bf16.vlgmr.msra.gmra.mrb[96].mxu1 %v2207_v1  ;;  %v1936_v63 = vmax.f32 %v1713_v24, 0.0  ;;  %v1903_v0 = vmax.f32 %v1582_v28, 0.0  ;;  %v5783_v24 = vld [vmem:[#allocation13 + $0x260] ss:$16 sps:$4 sm:$0xff]  }
 0x401   : > { %3815 = vmatpush1.bf16.msra.mxu0 %v5765_v5  ;;  %3979 = vmatpush1.bf16.msra.mxu1 %v5768_v41  ;;  %v2022_v4 = vmax.f32 %v2021_v26, %v1902_v6  ;;  %v1937_v44 = vmax.f32 %v1715_v2, 0.0 }
 0x402   : > { %v2056_v42 = vmax.f32 %v2055_v27, %v1936_v63  ;;  %3816 = vmatprep.subr.bf16.mxu0 %v5773_v39  ;;  %3980 = vmatprep.subr.bf16.mxu1 %v5776_v25  ;;  %v1585_v3 = vpop.f32.mrb[44].mxu1  ;;  %v1718_v35 = vpop.f32.mrb[52].mxu0  ;;  %v2037_v43 = vmax.f32 %v2036_v29, %v1903_v0  ;;  %v5786_v39 = vld [vmem:[#allocation13 + $0x268] ss:$16 sps:$4 sm:$0xff]   ;;  %v5791_v29 = vld [vmem:[#allocation13 + $0x284] ss:$16 sps:$4 sm:$0xff]  }
 0x403   : > { %v1586_v45 = vadd.f32 %v1585_v3, %v7158_v11  ;;  %v1719_v46 = vadd.f32 %v1718_v35, %v7147_v58  ;;  %v1587_v47 = vpop.f32.mrb[45].mxu1  ;;  %v1720_v48 = vpop.f32.mrb[53].mxu0  ;;  %v2071_v57 = vmax.f32 %v2070_v30, %v1937_v44  ;;  %v5794_v30 = vld [vmem:[#allocation13 + $0x28c] ss:$16 sps:$4 sm:$0xff]  }
 0x404   : > { %v1588_v50 = vadd.f32 %v1587_v47, %v7182_v32  ;;  %v1721_v51 = vadd.f32 %v1720_v48, %v7153_v7  ;;  %v1589_v52 = vpop.f32.mrb[46].mxu1  ;;  %v1722_v54 = vpop.f32.mrb[54].mxu0 }
 0x405   : > { %3817 = vmatpush1.bf16.msra.mxu0 %v5771_v31  ;;  %3981 = vmatpush1.bf16.msra.mxu1 %v5774_v33  ;;  %v1910_v55 = vmax.f32 %v1586_v45, 0.0  ;;  %v1944_v56 = vmax.f32 %v1719_v46, 0.0  ;;  %v1590_v60 = vadd.f32 %v1589_v52, %v7158_v11  ;;  %v1591_v19 = vpop.f32.mrb[47].mxu1  ;;  %v1724_v62 = vpop.f32.mrb[55].mxu0  ;;  %v1723_v8 = vadd.f32 %v1722_v54, %v7147_v58  ;;  %v5789_v33 = vld [vmem:[#allocation13 + $0x280] ss:$16 sps:$4 sm:$0xff]  }
 0x406   : > { %3818 = vmatprep.subr.bf16.mxu0 %v5779_v36  ;;  %3982 = vmatprep.subr.bf16.mxu1 %v5782_v37  ;;  %v1911_v1 = vmax.f32 %v1588_v50, 0.0  ;;  %v1945_v5 = vmax.f32 %v1721_v51, 0.0  ;;  %v1592_v9 = vadd.f32 %v1591_v19, %v7182_v32  ;;  %v1725_v16 = vadd.f32 %v1724_v62, %v7153_v7  ;;  %v5797_v52 = vld [vmem:[#allocation13 + $0x2a4] ss:$16 sps:$4 sm:$0xff]   ;;  %v5800_v54 = vld [vmem:[#allocation13 + $0x2ac] ss:$16 sps:$4 sm:$0xff]  }
 0x407   : > { %v2023_v13 = vmax.f32 %v2022_v4, %v1910_v55  ;;  %v2057_v14 = vmax.f32 %v2056_v42, %v1944_v56  ;;  %v1918_v15 = vmax.f32 %v1590_v60, 0.0  ;;  %v1952_v20 = vmax.f32 %v1723_v8, 0.0 }
 0x408   : > { %v2038_v41 = vmax.f32 %v2037_v43, %v1911_v1  ;;  %v2072_v17 = vmax.f32 %v2071_v57, %v1945_v5  ;;  %v1919_v21 = vmax.f32 %v1592_v9, 0.0  ;;  %v1953_v23 = vmax.f32 %v1725_v16, 0.0  ;;  %v5792_v43 = vld [vmem:[#allocation13 + $0x288] ss:$16 sps:$4 sm:$0xff]   ;;  %v5795_v9 = vld [vmem:[#allocation13 + $0x2a0] ss:$16 sps:$4 sm:$0xff]  }
 0x409   : > { %3819 = vmatpush1.bf16.msra.mxu0 %v5777_v49  ;;  %3983 = vmatpush1.bf16.msra.mxu1 %v5780_v59  ;;  %v2024_v22 = vmax.f32 %v2023_v13, %v1918_v15  ;;  %v2058_v25 = vmax.f32 %v2057_v14, %v1952_v20  ;;  %v5803_v16 = vld [vmem:[#allocation13 + $0x2c4] ss:$16 sps:$4 sm:$0xff]  }
 0x40a   : > { %v2039_v26 = vmax.f32 %v2038_v41, %v1919_v21  ;;  %3820 = vmatprep.subr.bf16.mxu0 %v5785_v18  ;;  %3984 = vmatprep.subr.bf16.mxu1 %v5788_v10  ;;  %v1595_v27 = vpop.f32.mrb[48].mxu1  ;;  %v1728_v28 = vpop.f32.mrb[56].mxu0  ;;  %v2073_v6 = vmax.f32 %v2072_v17, %v1953_v23  ;;  %v5798_v18 = vld [vmem:[#allocation13 + $0x2a8] ss:$16 sps:$4 sm:$0xff]   ;;  %v5806_v41 = vld [vmem:[#allocation13 + $0x2cc] ss:$16 sps:$4 sm:$0xff]  }
 0x40b   : > { %v1596_v63 = vadd.f32 %v1595_v27, %v7158_v11  ;;  %v1729_v0 = vadd.f32 %v1728_v28, %v7147_v58  ;;  %v1597_v2 = vpop.f32.mrb[49].mxu1  ;;  %v1730_v31 = vpop.f32.mrb[57].mxu0  ;;  %v5801_v23 = vld [vmem:[#allocation13 + $0x2c0] ss:$16 sps:$4 sm:$0xff]  }
 0x40c   : > { %v1598_v4 = vadd.f32 %v1597_v2, %v7182_v32  ;;  %v1731_v42 = vadd.f32 %v1730_v31, %v7153_v7  ;;  %v1599_v3 = vpop.f32.mrb[50].mxu1  ;;  %v1732_v35 = vpop.f32.mrb[58].mxu0 }
 0x40d   : > { %3821 = vmatpush1.bf16.msra.mxu0 %v5783_v24  ;;  %3985 = vmatpush1.bf16.msra.mxu1 %v5786_v39  ;;  %v1926_v36 = vmax.f32 %v1596_v63, 0.0  ;;  %v1960_v37 = vmax.f32 %v1729_v0, 0.0  ;;  %v1600_v44 = vadd.f32 %v1599_v3, %v7158_v11  ;;  %v1733_v45 = vadd.f32 %v1732_v35, %v7147_v58  ;;  %v1601_v46 = vpop.f32.mrb[51].mxu1  ;;  %v1734_v47 = vpop.f32.mrb[59].mxu0  ;;  %v5812_v3 = vld [vmem:[#allocation13 + $0x2ec] ss:$16 sps:$4 sm:$0xff]  }
 0x40e   : > { %3822 = vmatprep.subr.bf16.mxu0 %v5791_v29  ;;  %3986 = vmatprep.subr.bf16.mxu1 %v5794_v30  ;;  %v1927_v48 = vmax.f32 %v1598_v4, 0.0  ;;  %v1961_v49 = vmax.f32 %v1731_v42, 0.0  ;;  %v1602_v50 = vadd.f32 %v1601_v46, %v7182_v32  ;;  %v1735_v51 = vadd.f32 %v1734_v47, %v7153_v7  ;;  %v5804_v29 = vld [vmem:[#allocation13 + $0x2c8] ss:$16 sps:$4 sm:$0xff]   ;;  %v5809_v42 = vld [vmem:[#allocation13 + $0x2e4] ss:$16 sps:$4 sm:$0xff]  }
 0x40f   : > { %v2025_v57 = vmax.f32 %v2024_v22, %v1926_v36  ;;  %v2059_v55 = vmax.f32 %v2058_v25, %v1960_v37  ;;  %v1934_v56 = vmax.f32 %v1600_v44, 0.0  ;;  %v1968_v59 = vmax.f32 %v1733_v45, 0.0 }
 0x410   : > { %v2040_v60 = vmax.f32 %v2039_v26, %v1927_v48  ;;  %v2074_v19 = vmax.f32 %v2073_v6, %v1961_v49  ;;  %v1935_v62 = vmax.f32 %v1602_v50, 0.0  ;;  %v1969_v1 = vmax.f32 %v1735_v51, 0.0  ;;  %v5807_v49 = vld [vmem:[#allocation13 + $0x2e0] ss:$16 sps:$4 sm:$0xff]   ;;  %v5810_v50 = vld [vmem:[#allocation13 + $0x2e8] ss:$16 sps:$4 sm:$0xff]  }
 0x411   : > { %3823 = vmatpush1.bf16.msra.mxu0 %v5789_v33  ;;  %3987 = vmatpush1.bf16.msra.mxu1 %v5792_v43  ;;  %v2026_v5 = vmax.f32 %v2025_v57, %v1934_v56  ;;  %v2060_v8 = vmax.f32 %v2059_v55, %v1968_v59  ;;  %v5818_v57 = vld [vmem:[#allocation13 + $0x30c] ss:$16 sps:$4 sm:$0xff]  }
 0x412   : > { %v2041_v10 = vmax.f32 %v2040_v60, %v1935_v62  ;;  %v2075_v13 = vmax.f32 %v2074_v19, %v1969_v1  ;;  %3824 = vmatprep.subr.bf16.mxu0 %v5797_v52  ;;  %3988 = vmatprep.subr.bf16.mxu1 %v5800_v54  ;;  %v1605_v14 = vpop.f32.mrb[52].mxu1  ;;  %v1738_v15 = vpop.f32.mrb[60].mxu0  ;;  %v5815_v54 = vld [vmem:[#allocation13 + $0x304] ss:$16 sps:$4 sm:$0xff]   ;;  %v5813_v62 = vld [vmem:[#allocation13 + $0x300] ss:$16 sps:$4 sm:$0xff]  }
 0x413   : > { %v1606_v17 = vadd.f32 %v1605_v14, %v7158_v11  ;;  %v1739_v20 = vadd.f32 %v1738_v15, %v7147_v58  ;;  %v1607_v21 = vpop.f32.mrb[53].mxu1  ;;  %v1740_v22 = vpop.f32.mrb[61].mxu0  ;;  %v5816_v1 = vld [vmem:[#allocation13 + $0x308] ss:$16 sps:$4 sm:$0xff]  }
 0x414   : > { %v1608_v24 = vadd.f32 %v1607_v21, %v7182_v32  ;;  %v1741_v39 = vadd.f32 %v1740_v22, %v7153_v7  ;;  %v1609_v25 = vpop.f32.mrb[54].mxu1  ;;  %v1742_v26 = vpop.f32.mrb[62].mxu0  ;;  %v5822_v21 = vld [vmem:[#allocation13 + $0x328] ss:$16 sps:$4 sm:$0xff]  }
 0x415   : > { %3825 = vmatpush1.bf16.msra.mxu0 %v5795_v9  ;;  %3989 = vmatpush1.bf16.msra.mxu1 %v5798_v18  ;;  %v1942_v27 = vmax.f32 %v1606_v17, 0.0  ;;  %v1976_v28 = vmax.f32 %v1739_v20, 0.0  ;;  %v1610_v30 = vadd.f32 %v1609_v25, %v7158_v11  ;;  %v1743_v6 = vadd.f32 %v1742_v26, %v7147_v58  ;;  %v1611_v63 = vpop.f32.mrb[55].mxu1  ;;  %v1744_v0 = vpop.f32.mrb[63].mxu0  ;;  %v5819_v20 = vld [vmem:[#allocation13 + $0x320] ss:$16 sps:$4 sm:$0xff]  }
 0x416   : > { %3826 = vmatprep.subr.bf16.mxu0 %v5803_v16  ;;  %3990 = vmatprep.subr.bf16.mxu1 %v5806_v41  ;;  %v1943_v2 = vmax.f32 %v1608_v24, 0.0  ;;  %v1977_v31 = vmax.f32 %v1741_v39, 0.0  ;;  %v1612_v33 = vadd.f32 %v1611_v63, %v7182_v32  ;;  %v1745_v4 = vadd.f32 %v1744_v0, %v7153_v7  ;;  %v5827_v24 = vld [vmem:[#allocation13 + $0x344] ss:$16 sps:$4 sm:$0xff]   ;;  %v5830_v39 = vld [vmem:[#allocation13 + $0x34c] ss:$16 sps:$4 sm:$0xff]  }
 0x417   : > { %v2027_v35 = vmax.f32 %v2026_v5, %v1942_v27  ;;  %v2061_v36 = vmax.f32 %v2060_v8, %v1976_v28  ;;  %v1950_v37 = vmax.f32 %v1610_v30, 0.0  ;;  %v1984_v43 = vmax.f32 %v1743_v6, 0.0  ;;  %v5825_v63 = vld [vmem:[#allocation13 + $0x340] ss:$16 sps:$4 sm:$0xff]   ;;  %v5828_v0 = vld [vmem:[#allocation13 + $0x348] ss:$16 sps:$4 sm:$0xff]  }
 0x418   : > { %v2042_v44 = vmax.f32 %v2041_v10, %v1943_v2  ;;  %v2076_v45 = vmax.f32 %v2075_v13, %v1977_v31  ;;  %v1951_v46 = vmax.f32 %v1612_v33, 0.0  ;;  %v1985_v58 = vmax.f32 %v1745_v4, 0.0  ;;  %v5821_v10 = vld [vmem:[#allocation13 + $0x324] ss:$16 sps:$4 sm:$0xff]   ;;  %v5824_v13 = vld [vmem:[#allocation13 + $0x32c] ss:$16 sps:$4 sm:$0xff]  }
 0x419   : > { %3827 = vmatpush1.bf16.msra.mxu0 %v5801_v23  ;;  %3991 = vmatpush1.bf16.msra.mxu1 %v5804_v29  ;;  %v2028_v47 = vmax.f32 %v2027_v35, %v1950_v37  ;;  %v7232_v48 = vmax.f32 %v2061_v36, %v1984_v43  ;;  %v1074_v27 = vsub.s32 6, %v7106_v34  ;;  %v1078_v30 = vsub.s32 7, %v7106_v34  ;;  %v6161_v34 = vld [vmem:[%s7402_s23 + $0x70] sm:$0xff]  }
 0x41a   : > { %v2043_v51 = vmax.f32 %v2042_v44, %v1951_v46  ;;  %v7234_v52 = vmax.f32 %v2076_v45, %v1985_v58  ;;  %3828 = vmatprep.subr.bf16.mxu0 %v5809_v42  ;;  %3992 = vmatprep.subr.bf16.mxu1 %v5812_v3  ;;  %v1615_v7 = vpop.f32.mrb[56].mxu1  ;;  %v5833_v42 = vld [vmem:[#allocation13 + $0x364] ss:$16 sps:$4 sm:$0xff]   ;;  %v5836_v3 = vld [vmem:[#allocation13 + $0x36c] ss:$16 sps:$4 sm:$0xff]  }
 0x41b   : > { %v1616_v55 = vadd.f32 %v1615_v7, %v7158_v11  ;;  %v1617_v56 = vpop.f32.mrb[57].mxu1  ;;  %v7247_v37 = vrot.slane %v7111_v38, %v1074_v27  ;;  %v7251_v46 = vrot.slane %v7111_v38, %v1078_v30  ;;  %v5831_v58 = vld [vmem:[#allocation13 + $0x360] ss:$16 sps:$4 sm:$0xff]  }
 0x41c   : > { %v1618_v59 = vadd.f32 %v1617_v56, %v7182_v32  ;;  %v1619_v60 = vpop.f32.mrb[58].mxu1  ;;  %v2189_v43 = vrot.slane %v7234_v52, 4 }
 0x41d   : > { %3829 = vmatpush1.bf16.msra.mxu0 %v5807_v49  ;;  %3993 = vmatpush1.bf16.msra.mxu1 %v5810_v50  ;;  %v1958_v19 = vmax.f32 %v1616_v55, 0.0  ;;  %v1620_v5 = vadd.f32 %v1619_v60, %v7158_v11  ;;  %v1621_v8 = vpop.f32.mrb[59].mxu1  ;;  %v5839_v50 = vld [vmem:[#allocation13 + $0x384] ss:$16 sps:$4 sm:$0xff]  }
 0x41e   : > { %3830 = vmatprep.subr.bf16.mxu0 %v5815_v54  ;;  %3994 = vmatprep.subr.bf16.mxu1 %v5818_v57  ;;  %v1959_v9 = vmax.f32 %v1618_v59, 0.0  ;;  %v1622_v18 = vadd.f32 %v1621_v8, %v7182_v32  ;;  %v2190_v55 = vmax.f32 %v7234_v52, %v2189_v43  ;;  %v5857_v43 = vld [vmem:[#allocation13 + $0x3e4] ss:$16 sps:$4 sm:$0xff]  }
 0x41f   : > { %v2029_v14 = vmax.f32 %v2028_v47, %v1958_v19  ;;  %v1966_v15 = vmax.f32 %v1620_v5, 0.0  ;;  %v5834_v47 = vld [vmem:[#allocation13 + $0x368] ss:$16 sps:$4 sm:$0xff]   ;;  %v5837_v19 = vld [vmem:[#allocation13 + $0x380] ss:$16 sps:$4 sm:$0xff]  }
 0x420   : > { %v2044_v16 = vmax.f32 %v2043_v51, %v1959_v9  ;;  %v1967_v41 = vmax.f32 %v1622_v18, 0.0  ;;  %v5842_v51 = vld [vmem:[#allocation13 + $0x38c] ss:$16 sps:$4 sm:$0xff]   ;;  %v5845_v18 = vld [vmem:[#allocation13 + $0x3a4] ss:$16 sps:$4 sm:$0xff]  }
 0x421   : > { %3831 = vmatpush1.bf16.msra.mxu0 %v5813_v62  ;;  %3995 = vmatpush1.bf16.msra.mxu1 %v5816_v1  ;;  %v2030_v17 = vmax.f32 %v2029_v14, %v1966_v15  ;;  %v5840_v62 = vld [vmem:[#allocation13 + $0x388] ss:$16 sps:$4 sm:$0xff]   ;;  %v2191_v15 = vrot.slane %v2190_v55, 2 }
 0x422   : > { %v2045_v22 = vmax.f32 %v2044_v16, %v1967_v41  ;;  %3832 = vmatprep.subr.bf16.mxu0 %v5821_v10  ;;  %3996 = vmatprep.subr.bf16.mxu1 %v5824_v13  ;;  %v1625_v23 = vpop.f32.mrb[60].mxu1  ;;  %v5848_v10 = vld [vmem:[#allocation13 + $0x3ac] ss:$16 sps:$4 sm:$0xff]  }
 0x423   : > { %v1626_v25 = vadd.f32 %v1625_v23, %v7158_v11  ;;  %v1627_v26 = vpop.f32.mrb[61].mxu1 }
 0x424   : > { %v1628_v28 = vadd.f32 %v1627_v26, %v7182_v32  ;;  %v1629_v29 = vpop.f32.mrb[62].mxu1  ;;  %v5854_v26 = vld [vmem:[#allocation13 + $0x3cc] ss:$16 sps:$4 sm:$0xff]  }
 0x425   : > { %3833 = vmatpush1.bf16.msra.mxu0 %v5819_v20  ;;  %3997 = vmatpush1.bf16.msra.mxu1 %v5822_v21  ;;  %v1974_v6 = vmax.f32 %v1626_v25, 0.0  ;;  %v1630_v2 = vadd.f32 %v1629_v29, %v7158_v11  ;;  %v1631_v31 = vpop.f32.mrb[63].mxu1  ;;  %v5843_v21 = vld [vmem:[#allocation13 + $0x3a0] ss:$16 sps:$4 sm:$0xff]   ;;  %v5851_v25 = vld [vmem:[#allocation13 + $0x3c4] ss:$16 sps:$4 sm:$0xff]  }
 0x426   : > { %3834 = vmatprep.subr.bf16.mxu0 %v5827_v24  ;;  %3998 = vmatprep.subr.bf16.mxu1 %v5830_v39  ;;  %v1975_v33 = vmax.f32 %v1628_v28, 0.0  ;;  %v1632_v4 = vadd.f32 %v1631_v31, %v7182_v32  ;;  %v5849_v31 = vld [vmem:[#allocation13 + $0x3c0] ss:$16 sps:$4 sm:$0xff]  }
 0x427   : > { %v2031_v35 = vmax.f32 %v2030_v17, %v1974_v6  ;;  %v1982_v36 = vmax.f32 %v1630_v2, 0.0 }
 0x428   : > { %v2046_v44 = vmax.f32 %v2045_v22, %v1975_v33  ;;  %v1983_v45 = vmax.f32 %v1632_v4, 0.0  ;;  %v5846_v22 = vld [vmem:[#allocation13 + $0x3a8] ss:$16 sps:$4 sm:$0xff]  }
 0x429   : > { %3835 = vmatpush1.bf16.msra.mxu0 %v5825_v63  ;;  %3999 = vmatpush1.bf16.msra.mxu1 %v5828_v0  ;;  %v2032_v11 = vmax.f32 %v2031_v35, %v1982_v36  ;;  %v2192_v0 = vmax.f32 %v2190_v55, %v2191_v15  ;;  %v5852_v33 = vld [vmem:[#allocation13 + $0x3c8] ss:$16 sps:$4 sm:$0xff]  }
 0x42a   : > { %v2047_v32 = vmax.f32 %v2046_v44, %v1983_v45  ;;  %3836 = vmatprep.subr.bf16.mxu0 %v5833_v42  ;;  %4000 = vmatprep.subr.bf16.mxu1 %v5836_v3  ;;  %v1781_v49 = vpop.f32.mrb[64].mxu1  ;;  %v5860_v44 = vld [vmem:[#allocation13 + $0x3ec] ss:$16 sps:$4 sm:$0xff]  }
 0x42b   : > { %v2171_v7 = vrot.slane %v2032_v11, 4  ;;  %v1782_v54 = vadd.f32 %v1781_v49, %v7247_v37  ;;  %v1783_v57 = vpop.f32.mrb[65].mxu1 }
 0x42c   : > { %v2177_v56 = vrot.slane %v2047_v32, 4  ;;  %v1784_v38 = vadd.f32 %v1783_v57, %v7251_v46  ;;  %v1785_v59 = vpop.f32.mrb[66].mxu1 }
 0x42d   : > { %v2172_v60 = vmax.f32 %v2032_v11, %v2171_v7  ;;  %3837 = vmatpush1.bf16.msra.mxu0 %v5831_v58  ;;  %4001 = vmatpush1.bf16.msra.mxu1 %v5834_v47  ;;  %v1786_v1 = vadd.f32 %v1785_v59, %v7247_v37  ;;  %v1787_v5 = vpop.f32.mrb[67].mxu1  ;;  %v1866_v13 = vmax.f32 %v1782_v54, 0.0  ;;  %v5855_v7 = vld [vmem:[#allocation13 + $0x3e0] ss:$16 sps:$4 sm:$0xff]   ;;  %v5858_v54 = vld [vmem:[#allocation13 + $0x3e8] ss:$16 sps:$4 sm:$0xff]  }
 0x42e   : > { %v2178_v8 = vmax.f32 %v2047_v32, %v2177_v56  ;;  %3838 = vmatprep.subr.bf16.mxu0 %v5839_v50  ;;  %4002 = vmatprep.subr.bf16.mxu1 %v5842_v51  ;;  %v1788_v9 = vadd.f32 %v1787_v5, %v7251_v46  ;;  %v1867_v41 = vmax.f32 %v1784_v38, 0.0  ;;  %v2193_v50 = vrot.slane %v2192_v0, 1  ;;  %v5863_v56 = vld [vmem:[#allocation13 + $0x404] ss:$16 sps:$4 sm:$0xff]   ;;  %v5866_v38 = vld [vmem:[#allocation13 + $0x40c] ss:$16 sps:$4 sm:$0xff]  }
 0x42f   : > { %v2173_v52 = vrot.slane %v2172_v60, 2  ;;  %v1874_v14 = vmax.f32 %v1786_v1, 0.0 }
 0x430   : > { %v2179_v16 = vrot.slane %v2178_v8, 2  ;;  %v1875_v17 = vmax.f32 %v1788_v9, 0.0  ;;  %v2194_v5 = vmax.f32 %v2192_v0, %v2193_v50  ;;  %v5861_v9 = vld [vmem:[#allocation13 + $0x400] ss:$16 sps:$4 sm:$0xff]  }
 0x431   : > { %3839 = vmatpush1.bf16.msra.mxu0 %v5837_v19  ;;  %4003 = vmatpush1.bf16.msra.mxu1 %v5840_v62  ;;  %v2078_v20 = vmax.f32 %v1866_v13, %v1874_v14  ;;  %v2174_v23 = vmax.f32 %v2172_v60, %v2173_v52 }
 0x432   : > { %v2093_v24 = vmax.f32 %v1867_v41, %v1875_v17  ;;  %3840 = vmatprep.subr.bf16.mxu0 %v5845_v18  ;;  %4004 = vmatprep.subr.bf16.mxu1 %v5848_v10  ;;  %v1791_v39 = vpop.f32.mrb[68].mxu1  ;;  %v2180_v27 = vmax.f32 %v2178_v8, %v2179_v16  ;;  %v5864_v18 = vld [vmem:[#allocation13 + $0x408] ss:$16 sps:$4 sm:$0xff]   ;;  %v5869_v17 = vld [vmem:[#allocation13 + $0x424] ss:$16 sps:$4 sm:$0xff]  }
 0x433   : > { %v1792_v28 = vadd.f32 %v1791_v39, %v7247_v37  ;;  %v1793_v29 = vpop.f32.mrb[69].mxu1  ;;  %v2175_v3 = vrot.slane %v2174_v23, 1  ;;  %v5867_v39 = vld [vmem:[#allocation13 + $0x420] ss:$16 sps:$4 sm:$0xff]  }
 0x434   : > { %v1794_v30 = vadd.f32 %v1793_v29, %v7251_v46  ;;  %v1795_v6 = vpop.f32.mrb[70].mxu1  ;;  %v2181_v63 = vrot.slane %v2180_v27, 1  ;;  %v5878_v29 = vld [vmem:[#allocation13 + $0x44c] ss:$16 sps:$4 sm:$0xff]  }
 0x435   : > { %3841 = vmatpush1.bf16.msra.mxu0 %v5843_v21  ;;  %4005 = vmatpush1.bf16.msra.mxu1 %v5846_v22  ;;  %v1882_v2 = vmax.f32 %v1792_v28, 0.0  ;;  %v1796_v4 = vadd.f32 %v1795_v6, %v7247_v37  ;;  %v1797_v42 = vpop.f32.mrb[71].mxu1  ;;  %v2176_v59 = vmax.f32 %v2174_v23, %v2175_v3  ;;  %v2212_v22 = vpack.c.bf16 %v2194_v5, %v2194_v5  ;;  %v5875_v28 = vld [vmem:[#allocation13 + $0x444] ss:$16 sps:$4 sm:$0xff]  }
 0x436   : > { %3842 = vmatprep.subr.bf16.mxu0 %v5851_v25  ;;  %4006 = vmatprep.subr.bf16.mxu1 %v5854_v26  ;;  %v1883_v35 = vmax.f32 %v1794_v30, 0.0  ;;  %v1798_v36 = vadd.f32 %v1797_v42, %v7251_v46  ;;  %v2182_v45 = vmax.f32 %v2180_v27, %v2181_v63  ;;  %v5870_v25 = vld [vmem:[#allocation13 + $0x428] ss:$16 sps:$4 sm:$0xff]  }
 0x437   : > { %v2079_v11 = vmax.f32 %v2078_v20, %v1882_v2  ;;  %v1890_v58 = vmax.f32 %v1796_v4, 0.0  ;;  %v2209_v14 = vpack.c.bf16 %v2176_v59, %v2176_v59  ;;  %v5872_v20 = vld [vmem:[#allocation13 + $0x42c] ss:$16 sps:$4 sm:$0xff]  }
 0x438   : > { %v2094_v47 = vmax.f32 %v2093_v24, %v1883_v35  ;;  %v1891_v32 = vmax.f32 %v1798_v36, 0.0  ;;  %v2210_v49 = vpack.c.bf16 %v2182_v45, %v2182_v45  ;;  %v5881_v36 = vld [vmem:[#allocation13 + $0x464] ss:$16 sps:$4 sm:$0xff]  }
 0x439   : > { %3843 = vmatpush1.bf16.msra.mxu0 %v5849_v31  ;;  %4007 = vmatpush1.bf16.msra.mxu1 %v5852_v33  ;;  %v2080_v51 = vmax.f32 %v2079_v11, %v1890_v58  ;;  %v5873_v31 = vld [vmem:[#allocation13 + $0x440] ss:$16 sps:$4 sm:$0xff]   ;;  %v5876_v33 = vld [vmem:[#allocation13 + $0x448] ss:$16 sps:$4 sm:$0xff]  }
 0x43a   : > { %v2095_v57 = vmax.f32 %v2094_v47, %v1891_v32  ;;  %3844 = vmatprep.subr.bf16.mxu0 %v5857_v43  ;;  %4008 = vmatprep.subr.bf16.mxu1 %v5860_v44  ;;  %v1801_v55 = vpop.f32.mrb[72].mxu1  ;;  %v5884_v43 = vld [vmem:[#allocation13 + $0x46c] ss:$16 sps:$4 sm:$0xff]   ;;  %v5879_v32 = vld [vmem:[#allocation13 + $0x460] ss:$16 sps:$4 sm:$0xff]  }
 0x43b   : > { %v1802_v60 = vadd.f32 %v1801_v55, %v7247_v37  ;;  %3846 = vmatprep.mubr.bf16.mxu0 %v2210_v49  ;;  %4010 = vmatprep.mubr.bf16.mxu1 %v2210_v49  ;;  %v1803_v19 = vpop.f32.mrb[73].mxu1  ;;  %v5882_v49 = vld [vmem:[#allocation13 + $0x468] ss:$16 sps:$4 sm:$0xff]  }
 0x43c   : > { %v1804_v62 = vadd.f32 %v1803_v19, %v7251_v46  ;;  %v1805_v1 = vpop.f32.mrb[74].mxu1  ;;  %v5888_v19 = vld [vmem:[#allocation13 + $0x488] ss:$16 sps:$4 sm:$0xff]  }
 0x43d   : > { %3845 = vmatpush1.bf16.msra.mxu0 %v5855_v7  ;;  %4009 = vmatpush1.bf16.msra.mxu1 %v5858_v54  ;;  %v1898_v8 = vmax.f32 %v1802_v60, 0.0  ;;  %v1806_v10 = vadd.f32 %v1805_v1, %v7247_v37  ;;  %v1807_v52 = vpop.f32.mrb[75].mxu1  ;;  %v5887_v7 = vld [vmem:[#allocation13 + $0x484] ss:$16 sps:$4 sm:$0xff]   ;;  %v5890_v54 = vld [vmem:[#allocation13 + $0x48c] ss:$16 sps:$4 sm:$0xff]  }
 0x43e   : > { %3855 = vmatprep.subr.bf16.mxu0 %v5863_v56  ;;  %4019 = vmatprep.subr.bf16.mxu1 %v5866_v38  ;;  %v1899_v13 = vmax.f32 %v1804_v62, 0.0  ;;  %v1808_v15 = vadd.f32 %v1807_v52, %v7251_v46  ;;  %v5885_v60 = vld [vmem:[#allocation13 + $0x480] ss:$16 sps:$4 sm:$0xff]  }
 0x43f   : > { %v2081_v16 = vmax.f32 %v2080_v51, %v1898_v8  ;;  %v1906_v41 = vmax.f32 %v1806_v10, 0.0 }
 0x440   : > { %v2096_v21 = vmax.f32 %v2095_v57, %v1899_v13  ;;  %3847 = vmatmul.mubr.bf16.vlgmr.msra.gmra.mrb[64].mxu0 %v2209_v14  ;;  %4011 = vmatmul.mubr.bf16.vlgmr.msra.gmra.mrb[96].mxu1 %v2209_v14  ;;  %v1907_v23 = vmax.f32 %v1808_v15, 0.0 }
 0x441   : > { %3856 = vmatpush1.bf16.msra.mxu0 %v5861_v9  ;;  %4020 = vmatpush1.bf16.msra.mxu1 %v5864_v18  ;;  %v2082_v24 = vmax.f32 %v2081_v16, %v1906_v41  ;;  %v5893_v9 = vld [vmem:[#allocation13 + $0x4a4] ss:$16 sps:$4 sm:$0xff]   ;;  %v5896_v18 = vld [vmem:[#allocation13 + $0x4ac] ss:$16 sps:$4 sm:$0xff]   ;;  %v5891_v16 = vld [vmem:[#allocation13 + $0x4a0] ss:$16 sps:$4 sm:$0xff]  }
 0x442   : > { %3887 = vmatprep.mubr.bf16.mxu0 %v2212_v22  ;;  %4051 = vmatprep.mubr.bf16.mxu1 %v2212_v22  ;;  %v2097_v26 = vmax.f32 %v2096_v21, %v1907_v23  ;;  %v1811_v27 = vpop.f32.mrb[76].mxu1  ;;  %v5894_v41 = vld [vmem:[#allocation13 + $0x4a8] ss:$16 sps:$4 sm:$0xff]   ;;  %v5899_v21 = vld [vmem:[#allocation13 + $0x4c4] ss:$16 sps:$4 sm:$0xff]  }
 0x443   : > { %3857 = vmatprep.subr.bf16.mxu0 %v5869_v17  ;;  %4021 = vmatprep.subr.bf16.mxu1 %v5872_v20  ;;  %v1812_v30 = vadd.f32 %v1811_v27, %v7247_v37  ;;  %v1813_v6 = vpop.f32.mrb[77].mxu1  ;;  %v5902_v22 = vld [vmem:[#allocation13 + $0x4cc] ss:$16 sps:$4 sm:$0xff]   ;;  %v5897_v27 = vld [vmem:[#allocation13 + $0x4c0] ss:$16 sps:$4 sm:$0xff]  }
 0x444   : > { %v1814_v63 = vadd.f32 %v1813_v6, %v7251_v46  ;;  %v1815_v0 = vpop.f32.mrb[78].mxu1 }
 0x445   : > { %3858 = vmatpush1.bf16.msra.mxu0 %v5867_v39  ;;  %4022 = vmatpush1.bf16.msra.mxu1 %v5870_v25  ;;  %v1914_v2 = vmax.f32 %v1812_v30, 0.0  ;;  %v1816_v4 = vadd.f32 %v1815_v0, %v7247_v37  ;;  %v1817_v42 = vpop.f32.mrb[79].mxu1  ;;  %v5905_v0 = vld [vmem:[#allocation13 + $0x4e4] ss:$16 sps:$4 sm:$0xff]  }
 0x446   : > { %3859 = vmatprep.subr.bf16.mxu0 %v5875_v28  ;;  %4023 = vmatprep.subr.bf16.mxu1 %v5878_v29  ;;  %v1915_v3 = vmax.f32 %v1814_v63, 0.0  ;;  %v1818_v35 = vadd.f32 %v1817_v42, %v7251_v46  ;;  %v5900_v28 = vld [vmem:[#allocation13 + $0x4c8] ss:$16 sps:$4 sm:$0xff]  }
 0x447   : > { %v2083_v44 = vmax.f32 %v2082_v24, %v1914_v2  ;;  %v1922_v45 = vmax.f32 %v1816_v4, 0.0  ;;  %v5908_v2 = vld [vmem:[#allocation13 + $0x4ec] ss:$16 sps:$4 sm:$0xff]  }
 0x448   : > { %v2098_v11 = vmax.f32 %v2097_v26, %v1915_v3  ;;  %v1923_v58 = vmax.f32 %v1818_v35, 0.0  ;;  %v5903_v35 = vld [vmem:[#allocation13 + $0x4e0] ss:$16 sps:$4 sm:$0xff]  }
 0x449   : > { %3860 = vmatpush1.bf16.msra.mxu0 %v5873_v31  ;;  %4024 = vmatpush1.bf16.msra.mxu1 %v5876_v33  ;;  %v2084_v47 = vmax.f32 %v2083_v44, %v1922_v45  ;;  %v5911_v45 = vld [vmem:[#allocation13 + $0x504] ss:$16 sps:$4 sm:$0xff]  }
 0x44a   : > { %v2099_v50 = vmax.f32 %v2098_v11, %v1923_v58  ;;  %3861 = vmatprep.subr.bf16.mxu0 %v5881_v36  ;;  %4025 = vmatprep.subr.bf16.mxu1 %v5884_v43  ;;  %v1821_v51 = vpop.f32.mrb[80].mxu1  ;;  %v5906_v36 = vld [vmem:[#allocation13 + $0x4e8] ss:$16 sps:$4 sm:$0xff]   ;;  %v5914_v11 = vld [vmem:[#allocation13 + $0x50c] ss:$16 sps:$4 sm:$0xff]  }
 0x44b   : > { %v1822_v57 = vadd.f32 %v1821_v51, %v7247_v37  ;;  %v1823_v55 = vpop.f32.mrb[81].mxu1  ;;  %v5909_v51 = vld [vmem:[#allocation13 + $0x500] ss:$16 sps:$4 sm:$0xff]  }
 0x44c   : > { %v1824_v56 = vadd.f32 %v1823_v55, %v7251_v46  ;;  %v1825_v38 = vpop.f32.mrb[82].mxu1 }
 0x44d   : > { %3862 = vmatpush1.bf16.msra.mxu0 %v5879_v32  ;;  %4026 = vmatpush1.bf16.msra.mxu1 %v5882_v49  ;;  %v1930_v59 = vmax.f32 %v1822_v57, 0.0  ;;  %v1826_v62 = vadd.f32 %v1825_v38, %v7247_v37  ;;  %v1827_v1 = vpop.f32.mrb[83].mxu1  ;;  %v5917_v38 = vld [vmem:[#allocation13 + $0x524] ss:$16 sps:$4 sm:$0xff]  }
 0x44e   : > { %3863 = vmatprep.subr.bf16.mxu0 %v5887_v7  ;;  %4027 = vmatprep.subr.bf16.mxu1 %v5890_v54  ;;  %v1931_v5 = vmax.f32 %v1824_v56, 0.0  ;;  %v1828_v8 = vadd.f32 %v1827_v1, %v7251_v46  ;;  %v5912_v7 = vld [vmem:[#allocation13 + $0x508] ss:$16 sps:$4 sm:$0xff]  }
 0x44f   : > { %v2085_v10 = vmax.f32 %v2084_v47, %v1930_v59  ;;  %v1938_v52 = vmax.f32 %v1826_v62, 0.0  ;;  %v5920_v59 = vld [vmem:[#allocation13 + $0x52c] ss:$16 sps:$4 sm:$0xff]  }
 0x450   : > { %v2100_v13 = vmax.f32 %v2099_v50, %v1931_v5  ;;  %v1939_v14 = vmax.f32 %v1828_v8, 0.0  ;;  %v5915_v8 = vld [vmem:[#allocation13 + $0x520] ss:$16 sps:$4 sm:$0xff]  }
 0x451   : > { %3864 = vmatpush1.bf16.msra.mxu0 %v5885_v60  ;;  %4028 = vmatpush1.bf16.msra.mxu1 %v5888_v19  ;;  %v2086_v15 = vmax.f32 %v2085_v10, %v1938_v52  ;;  %v5923_v52 = vld [vmem:[#allocation13 + $0x544] ss:$16 sps:$4 sm:$0xff]  }
 0x452   : > { %v2101_v17 = vmax.f32 %v2100_v13, %v1939_v14  ;;  %3865 = vmatprep.subr.bf16.mxu0 %v5893_v9  ;;  %4029 = vmatprep.subr.bf16.mxu1 %v5896_v18  ;;  %v1831_v20 = vpop.f32.mrb[84].mxu1  ;;  %v5918_v9 = vld [vmem:[#allocation13 + $0x528] ss:$16 sps:$4 sm:$0xff]   ;;  %v5926_v13 = vld [vmem:[#allocation13 + $0x54c] ss:$16 sps:$4 sm:$0xff]  }
 0x453   : > { %v1832_v23 = vadd.f32 %v1831_v20, %v7247_v37  ;;  %v1833_v24 = vpop.f32.mrb[85].mxu1  ;;  %v5921_v20 = vld [vmem:[#allocation13 + $0x540] ss:$16 sps:$4 sm:$0xff]  }
 0x454   : > { %v1834_v39 = vadd.f32 %v1833_v24, %v7251_v46  ;;  %v1835_v25 = vpop.f32.mrb[86].mxu1  ;;  %v2183_v24 = vrot.slane %v7232_v48, 4 }
 0x455   : > { %3866 = vmatpush1.bf16.msra.mxu0 %v5891_v16  ;;  %4030 = vmatpush1.bf16.msra.mxu1 %v5894_v41  ;;  %v1946_v26 = vmax.f32 %v1832_v23, 0.0  ;;  %v1836_v29 = vadd.f32 %v1835_v25, %v7247_v37  ;;  %v1837_v30 = vpop.f32.mrb[87].mxu1 }
 0x456   : > { %3867 = vmatprep.subr.bf16.mxu0 %v5899_v21  ;;  %4031 = vmatprep.subr.bf16.mxu1 %v5902_v22  ;;  %v1947_v6 = vmax.f32 %v1834_v39, 0.0  ;;  %v1838_v63 = vadd.f32 %v1837_v30, %v7251_v46  ;;  %v5924_v21 = vld [vmem:[#allocation13 + $0x548] ss:$16 sps:$4 sm:$0xff]  }
 0x457   : > { %v2087_v31 = vmax.f32 %v2086_v15, %v1946_v26  ;;  %v1954_v33 = vmax.f32 %v1836_v29, 0.0  ;;  %v5929_v26 = vld [vmem:[#allocation13 + $0x564] ss:$16 sps:$4 sm:$0xff]  }
 0x458   : > { %v2102_v4 = vmax.f32 %v2101_v17, %v1947_v6  ;;  %v1955_v42 = vmax.f32 %v1838_v63, 0.0 }
 0x459   : > { %3868 = vmatpush1.bf16.msra.mxu0 %v5897_v27  ;;  %4032 = vmatpush1.bf16.msra.mxu1 %v5900_v28  ;;  %v2088_v3 = vmax.f32 %v2087_v31, %v1954_v33  ;;  %v5932_v27 = vld [vmem:[#allocation13 + $0x56c] ss:$16 sps:$4 sm:$0xff]   ;;  %v5935_v33 = vld [vmem:[#allocation13 + $0x584] ss:$16 sps:$4 sm:$0xff]  }
 0x45a   : > { %v2103_v43 = vmax.f32 %v2102_v4, %v1955_v42  ;;  %3869 = vmatprep.subr.bf16.mxu0 %v5905_v0  ;;  %4033 = vmatprep.subr.bf16.mxu1 %v5908_v2  ;;  %v1841_v44 = vpop.f32.mrb[88].mxu1  ;;  %v5927_v0 = vld [vmem:[#allocation13 + $0x560] ss:$16 sps:$4 sm:$0xff]   ;;  %v2184_v2 = vmax.f32 %v7232_v48, %v2183_v24  ;;  %v5938_v4 = vld [vmem:[#allocation13 + $0x58c] ss:$16 sps:$4 sm:$0xff]  }
 0x45b   : > { %v1842_v58 = vadd.f32 %v1841_v44, %v7247_v37  ;;  %v1843_v47 = vpop.f32.mrb[89].mxu1  ;;  %v5933_v42 = vld [vmem:[#allocation13 + $0x580] ss:$16 sps:$4 sm:$0xff]   ;;  %v5944_v44 = vld [vmem:[#allocation13 + $0x5ac] ss:$16 sps:$4 sm:$0xff]  }
 0x45c   : > { %v1844_v32 = vadd.f32 %v1843_v47, %v7251_v46  ;;  %v1845_v49 = vpop.f32.mrb[90].mxu1  ;;  %v5939_v48 = vld [vmem:[#allocation13 + $0x5a0] ss:$16 sps:$4 sm:$0xff]   ;;  %v5947_v47 = vld [vmem:[#allocation13 + $0x5c4] ss:$16 sps:$4 sm:$0xff]  }
 0x45d   : > { %3870 = vmatpush1.bf16.msra.mxu0 %v5903_v35  ;;  %4034 = vmatpush1.bf16.msra.mxu1 %v5906_v36  ;;  %v1962_v50 = vmax.f32 %v1842_v58, 0.0  ;;  %v1846_v54 = vadd.f32 %v1845_v49, %v7247_v37  ;;  %v1847_v57 = vpop.f32.mrb[91].mxu1  ;;  %v2185_v35 = vrot.slane %v2184_v2, 2  ;;  %v5986_v24 = vld [vmem:[#allocation13 + $0x68c] ss:$16 sps:$4 sm:$0xff]  }
 0x45e   : > { %3871 = vmatprep.subr.bf16.mxu0 %v5911_v45  ;;  %4035 = vmatprep.subr.bf16.mxu1 %v5914_v11  ;;  %v1963_v55 = vmax.f32 %v1844_v32, 0.0  ;;  %v1848_v56 = vadd.f32 %v1847_v57, %v7251_v46  ;;  %v5942_v11 = vld [vmem:[#allocation13 + $0x5a8] ss:$16 sps:$4 sm:$0xff]   ;;  %v5950_v32 = vld [vmem:[#allocation13 + $0x5cc] ss:$16 sps:$4 sm:$0xff]  }
 0x45f   : > { %v2089_v60 = vmax.f32 %v2088_v3, %v1962_v50  ;;  %v1970_v19 = vmax.f32 %v1846_v54, 0.0  ;;  %v5936_v3 = vld [vmem:[#allocation13 + $0x588] ss:$16 sps:$4 sm:$0xff]   ;;  %v2186_v58 = vmax.f32 %v2184_v2, %v2185_v35  ;;  %v5945_v50 = vld [vmem:[#allocation13 + $0x5c0] ss:$16 sps:$4 sm:$0xff]  }
 0x460   : > { %v2104_v62 = vmax.f32 %v2103_v43, %v1963_v55  ;;  %v1971_v1 = vmax.f32 %v1848_v56, 0.0  ;;  %v5941_v43 = vld [vmem:[#allocation13 + $0x5a4] ss:$16 sps:$4 sm:$0xff]   ;;  %v5956_v55 = vld [vmem:[#allocation13 + $0x5ec] ss:$16 sps:$4 sm:$0xff]  }
 0x461   : > { %3872 = vmatpush1.bf16.msra.mxu0 %v5909_v51  ;;  %4036 = vmatpush1.bf16.msra.mxu1 %v5912_v7  ;;  %v2090_v5 = vmax.f32 %v2089_v60, %v1970_v19  ;;  %v5948_v51 = vld [vmem:[#allocation13 + $0x5c8] ss:$16 sps:$4 sm:$0xff]   ;;  %v2187_v54 = vrot.slane %v2186_v58, 1  ;;  %v5953_v57 = vld [vmem:[#allocation13 + $0x5e4] ss:$16 sps:$4 sm:$0xff]  }
 0x462   : > { %v2105_v18 = vmax.f32 %v2104_v62, %v1971_v1  ;;  %3873 = vmatprep.subr.bf16.mxu0 %v5917_v38  ;;  %4037 = vmatprep.subr.bf16.mxu1 %v5920_v59  ;;  %v1851_v10 = vpop.f32.mrb[92].mxu1  ;;  %v5951_v56 = vld [vmem:[#allocation13 + $0x5e0] ss:$16 sps:$4 sm:$0xff]   ;;  %v5954_v38 = vld [vmem:[#allocation13 + $0x5e8] ss:$16 sps:$4 sm:$0xff]  }
 0x463   : > { %v1852_v14 = vadd.f32 %v1851_v10, %v7247_v37  ;;  %v1853_v15 = vpop.f32.mrb[93].mxu1  ;;  %v2188_v60 = vmax.f32 %v2186_v58, %v2187_v54  ;;  %v5959_v19 = vld [vmem:[#allocation13 + $0x604] ss:$16 sps:$4 sm:$0xff]   ;;  %v5962_v62 = vld [vmem:[#allocation13 + $0x60c] ss:$16 sps:$4 sm:$0xff]  }
 0x464   : > { %v1854_v16 = vadd.f32 %v1853_v15, %v7251_v46  ;;  %v1855_v41 = vpop.f32.mrb[94].mxu1  ;;  %v5957_v1 = vld [vmem:[#allocation13 + $0x600] ss:$16 sps:$4 sm:$0xff]   ;;  %v5968_v10 = vld [vmem:[#allocation13 + $0x62c] ss:$16 sps:$4 sm:$0xff]  }
 0x465   : > { %3874 = vmatpush1.bf16.msra.mxu0 %v5915_v8  ;;  %4038 = vmatpush1.bf16.msra.mxu1 %v5918_v9  ;;  %v1978_v17 = vmax.f32 %v1852_v14, 0.0  ;;  %v1856_v22 = vadd.f32 %v1855_v41, %v7247_v37  ;;  %v1857_v23 = vpop.f32.mrb[95].mxu1  ;;  %v5930_v37 = vld [vmem:[#allocation13 + $0x568] ss:$16 sps:$4 sm:$0xff]   ;;  %v2211_v8 = vpack.c.bf16 %v2188_v60, %v2188_v60  ;;  %v5971_v14 = vld [vmem:[#allocation13 + $0x644] ss:$16 sps:$4 sm:$0xff]  }
 0x466   : > { %3875 = vmatprep.subr.bf16.mxu0 %v5923_v52  ;;  %4039 = vmatprep.subr.bf16.mxu1 %v5926_v13  ;;  %v1979_v39 = vmax.f32 %v1854_v16, 0.0  ;;  %v1858_v25 = vadd.f32 %v1857_v23, %v7251_v46  ;;  %v5960_v9 = vld [vmem:[#allocation13 + $0x608] ss:$16 sps:$4 sm:$0xff]   ;;  %v5963_v52 = vld [vmem:[#allocation13 + $0x620] ss:$16 sps:$4 sm:$0xff]  }
 0x467   : > { %v2091_v28 = vmax.f32 %v2090_v5, %v1978_v17  ;;  %v1986_v29 = vmax.f32 %v1856_v22, 0.0  ;;  %v5966_v13 = vld [vmem:[#allocation13 + $0x628] ss:$16 sps:$4 sm:$0xff]   ;;  %v5974_v15 = vld [vmem:[#allocation13 + $0x64c] ss:$16 sps:$4 sm:$0xff]  }
 0x468   : > { %v2106_v30 = vmax.f32 %v2105_v18, %v1979_v39  ;;  %v1987_v6 = vmax.f32 %v1858_v25, 0.0  ;;  %v5965_v18 = vld [vmem:[#allocation13 + $0x624] ss:$16 sps:$4 sm:$0xff]   ;;  %v5969_v16 = vld [vmem:[#allocation13 + $0x640] ss:$16 sps:$4 sm:$0xff]  }
 0x469   : > { %3876 = vmatpush1.bf16.msra.mxu0 %v5921_v20  ;;  %4040 = vmatpush1.bf16.msra.mxu1 %v5924_v21  ;;  %v7287_v63 = vmax.f32 %v2091_v28, %v1986_v29  ;;  %v5972_v41 = vld [vmem:[#allocation13 + $0x648] ss:$16 sps:$4 sm:$0xff]   ;;  %v5977_v17 = vld [vmem:[#allocation13 + $0x664] ss:$16 sps:$4 sm:$0xff]   ;;  %v5980_v20 = vld [vmem:[#allocation13 + $0x66c] ss:$16 sps:$4 sm:$0xff]  }
 0x46a   : > { %v2107_v31 = vmax.f32 %v2106_v30, %v1987_v6  ;;  %3877 = vmatprep.subr.bf16.mxu0 %v5929_v26  ;;  %4041 = vmatprep.subr.bf16.mxu1 %v5932_v27  ;;  %v5975_v21 = vld [vmem:[#allocation13 + $0x660] ss:$16 sps:$4 sm:$0xff]   ;;  %v5978_v22 = vld [vmem:[#allocation13 + $0x668] ss:$16 sps:$4 sm:$0xff]   ;;  %v5983_v23 = vld [vmem:[#allocation13 + $0x684] ss:$16 sps:$4 sm:$0xff]  }
 0x46b   : > { %v5981_v39 = vld [vmem:[#allocation13 + $0x680] ss:$16 sps:$4 sm:$0xff]   ;;  %v5984_v25 = vld [vmem:[#allocation13 + $0x688] ss:$16 sps:$4 sm:$0xff]   ;;  %v5989_v26 = vld [vmem:[#allocation13 + $0x6a4] ss:$16 sps:$4 sm:$0xff]  }
 0x46c   : > { %v2201_v46 = vrot.slane %v2107_v31, 4  ;;  %v5992_v27 = vld [vmem:[#allocation13 + $0x6ac] ss:$16 sps:$4 sm:$0xff]   ;;  %v5987_v28 = vld [vmem:[#allocation13 + $0x6a0] ss:$16 sps:$4 sm:$0xff]  }
 0x46d   : > { %3878 = vmatpush1.bf16.msra.mxu0 %v5927_v0  ;;  %4042 = vmatpush1.bf16.msra.mxu1 %v5930_v37  ;;  %v5990_v29 = vld [vmem:[#allocation13 + $0x6a8] ss:$16 sps:$4 sm:$0xff]   ;;  %v5995_v30 = vld [vmem:[#allocation13 + $0x6c4] ss:$16 sps:$4 sm:$0xff]   ;;  %v5998_v6 = vld [vmem:[#allocation13 + $0x6cc] ss:$16 sps:$4 sm:$0xff]  }
 0x46e   : > { %v2202_v36 = vmax.f32 %v2107_v31, %v2201_v46  ;;  %3879 = vmatprep.subr.bf16.mxu0 %v5935_v33  ;;  %4043 = vmatprep.subr.bf16.mxu1 %v5938_v4  ;;  %v5993_v0 = vld [vmem:[#allocation13 + $0x6c0] ss:$16 sps:$4 sm:$0xff]   ;;  %v5996_v37 = vld [vmem:[#allocation13 + $0x6c8] ss:$16 sps:$4 sm:$0xff]   ;;  %v6001_v2 = vld [vmem:[#allocation13 + $0x6e4] ss:$16 sps:$4 sm:$0xff]  }
 0x46f   : > { %v6004_v31 = vld [vmem:[#allocation13 + $0x6ec] ss:$16 sps:$4 sm:$0xff]   ;;  %v5999_v33 = vld [vmem:[#allocation13 + $0x6e0] ss:$16 sps:$4 sm:$0xff]   ;;  %v6002_v4 = vld [vmem:[#allocation13 + $0x6e8] ss:$16 sps:$4 sm:$0xff]  }
 0x470   : > { %v2203_v45 = vrot.slane %v2202_v36, 2  ;;  %v6007_v46 = vld [vmem:[#allocation13 + $0x704] ss:$16 sps:$4 sm:$0xff]   ;;  %v6008_v35 = vld [vmem:[#allocation13 + $0x708] ss:$16 sps:$4 sm:$0xff]  }
 0x471   : > { %3880 = vmatpush1.bf16.msra.mxu0 %v5933_v42  ;;  %4044 = vmatpush1.bf16.msra.mxu1 %v5936_v3  ;;  %v6010_v42 = vld [vmem:[#allocation13 + $0x70c] ss:$16 sps:$4 sm:$0xff]   ;;  %v6005_v3 = vld [vmem:[#allocation13 + $0x700] ss:$16 sps:$4 sm:$0xff]   ;;  %v6026_v54 = vld [vmem:[#allocation13 + $0x768] ss:$16 sps:$4 sm:$0xff]  }
 0x472   : > { %3881 = vmatprep.subr.bf16.mxu0 %v5941_v43  ;;  %4045 = vmatprep.subr.bf16.mxu1 %v5944_v44  ;;  %v2204_v49 = vmax.f32 %v2202_v36, %v2203_v45  ;;  %v6013_v36 = vld [vmem:[#allocation13 + $0x724] ss:$16 sps:$4 sm:$0xff]   ;;  %v6016_v43 = vld [vmem:[#allocation13 + $0x72c] ss:$16 sps:$4 sm:$0xff]   ;;  %v6011_v44 = vld [vmem:[#allocation13 + $0x720] ss:$16 sps:$4 sm:$0xff]  }
 0x473   : > { %v6014_v45 = vld [vmem:[#allocation13 + $0x728] ss:$16 sps:$4 sm:$0xff]   ;;  %v6017_v58 = vld [vmem:[#allocation13 + $0x740] ss:$16 sps:$4 sm:$0xff]   ;;  %v6037_v60 = vld [vmem:[#allocation13 + $0x7a4] ss:$16 sps:$4 sm:$0xff]  }
 0x474   : > { %v2205_v7 = vrot.slane %v2204_v49, 1 }
 0x475   : > { %3882 = vmatpush1.bf16.msra.mxu0 %v5939_v48  ;;  %4046 = vmatpush1.bf16.msra.mxu1 %v5942_v11  ;;  %v6019_v48 = vld [vmem:[#allocation13 + $0x744] ss:$16 sps:$4 sm:$0xff]   ;;  %v6022_v11 = vld [vmem:[#allocation13 + $0x74c] ss:$16 sps:$4 sm:$0xff]  }
 0x476   : > { %3883 = vmatprep.subr.bf16.mxu0 %v5947_v47  ;;  %4047 = vmatprep.subr.bf16.mxu1 %v5950_v32  ;;  %v2206_v59 = vmax.f32 %v2204_v49, %v2205_v7  ;;  %v2195_v47 = vrot.slane %v7287_v63, 4  ;;  %v6020_v32 = vld [vmem:[#allocation13 + $0x748] ss:$16 sps:$4 sm:$0xff]   ;;  %v6025_v49 = vld [vmem:[#allocation13 + $0x764] ss:$16 sps:$4 sm:$0xff]  }
 0x478   : > { %v2214_v5 = vpack.c.bf16 %v2206_v59, %v2206_v59  ;;  %v2196_v7 = vmax.f32 %v7287_v63, %v2195_v47  ;;  %v6032_v59 = vld [vmem:[#allocation13 + $0x788] ss:$16 sps:$4 sm:$0xff]   ;;  %v6098_v47 = vld [vmem:[#allocation16 + $0xf0] ss:$8 sps:$4 sm:$0xff]  }
 0x479   : > { %3884 = vmatpush1.bf16.msra.mxu0 %v5945_v50  ;;  %4048 = vmatpush1.bf16.msra.mxu1 %v5948_v51  ;;  %v6028_v50 = vld [vmem:[#allocation13 + $0x76c] ss:$16 sps:$4 sm:$0xff]   ;;  %v6023_v51 = vld [vmem:[#allocation13 + $0x760] ss:$16 sps:$4 sm:$0xff]   ;;  %v6038_v63 = vld [vmem:[#allocation13 + $0x7a8] ss:$16 sps:$4 sm:$0xff]  }
 0x47a   : > { %3885 = vmatprep.subr.bf16.mxu0 %v5953_v57  ;;  %4049 = vmatprep.subr.bf16.mxu1 %v5956_v55  ;;  %v6031_v57 = vld [vmem:[#allocation13 + $0x784] ss:$16 sps:$4 sm:$0xff]   ;;  %v6034_v55 = vld [vmem:[#allocation13 + $0x78c] ss:$16 sps:$4 sm:$0xff]  }
 0x47d   : > { %3886 = vmatpush1.bf16.msra.mxu0 %v5951_v56  ;;  %4050 = vmatpush1.bf16.msra.mxu1 %v5954_v38  ;;  %v6029_v56 = vld [vmem:[#allocation13 + $0x780] ss:$16 sps:$4 sm:$0xff]   ;;  %v2197_v38 = vrot.slane %v2196_v7, 2 }
 0x47e   : > { %3896 = vmatprep.subr.bf16.mxu0 %v5959_v19  ;;  %4060 = vmatprep.subr.bf16.mxu1 %v5962_v62  ;;  %v6040_v19 = vld [vmem:[#allocation13 + $0x7ac] ss:$16 sps:$4 sm:$0xff]   ;;  %v6035_v62 = vld [vmem:[#allocation13 + $0x7a0] ss:$16 sps:$4 sm:$0xff]  }
 0x480   : > { %3888 = vmatmul.mubr.bf16.vlgmr.msra.gmra.mrb[64].mxu0 %v2211_v8  ;;  %4052 = vmatmul.mubr.bf16.vlgmr.msra.gmra.mrb[96].mxu1 %v2211_v8  ;;  %v6046_v8 = vld [vmem:[#allocation13 + $0x7cc] ss:$16 sps:$4 sm:$0xff]  }
 0x481   : > { %3897 = vmatpush1.bf16.msra.mxu0 %v5957_v1  ;;  %3928 = vmatprep.mubr.bf16.mxu0 %v2214_v5  ;;  %v2198_v1 = vmax.f32 %v2196_v7, %v2197_v38  ;;  %v6152_v7 = vld [vmem:[%s7402_s23 + $0x8] sm:$0xff]   ;;  %v6157_v38 = vld [vmem:[%s7402_s23 + $0x60] sm:$0xff]  }
 0x482   : > { %4061 = vmatpush1.bf16.msra.mxu1 %v5960_v9  ;;  %4092 = vmatprep.mubr.bf16.mxu1 %v2214_v5  ;;  %v6043_v5 = vld [vmem:[#allocation13 + $0x7c4] ss:$16 sps:$4 sm:$0xff]   ;;  %v6041_v9 = vld [vmem:[#allocation13 + $0x7c0] ss:$16 sps:$4 sm:$0xff]  }
 0x483   : > { %3898 = vmatprep.subr.bf16.mxu0 %v5965_v18  ;;  %4062 = vmatprep.subr.bf16.mxu1 %v5968_v10  ;;  %v2199_v18 = vrot.slane %v2198_v1, 1  ;;  %v6044_v10 = vld [vmem:[#allocation13 + $0x7c8] ss:$16 sps:$4 sm:$0xff]  }
 0x485   : > { %3899 = vmatpush1.bf16.msra.mxu0 %v5963_v52  ;;  %v6049_v52 = vld [vmem:[#allocation13 + $0x7e4] ss:$16 sps:$4 sm:$0xff]  }
 0x486   : > { %4063 = vmatpush1.bf16.msra.mxu1 %v5966_v13  ;;  %3900 = vmatprep.subr.bf16.mxu0 %v5971_v14  ;;  %v6052_v13 = vld [vmem:[#allocation13 + $0x7ec] ss:$16 sps:$4 sm:$0xff]   ;;  %v6047_v14 = vld [vmem:[#allocation13 + $0x7e0] ss:$16 sps:$4 sm:$0xff]  }
 0x487   : > { %4064 = vmatprep.subr.bf16.mxu1 %v5974_v15  ;;  %v6050_v15 = vld [vmem:[#allocation13 + $0x7e8] ss:$16 sps:$4 sm:$0xff]  }
 0x489   : > { %3901 = vmatpush1.bf16.msra.mxu0 %v5969_v16  ;;  %v2200_v16 = vmax.f32 %v2198_v1, %v2199_v18 }
 0x48a   : > { %4065 = vmatpush1.bf16.msra.mxu1 %v5972_v41  ;;  %3902 = vmatprep.subr.bf16.mxu0 %v5977_v17  ;;  %v6055_v41 = vld [vmem:[#allocation16 + $0x4] ss:$8 sps:$4 sm:$0xff]   ;;  %v6053_v17 = vld [vmem:[#allocation16] ss:$8 sps:$4 sm:$0xff]  }
 0x48b   : > { %4066 = vmatprep.subr.bf16.mxu1 %v5980_v20  ;;  %v2213_v20 = vpack.c.bf16 %v2200_v16, %v2200_v16 }
 0x48d   : > { %3903 = vmatpush1.bf16.msra.mxu0 %v5975_v21  ;;  %v6058_v21 = vld [vmem:[#allocation16 + $0x14] ss:$8 sps:$4 sm:$0xff]  }
 0x48e   : > { %4067 = vmatpush1.bf16.msra.mxu1 %v5978_v22  ;;  %3904 = vmatprep.subr.bf16.mxu0 %v5983_v23  ;;  %v6056_v22 = vld [vmem:[#allocation16 + $0x10] ss:$8 sps:$4 sm:$0xff]   ;;  %v6061_v23 = vld [vmem:[#allocation16 + $0x24] ss:$8 sps:$4 sm:$0xff]  }
 0x48f   : > { %4068 = vmatprep.subr.bf16.mxu1 %v5986_v24  ;;  %v6059_v24 = vld [vmem:[#allocation16 + $0x20] ss:$8 sps:$4 sm:$0xff]  }
 0x491   : > { %3905 = vmatpush1.bf16.msra.mxu0 %v5981_v39  ;;  %v6064_v39 = vld [vmem:[#allocation16 + $0x34] ss:$8 sps:$4 sm:$0xff]  }
 0x492   : > { %4069 = vmatpush1.bf16.msra.mxu1 %v5984_v25  ;;  %3906 = vmatprep.subr.bf16.mxu0 %v5989_v26  ;;  %v6062_v25 = vld [vmem:[#allocation16 + $0x30] ss:$8 sps:$4 sm:$0xff]   ;;  %v6067_v26 = vld [vmem:[#allocation16 + $0x44] ss:$8 sps:$4 sm:$0xff]  }
 0x493   : > { %4070 = vmatprep.subr.bf16.mxu1 %v5992_v27  ;;  %v6065_v27 = vld [vmem:[#allocation16 + $0x40] ss:$8 sps:$4 sm:$0xff]  }
 0x495   : > { %3907 = vmatpush1.bf16.msra.mxu0 %v5987_v28  ;;  %v6070_v28 = vld [vmem:[#allocation16 + $0x54] ss:$8 sps:$4 sm:$0xff]  }
 0x496   : > { %4071 = vmatpush1.bf16.msra.mxu1 %v5990_v29  ;;  %3908 = vmatprep.subr.bf16.mxu0 %v5995_v30  ;;  %v6068_v29 = vld [vmem:[#allocation16 + $0x50] ss:$8 sps:$4 sm:$0xff]   ;;  %v6073_v30 = vld [vmem:[#allocation16 + $0x64] ss:$8 sps:$4 sm:$0xff]  }
 0x497   : > { %4072 = vmatprep.subr.bf16.mxu1 %v5998_v6  ;;  %v6071_v6 = vld [vmem:[#allocation16 + $0x60] ss:$8 sps:$4 sm:$0xff]  }
 0x499   : > { %3909 = vmatpush1.bf16.msra.mxu0 %v5993_v0  ;;  %v6076_v0 = vld [vmem:[#allocation16 + $0x74] ss:$8 sps:$4 sm:$0xff]  }
 0x49a   : > { %4073 = vmatpush1.bf16.msra.mxu1 %v5996_v37  ;;  %3910 = vmatprep.subr.bf16.mxu0 %v6001_v2  ;;  %v6074_v37 = vld [vmem:[#allocation16 + $0x70] ss:$8 sps:$4 sm:$0xff]   ;;  %v6079_v2 = vld [vmem:[#allocation16 + $0x84] ss:$8 sps:$4 sm:$0xff]  }
 0x49b   : > { %4074 = vmatprep.subr.bf16.mxu1 %v6004_v31  ;;  %v6077_v31 = vld [vmem:[#allocation16 + $0x80] ss:$8 sps:$4 sm:$0xff]  }
 0x49d   : > { %3911 = vmatpush1.bf16.msra.mxu0 %v5999_v33  ;;  %v6082_v33 = vld [vmem:[#allocation16 + $0x94] ss:$8 sps:$4 sm:$0xff]  }
 0x49e   : > { %4075 = vmatpush1.bf16.msra.mxu1 %v6002_v4  ;;  %3912 = vmatprep.subr.bf16.mxu0 %v6007_v46  ;;  %v6080_v4 = vld [vmem:[#allocation16 + $0x90] ss:$8 sps:$4 sm:$0xff]   ;;  %v6085_v46 = vld [vmem:[#allocation16 + $0xa4] ss:$8 sps:$4 sm:$0xff]  }
 0x49f   : > { %4076 = vmatprep.subr.bf16.mxu1 %v6010_v42  ;;  %v6083_v42 = vld [vmem:[#allocation16 + $0xa0] ss:$8 sps:$4 sm:$0xff]  }
 0x4a1   : > { %3913 = vmatpush1.bf16.msra.mxu0 %v6005_v3  ;;  %v6088_v3 = vld [vmem:[#allocation16 + $0xb4] ss:$8 sps:$4 sm:$0xff]  }
 0x4a2   : > { %4077 = vmatpush1.bf16.msra.mxu1 %v6008_v35  ;;  %3914 = vmatprep.subr.bf16.mxu0 %v6013_v36  ;;  %v6086_v35 = vld [vmem:[#allocation16 + $0xb0] ss:$8 sps:$4 sm:$0xff]   ;;  %v6091_v36 = vld [vmem:[#allocation16 + $0xc4] ss:$8 sps:$4 sm:$0xff]  }
 0x4a3   : > { %4078 = vmatprep.subr.bf16.mxu1 %v6016_v43  ;;  %v6089_v43 = vld [vmem:[#allocation16 + $0xc0] ss:$8 sps:$4 sm:$0xff]  }
 0x4a5   : > { %3915 = vmatpush1.bf16.msra.mxu0 %v6011_v44  ;;  %v6094_v44 = vld [vmem:[#allocation16 + $0xd4] ss:$8 sps:$4 sm:$0xff]  }
 0x4a6   : > { %4079 = vmatpush1.bf16.msra.mxu1 %v6014_v45  ;;  %3916 = vmatprep.subr.bf16.mxu0 %v6019_v48  ;;  %v6092_v45 = vld [vmem:[#allocation16 + $0xd0] ss:$8 sps:$4 sm:$0xff]   ;;  %v6097_v48 = vld [vmem:[#allocation16 + $0xe4] ss:$8 sps:$4 sm:$0xff]  }
 0x4a7   : > { %4080 = vmatprep.subr.bf16.mxu1 %v6022_v11  ;;  %v6095_v11 = vld [vmem:[#allocation16 + $0xe0] ss:$8 sps:$4 sm:$0xff]  }
 0x4a9   : > { %3917 = vmatpush1.bf16.msra.mxu0 %v6017_v58  ;;  %v6100_v58 = vld [vmem:[#allocation16 + $0xf4] ss:$8 sps:$4 sm:$0xff]  }
 0x4aa   : > { %4081 = vmatpush1.bf16.msra.mxu1 %v6020_v32  ;;  %3918 = vmatprep.subr.bf16.mxu0 %v6025_v49  ;;  %v6103_v32 = vld [vmem:[#allocation16 + $0x104] ss:$8 sps:$4 sm:$0xff]  }
 0x4ab   : > { %4082 = vmatprep.subr.bf16.mxu1 %v6028_v50  ;;  %v6149_v49 = vld [vmem:[%s7402_s23 + $0x40] sm:$0xff]  }
 0x4ac   : > { %v6150_v50 = vld [vmem:[%s7402_s23] sm:$0xff]  }
 0x4ad   : > { %3919 = vmatpush1.bf16.msra.mxu0 %v6023_v51  ;;  %v6151_v51 = vld [vmem:[%s7402_s23 + $0x48] sm:$0xff]  }
 0x4ae   : > { %4083 = vmatpush1.bf16.msra.mxu1 %v6026_v54  ;;  %3920 = vmatprep.subr.bf16.mxu0 %v6031_v57  ;;  %v6153_v54 = vld [vmem:[%s7402_s23 + $0x50] sm:$0xff]  }
 0x4af   : > { %4084 = vmatprep.subr.bf16.mxu1 %v6034_v55  ;;  %v6154_v57 = vld [vmem:[%s7402_s23 + $0x10] sm:$0xff]   ;;  %v6155_v55 = vld [vmem:[%s7402_s23 + $0x58] sm:$0xff]  }
 0x4b1   : > { %3921 = vmatpush1.bf16.msra.mxu0 %v6029_v56  ;;  %v6156_v56 = vld [vmem:[%s7402_s23 + $0x18] sm:$0xff]  }
 0x4b2   : > { %4085 = vmatpush1.bf16.msra.mxu1 %v6032_v59  ;;  %3922 = vmatprep.subr.bf16.mxu0 %v6037_v60  ;;  %v6158_v59 = vld [vmem:[%s7402_s23 + $0x20] sm:$0xff]   ;;  %v6159_v60 = vld [vmem:[%s7402_s23 + $0x68] sm:$0xff]  }
 0x4b3   : > { %4086 = vmatprep.subr.bf16.mxu1 %v6040_v19  ;;  %v6160_v19 = vld [vmem:[%s7402_s23 + $0x28] sm:$0xff]  }
 0x4b5   : > { %3923 = vmatpush1.bf16.msra.mxu0 %v6035_v62  ;;  %v7328_v62 = vld [vmem:[#allocation14] sm:$0xf] }
 0x4b6   : > { %4087 = vmatpush1.bf16.msra.mxu1 %v6038_v63  ;;  %3924 = vmatprep.subr.bf16.mxu0 %v6043_v5  ;;  %v3756_v1 = vrot.slane %v7328_v62, %v7109_v61  ;;  %v3760_v63 = vrot.slane %v7328_v62, %v7114_v40  ;;  %v3768_v5 = vrot.slane %v7328_v62, %v1062_v12 }
 0x4b7   : > { %4088 = vmatprep.subr.bf16.mxu1 %v6046_v8 }
 0x4b9   : > { %3925 = vmatpush1.bf16.msra.mxu0 %v6041_v9 }
 0x4ba   : > { %4089 = vmatpush1.bf16.msra.mxu1 %v6044_v10  ;;  %3926 = vmatprep.subr.bf16.mxu0 %v6049_v52 }
 0x4bb   : > { %4090 = vmatprep.subr.bf16.mxu1 %v6052_v13 }
 0x4bd   : > { %3927 = vmatpush1.bf16.msra.mxu0 %v6047_v14 }
 0x4be   : > { %4091 = vmatpush1.bf16.msra.mxu1 %v6050_v15  ;;  %4505 = vmatprep.subr.bf16.mxu0 %v6055_v41 }
 0x4bf   : > { %5406 = vmatprep.subr.bf16.mxu1 %v6149_v49  ;;  %v3764_v49 = vrot.slane %v7328_v62, %v1058_v53  ;;  %v6162_v53 = vld [vmem:[%s7402_s23 + $0x30] sm:$0xff]  }
 0x4c0   : > { %3929 = vmatmul.mubr.bf16.vlgmr.msra.gmra.mrb[64].mxu0 %v2213_v20 }
 0x4c1   : > { %4093 = vmatmul.mubr.bf16.vlgmr.msra.gmra.mrb[96].mxu1 %v2213_v20  ;;  %4506 = vmatpush1.bf16.msra.mxu0 %v6053_v17 }
 0x4c2   : > { %4507 = vmatprep.subr.bf16.mxu0 %v6058_v21  ;;  %5407 = vmatpush3.bf16.msra.mxu1 %v6150_v50  ;;  %v6145_v50 = vld [vmem:[#allocation16 + $0x1e4] ss:$8 sps:$4 sm:$0xff]  }
 0x4c3   : > { %5408 = vmatprep.subr.bf16.mxu1 %v6151_v51  ;;  %v6143_v51 = vld [vmem:[#allocation16 + $0x1e0] ss:$8 sps:$4 sm:$0xff]  }
 0x4c5   : > { %4508 = vmatpush1.bf16.msra.mxu0 %v6056_v22 }
 0x4c6   : > { %4509 = vmatprep.subr.bf16.mxu0 %v6061_v23  ;;  %5409 = vmatpush3.bf16.msra.mxu1 %v6152_v7 }
 0x4c7   : > { %5410 = vmatprep.subr.bf16.mxu1 %v6153_v54  ;;  %v6148_v54 = vld [vmem:[#allocation16 + $0x1f4] ss:$8 sps:$4 sm:$0xff]  }
 0x4c9   : > { %4510 = vmatpush1.bf16.msra.mxu0 %v6059_v24  ;;  %v6101_v24 = vld [vmem:[#allocation16 + $0x100] ss:$8 sps:$4 sm:$0xff]  }
 0x4ca   : > { %4511 = vmatprep.subr.bf16.mxu0 %v6064_v39  ;;  %5411 = vmatpush3.bf16.msra.mxu1 %v6154_v57  ;;  %v6146_v57 = vld [vmem:[#allocation16 + $0x1f0] ss:$8 sps:$4 sm:$0xff]  }
 0x4cb   : > { %5412 = vmatprep.subr.bf16.mxu1 %v6155_v55 }
 0x4cd   : > { %4512 = vmatpush1.bf16.msra.mxu0 %v6062_v25  ;;  %v6106_v25 = vld [vmem:[#allocation16 + $0x114] ss:$8 sps:$4 sm:$0xff]  }
 0x4ce   : > { %4513 = vmatprep.subr.bf16.mxu0 %v6067_v26  ;;  %5413 = vmatpush3.bf16.msra.mxu1 %v6156_v56  ;;  %v6104_v26 = vld [vmem:[#allocation16 + $0x110] ss:$8 sps:$4 sm:$0xff]  }
 0x4cf   : > { %5414 = vmatprep.subr.bf16.mxu1 %v6157_v38  ;;  %v6163_v38 = vld [vmem:[%s7402_s23 + $0x78] sm:$0xff]  }
 0x4d1   : > { %4514 = vmatpush1.bf16.msra.mxu0 %v6065_v27  ;;  %v6109_v27 = vld [vmem:[#allocation16 + $0x124] ss:$8 sps:$4 sm:$0xff]  }
 0x4d2   : > { %4515 = vmatprep.subr.bf16.mxu0 %v6070_v28  ;;  %5415 = vmatpush3.bf16.msra.mxu1 %v6158_v59  ;;  %v6107_v28 = vld [vmem:[#allocation16 + $0x120] ss:$8 sps:$4 sm:$0xff]  }
 0x4d3   : > { %5416 = vmatprep.subr.bf16.mxu1 %v6159_v60  ;;  %v6164_v59 = vld [vmem:[%s7402_s23 + $0x38] sm:$0xff]   ;;  %v4173_v60 = vld [vmem:[#allocation17] sm:$0x3] }
 0x4d4   : > { %v4502_v62 = vrot.slane %v4173_v60, %v7114_v40 }
 0x4d5   : > { %4516 = vmatpush1.bf16.msra.mxu0 %v6068_v29  ;;  %v6112_v29 = vld [vmem:[#allocation16 + $0x134] ss:$8 sps:$4 sm:$0xff]  }
 0x4d6   : > { %4517 = vmatprep.subr.bf16.mxu0 %v6073_v30  ;;  %5417 = vmatpush3.bf16.msra.mxu1 %v6160_v19  ;;  %v6110_v30 = vld [vmem:[#allocation16 + $0x130] ss:$8 sps:$4 sm:$0xff]   ;;  %v4498_v19 = vrot.slane %v4173_v60, %v7109_v61 }
 0x4d7   : > { %5418 = vmatprep.subr.bf16.mxu1 %v6161_v34 }
 0x4d9   : > { %4518 = vmatpush1.bf16.msra.mxu0 %v6071_v6  ;;  %v6115_v6 = vld [vmem:[#allocation16 + $0x144] ss:$8 sps:$4 sm:$0xff]  }
 0x4da   : > { %4519 = vmatprep.subr.bf16.mxu0 %v6076_v0  ;;  %v6113_v0 = vld [vmem:[#allocation16 + $0x140] ss:$8 sps:$4 sm:$0xff]   ;;  %5419 = vmatpush3.bf16.msra.mxu1 %v6162_v53 }
 0x4db   : > { %5420 = vmatprep.subr.bf16.mxu1 %v6163_v38 }
 0x4dd   : > { %4520 = vmatpush1.bf16.msra.mxu0 %v6074_v37  ;;  %v6118_v37 = vld [vmem:[#allocation16 + $0x154] ss:$8 sps:$4 sm:$0xff]  }
 0x4de   : > { %4521 = vmatprep.subr.bf16.mxu0 %v6079_v2  ;;  %v6116_v2 = vld [vmem:[#allocation16 + $0x150] ss:$8 sps:$4 sm:$0xff]   ;;  %5421 = vmatpush3.bf16.msra.mxu1 %v6164_v59 }
 0x4e1   : > { %4522 = vmatpush1.bf16.msra.mxu0 %v6077_v31  ;;  %v6121_v31 = vld [vmem:[#allocation16 + $0x164] ss:$8 sps:$4 sm:$0xff]  }
 0x4e2   : > { %4523 = vmatprep.subr.bf16.mxu0 %v6082_v33  ;;  %v6119_v33 = vld [vmem:[#allocation16 + $0x160] ss:$8 sps:$4 sm:$0xff]  }
 0x4e5   : > { %4524 = vmatpush1.bf16.msra.mxu0 %v6080_v4  ;;  %v6124_v4 = vld [vmem:[#allocation16 + $0x174] ss:$8 sps:$4 sm:$0xff]  }
 0x4e6   : > { %4525 = vmatprep.subr.bf16.mxu0 %v6085_v46  ;;  %v6122_v46 = vld [vmem:[#allocation16 + $0x170] ss:$8 sps:$4 sm:$0xff]  }
 0x4e9   : > { %4526 = vmatpush1.bf16.msra.mxu0 %v6083_v42  ;;  %v6127_v42 = vld [vmem:[#allocation16 + $0x184] ss:$8 sps:$4 sm:$0xff]  }
 0x4ea   : > { %4527 = vmatprep.subr.bf16.mxu0 %v6088_v3  ;;  %v6125_v3 = vld [vmem:[#allocation16 + $0x180] ss:$8 sps:$4 sm:$0xff]  }
 0x4ed   : > { %4528 = vmatpush1.bf16.msra.mxu0 %v6086_v35  ;;  %v6130_v35 = vld [vmem:[#allocation16 + $0x194] ss:$8 sps:$4 sm:$0xff]  }
 0x4ee   : > { %4529 = vmatprep.subr.bf16.mxu0 %v6091_v36  ;;  %v6128_v36 = vld [vmem:[#allocation16 + $0x190] ss:$8 sps:$4 sm:$0xff]  }
 0x4f1   : > { %4530 = vmatpush1.bf16.msra.mxu0 %v6089_v43  ;;  %v6133_v43 = vld [vmem:[#allocation16 + $0x1a4] ss:$8 sps:$4 sm:$0xff]  }
 0x4f2   : > { %4531 = vmatprep.subr.bf16.mxu0 %v6094_v44  ;;  %v6131_v44 = vld [vmem:[#allocation16 + $0x1a0] ss:$8 sps:$4 sm:$0xff]  }
 0x4f5   : > { %4532 = vmatpush1.bf16.msra.mxu0 %v6092_v45  ;;  %v6136_v45 = vld [vmem:[#allocation16 + $0x1b4] ss:$8 sps:$4 sm:$0xff]  }
 0x4f6   : > { %4533 = vmatprep.subr.bf16.mxu0 %v6097_v48  ;;  %v6134_v48 = vld [vmem:[#allocation16 + $0x1b0] ss:$8 sps:$4 sm:$0xff]  }
 0x4f9   : > { %4534 = vmatpush1.bf16.msra.mxu0 %v6095_v11  ;;  %v6139_v11 = vld [vmem:[#allocation16 + $0x1c4] ss:$8 sps:$4 sm:$0xff]  }
 0x4fa   : > { %4535 = vmatprep.subr.bf16.mxu0 %v6100_v58  ;;  %v6137_v58 = vld [vmem:[#allocation16 + $0x1c0] ss:$8 sps:$4 sm:$0xff]  }
 0x4fd   : > { %4536 = vmatpush1.bf16.msra.mxu0 %v6098_v47  ;;  %v6142_v47 = vld [vmem:[#allocation16 + $0x1d4] ss:$8 sps:$4 sm:$0xff]  }
 0x4fe   : > { %4546 = vmatprep.subr.bf16.mxu0 %v6103_v32  ;;  %v6140_v32 = vld [vmem:[#allocation16 + $0x1d0] ss:$8 sps:$4 sm:$0xff]  }
 0x593   : > { %v3930_v8 = vpop.f32.mrb[64].mxu0 }
 0x594   : > { %v5486_v9 = vadd.f32 %v3930_v8, %v3756_v1  ;;  %v7337_v18 = vpop.f32.mrb[96].mxu1  ;;  %v3932_v10 = vpop.f32.mrb[65].mxu0 }
 0x595   : > { %v5487_v52 = vadd.f32 %v3932_v10, %v3760_v63  ;;  %v4096_v13 = vpop.f32.mrb[97].mxu1  ;;  %v3934_v14 = vpop.f32.mrb[66].mxu0  ;;  %v5488_v7 = vadd.f32 %v7337_v18, %v3764_v49 }
 0x596   : > { %v4101_v15 = vmax.f32 %v5486_v9, 0.0  ;;  %v5489_v16 = vadd.f32 %v4096_v13, %v3768_v5  ;;  %v4098_v41 = vpop.f32.mrb[98].mxu1  ;;  %v3935_v17 = vpop.f32.mrb[67].mxu0 }
 0x597   : > { %v4102_v20 = vmax.f32 %v5487_v52, 0.0  ;;  %v4099_v21 = vpop.f32.mrb[99].mxu1  ;;  %v4103_v55 = vmax.f32 %v5488_v7, 0.0 }
 0x598   : > { %v4104_v22 = vmax.f32 %v5489_v16, 0.0  ;;  %v4105_v39 = vpack.c.bf16 %v4101_v15, %v4101_v15  ;;  %v4623_v16 = vld [vmem:[#allocation19] sm:$0x1] }
 0x599   : > { %v4106_v23 = vpack.c.bf16 %v4102_v20, %v4102_v20  ;;  %v4107_v56 = vpack.c.bf16 %v4103_v55, %v4103_v55 }
 0x59a   : > { %v4108_v12 = vpack.c.bf16 %v4104_v22, %v4104_v22 }
 0x59b   : > { %4537 = vmatprep.mubr.bf16.mxu0 %v4106_v23 }
 0x59c   : > { %4538 = vmatmul.mubr.bf16.vlgmr.msra.gmra.mrb[68].mxu0 %v4105_v39 }
 0x59d   : > { %4547 = vmatpush1.bf16.msra.mxu0 %v6101_v24  ;;  %4578 = vmatprep.mubr.bf16.mxu0 %v4108_v12 }
 0x59e   : > { %4548 = vmatprep.subr.bf16.mxu0 %v6106_v25 }
 0x5a1   : > { %4549 = vmatpush1.bf16.msra.mxu0 %v6104_v26 }
 0x5a2   : > { %4550 = vmatprep.subr.bf16.mxu0 %v6109_v27 }
 0x5a5   : > { %4551 = vmatpush1.bf16.msra.mxu0 %v6107_v28 }
 0x5a6   : > { %4552 = vmatprep.subr.bf16.mxu0 %v6112_v29 }
 0x5a9   : > { %4553 = vmatpush1.bf16.msra.mxu0 %v6110_v30 }
 0x5aa   : > { %4554 = vmatprep.subr.bf16.mxu0 %v6115_v6 }
 0x5ad   : > { %4555 = vmatpush1.bf16.msra.mxu0 %v6113_v0 }
 0x5ae   : > { %4556 = vmatprep.subr.bf16.mxu0 %v6118_v37 }
 0x5b1   : > { %4557 = vmatpush1.bf16.msra.mxu0 %v6116_v2 }
 0x5b2   : > { %4558 = vmatprep.subr.bf16.mxu0 %v6121_v31 }
 0x5b5   : > { %4559 = vmatpush1.bf16.msra.mxu0 %v6119_v33 }
 0x5b6   : > { %4560 = vmatprep.subr.bf16.mxu0 %v6124_v4 }
 0x5b9   : > { %4561 = vmatpush1.bf16.msra.mxu0 %v6122_v46 }
 0x5ba   : > { %4562 = vmatprep.subr.bf16.mxu0 %v6127_v42 }
 0x5bd   : > { %4563 = vmatpush1.bf16.msra.mxu0 %v6125_v3 }
 0x5be   : > { %4564 = vmatprep.subr.bf16.mxu0 %v6130_v35 }
 0x5c1   : > { %4565 = vmatpush1.bf16.msra.mxu0 %v6128_v36 }
 0x5c2   : > { %4566 = vmatprep.subr.bf16.mxu0 %v6133_v43 }
 0x5c5   : > { %4567 = vmatpush1.bf16.msra.mxu0 %v6131_v44 }
 0x5c6   : > { %4568 = vmatprep.subr.bf16.mxu0 %v6136_v45 }
 0x5c9   : > { %4569 = vmatpush1.bf16.msra.mxu0 %v6134_v48 }
 0x5ca   : > { %4570 = vmatprep.subr.bf16.mxu0 %v6139_v11 }
 0x5cd   : > { %4571 = vmatpush1.bf16.msra.mxu0 %v6137_v58 }
 0x5ce   : > { %4572 = vmatprep.subr.bf16.mxu0 %v6142_v47 }
 0x5d1   : > { %4573 = vmatpush1.bf16.msra.mxu0 %v6140_v32 }
 0x5d2   : > { %4574 = vmatprep.subr.bf16.mxu0 %v6145_v50 }
 0x5d5   : > { %4575 = vmatpush1.bf16.msra.mxu0 %v6143_v51 }
 0x5d6   : > { %4576 = vmatprep.subr.bf16.mxu0 %v6148_v54 }
 0x5d9   : > { %4577 = vmatpush1.bf16.msra.mxu0 %v6146_v57 }
 0x5dc   : > { %4579 = vmatmul.mubr.bf16.vlgmr.msra.gmra.mrb[68].mxu0 %v4107_v56 }
 0x6af   : > { %v4580_v1 = vpop.f32.mrb[68].mxu0 }
 0x6b0   : > { %v5490_v63 = vadd.f32 %v4580_v1, %v4498_v19  ;;  %v4582_v5 = vpop.f32.mrb[69].mxu0 }
 0x6b1   : > { %v5491_v8 = vadd.f32 %v4582_v5, %v4502_v62  ;;  %v4584_v9 = vpop.f32.mrb[70].mxu0 }
 0x6b2   : > { %v4587_v18 = vmax.f32 %v5490_v63, 0.0  ;;  %v4585_v10 = vpop.f32.mrb[71].mxu0 }
 0x6b3   : > { %v4588_v52 = vmax.f32 %v5491_v8, 0.0 }
 0x6b4   : > { %v4589_v14 = vpack.c.bf16 %v4587_v18, %v4587_v18 }
 0x6b5   : > { %v4590_v13 = vpack.c.bf16 %v4588_v52, %v4588_v52 }
 0x6b7   : > { %4752 = vmatprep.mubr.bf16.mxu1 %v4590_v13 }
 0x6b8   : > { %4753 = vmatmul.mubr.bf16.vlgmr.msra.gmra.mrb[100].mxu1 %v4589_v14 }
 0x78b   : > { %v5422_v15 = vpop.f32.mrb[100].mxu1 }
 0x78c   : > { %v5423_v41 = vpop.f32.mrb[101].mxu1 }
 0x78d   : > { %v5424_v17 = vadd.f32 %v5423_v41, %v5422_v15  ;;  %v5425_v61 = vpop.f32.mrb[102].mxu1 }
 0x78e   : > { %v5426_v40 = vpop.f32.mrb[103].mxu1 }
 0x78f   : > { %v4755_v20 = vadd.f32 %v5424_v17, %v4623_v16 }
 0x791   : > { %4761 = vst.msk [vmem:[%s610_s11] sm:$0x1] %vm4760_vm4, %v4755_v20 }
 0x792 PF: > { %s7404_s24 = sld [smem:[#allocation26_spill]]  ;;  %s7405_s25 = smov %s6515_s26 }
 0x793   : > { %s7406_s26 = smov %s7408_s17 }
 0x798   : > { %s29_s27 = sadd.s32 1, %s7404_s24  }
 0x799   : > { %p26_p7 = scmp.ge.s32.totalorder %s29_s27, 4  }
 0x79b   :  { %28 = sbr.rel (!%p26_p7) target bundleno = 12 (0xc), region = 159 }
 0x7a2   :  { %4779 = vsyncpa [#allocation4], 1 }
 0x7a3   :  { %4781 = vsyncpa [#allocation4 + $0x1], 1 }
 0x7a4   :  { %4782 = vsyncpa [#allocation6], 1 }
 0x7a5   :  { %4783 = vsyncpa [#allocation9], 1 }
 0x7a6   :  { %4784 = vsyncpa [#allocation12], 1 }
 0x7a7   :  { %4785 = vsyncpa [#allocation15], 1 }
 0x7a8   :  { %4786 = vsyncpa [#allocation18], 1 }

// kernel: pointnet_encoder.5
= control target key start
LH: loop header
LB: loop body
LE: loop exit
PB: predicated region body
PF: predicated region fallthrough
CT: control target
= control target key end

     0   :  { %s2222_s24 = smov 0   ;;  %s2224_s25 = smov 0   ;;  %s2811_s0 = inlined_call_operand.vmem [shape: f32[2,128,3], index: 0, kind: input, shape index: {}]   ;;  %s2812_s1 = inlined_call_operand.vmem [shape: bf16[2,3,64], index: 1, kind: input, shape index: {}]   ;;  %s2813_s2 = inlined_call_operand.vmem [shape: f32[1,64], index: 2, kind: input, shape index: {}]   ;;  %s2814_s3 = inlined_call_operand.vmem [shape: bf16[2,64,128], index: 3, kind: input, shape index: {}]   ;;  %s2815_s4 = inlined_call_operand.vmem [shape: f32[1,128], index: 4, kind: input, shape index: {}]   ;;  %s2816_s5 = inlined_call_operand.vmem [shape: bf16[128,1024], index: 5, kind: input, shape index: {}]   ;;  %s2817_s6 = inlined_call_operand.vmem [shape: f32[1,1024], index: 6, kind: input, shape index: {}]   ;;  %s2818_s7 = inlined_call_operand.vmem [shape: f32[2,1,1024], index: 7, kind: output, shape index: {}]  }
   0x1   :  { %s2226_s26 = smov 0  }
   0x2 LB: > { %s29_s27 = sadd.s32 1, %s2173_s25  ;;  %p1964_p0 = scmp.ge.s32.totalorder %s2177_s26, 1  ;;  %s2177_s26 = sphi %s2226_s26, %s17_s26   ;;  %s2173_s25 = sphi %s2224_s25, %s2820_s25   ;;  %s2169_s24 = sphi %s2222_s24, %s2819_s24  }
   0x3   : > { %p31_p1 = scmp.ge.s32.totalorder %s29_s27, 2  ;;  %p275_p2 = scmp.lt.s32.totalorder %s2177_s26, 3 }
   0x5   : > { %s2822_s27 = smov (%p31_p1, %s29_s27), 0  ;;  %p276_p3 = pnand %p1964_p0, %p275_p2 }
   0x6   : > { %p320_p4 = scmp.lt.s32.totalorder (!%p276_p3), %s2169_s24, 1  ;;  %vm400_vm0 = vcmask (!%p276_p3), 1040384   ;;  %vm401_vm1 = vcmask (!%p276_p3), 1041408   ;;  %v2179_v0 = vmov (!%p276_p3), 65535   ;;  %vm375_vm2 = vcmask (!%p276_p3), 23552   ;;  %v713_v33 = vld [vmem:[%s2816_s5] sm:$0xff] (!%p276_p3) }
   0x7   : > { %279 = sbr.rel (%p276_p3) target bundleno = 829 (0x33d), region = 48  ;;  %v402_v1 = vsel (!%p276_p3), %vm400_vm0, 4294967295, %v2179_v0  ;;  %v717_v34 = vld [vmem:[%s2816_s5 + $0x20] sm:$0xff] (!%p276_p3)  ;;  %v2295_v35 = vld [vmem:[%s2816_s5 + $0x8] sm:$0xff] (!%p276_p3)  ;;  %vm567_vm3 = vcmask (!%p276_p3), 523264  }
   0x8   : > { %v403_v2 = vsel (!%p276_p3), %vm401_vm1, %v402_v1, 0  ;;  %v1993_v36 = vcombine.low (!%p276_p3), %v713_v33, %v717_v34  ;;  %v1994_v37 = vcombine.high (!%p276_p3), %v713_v33, %v717_v34  ;;  %v2300_v38 = vld [vmem:[%s2816_s5 + $0x28] sm:$0xff] (!%p276_p3)  ;;  %v721_v39 = vld [vmem:[%s2816_s5 + $0x40] sm:$0xff] (!%p276_p3) }
   0x9   : > { %v725_v40 = vld [vmem:[%s2816_s5 + $0x60] sm:$0xff] (!%p276_p3)  ;;  %v1995_v41 = vcombine.low (!%p276_p3), %v2295_v35, %v2300_v38  ;;  %v1996_v42 = vcombine.high (!%p276_p3), %v2295_v35, %v2300_v38 }
   0xa   : > { %v2002_v43 = vcombine.high (!%p276_p3), %v721_v39, %v725_v40  ;;  %v729_v44 = vld [vmem:[%s2816_s5 + $0x80] sm:$0xff] (!%p276_p3)  ;;  %v2001_v46 = vcombine.low (!%p276_p3), %v721_v39, %v725_v40 }
   0xb   : > { %v733_v45 = vld [vmem:[%s2816_s5 + $0xa0] sm:$0xff] (!%p276_p3) }
   0xc   : > { %v2010_v47 = vcombine.high (!%p276_p3), %v729_v44, %v733_v45  ;;  %v737_v48 = vld [vmem:[%s2816_s5 + $0xc0] sm:$0xff] (!%p276_p3)  ;;  %v2009_v50 = vcombine.low (!%p276_p3), %v729_v44, %v733_v45 }
   0xd   : > { %v741_v49 = vld [vmem:[%s2816_s5 + $0xe0] sm:$0xff] (!%p276_p3) }
   0xe   : > { %s2824_s24 = smov (!%p320_p4, %s2169_s24), 1  ;;  %v2018_v51 = vcombine.high %v737_v48, %v741_v49  ;;  %v745_v52 = vld [vmem:[%s2816_s5 + $0x100] sm:$0xff]  ;;  %v2017_v54 = vcombine.low %v737_v48, %v741_v49 }
   0xf   : > { %s2059_s28 = sshll.u32 %s2824_s24, 7  ;;  %s1967_s29 = sshll.u32 %s2824_s24, 1  ;;  %v749_v53 = vld [vmem:[%s2816_s5 + $0x120] sm:$0xff] }
  0x10   : > { %s2247_s9 = scalar_lea.vmem %s2811_s0, %s2059_s28  ;;  %s332_s12 = scalar_lea.vmem %s2812_s1, %s1967_s29  ;;  %v2026_v55 = vcombine.high %v745_v52, %v749_v53  ;;  %v753_v56 = vld [vmem:[%s2816_s5 + $0x140] sm:$0xff]  ;;  %v2025_v58 = vcombine.low %v745_v52, %v749_v53  ;;  %v754_v53 = vld [vmem:[%s2816_s5 + $0x148] sm:$0xff] }
  0x11   : > { %v367_v3 = vld [vmem:[%s332_s12] sm:$0x3]  ;;  %v344_v5 = vld [vmem:[%s2247_s9 + $0x8] sm:$0xff]  ;;  %s2060_s13 = sshll.u32 %s2824_s24, 5  ;;  %v345_v8 = vld [vmem:[%s2247_s9 + $0x10] sm:$0xff]  ;;  %s1970_s18 = sshll.u32 %s2824_s24, 3 }
  0x12   : > { %v343_v4 = vld [vmem:[%s2247_s9] sm:$0xff]  ;;  %v405_v6 = vand.u32 %v403_v2, %v367_v3  ;;  %v346_v9 = vld [vmem:[%s2247_s9 + $0x18] sm:$0xff]  ;;  %v348_v11 = vld [vmem:[%s2247_s9 + $0x28] sm:$0xff]  ;;  %s2263_s16 = scalar_lea.vmem %s2814_s3, %s2060_s13  ;;  %s341_s21 = scalar_lea.vmem %s2818_s7, %s1970_s18 }
  0x13   : > { %v359_v7 = vpack.c.bf16 %v344_v5, %v343_v4  ;;  %v347_v10 = vld [vmem:[%s2247_s9 + $0x20] sm:$0xff]  ;;  %v360_v12 = vpack.c.bf16 %v346_v9, %v345_v8  ;;  %v349_v14 = vld [vmem:[%s2247_s9 + $0x30] sm:$0xff]  ;;  %v350_v15 = vld [vmem:[%s2247_s9 + $0x38] sm:$0xff] }
  0x14   : > { %2082 = vmatprep.subr.bf16.mxu0 %v405_v6  ;;  %v361_v13 = vpack.c.bf16 %v348_v11, %v347_v10  ;;  %v2151_v16 = vld [vmem:[%s2263_s16] sm:$0xff]   ;;  %v2152_v17 = vld [vmem:[%s2263_s16 + $0x8] sm:$0xff]   ;;  %v362_v20 = vpack.c.bf16 %v350_v15, %v349_v14  ;;  %v353_v22 = vld [vmem:[%s2247_s9 + $0x50] sm:$0xff] }
  0x15   : > { %2084 = vmatprep.mubr.msk.bf16.mxu0 %vm375_vm2, %v359_v7  ;;  %2083 = vmatpush3.bf16.msra.mxu0 %v405_v6  ;;  %v351_v18 = vld [vmem:[%s2247_s9 + $0x40] sm:$0xff]  ;;  %v352_v19 = vld [vmem:[%s2247_s9 + $0x48] sm:$0xff]  ;;  %v354_v23 = vld [vmem:[%s2247_s9 + $0x58] sm:$0xff] }
  0x16   : > { %2100 = vmatprep.subr.bf16.mxu1 %v2151_v16  ;;  %v363_v21 = vpack.c.bf16 %v352_v19, %v351_v18  ;;  %v355_v24 = vld [vmem:[%s2247_s9 + $0x60] sm:$0xff]  ;;  %v356_v25 = vld [vmem:[%s2247_s9 + $0x68] sm:$0xff]  ;;  %v364_v26 = vpack.c.bf16 %v354_v23, %v353_v22  ;;  %v357_v28 = vld [vmem:[%s2247_s9 + $0x70] sm:$0xff]  ;;  %1139 = vmatprep.subr.bf16.mxu0 %v1994_v37 }
  0x17   : > { %2101 = vmatpush3.bf16.msra.mxu1 %v2151_v16  ;;  %v365_v27 = vpack.c.bf16 %v356_v25, %v355_v24  ;;  %v358_v29 = vld [vmem:[%s2247_s9 + $0x78] sm:$0xff]  ;;  %v2153_v31 = vld [vmem:[%s2263_s16 + $0x10] sm:$0xff]   ;;  %v757_v57 = vld [vmem:[%s2816_s5 + $0x160] sm:$0xff] }
  0x18   : > { %2085 = vmatmul.mubr.msk.bf16.vlgmr.msra.gmra.mrb[0].mxu0 %vm375_vm2, %v360_v12  ;;  %2102 = vmatprep.subr.bf16.mxu1 %v2152_v17  ;;  %v366_v30 = vpack.c.bf16 %v358_v29, %v357_v28  ;;  %v2154_v32 = vld [vmem:[%s2263_s16 + $0x18] sm:$0xff]   ;;  %v2034_v59 = vcombine.high %v753_v56, %v757_v57  ;;  %v2033_v60 = vcombine.low %v753_v56, %v757_v57  ;;  %v2339_v61 = vld [vmem:[%s2813_s2] ss:$0 sm:$0xff]  ;;  %v722_v10 = vld [vmem:[%s2816_s5 + $0x48] sm:$0xff] }
  0x19   : > { %2088 = vmatprep.mubr.msk.bf16.mxu0 %vm375_vm2, %v361_v13  ;;  %1140 = vmatpush1.bf16.msra.mxu0 %v1993_v36  ;;  %v726_v11 = vld [vmem:[%s2816_s5 + $0x68] sm:$0xff] }
  0x1a   : > { %1141 = vmatprep.subr.bf16.mxu0 %v2002_v43  ;;  %v750_v43 = vld [vmem:[%s2816_s5 + $0x128] sm:$0xff] }
  0x1b   : > { %2103 = vmatpush3.bf16.msra.mxu1 %v2152_v17  ;;  %v2004_v17 = vcombine.high %v722_v10, %v726_v11 }
  0x1c   : > { %2104 = vmatprep.subr.bf16.mxu1 %v2153_v31 }
  0x1d   : > { %1142 = vmatpush1.bf16.msra.mxu0 %v2001_v46 }
  0x1e   : > { %1143 = vmatprep.subr.bf16.mxu0 %v2010_v47 }
  0x1f   : > { %2105 = vmatpush3.bf16.msra.mxu1 %v2153_v31  ;;  %v738_v31 = vld [vmem:[%s2816_s5 + $0xc8] sm:$0xff] }
  0x20   : > { %2089 = vmatmul.mubr.msk.bf16.gmra.mrb[4].mxu0 %vm375_vm2, %v362_v20  ;;  %2106 = vmatprep.subr.bf16.mxu1 %v2154_v32  ;;  %v730_v20 = vld [vmem:[%s2816_s5 + $0x88] sm:$0xff] }
  0x21   : > { %2092 = vmatprep.mubr.msk.bf16.mxu0 %vm375_vm2, %v363_v21  ;;  %1144 = vmatpush1.bf16.msra.mxu0 %v2009_v50  ;;  %v734_v21 = vld [vmem:[%s2816_s5 + $0xa8] sm:$0xff] }
  0x22   : > { %1145 = vmatprep.subr.bf16.mxu0 %v2018_v51  ;;  %v2012_v29 = vcombine.high %v730_v20, %v734_v21  ;;  %v2011_v37 = vcombine.low %v730_v20, %v734_v21  ;;  %v770_v20 = vld [vmem:[%s2816_s5 + $0x1c8] sm:$0xff] }
  0x23   : > { %2107 = vmatpush3.bf16.msra.mxu1 %v2154_v32  ;;  %v742_v32 = vld [vmem:[%s2816_s5 + $0xe8] sm:$0xff] }
  0x24   : > { %1252 = vmatprep.subr.bf16.mxu1 %v1996_v42  ;;  %v2020_v39 = vcombine.high %v738_v31, %v742_v32  ;;  %v746_v42 = vld [vmem:[%s2816_s5 + $0x108] sm:$0xff]  ;;  %v2019_v49 = vcombine.low %v738_v31, %v742_v32  ;;  %v720_v32 = vld [vmem:[%s2816_s5 + $0x38] sm:$0xff] }
  0x25   : > { %1146 = vmatpush1.bf16.msra.mxu0 %v2017_v54  ;;  %v2028_v51 = vcombine.high %v746_v42, %v750_v43  ;;  %v758_v54 = vld [vmem:[%s2816_s5 + $0x168] sm:$0xff] }
  0x26   : > { %1147 = vmatprep.subr.bf16.mxu0 %v2026_v55 }
  0x28   : > { %2093 = vmatmul.mubr.msk.bf16.gmra.mrb[8].mxu0 %vm375_vm2, %v364_v26 }
  0x29   : > { %2096 = vmatprep.mubr.msk.bf16.mxu0 %vm375_vm2, %v365_v27  ;;  %1148 = vmatpush1.bf16.msra.mxu0 %v2025_v58  ;;  %v2003_v27 = vcombine.low %v722_v10, %v726_v11  ;;  %v2027_v58 = vcombine.low %v746_v42, %v750_v43  ;;  %v761_v11 = vld [vmem:[%s2816_s5 + $0x180] sm:$0xff] }
  0x2a   : > { %1149 = vmatprep.subr.bf16.mxu0 %v2034_v59 }
  0x2d   : > { %1150 = vmatpush1.bf16.msra.mxu0 %v2033_v60 }
  0x30   : > { %2097 = vmatmul.mubr.msk.bf16.gmra.mrb[12].mxu0 %vm375_vm2, %v366_v30 }
  0xeb   : > { %v2086_v62 = vpop.f32.mrb[0].mxu0 }
  0xec   : > { %v450_v63 = vadd.f32 %v2086_v62, %v2339_v61  ;;  %v441_v0 = vpop.f32.mrb[1].mxu0  ;;  %v2036_v62 = vcombine.high %v754_v53, %v758_v54 }
  0xed   : > { %v442_v1 = vadd.f32 %v2339_v61, %v441_v0  ;;  %v2087_v2 = vpop.f32.mrb[2].mxu0 }
  0xee   : > { %v453_v3 = vadd.f32 %v2087_v2, %v2339_v61  ;;  %v444_v4 = vpop.f32.mrb[3].mxu0  ;;  %v506_v6 = vmax.f32 %v450_v63, 0.0 }
  0xef   : > { %v445_v5 = vadd.f32 %v2339_v61, %v444_v4  ;;  %v504_v8 = vmax.f32 %v442_v1, 0.0 }
  0xf0   : > { %v507_v7 = vmax.f32 %v453_v3, 0.0 }
  0xf1   : > { %v505_v9 = vmax.f32 %v445_v5, 0.0 }
  0xf2   : > { %v521_v12 = vpack.c.bf16 %v507_v7, %v506_v6  ;;  %v2035_v6 = vcombine.low %v754_v53, %v758_v54 }
  0xf3   : > { %v2090_v13 = vpop.f32.mrb[4].mxu0  ;;  %v520_v14 = vpack.c.bf16 %v505_v9, %v504_v8 }
  0xf4   : > { %v466_v15 = vadd.f32 %v2090_v13, %v2339_v61  ;;  %v457_v16 = vpop.f32.mrb[5].mxu0 }
  0xf5   : > { %v458_v18 = vadd.f32 %v2339_v61, %v457_v16  ;;  %2108 = vmatprep.mubr.msk.bf16.mxu1 %vm567_vm3, %v520_v14  ;;  %v2091_v19 = vpop.f32.mrb[6].mxu0  ;;  %v766_v14 = vld [vmem:[%s2816_s5 + $0x1a8] sm:$0xff] }
  0xf6   : > { %v510_v22 = vmax.f32 %v466_v15, 0.0  ;;  %v469_v23 = vadd.f32 %v2091_v19, %v2339_v61  ;;  %2109 = vmatmul.mubr.msk.bf16.vlgmr.msra.gmra.mrb[0].mxu1 %vm567_vm3, %v521_v12  ;;  %v460_v24 = vpop.f32.mrb[7].mxu0  ;;  %v762_v12 = vld [vmem:[%s2816_s5 + $0x188] sm:$0xff]  ;;  %v773_v19 = vld [vmem:[%s2816_s5 + $0x1e0] sm:$0xff] }
  0xf7   : > { %v508_v25 = vmax.f32 %v458_v18, 0.0  ;;  %v461_v26 = vadd.f32 %v2339_v61, %v460_v24  ;;  %1253 = vmatpush1.bf16.msra.mxu1 %v1995_v41  ;;  %v2043_v16 = vcombine.low %v762_v12, %v766_v14  ;;  %v769_v18 = vld [vmem:[%s2816_s5 + $0x1c0] sm:$0xff] }
  0xf8   : > { %v511_v28 = vmax.f32 %v469_v23, 0.0  ;;  %1254 = vmatprep.subr.bf16.mxu1 %v2004_v17  ;;  %v2044_v17 = vcombine.high %v762_v12, %v766_v14  ;;  %v2050_v21 = vcombine.high %v769_v18, %v773_v19  ;;  %v2049_v23 = vcombine.low %v769_v18, %v773_v19  ;;  %v740_v14 = vld [vmem:[%s2816_s5 + $0xd8] sm:$0xff] }
  0xf9   : > { %v509_v30 = vmax.f32 %v461_v26, 0.0  ;;  %v2180_v26 = vmov 0  }
  0xfa   : > { %v523_v33 = vpack.c.bf16 %v511_v28, %v510_v22  ;;  %v774_v22 = vld [vmem:[%s2816_s5 + $0x1e8] sm:$0xff]  ;;  %1171 = vmatprep.mubr.bf16.mxu0 %v2180_v26  ;;  %v719_v28 = vld [vmem:[%s2816_s5 + $0x30] sm:$0xff] }
  0xfb   : > { %v522_v34 = vpack.c.bf16 %v509_v30, %v508_v25  ;;  %v2094_v36 = vpop.f32.mrb[8].mxu0  ;;  %1255 = vmatpush1.bf16.msra.mxu1 %v2003_v27  ;;  %v2051_v24 = vcombine.low %v770_v20, %v774_v22  ;;  %v2052_v25 = vcombine.high %v770_v20, %v774_v22  ;;  %v715_v27 = vld [vmem:[%s2816_s5 + $0x10] sm:$0xff] }
  0xfc   : > { %v482_v35 = vadd.f32 %v2094_v36, %v2339_v61  ;;  %v473_v38 = vpop.f32.mrb[9].mxu0  ;;  %1256 = vmatprep.subr.bf16.mxu1 %v2012_v29  ;;  %v716_v29 = vld [vmem:[%s2816_s5 + $0x18] sm:$0xff]  ;;  %v1997_v30 = vcombine.low %v715_v27, %v719_v28  ;;  %v1998_v31 = vcombine.high %v715_v27, %v719_v28  ;;  %v2439_v36 = vld [vmem:[%s2815_s4] ss:$0 sm:$0xff] }
  0xfd   : > { %2112 = vmatprep.mubr.msk.bf16.mxu1 %vm567_vm3, %v522_v34  ;;  %v474_v40 = vadd.f32 %v2339_v61, %v473_v38  ;;  %v2095_v41 = vpop.f32.mrb[10].mxu0  ;;  %v2000_v34 = vcombine.high %v716_v29, %v720_v32 }
  0xfe   : > { %2113 = vmatmul.mubr.msk.bf16.gmra.mrb[4].mxu1 %vm567_vm3, %v523_v33  ;;  %v514_v44 = vmax.f32 %v482_v35, 0.0  ;;  %v485_v45 = vadd.f32 %v2095_v41, %v2339_v61  ;;  %v476_v46 = vpop.f32.mrb[11].mxu0  ;;  %v1999_v33 = vcombine.low %v716_v29, %v720_v32  ;;  %v751_v29 = vld [vmem:[%s2816_s5 + $0x130] sm:$0xff] }
  0xff   : > { %v512_v47 = vmax.f32 %v474_v40, 0.0  ;;  %v477_v48 = vadd.f32 %v2339_v61, %v476_v46  ;;  %1257 = vmatpush1.bf16.msra.mxu1 %v2011_v37  ;;  %v723_v46 = vld [vmem:[%s2816_s5 + $0x50] sm:$0xff] }
 0x100   : > { %v515_v50 = vmax.f32 %v485_v45, 0.0  ;;  %1258 = vmatprep.subr.bf16.mxu1 %v2020_v39 }
 0x101   : > { %v513_v52 = vmax.f32 %v477_v48, 0.0 }
 0x102   : > { %v525_v55 = vpack.c.bf16 %v515_v50, %v514_v44  ;;  %v724_v50 = vld [vmem:[%s2816_s5 + $0x58] sm:$0xff] }
 0x103   : > { %v524_v56 = vpack.c.bf16 %v513_v52, %v512_v47  ;;  %v2098_v57 = vpop.f32.mrb[12].mxu0  ;;  %1259 = vmatpush1.bf16.msra.mxu1 %v2019_v49  ;;  %v727_v49 = vld [vmem:[%s2816_s5 + $0x70] sm:$0xff] }
 0x104   : > { %v498_v59 = vadd.f32 %v2098_v57, %v2339_v61  ;;  %v489_v60 = vpop.f32.mrb[13].mxu0  ;;  %1260 = vmatprep.subr.bf16.mxu1 %v2028_v51  ;;  %v728_v51 = vld [vmem:[%s2816_s5 + $0x78] sm:$0xff] }
 0x105   : > { %2116 = vmatprep.mubr.msk.bf16.mxu1 %vm567_vm3, %v524_v56  ;;  %v490_v63 = vadd.f32 %v2339_v61, %v489_v60  ;;  %v2099_v0 = vpop.f32.mrb[14].mxu0  ;;  %v735_v60 = vld [vmem:[%s2816_s5 + $0xb0] sm:$0xff] }
 0x106   : > { %2117 = vmatmul.mubr.msk.bf16.gmra.mrb[8].mxu1 %vm567_vm3, %v525_v55  ;;  %v518_v1 = vmax.f32 %v498_v59, 0.0  ;;  %v501_v2 = vadd.f32 %v2099_v0, %v2339_v61  ;;  %v492_v3 = vpop.f32.mrb[15].mxu0  ;;  %v731_v55 = vld [vmem:[%s2816_s5 + $0x90] sm:$0xff]  ;;  %v2008_v59 = vcombine.high %v724_v50, %v728_v51 }
 0x107   : > { %v516_v4 = vmax.f32 %v490_v63, 0.0  ;;  %v493_v5 = vadd.f32 %v2339_v61, %v492_v3  ;;  %1261 = vmatpush1.bf16.msra.mxu1 %v2027_v58  ;;  %v765_v61 = vld [vmem:[%s2816_s5 + $0x1a0] sm:$0xff]  ;;  %v2006_v58 = vcombine.high %v723_v46, %v727_v49  ;;  %v736_v63 = vld [vmem:[%s2816_s5 + $0xb8] sm:$0xff]  ;;  %v2013_v19 = vcombine.low %v731_v55, %v735_v60 }
 0x108   : > { %v519_v7 = vmax.f32 %v501_v2, 0.0  ;;  %1262 = vmatprep.subr.bf16.mxu1 %v2036_v62  ;;  %v2042_v13 = vcombine.high %v761_v11, %v765_v61  ;;  %v2041_v15 = vcombine.low %v761_v11, %v765_v61  ;;  %v732_v62 = vld [vmem:[%s2816_s5 + $0x98] sm:$0xff]  ;;  %v739_v61 = vld [vmem:[%s2816_s5 + $0xd0] sm:$0xff] }
 0x109   : > { %v517_v8 = vmax.f32 %v493_v5, 0.0  ;;  %v2005_v5 = vcombine.low %v723_v46, %v727_v49  ;;  %v2015_v20 = vcombine.low %v732_v62, %v736_v63  ;;  %v756_v46 = vld [vmem:[%s2816_s5 + $0x158] sm:$0xff] }
 0x10a   : > { %v527_v9 = vpack.c.bf16 %v519_v7, %v518_v1  ;;  %1151 = vmatprep.subr.bf16.mxu0 %v2042_v13  ;;  %v743_v13 = vld [vmem:[%s2816_s5 + $0xf0] sm:$0xff] }
 0x10b   : > { %v526_v10 = vpack.c.bf16 %v517_v8, %v516_v4  ;;  %1263 = vmatpush1.bf16.msra.mxu1 %v2035_v6  ;;  %1152 = vmatpush1.bf16.msra.mxu0 %v2041_v15  ;;  %v2007_v6 = vcombine.low %v724_v50, %v728_v51  ;;  %v744_v15 = vld [vmem:[%s2816_s5 + $0xf8] sm:$0xff] }
 0x10c   : > { %1264 = vmatprep.subr.bf16.mxu1 %v2044_v17  ;;  %1153 = vmatprep.subr.bf16.mxu0 %v2050_v21 }
 0x10d   : > { %2120 = vmatprep.mubr.msk.bf16.mxu1 %vm567_vm3, %v526_v10  ;;  %v2016_v10 = vcombine.high %v732_v62, %v736_v63  ;;  %v767_v63 = vld [vmem:[%s2816_s5 + $0x1b0] sm:$0xff] }
 0x10e   : > { %2121 = vmatmul.mubr.msk.bf16.gmra.mrb[12].mxu1 %vm567_vm3, %v527_v9  ;;  %v2014_v9 = vcombine.high %v731_v55, %v735_v60 }
 0x10f   : > { %1265 = vmatpush1.bf16.msra.mxu1 %v2043_v16  ;;  %1154 = vmatpush1.bf16.msra.mxu0 %v2049_v23  ;;  %v2022_v23 = vcombine.high %v739_v61, %v743_v13 }
 0x110   : > { %1266 = vmatprep.subr.bf16.mxu1 %v2052_v25  ;;  %1284 = vmatprep.mubr.bf16.mxu1 %v2180_v26  ;;  %v747_v25 = vld [vmem:[%s2816_s5 + $0x110] sm:$0xff] }
 0x111   : > { %1365 = vmatprep.subr.bf16.mxu0 %v1998_v31  ;;  %v752_v31 = vld [vmem:[%s2816_s5 + $0x138] sm:$0xff]  ;;  %v2029_v51 = vcombine.low %v747_v25, %v751_v29 }
 0x113   : > { %1267 = vmatpush1.bf16.msra.mxu1 %v2051_v24  ;;  %v2024_v24 = vcombine.high %v740_v14, %v744_v15 }
 0x114   : > { %1478 = vmatprep.subr.bf16.mxu1 %v2000_v34 }
 0x1c9   : > { %v2110_v37 = vpop.f32.mrb[0].mxu1 }
 0x1ca   : > { %v635_v35 = vadd.f32 %v2110_v37, %v2439_v36  ;;  %v626_v38 = vpop.f32.mrb[1].mxu1 }
 0x1cb   : > { %v627_v39 = vadd.f32 %v2439_v36, %v626_v38  ;;  %v2111_v40 = vpop.f32.mrb[2].mxu1  ;;  %v2021_v38 = vcombine.low %v739_v61, %v743_v13  ;;  %v771_v61 = vld [vmem:[%s2816_s5 + $0x1d0] sm:$0xff] }
 0x1cc   : > { %v638_v41 = vadd.f32 %v2111_v40, %v2439_v36  ;;  %v629_v42 = vpop.f32.mrb[3].mxu1  ;;  %v691_v44 = vmax.f32 %v635_v35, 0.0  ;;  %v775_v13 = vld [vmem:[%s2816_s5 + $0x1f0] sm:$0xff] }
 0x1cd   : > { %v630_v43 = vadd.f32 %v2439_v36, %v629_v42  ;;  %v689_v47 = vmax.f32 %v627_v39, 0.0  ;;  %v2023_v39 = vcombine.low %v740_v14, %v744_v15  ;;  %v776_v14 = vld [vmem:[%s2816_s5 + $0x1f8] sm:$0xff] }
 0x1ce   : > { %v692_v45 = vmax.f32 %v638_v41, 0.0  ;;  %v2030_v41 = vcombine.high %v747_v25, %v751_v29  ;;  %v2620_v25 = vld [vmem:[%s2817_s6] sm:$0xff] }
 0x1cf   : > { %v690_v48 = vmax.f32 %v630_v43, 0.0  ;;  %v755_v43 = vld [vmem:[%s2816_s5 + $0x150] sm:$0xff] }
 0x1d0   : > { %v2457_v52 = vpack.c.bf16 %v692_v45, %v691_v44  ;;  %v759_v45 = vld [vmem:[%s2816_s5 + $0x170] sm:$0xff] }
 0x1d1   : > { %v2459_v53 = vpack.c.bf16 %v690_v48, %v689_v47  ;;  %v2114_v54 = vpop.f32.mrb[4].mxu1  ;;  %v760_v47 = vld [vmem:[%s2816_s5 + $0x178] sm:$0xff] }
 0x1d2   : > { %v651_v56 = vadd.f32 %v2114_v54, %v2439_v36  ;;  %v642_v57 = vpop.f32.mrb[5].mxu1 }
 0x1d3   : > { %v643_v0 = vadd.f32 %v2439_v36, %v642_v57  ;;  %1172 = vmatmul.mubr.bf16.vlgmr.msra.gmra.mrb[16].mxu0 %v2459_v53  ;;  %1285 = vmatmul.mubr.bf16.vlgmr.msra.gmra.mrb[16].mxu1 %v2459_v53  ;;  %v2115_v1 = vpop.f32.mrb[6].mxu1  ;;  %v2038_v57 = vcombine.high %v755_v43, %v759_v45 }
 0x1d4   : > { %v695_v2 = vmax.f32 %v651_v56, 0.0  ;;  %1366 = vmatpush1.bf16.msra.mxu0 %v1997_v30  ;;  %1479 = vmatpush1.bf16.msra.mxu1 %v1999_v33  ;;  %v654_v3 = vadd.f32 %v2115_v1, %v2439_v36  ;;  %v645_v4 = vpop.f32.mrb[7].mxu1  ;;  %v748_v30 = vld [vmem:[%s2816_s5 + $0x118] sm:$0xff] }
 0x1d5   : > { %v693_v7 = vmax.f32 %v643_v0, 0.0  ;;  %v646_v8 = vadd.f32 %v2439_v36, %v645_v4  ;;  %1181 = vmatprep.mubr.bf16.mxu0 %v2180_v26  ;;  %1294 = vmatprep.mubr.bf16.mxu1 %v2180_v26  ;;  %v2032_v42 = vcombine.high %v748_v30, %v752_v31  ;;  %v2031_v54 = vcombine.low %v748_v30, %v752_v31  ;;  %v764_v0 = vld [vmem:[%s2816_s5 + $0x198] sm:$0xff] }
 0x1d6   : > { %v696_v11 = vmax.f32 %v654_v3, 0.0  ;;  %1367 = vmatprep.subr.bf16.mxu0 %v2006_v58  ;;  %1480 = vmatprep.subr.bf16.mxu1 %v2008_v59  ;;  %v2040_v58 = vcombine.high %v756_v46, %v760_v47  ;;  %v763_v59 = vld [vmem:[%s2816_s5 + $0x190] sm:$0xff]  ;;  %v768_v1 = vld [vmem:[%s2816_s5 + $0x1b8] sm:$0xff] }
 0x1d7   : > { %v694_v12 = vmax.f32 %v646_v8, 0.0  ;;  %v2039_v8 = vcombine.low %v756_v46, %v760_v47 }
 0x1d8   : > { %v2493_v16 = vpack.c.bf16 %v696_v11, %v695_v2  ;;  %1368 = vmatpush1.bf16.msra.mxu0 %v2005_v5  ;;  %1481 = vmatpush1.bf16.msra.mxu1 %v2007_v6  ;;  %v2048_v11 = vcombine.high %v764_v0, %v768_v1 }
 0x1d9   : > { %v2495_v17 = vpack.c.bf16 %v694_v12, %v693_v7  ;;  %v2118_v18 = vpop.f32.mrb[8].mxu1  ;;  %1369 = vmatprep.subr.bf16.mxu0 %v2014_v9  ;;  %1482 = vmatprep.subr.bf16.mxu1 %v2016_v10  ;;  %v2037_v7 = vcombine.low %v755_v43, %v759_v45  ;;  %v2046_v10 = vcombine.high %v763_v59, %v767_v63 }
 0x1da   : > { %v667_v21 = vadd.f32 %v2118_v18, %v2439_v36  ;;  %v658_v22 = vpop.f32.mrb[9].mxu1 }
 0x1db   : > { %1182 = vmatmul.mubr.bf16.gmra.mrb[20].mxu0 %v2457_v52  ;;  %1295 = vmatmul.mubr.bf16.gmra.mrb[20].mxu1 %v2457_v52  ;;  %v659_v27 = vadd.f32 %v2439_v36, %v658_v22  ;;  %v2119_v28 = vpop.f32.mrb[10].mxu1 }
 0x1dc   : > { %v699_v32 = vmax.f32 %v667_v21, 0.0  ;;  %1191 = vmatprep.mubr.bf16.mxu0 %v2180_v26  ;;  %1304 = vmatprep.mubr.bf16.mxu1 %v2180_v26  ;;  %v670_v33 = vadd.f32 %v2119_v28, %v2439_v36  ;;  %v661_v34 = vpop.f32.mrb[11].mxu1  ;;  %v2054_v21 = vcombine.high %v771_v61, %v775_v13 }
 0x1dd   : > { %v697_v37 = vmax.f32 %v659_v27, 0.0  ;;  %1370 = vmatpush1.bf16.msra.mxu0 %v2013_v19  ;;  %1483 = vmatpush1.bf16.msra.mxu1 %v2015_v20  ;;  %v662_v35 = vadd.f32 %v2439_v36, %v661_v34  ;;  %v2045_v19 = vcombine.low %v763_v59, %v767_v63  ;;  %v2047_v20 = vcombine.low %v764_v0, %v768_v1 }
 0x1de   : > { %v700_v40 = vmax.f32 %v670_v33, 0.0  ;;  %1371 = vmatprep.subr.bf16.mxu0 %v2022_v23  ;;  %1484 = vmatprep.subr.bf16.mxu1 %v2024_v24  ;;  %v2053_v23 = vcombine.low %v771_v61, %v775_v13 }
 0x1df   : > { %v698_v44 = vmax.f32 %v662_v35, 0.0 }
 0x1e0   : > { %v2529_v48 = vpack.c.bf16 %v700_v40, %v699_v32 }
 0x1e1   : > { %v2531_v49 = vpack.c.bf16 %v698_v44, %v697_v37  ;;  %1372 = vmatpush1.bf16.msra.mxu0 %v2021_v38  ;;  %1485 = vmatpush1.bf16.msra.mxu1 %v2023_v39  ;;  %v2122_v50 = vpop.f32.mrb[12].mxu1 }
 0x1e2   : > { %v683_v55 = vadd.f32 %v2122_v50, %v2439_v36  ;;  %1373 = vmatprep.subr.bf16.mxu0 %v2030_v41  ;;  %1486 = vmatprep.subr.bf16.mxu1 %v2032_v42  ;;  %v674_v56 = vpop.f32.mrb[13].mxu1 }
 0x1e3   : > { %1192 = vmatmul.mubr.bf16.gmra.mrb[24].mxu0 %v2495_v17  ;;  %1305 = vmatmul.mubr.bf16.gmra.mrb[24].mxu1 %v2495_v17  ;;  %v675_v60 = vadd.f32 %v2439_v36, %v674_v56  ;;  %v2123_v62 = vpop.f32.mrb[14].mxu1 }
 0x1e4   : > { %1201 = vmatprep.mubr.bf16.mxu0 %v2180_v26  ;;  %1314 = vmatprep.mubr.bf16.mxu1 %v2180_v26  ;;  %v703_v2 = vmax.f32 %v683_v55, 0.0  ;;  %v686_v3 = vadd.f32 %v2123_v62, %v2439_v36  ;;  %v677_v4 = vpop.f32.mrb[15].mxu1 }
 0x1e5   : > { %v701_v5 = vmax.f32 %v675_v60, 0.0  ;;  %1374 = vmatpush1.bf16.msra.mxu0 %v2029_v51  ;;  %1487 = vmatpush1.bf16.msra.mxu1 %v2031_v54  ;;  %v678_v6 = vadd.f32 %v2439_v36, %v677_v4  ;;  %v772_v36 = vld [vmem:[%s2816_s5 + $0x1d8] sm:$0xff] }
 0x1e6   : > { %v704_v9 = vmax.f32 %v686_v3, 0.0  ;;  %1375 = vmatprep.subr.bf16.mxu0 %v2038_v57  ;;  %1488 = vmatprep.subr.bf16.mxu1 %v2040_v58  ;;  %v2056_v22 = vcombine.high %v772_v36, %v776_v14  ;;  %v2055_v24 = vcombine.low %v772_v36, %v776_v14 }
 0x1e7   : > { %v702_v12 = vmax.f32 %v678_v6, 0.0 }
 0x1e8   : > { %v2565_v15 = vpack.c.bf16 %v704_v9, %v703_v2 }
 0x1e9   : > { %v711_v18 = vpack.c.bf16 %v702_v12, %v701_v5  ;;  %1376 = vmatpush1.bf16.msra.mxu0 %v2037_v7  ;;  %1489 = vmatpush1.bf16.msra.mxu1 %v2039_v8 }
 0x1ea   : > { %1377 = vmatprep.subr.bf16.mxu0 %v2046_v10  ;;  %1490 = vmatprep.subr.bf16.mxu1 %v2048_v11 }
 0x1eb   : > { %1202 = vmatmul.mubr.bf16.gmra.mrb[28].mxu0 %v2493_v16  ;;  %1315 = vmatmul.mubr.bf16.gmra.mrb[28].mxu1 %v2493_v16 }
 0x1ec   : > { %1211 = vmatprep.mubr.bf16.mxu0 %v2180_v26  ;;  %1324 = vmatprep.mubr.bf16.mxu1 %v2180_v26 }
 0x1ed   : > { %1378 = vmatpush1.bf16.msra.mxu0 %v2045_v19  ;;  %1491 = vmatpush1.bf16.msra.mxu1 %v2047_v20 }
 0x1ee   : > { %1379 = vmatprep.subr.bf16.mxu0 %v2054_v21  ;;  %1492 = vmatprep.subr.bf16.mxu1 %v2056_v22 }
 0x1f1   : > { %1380 = vmatpush1.bf16.msra.mxu0 %v2053_v23  ;;  %1493 = vmatpush1.bf16.msra.mxu1 %v2055_v24 }
 0x1f3   : > { %1212 = vmatmul.mubr.bf16.gmra.mrb[32].mxu0 %v2531_v49  ;;  %1325 = vmatmul.mubr.bf16.gmra.mrb[32].mxu1 %v2531_v49 }
 0x1f4   : > { %1221 = vmatprep.mubr.bf16.mxu0 %v2180_v26  ;;  %1334 = vmatprep.mubr.bf16.mxu1 %v2180_v26 }
 0x1fb   : > { %1222 = vmatmul.mubr.bf16.gmra.mrb[36].mxu0 %v2529_v48  ;;  %1335 = vmatmul.mubr.bf16.gmra.mrb[36].mxu1 %v2529_v48 }
 0x1fc   : > { %1231 = vmatprep.mubr.bf16.mxu0 %v2180_v26  ;;  %1344 = vmatprep.mubr.bf16.mxu1 %v2180_v26 }
 0x203   : > { %1232 = vmatmul.mubr.bf16.gmra.mrb[40].mxu0 %v711_v18  ;;  %1345 = vmatmul.mubr.bf16.gmra.mrb[40].mxu1 %v711_v18 }
 0x204   : > { %1241 = vmatprep.mubr.bf16.mxu0 %v2180_v26  ;;  %1354 = vmatprep.mubr.bf16.mxu1 %v2180_v26 }
 0x20b   : > { %1242 = vmatmul.mubr.bf16.gmra.mrb[44].mxu0 %v2565_v15  ;;  %1355 = vmatmul.mubr.bf16.gmra.mrb[44].mxu1 %v2565_v15 }
 0x20c   : > { %1397 = vmatprep.mubr.bf16.mxu0 %v2180_v26  ;;  %1510 = vmatprep.mubr.bf16.mxu1 %v2180_v26 }
 0x213   : > { %1398 = vmatmul.mubr.bf16.vlgmr.msra.gmra.mrb[48].mxu0 %v2459_v53  ;;  %1511 = vmatmul.mubr.bf16.vlgmr.msra.gmra.mrb[48].mxu1 %v2459_v53 }
 0x214   : > { %1407 = vmatprep.mubr.bf16.mxu0 %v2180_v26  ;;  %1520 = vmatprep.mubr.bf16.mxu1 %v2180_v26 }
 0x21b   : > { %1408 = vmatmul.mubr.bf16.gmra.mrb[52].mxu0 %v2457_v52  ;;  %1521 = vmatmul.mubr.bf16.gmra.mrb[52].mxu1 %v2457_v52  ;;  %v779_v52 = vlaneseq }
 0x21c   : > { %1417 = vmatprep.mubr.bf16.mxu0 %v2180_v26  ;;  %1530 = vmatprep.mubr.bf16.mxu1 %v2180_v26 }
 0x21d   : > { %v2613_v53 = vshrl.u32 %v779_v52, 7 }
 0x21f   : > { %v785_v27 = vsub.s32 1, %v2613_v53 }
 0x221   : > { %v2631_v32 = vrot.slane %v2620_v25, %v785_v27 }
 0x223   : > { %1418 = vmatmul.mubr.bf16.gmra.mrb[56].mxu0 %v2495_v17  ;;  %1531 = vmatmul.mubr.bf16.gmra.mrb[56].mxu1 %v2495_v17  ;;  %v789_v17 = vsub.s32 2, %v2613_v53 }
 0x224   : > { %1427 = vmatprep.mubr.bf16.mxu0 %v2180_v26  ;;  %1540 = vmatprep.mubr.bf16.mxu1 %v2180_v26 }
 0x225   : > { %v2628_v29 = vrot.slane %v2620_v25, %v789_v17 }
 0x22b   : > { %1428 = vmatmul.mubr.bf16.gmra.mrb[60].mxu0 %v2493_v16  ;;  %1541 = vmatmul.mubr.bf16.gmra.mrb[60].mxu1 %v2493_v16  ;;  %v781_v16 = vsub.s32 0, %v2613_v53 }
 0x22c   : > { %1437 = vmatprep.mubr.bf16.mxu0 %v2180_v26  ;;  %1550 = vmatprep.mubr.bf16.mxu1 %v2180_v26 }
 0x22d   : > { %v2625_v28 = vrot.slane %v2620_v25, %v781_v16 }
 0x233   : > { %1438 = vmatmul.mubr.bf16.gmra.mrb[64].mxu0 %v2531_v49  ;;  %1551 = vmatmul.mubr.bf16.gmra.mrb[64].mxu1 %v2531_v49 }
 0x234   : > { %1447 = vmatprep.mubr.bf16.mxu0 %v2180_v26  ;;  %1560 = vmatprep.mubr.bf16.mxu1 %v2180_v26 }
 0x23b   : > { %1448 = vmatmul.mubr.bf16.gmra.mrb[68].mxu0 %v2529_v48  ;;  %1561 = vmatmul.mubr.bf16.gmra.mrb[68].mxu1 %v2529_v48 }
 0x23c   : > { %1457 = vmatprep.mubr.bf16.mxu0 %v2180_v26  ;;  %1570 = vmatprep.mubr.bf16.mxu1 %v2180_v26 }
 0x243   : > { %1458 = vmatmul.mubr.bf16.gmra.mrb[72].mxu0 %v711_v18  ;;  %1571 = vmatmul.mubr.bf16.gmra.mrb[72].mxu1 %v711_v18 }
 0x244   : > { %1467 = vmatprep.mubr.bf16.mxu0 %v2180_v26  ;;  %1580 = vmatprep.mubr.bf16.mxu1 %v2180_v26  ;;  %v793_v26 = vsub.s32 3, %v2613_v53 }
 0x246   : > { %v2634_v33 = vrot.slane %v2620_v25, %v793_v26 }
 0x24b   : > { %1468 = vmatmul.mubr.bf16.gmra.mrb[76].mxu0 %v2565_v15  ;;  %1581 = vmatmul.mubr.bf16.gmra.mrb[76].mxu1 %v2565_v15 }
 0x2a6   : > { %v1173_v30 = vpop.f32.mrb[16].mxu0  ;;  %v1286_v31 = vpop.f32.mrb[16].mxu1 }
 0x2a7   : > { %v1175_v34 = vpop.f32.mrb[17].mxu0  ;;  %v1288_v37 = vpop.f32.mrb[17].mxu1  ;;  %v1174_v39 = vadd.f32 %v1173_v30, %v2625_v28  ;;  %v1287_v40 = vadd.f32 %v1286_v31, %v2628_v29 }
 0x2a8   : > { %v1177_v35 = vpop.f32.mrb[18].mxu0  ;;  %v1290_v38 = vpop.f32.mrb[18].mxu1  ;;  %v1176_v45 = vadd.f32 %v1175_v34, %v2631_v32  ;;  %v1289_v46 = vadd.f32 %v1288_v37, %v2634_v33 }
 0x2a9   : > { %v1178_v41 = vadd.f32 %v1177_v35, %v2625_v28  ;;  %v1291_v42 = vadd.f32 %v1290_v38, %v2628_v29  ;;  %v1179_v43 = vpop.f32.mrb[19].mxu0  ;;  %v1292_v44 = vpop.f32.mrb[19].mxu1 }
 0x2aa   : > { %v1180_v47 = vadd.f32 %v1179_v43, %v2631_v32  ;;  %v1293_v48 = vadd.f32 %v1292_v44, %v2634_v33 }
 0x2ab   : > { %v1591_v49 = vmax.f32 %v1174_v39, %v1178_v41  ;;  %v1621_v50 = vmax.f32 %v1287_v40, %v1291_v42 }
 0x2ac   : > { %v1606_v51 = vmax.f32 %v1176_v45, %v1180_v47  ;;  %v1636_v54 = vmax.f32 %v1289_v46, %v1293_v48 }
 0x2ae   : > { %v1183_v55 = vpop.f32.mrb[20].mxu0  ;;  %v1296_v56 = vpop.f32.mrb[20].mxu1 }
 0x2af   : > { %v1184_v57 = vadd.f32 %v1183_v55, %v2625_v28  ;;  %v1297_v58 = vadd.f32 %v1296_v56, %v2628_v29  ;;  %v1185_v59 = vpop.f32.mrb[21].mxu0  ;;  %v1298_v60 = vpop.f32.mrb[21].mxu1 }
 0x2b0   : > { %v1186_v62 = vadd.f32 %v1185_v59, %v2631_v32  ;;  %v1299_v63 = vadd.f32 %v1298_v60, %v2634_v33  ;;  %v1187_v0 = vpop.f32.mrb[22].mxu0  ;;  %v1300_v1 = vpop.f32.mrb[22].mxu1 }
 0x2b1   : > { %v1592_v2 = vmax.f32 %v1591_v49, %v1184_v57  ;;  %v1622_v3 = vmax.f32 %v1621_v50, %v1297_v58  ;;  %v1188_v4 = vadd.f32 %v1187_v0, %v2625_v28  ;;  %v1301_v5 = vadd.f32 %v1300_v1, %v2628_v29  ;;  %v1189_v6 = vpop.f32.mrb[23].mxu0  ;;  %v1302_v7 = vpop.f32.mrb[23].mxu1 }
 0x2b2   : > { %v1607_v8 = vmax.f32 %v1606_v51, %v1186_v62  ;;  %v1637_v9 = vmax.f32 %v1636_v54, %v1299_v63  ;;  %v1190_v10 = vadd.f32 %v1189_v6, %v2631_v32  ;;  %v1303_v11 = vadd.f32 %v1302_v7, %v2634_v33 }
 0x2b3   : > { %v1593_v61 = vmax.f32 %v1592_v2, %v1188_v4  ;;  %v1623_v12 = vmax.f32 %v1622_v3, %v1301_v5 }
 0x2b4   : > { %v1608_v13 = vmax.f32 %v1607_v8, %v1190_v10  ;;  %v1638_v36 = vmax.f32 %v1637_v9, %v1303_v11 }
 0x2b6   : > { %v1193_v14 = vpop.f32.mrb[24].mxu0  ;;  %v1306_v15 = vpop.f32.mrb[24].mxu1 }
 0x2b7   : > { %v1194_v18 = vadd.f32 %v1193_v14, %v2625_v28  ;;  %v1307_v19 = vadd.f32 %v1306_v15, %v2628_v29  ;;  %v1195_v20 = vpop.f32.mrb[25].mxu0  ;;  %v1308_v21 = vpop.f32.mrb[25].mxu1 }
 0x2b8   : > { %v1196_v22 = vadd.f32 %v1195_v20, %v2631_v32  ;;  %v1309_v23 = vadd.f32 %v1308_v21, %v2634_v33  ;;  %v1197_v24 = vpop.f32.mrb[26].mxu0  ;;  %v1310_v52 = vpop.f32.mrb[26].mxu1 }
 0x2b9   : > { %v1594_v16 = vmax.f32 %v1593_v61, %v1194_v18  ;;  %v1624_v17 = vmax.f32 %v1623_v12, %v1307_v19  ;;  %v1198_v27 = vadd.f32 %v1197_v24, %v2625_v28  ;;  %v1311_v26 = vadd.f32 %v1310_v52, %v2628_v29  ;;  %v1199_v30 = vpop.f32.mrb[27].mxu0  ;;  %v1312_v31 = vpop.f32.mrb[27].mxu1 }
 0x2ba   : > { %v1609_v34 = vmax.f32 %v1608_v13, %v1196_v22  ;;  %v1639_v37 = vmax.f32 %v1638_v36, %v1309_v23  ;;  %v1200_v35 = vadd.f32 %v1199_v30, %v2631_v32  ;;  %v1313_v38 = vadd.f32 %v1312_v31, %v2634_v33 }
 0x2bb   : > { %v1595_v39 = vmax.f32 %v1594_v16, %v1198_v27  ;;  %v1625_v40 = vmax.f32 %v1624_v17, %v1311_v26 }
 0x2bc   : > { %v1610_v41 = vmax.f32 %v1609_v34, %v1200_v35  ;;  %v1640_v42 = vmax.f32 %v1639_v37, %v1313_v38 }
 0x2be   : > { %v1203_v43 = vpop.f32.mrb[28].mxu0  ;;  %v1316_v44 = vpop.f32.mrb[28].mxu1 }
 0x2bf   : > { %v1204_v45 = vadd.f32 %v1203_v43, %v2625_v28  ;;  %v1317_v46 = vadd.f32 %v1316_v44, %v2628_v29  ;;  %v1205_v47 = vpop.f32.mrb[29].mxu0  ;;  %v1318_v48 = vpop.f32.mrb[29].mxu1 }
 0x2c0   : > { %v1206_v49 = vadd.f32 %v1205_v47, %v2631_v32  ;;  %v1319_v50 = vadd.f32 %v1318_v48, %v2634_v33  ;;  %v1207_v51 = vpop.f32.mrb[30].mxu0  ;;  %v1320_v54 = vpop.f32.mrb[30].mxu1 }
 0x2c1   : > { %v1596_v55 = vmax.f32 %v1595_v39, %v1204_v45  ;;  %v1626_v56 = vmax.f32 %v1625_v40, %v1317_v46  ;;  %v1208_v57 = vadd.f32 %v1207_v51, %v2625_v28  ;;  %v1321_v58 = vadd.f32 %v1320_v54, %v2628_v29  ;;  %v1209_v59 = vpop.f32.mrb[31].mxu0  ;;  %v1322_v60 = vpop.f32.mrb[31].mxu1 }
 0x2c2   : > { %v1611_v62 = vmax.f32 %v1610_v41, %v1206_v49  ;;  %v1641_v63 = vmax.f32 %v1640_v42, %v1319_v50  ;;  %v1210_v0 = vadd.f32 %v1209_v59, %v2631_v32  ;;  %v1323_v1 = vadd.f32 %v1322_v60, %v2634_v33 }
 0x2c3   : > { %v1597_v2 = vmax.f32 %v1596_v55, %v1208_v57  ;;  %v1627_v3 = vmax.f32 %v1626_v56, %v1321_v58 }
 0x2c4   : > { %v1612_v4 = vmax.f32 %v1611_v62, %v1210_v0  ;;  %v1642_v5 = vmax.f32 %v1641_v63, %v1323_v1 }
 0x2c6   : > { %v1213_v6 = vpop.f32.mrb[32].mxu0  ;;  %v1326_v7 = vpop.f32.mrb[32].mxu1 }
 0x2c7   : > { %v1214_v8 = vadd.f32 %v1213_v6, %v2625_v28  ;;  %v1327_v9 = vadd.f32 %v1326_v7, %v2628_v29  ;;  %v1215_v10 = vpop.f32.mrb[33].mxu0  ;;  %v1328_v11 = vpop.f32.mrb[33].mxu1 }
 0x2c8   : > { %v1216_v61 = vadd.f32 %v1215_v10, %v2631_v32  ;;  %v1329_v12 = vadd.f32 %v1328_v11, %v2634_v33  ;;  %v1217_v13 = vpop.f32.mrb[34].mxu0  ;;  %v1330_v36 = vpop.f32.mrb[34].mxu1 }
 0x2c9   : > { %v1598_v14 = vmax.f32 %v1597_v2, %v1214_v8  ;;  %v1628_v15 = vmax.f32 %v1627_v3, %v1327_v9  ;;  %v1218_v18 = vadd.f32 %v1217_v13, %v2625_v28  ;;  %v1331_v19 = vadd.f32 %v1330_v36, %v2628_v29  ;;  %v1219_v20 = vpop.f32.mrb[35].mxu0  ;;  %v1332_v21 = vpop.f32.mrb[35].mxu1 }
 0x2ca   : > { %v1613_v22 = vmax.f32 %v1612_v4, %v1216_v61  ;;  %v1643_v23 = vmax.f32 %v1642_v5, %v1329_v12  ;;  %v1220_v24 = vadd.f32 %v1219_v20, %v2631_v32  ;;  %v1333_v52 = vadd.f32 %v1332_v21, %v2634_v33 }
 0x2cb   : > { %v1599_v16 = vmax.f32 %v1598_v14, %v1218_v18  ;;  %v1629_v17 = vmax.f32 %v1628_v15, %v1331_v19 }
 0x2cc   : > { %v1614_v27 = vmax.f32 %v1613_v22, %v1220_v24  ;;  %v1644_v26 = vmax.f32 %v1643_v23, %v1333_v52  ;;  %v797_v22 = vsub.s32 4, %v2613_v53 }
 0x2ce   : > { %v1223_v30 = vpop.f32.mrb[36].mxu0  ;;  %v1336_v31 = vpop.f32.mrb[36].mxu1 }
 0x2cf   : > { %v1224_v34 = vadd.f32 %v1223_v30, %v2625_v28  ;;  %v1337_v37 = vadd.f32 %v1336_v31, %v2628_v29  ;;  %v1225_v35 = vpop.f32.mrb[37].mxu0  ;;  %v1338_v38 = vpop.f32.mrb[37].mxu1 }
 0x2d0   : > { %v1226_v39 = vadd.f32 %v1225_v35, %v2631_v32  ;;  %v1339_v40 = vadd.f32 %v1338_v38, %v2634_v33  ;;  %v1227_v41 = vpop.f32.mrb[38].mxu0  ;;  %v1340_v42 = vpop.f32.mrb[38].mxu1  ;;  %v809_v38 = vsub.s32 7, %v2613_v53 }
 0x2d1   : > { %v1600_v43 = vmax.f32 %v1599_v16, %v1224_v34  ;;  %v1630_v44 = vmax.f32 %v1629_v17, %v1337_v37  ;;  %v1228_v45 = vadd.f32 %v1227_v41, %v2625_v28  ;;  %v1341_v46 = vadd.f32 %v1340_v42, %v2628_v29  ;;  %v1229_v47 = vpop.f32.mrb[39].mxu0  ;;  %v1342_v48 = vpop.f32.mrb[39].mxu1 }
 0x2d2   : > { %v1615_v49 = vmax.f32 %v1614_v27, %v1226_v39  ;;  %v1645_v50 = vmax.f32 %v1644_v26, %v1339_v40  ;;  %v1230_v51 = vadd.f32 %v1229_v47, %v2631_v32  ;;  %v1343_v54 = vadd.f32 %v1342_v48, %v2634_v33 }
 0x2d3   : > { %v1601_v55 = vmax.f32 %v1600_v43, %v1228_v45  ;;  %v1631_v56 = vmax.f32 %v1630_v44, %v1341_v46  ;;  %v805_v17 = vsub.s32 6, %v2613_v53  ;;  %v801_v27 = vsub.s32 5, %v2613_v53 }
 0x2d4   : > { %v1616_v57 = vmax.f32 %v1615_v49, %v1230_v51  ;;  %v1646_v58 = vmax.f32 %v1645_v50, %v1343_v54  ;;  %v2181_v37 = vmov 1966171168   ;;  %v2705_v51 = vrot.slane %v2620_v25, %v797_v22 }
 0x2d5   : > { %v1823_v35 = vunpack.c.l.s4 %v2181_v37  ;;  %v2708_v54 = vrot.slane %v2620_v25, %v805_v17 }
 0x2d6   : > { %v1233_v59 = vpop.f32.mrb[40].mxu0  ;;  %v1346_v60 = vpop.f32.mrb[40].mxu1 }
 0x2d7   : > { %v1234_v62 = vadd.f32 %v1233_v59, %v2625_v28  ;;  %v1347_v63 = vadd.f32 %v1346_v60, %v2628_v29  ;;  %v1235_v0 = vpop.f32.mrb[41].mxu0  ;;  %v1348_v1 = vpop.f32.mrb[41].mxu1 }
 0x2d8   : > { %v1236_v2 = vadd.f32 %v1235_v0, %v2631_v32  ;;  %v1349_v3 = vadd.f32 %v1348_v1, %v2634_v33  ;;  %v1237_v4 = vpop.f32.mrb[42].mxu0  ;;  %v1350_v5 = vpop.f32.mrb[42].mxu1 }
 0x2d9   : > { %v1602_v6 = vmax.f32 %v1601_v55, %v1234_v62  ;;  %v1632_v7 = vmax.f32 %v1631_v56, %v1347_v63  ;;  %v1238_v8 = vadd.f32 %v1237_v4, %v2625_v28  ;;  %v1351_v9 = vadd.f32 %v1350_v5, %v2628_v29  ;;  %v1239_v10 = vpop.f32.mrb[43].mxu0  ;;  %v1352_v11 = vpop.f32.mrb[43].mxu1 }
 0x2da   : > { %v1617_v61 = vmax.f32 %v1616_v57, %v1236_v2  ;;  %v1647_v12 = vmax.f32 %v1646_v58, %v1349_v3  ;;  %v1240_v13 = vadd.f32 %v1239_v10, %v2631_v32  ;;  %v1353_v36 = vadd.f32 %v1352_v11, %v2634_v33 }
 0x2db   : > { %v1603_v14 = vmax.f32 %v1602_v6, %v1238_v8  ;;  %v1633_v15 = vmax.f32 %v1632_v7, %v1351_v9  ;;  %v2714_v56 = vrot.slane %v2620_v25, %v809_v38 }
 0x2dc   : > { %v1618_v18 = vmax.f32 %v1617_v61, %v1240_v13  ;;  %v1648_v19 = vmax.f32 %v1647_v12, %v1353_v36 }
 0x2de   : > { %v1243_v20 = vpop.f32.mrb[44].mxu0  ;;  %v1356_v21 = vpop.f32.mrb[44].mxu1 }
 0x2df   : > { %v1244_v23 = vadd.f32 %v1243_v20, %v2625_v28  ;;  %v1357_v24 = vadd.f32 %v1356_v21, %v2628_v29  ;;  %v1245_v52 = vpop.f32.mrb[45].mxu0  ;;  %v1358_v16 = vpop.f32.mrb[45].mxu1 }
 0x2e0   : > { %v1246_v26 = vadd.f32 %v1245_v52, %v2631_v32  ;;  %v1359_v30 = vadd.f32 %v1358_v16, %v2634_v33  ;;  %v1247_v31 = vpop.f32.mrb[46].mxu0  ;;  %v1360_v34 = vpop.f32.mrb[46].mxu1 }
 0x2e1   : > { %v1604_v39 = vmax.f32 %v1603_v14, %v1244_v23  ;;  %v1634_v40 = vmax.f32 %v1633_v15, %v1357_v24  ;;  %v1248_v41 = vadd.f32 %v1247_v31, %v2625_v28  ;;  %v1361_v42 = vadd.f32 %v1360_v34, %v2628_v29  ;;  %v1249_v43 = vpop.f32.mrb[47].mxu0  ;;  %v1362_v44 = vpop.f32.mrb[47].mxu1 }
 0x2e2   : > { %v1619_v45 = vmax.f32 %v1618_v18, %v1246_v26  ;;  %v1649_v46 = vmax.f32 %v1648_v19, %v1359_v30  ;;  %v1250_v47 = vadd.f32 %v1249_v43, %v2631_v32  ;;  %v1363_v48 = vadd.f32 %v1362_v44, %v2634_v33 }
 0x2e3   : > { %v1605_v49 = vmax.f32 %v1604_v39, %v1248_v41  ;;  %v1635_v50 = vmax.f32 %v1634_v40, %v1361_v42  ;;  %v2711_v29 = vrot.slane %v2620_v25, %v801_v27  ;;  %v1824_v33 = vunpack.c.0.s8 %v1823_v35 }
 0x2e4   : > { %v1620_v55 = vmax.f32 %v1619_v45, %v1250_v47  ;;  %v1650_v28 = vmax.f32 %v1649_v46, %v1363_v48 }
 0x2e5   : > { %v1762_v57 = vrot.slane %v1605_v49, 4  ;;  %v1774_v32 = vrot.slane %v1635_v50, 4  ;;  %v2725_v31 = vsub.s32 %v1824_v33, %v2613_v53 }
 0x2e6   : > { %v1768_v58 = vrot.slane %v1620_v55, 4  ;;  %v1780_v59 = vrot.slane %v1650_v28, 4  ;;  %v1399_v60 = vpop.f32.mrb[48].mxu0  ;;  %v1512_v62 = vpop.f32.mrb[48].mxu1 }
 0x2e7   : > { %v1763_v63 = vmax.f32 %v1605_v49, %v1762_v57  ;;  %v1775_v0 = vmax.f32 %v1635_v50, %v1774_v32  ;;  %v1400_v1 = vadd.f32 %v1399_v60, %v2705_v51  ;;  %v1513_v2 = vadd.f32 %v1512_v62, %v2708_v54  ;;  %v1401_v3 = vpop.f32.mrb[49].mxu0  ;;  %v1514_v4 = vpop.f32.mrb[49].mxu1 }
 0x2e8   : > { %v1769_v5 = vmax.f32 %v1620_v55, %v1768_v58  ;;  %v1781_v6 = vmax.f32 %v1650_v28, %v1780_v59  ;;  %v1402_v25 = vadd.f32 %v1401_v3, %v2711_v29  ;;  %v1515_v7 = vadd.f32 %v1514_v4, %v2714_v56  ;;  %v1403_v8 = vpop.f32.mrb[50].mxu0  ;;  %v1516_v9 = vpop.f32.mrb[50].mxu1 }
 0x2e9   : > { %v1764_v10 = vrot.slane %v1763_v63, 2  ;;  %v1776_v11 = vrot.slane %v1775_v0, 2  ;;  %v1404_v61 = vadd.f32 %v1403_v8, %v2705_v51  ;;  %v1517_v12 = vadd.f32 %v1516_v9, %v2708_v54  ;;  %v1405_v13 = vpop.f32.mrb[51].mxu0  ;;  %v1518_v36 = vpop.f32.mrb[51].mxu1 }
 0x2ea   : > { %v1770_v14 = vrot.slane %v1769_v5, 2  ;;  %v1782_v15 = vrot.slane %v1781_v6, 2  ;;  %v1406_v18 = vadd.f32 %v1405_v13, %v2711_v29  ;;  %v1519_v19 = vadd.f32 %v1518_v36, %v2714_v56 }
 0x2eb   : > { %v1765_v20 = vmax.f32 %v1763_v63, %v1764_v10  ;;  %v1777_v21 = vmax.f32 %v1775_v0, %v1776_v11  ;;  %v1651_v22 = vmax.f32 %v1400_v1, %v1404_v61  ;;  %v1681_v23 = vmax.f32 %v1513_v2, %v1517_v12 }
 0x2ec   : > { %v1771_v24 = vmax.f32 %v1769_v5, %v1770_v14  ;;  %v1783_v52 = vmax.f32 %v1781_v6, %v1782_v15  ;;  %v1666_v16 = vmax.f32 %v1402_v25, %v1406_v18  ;;  %v1696_v17 = vmax.f32 %v1515_v7, %v1519_v19 }
 0x2ed   : > { %v1766_v27 = vrot.slane %v1765_v20, 1  ;;  %v1778_v26 = vrot.slane %v1777_v21, 1 }
 0x2ee   : > { %v1772_v30 = vrot.slane %v1771_v24, 1  ;;  %v1784_v34 = vrot.slane %v1783_v52, 1  ;;  %v1409_v37 = vpop.f32.mrb[52].mxu0  ;;  %v1522_v35 = vpop.f32.mrb[52].mxu1 }
 0x2ef   : > { %v1767_v38 = vmax.f32 %v1765_v20, %v1766_v27  ;;  %v1779_v39 = vmax.f32 %v1777_v21, %v1778_v26  ;;  %v1410_v40 = vadd.f32 %v1409_v37, %v2705_v51  ;;  %v1523_v41 = vadd.f32 %v1522_v35, %v2708_v54  ;;  %v1411_v42 = vpop.f32.mrb[53].mxu0  ;;  %v1524_v43 = vpop.f32.mrb[53].mxu1 }
 0x2f0   : > { %v1773_v44 = vmax.f32 %v1771_v24, %v1772_v30  ;;  %v1785_v45 = vmax.f32 %v1783_v52, %v1784_v34  ;;  %v1412_v46 = vadd.f32 %v1411_v42, %v2711_v29  ;;  %v1525_v47 = vadd.f32 %v1524_v43, %v2714_v56  ;;  %v1413_v48 = vpop.f32.mrb[54].mxu0  ;;  %v1526_v53 = vpop.f32.mrb[54].mxu1 }
 0x2f1   : > { %v1652_v49 = vmax.f32 %v1651_v22, %v1410_v40  ;;  %v1682_v50 = vmax.f32 %v1681_v23, %v1523_v41  ;;  %v1414_v55 = vadd.f32 %v1413_v48, %v2705_v51  ;;  %v1527_v28 = vadd.f32 %v1526_v53, %v2708_v54  ;;  %v1415_v57 = vpop.f32.mrb[55].mxu0  ;;  %v1528_v32 = vpop.f32.mrb[55].mxu1 }
 0x2f2   : > { %v1818_v58 = vcombine.low %v1767_v38, %v1773_v44  ;;  %v1819_v33 = vcombine.low %v1779_v39, %v1785_v45  ;;  %v1667_v59 = vmax.f32 %v1666_v16, %v1412_v46  ;;  %v1697_v60 = vmax.f32 %v1696_v17, %v1525_v47 }
 0x2f3   : > { %v1653_v62 = vmax.f32 %v1652_v49, %v1414_v55  ;;  %v1683_v63 = vmax.f32 %v1682_v50, %v1527_v28  ;;  %v1416_v0 = vadd.f32 %v1415_v57, %v2711_v29  ;;  %v1529_v1 = vadd.f32 %v1528_v32, %v2714_v56 }
 0x2f4   : > { %v2736_v2 = vrot.slane %v1818_v58, %v2725_v31  ;;  %v2739_v3 = vrot.slane %v1819_v33, %v2725_v31 }
 0x2f5   : > { %v1668_v4 = vmax.f32 %v1667_v59, %v1416_v0  ;;  %v1698_v5 = vmax.f32 %v1697_v60, %v1529_v1 }
 0x2f6   : > { %v1850_v6 = vcombine.low %v2736_v2, %v2739_v3  ;;  %v1419_v25 = vpop.f32.mrb[56].mxu0  ;;  %v1532_v7 = vpop.f32.mrb[56].mxu1 }
 0x2f7   : > { %v1420_v8 = vadd.f32 %v1419_v25, %v2705_v51  ;;  %v1533_v9 = vadd.f32 %v1532_v7, %v2708_v54  ;;  %v1421_v10 = vpop.f32.mrb[57].mxu0  ;;  %v1534_v11 = vpop.f32.mrb[57].mxu1 }
 0x2f8   : > { %v1422_v61 = vadd.f32 %v1421_v10, %v2711_v29  ;;  %v1535_v12 = vadd.f32 %v1534_v11, %v2714_v56  ;;  %v1423_v13 = vpop.f32.mrb[58].mxu0  ;;  %v1536_v36 = vpop.f32.mrb[58].mxu1 }
 0x2f9   : > { %v1654_v14 = vmax.f32 %v1653_v62, %v1420_v8  ;;  %v1684_v15 = vmax.f32 %v1683_v63, %v1533_v9  ;;  %v1424_v18 = vadd.f32 %v1423_v13, %v2705_v51  ;;  %v1537_v19 = vadd.f32 %v1536_v36, %v2708_v54  ;;  %v1425_v20 = vpop.f32.mrb[59].mxu0  ;;  %v1538_v21 = vpop.f32.mrb[59].mxu1 }
 0x2fa   : > { %v1669_v22 = vmax.f32 %v1668_v4, %v1422_v61  ;;  %v1699_v23 = vmax.f32 %v1698_v5, %v1535_v12  ;;  %v1426_v24 = vadd.f32 %v1425_v20, %v2711_v29  ;;  %v1539_v52 = vadd.f32 %v1538_v21, %v2714_v56 }
 0x2fb   : > { %v1655_v16 = vmax.f32 %v1654_v14, %v1424_v18  ;;  %v1685_v17 = vmax.f32 %v1684_v15, %v1537_v19 }
 0x2fc   : > { %v1670_v27 = vmax.f32 %v1669_v22, %v1426_v24  ;;  %v1700_v26 = vmax.f32 %v1699_v23, %v1539_v52 }
 0x2fe   : > { %v1429_v30 = vpop.f32.mrb[60].mxu0  ;;  %v1542_v34 = vpop.f32.mrb[60].mxu1 }
 0x2ff   : > { %v1430_v37 = vadd.f32 %v1429_v30, %v2705_v51  ;;  %v1543_v35 = vadd.f32 %v1542_v34, %v2708_v54  ;;  %v1431_v38 = vpop.f32.mrb[61].mxu0  ;;  %v1544_v39 = vpop.f32.mrb[61].mxu1 }
 0x300   : > { %v1432_v40 = vadd.f32 %v1431_v38, %v2711_v29  ;;  %v1545_v41 = vadd.f32 %v1544_v39, %v2714_v56  ;;  %v1433_v42 = vpop.f32.mrb[62].mxu0  ;;  %v1546_v43 = vpop.f32.mrb[62].mxu1 }
 0x301   : > { %v1656_v44 = vmax.f32 %v1655_v16, %v1430_v37  ;;  %v1686_v45 = vmax.f32 %v1685_v17, %v1543_v35  ;;  %v1434_v46 = vadd.f32 %v1433_v42, %v2705_v51  ;;  %v1547_v47 = vadd.f32 %v1546_v43, %v2708_v54  ;;  %v1435_v48 = vpop.f32.mrb[63].mxu0  ;;  %v1548_v53 = vpop.f32.mrb[63].mxu1 }
 0x302   : > { %v1671_v49 = vmax.f32 %v1670_v27, %v1432_v40  ;;  %v1701_v50 = vmax.f32 %v1700_v26, %v1545_v41  ;;  %v1436_v55 = vadd.f32 %v1435_v48, %v2711_v29  ;;  %v1549_v28 = vadd.f32 %v1548_v53, %v2714_v56 }
 0x303   : > { %v1657_v57 = vmax.f32 %v1656_v44, %v1434_v46  ;;  %v1687_v32 = vmax.f32 %v1686_v45, %v1547_v47 }
 0x304   : > { %v1672_v58 = vmax.f32 %v1671_v49, %v1436_v55  ;;  %v1702_v33 = vmax.f32 %v1701_v50, %v1549_v28 }
 0x306   : > { %v1439_v59 = vpop.f32.mrb[64].mxu0  ;;  %v1552_v60 = vpop.f32.mrb[64].mxu1 }
 0x307   : > { %v1440_v62 = vadd.f32 %v1439_v59, %v2705_v51  ;;  %v1553_v63 = vadd.f32 %v1552_v60, %v2708_v54  ;;  %v1441_v0 = vpop.f32.mrb[65].mxu0  ;;  %v1554_v1 = vpop.f32.mrb[65].mxu1 }
 0x308   : > { %v1442_v4 = vadd.f32 %v1441_v0, %v2711_v29  ;;  %v1555_v5 = vadd.f32 %v1554_v1, %v2714_v56  ;;  %v1443_v25 = vpop.f32.mrb[66].mxu0  ;;  %v1556_v7 = vpop.f32.mrb[66].mxu1 }
 0x309   : > { %v1658_v8 = vmax.f32 %v1657_v57, %v1440_v62  ;;  %v1688_v9 = vmax.f32 %v1687_v32, %v1553_v63  ;;  %v1444_v10 = vadd.f32 %v1443_v25, %v2705_v51  ;;  %v1557_v11 = vadd.f32 %v1556_v7, %v2708_v54  ;;  %v1445_v61 = vpop.f32.mrb[67].mxu0  ;;  %v1558_v12 = vpop.f32.mrb[67].mxu1 }
 0x30a   : > { %v1673_v13 = vmax.f32 %v1672_v58, %v1442_v4  ;;  %v1703_v36 = vmax.f32 %v1702_v33, %v1555_v5  ;;  %v1446_v14 = vadd.f32 %v1445_v61, %v2711_v29  ;;  %v1559_v15 = vadd.f32 %v1558_v12, %v2714_v56 }
 0x30b   : > { %v1659_v18 = vmax.f32 %v1658_v8, %v1444_v10  ;;  %v1689_v19 = vmax.f32 %v1688_v9, %v1557_v11 }
 0x30c   : > { %v1674_v20 = vmax.f32 %v1673_v13, %v1446_v14  ;;  %v1704_v21 = vmax.f32 %v1703_v36, %v1559_v15 }
 0x30e   : > { %v1449_v22 = vpop.f32.mrb[68].mxu0  ;;  %v1562_v23 = vpop.f32.mrb[68].mxu1 }
 0x30f   : > { %v1450_v24 = vadd.f32 %v1449_v22, %v2705_v51  ;;  %v1563_v52 = vadd.f32 %v1562_v23, %v2708_v54  ;;  %v1451_v16 = vpop.f32.mrb[69].mxu0  ;;  %v1564_v17 = vpop.f32.mrb[69].mxu1 }
 0x310   : > { %v1452_v27 = vadd.f32 %v1451_v16, %v2711_v29  ;;  %v1565_v26 = vadd.f32 %v1564_v17, %v2714_v56  ;;  %v1453_v30 = vpop.f32.mrb[70].mxu0  ;;  %v1566_v34 = vpop.f32.mrb[70].mxu1 }
 0x311   : > { %v1660_v37 = vmax.f32 %v1659_v18, %v1450_v24  ;;  %v1690_v35 = vmax.f32 %v1689_v19, %v1563_v52  ;;  %v1454_v38 = vadd.f32 %v1453_v30, %v2705_v51  ;;  %v1567_v39 = vadd.f32 %v1566_v34, %v2708_v54  ;;  %v1455_v40 = vpop.f32.mrb[71].mxu0  ;;  %v1568_v41 = vpop.f32.mrb[71].mxu1 }
 0x312   : > { %v1675_v42 = vmax.f32 %v1674_v20, %v1452_v27  ;;  %v1705_v43 = vmax.f32 %v1704_v21, %v1565_v26  ;;  %v1456_v44 = vadd.f32 %v1455_v40, %v2711_v29  ;;  %v1569_v45 = vadd.f32 %v1568_v41, %v2714_v56 }
 0x313   : > { %v1661_v46 = vmax.f32 %v1660_v37, %v1454_v38  ;;  %v1691_v47 = vmax.f32 %v1690_v35, %v1567_v39 }
 0x314   : > { %v1676_v48 = vmax.f32 %v1675_v42, %v1456_v44  ;;  %v1706_v53 = vmax.f32 %v1705_v43, %v1569_v45 }
 0x316   : > { %v1459_v49 = vpop.f32.mrb[72].mxu0  ;;  %v1572_v50 = vpop.f32.mrb[72].mxu1 }
 0x317   : > { %v1460_v55 = vadd.f32 %v1459_v49, %v2705_v51  ;;  %v1573_v28 = vadd.f32 %v1572_v50, %v2708_v54  ;;  %v1461_v57 = vpop.f32.mrb[73].mxu0  ;;  %v1574_v32 = vpop.f32.mrb[73].mxu1 }
 0x318   : > { %v1462_v58 = vadd.f32 %v1461_v57, %v2711_v29  ;;  %v1575_v33 = vadd.f32 %v1574_v32, %v2714_v56  ;;  %v1463_v59 = vpop.f32.mrb[74].mxu0  ;;  %v1576_v60 = vpop.f32.mrb[74].mxu1 }
 0x319   : > { %v1662_v62 = vmax.f32 %v1661_v46, %v1460_v55  ;;  %v1692_v63 = vmax.f32 %v1691_v47, %v1573_v28  ;;  %v1464_v0 = vadd.f32 %v1463_v59, %v2705_v51  ;;  %v1577_v1 = vadd.f32 %v1576_v60, %v2708_v54  ;;  %v1465_v4 = vpop.f32.mrb[75].mxu0  ;;  %v1578_v5 = vpop.f32.mrb[75].mxu1 }
 0x31a   : > { %v1677_v25 = vmax.f32 %v1676_v48, %v1462_v58  ;;  %v1707_v7 = vmax.f32 %v1706_v53, %v1575_v33  ;;  %v1466_v8 = vadd.f32 %v1465_v4, %v2711_v29  ;;  %v1579_v9 = vadd.f32 %v1578_v5, %v2714_v56 }
 0x31b   : > { %v1663_v10 = vmax.f32 %v1662_v62, %v1464_v0  ;;  %v1693_v11 = vmax.f32 %v1692_v63, %v1577_v1 }
 0x31c   : > { %v1678_v61 = vmax.f32 %v1677_v25, %v1466_v8  ;;  %v1708_v12 = vmax.f32 %v1707_v7, %v1579_v9  ;;  %v1858_v7 = vrot.slane %v1850_v6, %v2725_v31 }
 0x31e   : > { %v1469_v13 = vpop.f32.mrb[76].mxu0  ;;  %v1582_v36 = vpop.f32.mrb[76].mxu1 }
 0x31f   : > { %v1470_v14 = vadd.f32 %v1469_v13, %v2705_v51  ;;  %v1583_v15 = vadd.f32 %v1582_v36, %v2708_v54  ;;  %v1471_v18 = vpop.f32.mrb[77].mxu0  ;;  %v1584_v19 = vpop.f32.mrb[77].mxu1 }
 0x320   : > { %v1472_v20 = vadd.f32 %v1471_v18, %v2711_v29  ;;  %v1585_v21 = vadd.f32 %v1584_v19, %v2714_v56  ;;  %v1473_v22 = vpop.f32.mrb[78].mxu0  ;;  %v1586_v23 = vpop.f32.mrb[78].mxu1 }
 0x321   : > { %v1664_v24 = vmax.f32 %v1663_v10, %v1470_v14  ;;  %v1694_v52 = vmax.f32 %v1693_v11, %v1583_v15  ;;  %v1474_v16 = vadd.f32 %v1473_v22, %v2705_v51  ;;  %v1587_v17 = vadd.f32 %v1586_v23, %v2708_v54  ;;  %v1475_v27 = vpop.f32.mrb[79].mxu0  ;;  %v1588_v26 = vpop.f32.mrb[79].mxu1 }
 0x322   : > { %v1679_v30 = vmax.f32 %v1678_v61, %v1472_v20  ;;  %v1709_v34 = vmax.f32 %v1708_v12, %v1585_v21  ;;  %v1476_v37 = vadd.f32 %v1475_v27, %v2711_v29  ;;  %v1589_v35 = vadd.f32 %v1588_v26, %v2714_v56 }
 0x323   : > { %v1665_v38 = vmax.f32 %v1664_v24, %v1474_v16  ;;  %v1695_v39 = vmax.f32 %v1694_v52, %v1587_v17 }
 0x324   : > { %v1680_v40 = vmax.f32 %v1679_v30, %v1476_v37  ;;  %v1710_v41 = vmax.f32 %v1709_v34, %v1589_v35 }
 0x325   : > { %v1786_v42 = vrot.slane %v1665_v38, 4  ;;  %v1798_v43 = vrot.slane %v1695_v39, 4 }
 0x326   : > { %v1792_v44 = vrot.slane %v1680_v40, 4  ;;  %v1804_v45 = vrot.slane %v1710_v41, 4 }
 0x327   : > { %v1787_v46 = vmax.f32 %v1665_v38, %v1786_v42  ;;  %v1799_v51 = vmax.f32 %v1695_v39, %v1798_v43 }
 0x328   : > { %v1793_v47 = vmax.f32 %v1680_v40, %v1792_v44  ;;  %v1805_v54 = vmax.f32 %v1710_v41, %v1804_v45 }
 0x329   : > { %v1788_v48 = vrot.slane %v1787_v46, 2  ;;  %v1800_v53 = vrot.slane %v1799_v51, 2 }
 0x32a   : > { %v1794_v49 = vrot.slane %v1793_v47, 2  ;;  %v1806_v50 = vrot.slane %v1805_v54, 2 }
 0x32b   : > { %v1789_v55 = vmax.f32 %v1787_v46, %v1788_v48  ;;  %v1801_v29 = vmax.f32 %v1799_v51, %v1800_v53 }
 0x32c   : > { %v1795_v56 = vmax.f32 %v1793_v47, %v1794_v49  ;;  %v1807_v28 = vmax.f32 %v1805_v54, %v1806_v50 }
 0x32d   : > { %v1790_v57 = vrot.slane %v1789_v55, 1  ;;  %v1802_v32 = vrot.slane %v1801_v29, 1 }
 0x32e   : > { %v1796_v58 = vrot.slane %v1795_v56, 1  ;;  %v1808_v33 = vrot.slane %v1807_v28, 1 }
 0x32f   : > { %v1791_v59 = vmax.f32 %v1789_v55, %v1790_v57  ;;  %v1803_v60 = vmax.f32 %v1801_v29, %v1802_v32 }
 0x330   : > { %v1797_v62 = vmax.f32 %v1795_v56, %v1796_v58  ;;  %v1809_v63 = vmax.f32 %v1807_v28, %v1808_v33 }
 0x332   : > { %v1820_v0 = vcombine.low %v1791_v59, %v1797_v62  ;;  %v1821_v1 = vcombine.low %v1803_v60, %v1809_v63 }
 0x334   : > { %v1842_v4 = vrot.slane %v1820_v0, %v2725_v31  ;;  %v1849_v5 = vrot.slane %v1821_v1, %v2725_v31 }
 0x336   : > { %v1851_v25 = vcombine.low %v1842_v4, %v1849_v5 }
 0x338   : > { %v1865_v8 = vrot.slane %v1851_v25, %v2725_v31 }
 0x33a   : > { %v1866_v9 = vcombine.low %v1858_v7, %v1865_v8 }
 0x33c   : > { %1868 = vst [vmem:[%s341_s21] sm:$0xff] %v1866_v9 }
 0x33d PF: > { %s17_s26 = sadd.s32 1, %s2177_s26   ;;  %s2819_s24 = smov %s2173_s25 }
 0x33e   : > { %p14_p5 = scmp.ge.s32.totalorder %s17_s26, 4   ;;  %s2820_s25 = smov %s2822_s27 }
 0x340   :  { %16 = sbr.rel (!%p14_p5) target bundleno = 2 (0x2), region = 96 }

// kernel: pointnet_encoder.4
= control target key start
LH: loop header
LB: loop body
LE: loop exit
PB: predicated region body
PF: predicated region fallthrough
CT: control target
= control target key end

     0   :  { %s13358_s0 = inlined_call_operand.vmem [shape: f32[2,128,3], index: 0, kind: input, shape index: {}]   ;;  %s13359_s1 = inlined_call_operand.vmem [shape: bf16[2,3,64], index: 1, kind: input, shape index: {}]   ;;  %s13360_s2 = inlined_call_operand.hbm [shape: f32[1,64], index: 2, kind: input, shape index: {}]   ;;  %s13361_s3 = inlined_call_operand.hbm [shape: bf16[64,64], index: 3, kind: input, shape index: {}]   ;;  %s13362_s4 = inlined_call_operand.hbm [shape: f32[1,64], index: 4, kind: input, shape index: {}]   ;;  %s13363_s5 = inlined_call_operand.hbm [shape: bf16[64,128], index: 5, kind: input, shape index: {}]   ;;  %s13364_s6 = inlined_call_operand.hbm [shape: f32[1,128], index: 6, kind: input, shape index: {}]   ;;  %s13365_s7 = inlined_call_operand.vmem [shape: bf16[128,1024], index: 7, kind: input, shape index: {}]   ;;  %s13366_s8 = inlined_call_operand.hbm [shape: f32[1,1024], index: 8, kind: input, shape index: {}]   ;;  %s13367_s9 = inlined_call_operand.vmem [shape: bf16[1024,512], index: 9, kind: input, shape index: {}]   ;;  %s13368_s10 = inlined_call_operand.hbm [shape: f32[1,512], index: 10, kind: input, shape index: {}]   ;;  %s13369_s11 = inlined_call_operand.vmem [shape: bf16[512,256], index: 11, kind: input, shape index: {}]   ;;  %s13370_s12 = inlined_call_operand.hbm [shape: f32[1,256], index: 12, kind: input, shape index: {}]   ;;  %s13371_s13 = inlined_call_operand.hbm [shape: bf16[256,4096], index: 13, kind: input, shape index: {}]   ;;  %s13372_s14 = inlined_call_operand.hbm [shape: f32[1,4096], index: 14, kind: input, shape index: {}]   ;;  %s13373_s15 = inlined_call_operand.vmem [shape: f32[2,1,4096], index: 15, kind: output, shape index: {}]  }
   0x1   :  { %13381 = sst [smem:[#allocation26_spill]] %s13358_s0 }
   0x2   :  { %13382 = sst [smem:[#allocation27_spill]] %s13359_s1 }
   0x3   :  { %13383 = sst [smem:[#allocation28_spill]] %s13365_s7 }
   0x4   :  { %13384 = sst [smem:[#allocation29_spill]] %s13367_s9 }
   0x5   :  { %13385 = sst [smem:[#allocation30_spill]] %s13369_s11 }
   0x6   :  { %13386 = sst [smem:[#allocation31_spill]] %s13373_s15 }
   0x7   :  { %20 = vsyncpa [#allocation4], 0 }
   0x8   :  { %21 = vsyncpa [#allocation6], 0 }
   0x9   :  { %22 = vsyncpa [#allocation9], 0 }
   0xa   :  { %23 = vsyncpa [#allocation12], 0 }
   0xb   :  { %24 = vsyncpa [#allocation15], 0 }
   0xc   :  { %25 = vsyncpa [#allocation18], 0  ;;  %s11288_s18 = smov 0   ;;  %s11290_s19 = smov 0  }
   0xd   :  { %s11292_s20 = smov 0  }
   0xe LB: > { %13387 = sst [smem:[#allocation25_spill]] %s11189_s20  ;;  %s11191_s21 = smov [#allocation5]   ;;  %s11189_s20 = sphi %s11292_s20, %s31_s20   ;;  %s11185_s19 = sphi %s11290_s19, %s13404_s19   ;;  %s11181_s18 = sphi %s11288_s18, %s13403_s18  }
   0xf   : > { %s424_s22 = sshll.u32 %s11191_s21, 4  ;;  %s9144_s23 = sadd.s32 4294967295, %s11189_s20   ;;  %s11310_s22 = int_to_ptr.vmem [resolvable:$true] %s424_s22 }
  0x10   : > { %p9146_p0 = scmp.ge.s32.totalorder %s11189_s20, 1  ;;  %p401_p1 = scmp.lt.s32.totalorder %s11189_s20, 3 }
  0x11   : > { %p11306_p2 = scmp.eq.s32.totalorder %s9144_s23, 0  ;;  %s11192_s26 = smov [#allocation8]  }
  0x12   : > { %p11312_p3 = pnand %p9146_p0, %p401_p1  ;;  %s448_s27 = sshll.u32 %s11192_s26, 4  ;;  %s11318_s27 = int_to_ptr.vmem [resolvable:$true] %s448_s27 }
  0x13   : > { %s13388_s24 = scalar_select %p11306_p2, 1, 0 }
  0x14   : > { %s13389_s25 = scalar_select %p11312_p3, 1, 0 }
  0x15   : > { %p10282_p4 = pneg %p11312_p3  ;;  %s11193_s29 = smov [#allocation11]  }
  0x16   : > { %s476_s30 = sshll.u32 %s11193_s29, 4  ;;  %s11194_s16 = smov [#allocation14]   ;;  %s11326_s30 = int_to_ptr.vmem [resolvable:$true] %s476_s30 }
  0x17   : > { %p11322_p5 = pnand %p11306_p2, %p10282_p4  ;;  %s11328_s17 = sshll.u32 %s11194_s16, 4  ;;  %s505_s17 = int_to_ptr.vmem [resolvable:$true] %s11328_s17 }
  0x18   : > { %s10863_s20 = scalar_lea.hbm %s13361_s3, 512 }
  0x19   : > { %p10864_p6 = scmp.ne.s32.totalorder %s13361_s3, %s10863_s20  ;;  %p11338_p7 = pneg %p11322_p5 }
  0x1a   : > { %p10870_p10 = scmp.lt.u32.totalorder %s10863_s20, %s13361_s3 }
  0x1b   : > { %p10866_p8 = pnand %p11338_p7, %p10864_p6 }
  0x1d   : > { %p10867_p9 = pneg %p10866_p8 }
  0x1f   : > { %p10872_p11 = pnand %p10870_p10, %p10867_p9 }
  0x21   : > { %10875 = shalt.err (!%p10872_p11)
}
  0x22   : > { %s10876_s15 = scalar_lea.vmem %s11310_s22, 512  ;;  %p10884_p1 = scmp.lt.s32.totalorder %s11310_s22, %s11310_s22 }
  0x23   : > { %p10877_p12 = scmp.ne.s32.totalorder %s11310_s22, %s10876_s15  ;;  %p10885_p4 = scmp.lt.s32.totalorder %s10876_s15, %s10876_s15 }
  0x25   : > { %p10879_p13 = pnand %p10877_p12, %p11338_p7  ;;  %p10886_p6 = por %p10885_p4, %p10884_p1 }
  0x27   : > { %p10880_p0 = pneg %p10879_p13 }
  0x29   : > { %p10887_p8 = pnand %p10886_p6, %p10880_p0 }
  0x2b   : > { %10890 = shalt.err (!%p10887_p8)
}
  0x2c   : > { %s11195_s21 = smov 64   ;;  %s11196_s20 = smov 4  }
  0x2d   : > { %10288 = dma.hbm_to_vmem [thread:$0]  (!%p11322_p5), %s13361_s3, 512, %s11310_s22, [#allocation6], %s11195_s21, %s11195_s21, %s11196_s20  }
  0x2e   : > { %s10891_s9 = scalar_lea.hbm %s13363_s5, 512 }
  0x2f   : > { %p10892_p9 = scmp.ne.s32.totalorder %s13363_s5, %s10891_s9  ;;  %p10898_p12 = scmp.lt.u32.totalorder %s10891_s9, %s13363_s5 }
  0x31   : > { %p10894_p10 = pnand %p10892_p9, %p11338_p7 }
  0x33   : > { %p10895_p11 = pneg %p10894_p10 }
  0x35   : > { %p10900_p13 = pnand %p10898_p12, %p10895_p11 }
  0x37   : > { %10903 = shalt.err (!%p10900_p13)
}
  0x38   : > { %s10904_s22 = scalar_lea.vmem %s11318_s27, 512  ;;  %p10912_p6 = scmp.lt.s32.totalorder %s11318_s27, %s11318_s27 }
  0x39   : > { %p10905_p0 = scmp.ne.s32.totalorder %s11318_s27, %s10904_s22  ;;  %p10913_p8 = scmp.lt.s32.totalorder %s10904_s22, %s10904_s22 }
  0x3b   : > { %p10907_p1 = pnand %p10905_p0, %p11338_p7  ;;  %p10914_p9 = por %p10913_p8, %p10912_p6 }
  0x3d   : > { %p10908_p4 = pneg %p10907_p1 }
  0x3f   : > { %p10915_p10 = pnand %p10914_p9, %p10908_p4 }
  0x41   : > { %10918 = shalt.err (!%p10915_p10)
}
  0x42   : > { %10294 = dma.hbm_to_vmem [thread:$0]  (!%p11322_p5), %s13363_s5, 512, %s11318_s27, [#allocation9], %s11195_s21, %s11195_s21, %s11196_s20  }
  0x43   : > { %s10919_s23 = scalar_lea.hbm %s13366_s8, 128 }
  0x44   : > { %p10920_p11 = scmp.ne.s32.totalorder %s13366_s8, %s10919_s23  ;;  %p10926_p0 = scmp.lt.u32.totalorder %s10919_s23, %s13366_s8 }
  0x46   : > { %p10922_p12 = pnand %p10920_p11, %p11338_p7 }
  0x48   : > { %p10923_p13 = pneg %p10922_p12 }
  0x4a   : > { %p10928_p1 = pnand %p10926_p0, %p10923_p13 }
  0x4c   : > { %10931 = shalt.err (!%p10928_p1)
}
  0x4d   : > { %s10932_s27 = scalar_lea.vmem %s11326_s30, 128  ;;  %p10940_p9 = scmp.lt.s32.totalorder %s11326_s30, %s11326_s30 }
  0x4e   : > { %p10933_p4 = scmp.ne.s32.totalorder %s11326_s30, %s10932_s27  ;;  %p10941_p10 = scmp.lt.s32.totalorder %s10932_s27, %s10932_s27 }
  0x50   : > { %p10935_p6 = pnand %p10933_p4, %p11338_p7  ;;  %p10942_p11 = por %p10941_p10, %p10940_p9 }
  0x52   : > { %p10936_p8 = pneg %p10935_p6 }
  0x54   : > { %p10943_p12 = pnand %p10942_p11, %p10936_p8 }
  0x56   : > { %10946 = shalt.err (!%p10943_p12)
}
  0x57   : > { %10300 = dma.hbm_to_vmem [thread:$0]  (!%p11322_p5), %s13366_s8, 128, %s11326_s30, [#allocation12]  }
  0x58   : > { %s10947_s1 = scalar_lea.hbm %s13370_s12, 32 }
  0x59   : > { %p10948_p13 = scmp.ne.s32.totalorder %s13370_s12, %s10947_s1  ;;  %p10954_p4 = scmp.lt.u32.totalorder %s10947_s1, %s13370_s12 }
  0x5b   : > { %p10950_p0 = pnand %p10948_p13, %p11338_p7 }
  0x5d   : > { %p10951_p1 = pneg %p10950_p0 }
  0x5f   : > { %p10956_p6 = pnand %p10954_p4, %p10951_p1 }
  0x61   : > { %10959 = shalt.err (!%p10956_p6)
}
  0x62   : > { %s10960_s29 = scalar_lea.vmem %s505_s17, 32  ;;  %p10968_p11 = scmp.lt.s32.totalorder %s505_s17, %s505_s17 }
  0x63   : > { %p10961_p8 = scmp.ne.s32.totalorder %s505_s17, %s10960_s29  ;;  %p10969_p12 = scmp.lt.s32.totalorder %s10960_s29, %s10960_s29 }
  0x65   : > { %p10963_p9 = pnand %p10961_p8, %p11338_p7  ;;  %p10970_p2 = por %p10969_p12, %p10968_p11 }
  0x67   : > { %p10964_p10 = pneg %p10963_p9 }
  0x69   : > { %p10971_p3 = pnand %p10970_p2, %p10964_p10 }
  0x6b   : > { %10974 = shalt.err (!%p10971_p3)
}
  0x6c   : > { %10306 = dma.hbm_to_vmem [thread:$0]  (!%p11322_p5), %s13370_s12, 32, %s505_s17, [#allocation15]  }
  0x6d   : > { %s43_s15 = sadd.s32 1, %s11185_s19  ;;  %s11197_s27 = smov [#allocation3]  }
  0x6e   : > { %s414_s21 = sshll.u32 %s11197_s27, 4  ;;  %p11425_p13 = scmp.ge.s32.totalorder %s43_s15, 2  ;;  %s415_s21 = int_to_ptr.vmem [resolvable:$true] %s414_s21 }
  0x6f   : > { %s10975_s1 = scalar_lea.hbm %s13360_s2, 16 }
  0x70   : > { %s13392_s20 = scalar_select %p11425_p13, 1, 0 }
  0x71   : > { %p10976_p2 = scmp.ne.s32.totalorder %s13360_s2, %s10975_s1  ;;  %p10982_p1 = scmp.lt.u32.totalorder %s10975_s1, %s13360_s2 }
  0x73   : > { %p10978_p3 = pnand %p10976_p2, %p11338_p7 }
  0x75   : > { %p10979_p0 = pneg %p10978_p3 }
  0x77   : > { %p10984_p4 = pnand %p10982_p1, %p10979_p0 }
  0x79   : > { %10987 = shalt.err (!%p10984_p4)
}
  0x7a   : > { %s10988_s26 = scalar_lea.vmem %s415_s21, 16  ;;  %s10995_s29 = scalar_lea.vmem %s415_s21, 32 }
  0x7b   : > { %p10989_p6 = scmp.ne.s32.totalorder %s415_s21, %s10988_s26  ;;  %p10996_p10 = scmp.lt.s32.totalorder %s415_s21, %s415_s21 }
  0x7c   : > { %p10997_p11 = scmp.lt.s32.totalorder %s10995_s29, %s10988_s26 }
  0x7d   : > { %p10991_p8 = pnand %p10989_p6, %p11338_p7 }
  0x7e   : > { %p10998_p12 = por %p10997_p11, %p10996_p10 }
  0x7f   : > { %p10992_p9 = pneg %p10991_p8 }
  0x81   : > { %p10999_p13 = pnand %p10998_p12, %p10992_p9 }
  0x83   : > { %11002 = shalt.err (!%p10999_p13)
}
  0x84   : > { %10285 = dma.hbm_to_vmem [thread:$0]  (!%p11322_p5), %s13360_s2, 16, %s415_s21, [#allocation4]  }
  0x85   : > { %p13393_p2 = scmp.ne.s32.totalorder %s13392_s20, 0  ;;  %s11198_s27 = smov [#allocation7]  }
  0x86   : > { %s438_s22 = sshll.u32 %s11198_s27, 4  ;;  %s11199_s0 = smov [#allocation10]   ;;  %s439_s22 = int_to_ptr.vmem [resolvable:$true] %s438_s22 }
  0x87   : > { %s13406_s15 = smov (%p13393_p2, %s43_s15), 0  ;;  %s462_s1 = sshll.u32 %s11199_s0, 4  ;;  %s11451_s1 = int_to_ptr.vmem [resolvable:$true] %s462_s1 }
  0x88   : > { %s11003_s17 = scalar_lea.hbm %s13362_s4, 16 }
  0x89   : > { %p11004_p13 = scmp.ne.s32.totalorder %s13362_s4, %s11003_s17  ;;  %p11010_p1 = scmp.lt.u32.totalorder %s11003_s17, %s13362_s4 }
  0x8b   : > { %p11006_p3 = pnand %p11004_p13, %p11338_p7 }
  0x8d   : > { %p11007_p0 = pneg %p11006_p3 }
  0x8f   : > { %p11012_p4 = pnand %p11010_p1, %p11007_p0 }
  0x91   : > { %11015 = shalt.err (!%p11012_p4)
}
  0x92   : > { %s11016_s29 = scalar_lea.vmem %s439_s22, 16  ;;  %s11023_s30 = scalar_lea.vmem %s439_s22, 32 }
  0x93   : > { %p11017_p6 = scmp.ne.s32.totalorder %s439_s22, %s11016_s29  ;;  %p11024_p10 = scmp.lt.s32.totalorder %s439_s22, %s439_s22 }
  0x94   : > { %p11025_p11 = scmp.lt.s32.totalorder %s11023_s30, %s11016_s29 }
  0x95   : > { %p11019_p8 = pnand %p11017_p6, %p11338_p7 }
  0x96   : > { %p11026_p12 = por %p11025_p11, %p11024_p10 }
  0x97   : > { %p11020_p9 = pneg %p11019_p8 }
  0x99   : > { %p11027_p2 = pnand %p11026_p12, %p11020_p9 }
  0x9b   : > { %11030 = shalt.err (!%p11027_p2)
}
  0x9c   : > { %10291 = dma.hbm_to_vmem [thread:$0]  (!%p11322_p5), %s13362_s4, 16, %s439_s22, [#allocation6]  }
  0x9d   : > { %s11031_s9 = scalar_lea.hbm %s13364_s6, 16 }
  0x9e   : > { %p11032_p13 = scmp.ne.s32.totalorder %s13364_s6, %s11031_s9  ;;  %p11038_p1 = scmp.lt.u32.totalorder %s11031_s9, %s13364_s6 }
  0xa0   : > { %p11034_p3 = pnand %p11032_p13, %p11338_p7 }
  0xa2   : > { %p11035_p0 = pneg %p11034_p3 }
  0xa4   : > { %p11040_p4 = pnand %p11038_p1, %p11035_p0 }
  0xa6   : > { %11043 = shalt.err (!%p11040_p4)
}
  0xa7   : > { %s11044_s22 = scalar_lea.vmem %s11451_s1, 16  ;;  %s11051_s20 = scalar_lea.vmem %s11451_s1, 32 }
  0xa8   : > { %p11045_p6 = scmp.ne.s32.totalorder %s11451_s1, %s11044_s22  ;;  %p11052_p10 = scmp.lt.s32.totalorder %s11451_s1, %s11451_s1 }
  0xa9   : > { %p11053_p11 = scmp.lt.s32.totalorder %s11051_s20, %s11044_s22 }
  0xaa   : > { %p11047_p8 = pnand %p11045_p6, %p11338_p7 }
  0xab   : > { %p11054_p12 = por %p11053_p11, %p11052_p10 }
  0xac   : > { %p11048_p9 = pneg %p11047_p8 }
  0xae   : > { %p11055_p2 = pnand %p11054_p12, %p11048_p9 }
  0xb0   : > { %11058 = shalt.err (!%p11055_p2)
}
  0xb1   : > { %10297 = dma.hbm_to_vmem [thread:$0]  (!%p11322_p5), %s13364_s6, 16, %s11451_s1, [#allocation9]  }
  0xb2   : > { %s11200_s16 = smov [#allocation13]   ;;  %s11201_s0 = smov [#allocation16]  }
  0xb3   : > { %s490_s27 = sshll.u32 %s11200_s16, 4  ;;  %s514_s7 = sshll.u32 %s11201_s0, 4  ;;  %s491_s27 = int_to_ptr.vmem [resolvable:$true] %s490_s27  ;;  %s11495_s7 = int_to_ptr.vmem [resolvable:$true] %s514_s7 }
  0xb4   : > { %s11059_s23 = scalar_lea.hbm %s13368_s10, 64 }
  0xb5   : > { %p11060_p13 = scmp.ne.s32.totalorder %s13368_s10, %s11059_s23  ;;  %p11066_p1 = scmp.lt.u32.totalorder %s11059_s23, %s13368_s10 }
  0xb7   : > { %p11062_p3 = pnand %p11060_p13, %p11338_p7 }
  0xb9   : > { %p11063_p0 = pneg %p11062_p3 }
  0xbb   : > { %p11068_p4 = pnand %p11066_p1, %p11063_p0 }
  0xbd   : > { %11071 = shalt.err (!%p11068_p4)
}
  0xbe   : > { %s11072_s20 = scalar_lea.vmem %s491_s27, 64  ;;  %p11080_p10 = scmp.lt.s32.totalorder %s491_s27, %s491_s27 }
  0xbf   : > { %p11073_p6 = scmp.ne.s32.totalorder %s491_s27, %s11072_s20  ;;  %p11081_p11 = scmp.lt.s32.totalorder %s11072_s20, %s11072_s20 }
  0xc1   : > { %p11075_p8 = pnand %p11073_p6, %p11338_p7  ;;  %p11082_p12 = por %p11081_p11, %p11080_p10 }
  0xc3   : > { %p11076_p9 = pneg %p11075_p8 }
  0xc5   : > { %p11083_p2 = pnand %p11082_p12, %p11076_p9 }
  0xc7   : > { %11086 = shalt.err (!%p11083_p2)
}
  0xc8   : > { %10303 = dma.hbm_to_vmem [thread:$0]  (!%p11322_p5), %s13368_s10, 64, %s491_s27, [#allocation12]  }
  0xc9   : > { %s11087_s9 = scalar_lea.hbm %s13371_s13, 65536 }
  0xca   : > { %p11088_p13 = scmp.ne.s32.totalorder %s13371_s13, %s11087_s9  ;;  %p11094_p1 = scmp.lt.u32.totalorder %s11087_s9, %s13371_s13 }
  0xcc   : > { %p11090_p3 = pnand %p11088_p13, %p11338_p7 }
  0xce   : > { %p11091_p0 = pneg %p11090_p3 }
  0xd0   : > { %p11096_p4 = pnand %p11094_p1, %p11091_p0 }
  0xd2   : > { %11099 = shalt.err (!%p11096_p4)
}
  0xd3   : > { %s11100_s27 = scalar_lea.vmem %s11495_s7, 65536  ;;  %p11108_p10 = scmp.lt.s32.totalorder %s11495_s7, %s11495_s7 }
  0xd4   : > { %p11101_p6 = scmp.ne.s32.totalorder %s11495_s7, %s11100_s27  ;;  %p11109_p11 = scmp.lt.s32.totalorder %s11100_s27, %s11100_s27 }
  0xd6   : > { %p11103_p8 = pnand %p11101_p6, %p11338_p7  ;;  %p11110_p12 = por %p11109_p11, %p11108_p10 }
  0xd8   : > { %p11104_p9 = pneg %p11103_p8 }
  0xda   : > { %p11111_p2 = pnand %p11110_p12, %p11104_p9 }
  0xdc   : > { %11114 = shalt.err (!%p11111_p2)
}
  0xdd   : > { %s11202_s22 = smov 2048   ;;  %s11203_s1 = smov 128  }
  0xde   : > { %10309 = dma.hbm_to_vmem [thread:$0]  (!%p11322_p5), %s13371_s13, 65536, %s11495_s7, [#allocation15], %s11202_s22, %s11202_s22, %s11203_s1  }
  0xdf   : > { %s11204_s30 = smov [#allocation17]   ;;  %s11115_s17 = scalar_lea.hbm %s13372_s14, 512 }
  0xe0   : > { %s528_s16 = sshll.u32 %s11204_s30, 4  ;;  %p11116_p13 = scmp.ne.s32.totalorder %s13372_s14, %s11115_s17  ;;  %s529_s16 = int_to_ptr.vmem [resolvable:$true] %s528_s16 }
  0xe1   : > { %p11122_p1 = scmp.lt.u32.totalorder %s11115_s17, %s13372_s14 }
  0xe2   : > { %p11118_p3 = pnand %p11116_p13, %p11338_p7 }
  0xe4   : > { %p11119_p0 = pneg %p11118_p3 }
  0xe6   : > { %p11124_p4 = pnand %p11122_p1, %p11119_p0 }
  0xe8   : > { %11127 = shalt.err (!%p11124_p4)
}
  0xe9   : > { %s11128_s7 = scalar_lea.vmem %s529_s16, 512  ;;  %p11136_p10 = scmp.lt.s32.totalorder %s529_s16, %s529_s16 }
  0xea   : > { %p11129_p6 = scmp.ne.s32.totalorder %s529_s16, %s11128_s7  ;;  %p11137_p11 = scmp.lt.s32.totalorder %s11128_s7, %s11128_s7 }
  0xec   : > { %p11131_p8 = pnand %p11129_p6, %p11338_p7  ;;  %p11138_p12 = por %p11137_p11, %p11136_p10 }
  0xee   : > { %p11132_p9 = pneg %p11131_p8 }
  0xf0   : > { %p11139_p2 = pnand %p11138_p12, %p11132_p9 }
  0xf2   : > { %11142 = shalt.err (!%p11139_p2)
}
  0xf3   : > { %10312 = dma.hbm_to_vmem [thread:$0]  (!%p11322_p5), %s13372_s14, 512, %s529_s16, [#allocation18]  }
  0xf4   : > { %p13394_p13 = scmp.ne.s32.totalorder %s13389_s25, 0 }
  0xf5   : > { %p13395_p3 = scmp.ne.s32.totalorder (!%p13394_p13), %s13388_s24, 0 }
  0xf6   : > { %561 = sbr.rel (%p13394_p13) target bundleno = 2674 (0xa72), region = 80 }
  0xfd   : > { %11156 = dma.done.wait (%p13395_p3), [#allocation4], 16  }
  0xfe   : > { %11158 = vsyncadd (%p13395_p3), [#allocation4], 4294967280 }
  0xff   : > { %11160 = dma.done.wait (%p13395_p3), [#allocation6], 528  }
 0x100   : > { %11162 = vsyncadd (%p13395_p3), [#allocation6], 4294966768 }
 0x101   : > { %11164 = dma.done.wait (%p13395_p3), [#allocation9], 528  }
 0x102   : > { %11166 = vsyncadd (%p13395_p3), [#allocation9], 4294966768 }
 0x103   : > { %11168 = dma.done.wait (%p13395_p3), [#allocation12], 192  }
 0x104   : > { %11170 = vsyncadd (%p13395_p3), [#allocation12], 4294967104 }
 0x105   : > { %11172 = dma.done.wait (%p13395_p3), [#allocation15], 65568  }
 0x106   : > { %11174 = vsyncadd (%p13395_p3), [#allocation15], 4294901728 }
 0x107   : > { %11176 = dma.done.wait (%p13395_p3), [#allocation18], 512  }
 0x108   : > { %11178 = vsyncadd (%p13395_p3), [#allocation18], 4294966784  ;;  %p653_p5 = scmp.lt.s32.totalorder %s11181_s18, 1  ;;  %vm728_vm0 = vcmask 1040384   ;;  %vm729_vm1 = vcmask 1041408   ;;  %v11205_v0 = vmov 65535  }
 0x109   : > { %v730_v1 = vsel %vm728_vm0, 4294967295, %v11205_v0  ;;  %s13396_s29 = sld [smem:[#allocation26_spill]]  ;;  %s13397_s0 = sld [smem:[#allocation27_spill]]  ;;  %vm703_vm2 = vcmask 23552   ;;  %v10374_v25 = vld [vmem:[#allocation5] sm:$0xff]   ;;  %v10375_v28 = vld [vmem:[#allocation5 + $0x8] sm:$0xff]  }
 0x10a   : > { %s13408_s18 = smov (!%p653_p5, %s11181_s18), 1  ;;  %v731_v2 = vsel %vm729_vm1, %v730_v1, 0  ;;  %v10376_v31 = vld [vmem:[#allocation5 + $0x10] sm:$0xff]   ;;  %v10377_v32 = vld [vmem:[#allocation5 + $0x18] sm:$0xff]   ;;  %v10378_v33 = vld [vmem:[#allocation8] sm:$0xff]   ;;  %vm895_vm3 = vcmask 523264  }
 0x10b   : > { %s10106_s11 = sshll.u32 %s13408_s18, 7  ;;  %s9171_s25 = sshll.u32 %s13408_s18, 1  ;;  %v10379_v34 = vld [vmem:[#allocation8 + $0x8] sm:$0xff]   ;;  %v9173_v35 = vld [vmem:[#allocation3] ss:$0 sm:$0xff] }
 0x10c   : > { %s13398_s26 = sld [smem:[#allocation28_spill]]  ;;  %s9172_s21 = sshll.u32 %s13408_s18, 5 }
 0x10d   : > { %s13401_s22 = sld [smem:[#allocation31_spill]] }
 0x10f   : > { %s11591_s30 = scalar_lea.vmem %s13396_s29, %s10106_s11  ;;  %s665_s9 = scalar_lea.vmem %s13397_s0, %s9171_s25 }
 0x110   : > { %v695_v3 = vld [vmem:[%s665_s9] sm:$0x3]  ;;  %v672_v5 = vld [vmem:[%s11591_s30 + $0x8] sm:$0xff]  ;;  %v673_v8 = vld [vmem:[%s11591_s30 + $0x10] sm:$0xff]  ;;  %s13399_s29 = sld [smem:[#allocation29_spill]] }
 0x111   : > { %v671_v4 = vld [vmem:[%s11591_s30] sm:$0xff]  ;;  %v733_v6 = vand.u32 %v731_v2, %v695_v3  ;;  %v674_v9 = vld [vmem:[%s11591_s30 + $0x18] sm:$0xff]  ;;  %v676_v11 = vld [vmem:[%s11591_s30 + $0x28] sm:$0xff] }
 0x112   : > { %v687_v7 = vpack.c.bf16 %v672_v5, %v671_v4  ;;  %v675_v10 = vld [vmem:[%s11591_s30 + $0x20] sm:$0xff]  ;;  %v688_v12 = vpack.c.bf16 %v674_v9, %v673_v8  ;;  %v680_v14 = vld [vmem:[%s11591_s30 + $0x48] sm:$0xff]  ;;  %v681_v15 = vld [vmem:[%s11591_s30 + $0x50] sm:$0xff] }
 0x113   : > { %10140 = vmatprep.subr.bf16.mxu0 %v733_v6  ;;  %v679_v13 = vld [vmem:[%s11591_s30 + $0x40] sm:$0xff]  ;;  %v689_v16 = vpack.c.bf16 %v676_v11, %v675_v10  ;;  %10206 = vmatprep.subr.bf16.mxu1 %v733_v6  ;;  %v682_v18 = vld [vmem:[%s11591_s30 + $0x58] sm:$0xff]  ;;  %v684_v20 = vld [vmem:[%s11591_s30 + $0x68] sm:$0xff]  ;;  %s13244_s18 = scalar_lea.vmem %s13401_s22, %s9172_s21 }
 0x114   : > { %10142 = vmatprep.mubr.msk.bf16.mxu0 %vm703_vm2, %v687_v7  ;;  %10141 = vmatpush3.bf16.msra.mxu0 %v733_v6  ;;  %v691_v17 = vpack.c.bf16 %v680_v14, %v679_v13  ;;  %v683_v19 = vld [vmem:[%s11591_s30 + $0x60] sm:$0xff]  ;;  %v692_v21 = vpack.c.bf16 %v682_v18, %v681_v15  ;;  %v677_v23 = vld [vmem:[%s11591_s30 + $0x30] sm:$0xff]  ;;  %v678_v24 = vld [vmem:[%s11591_s30 + $0x38] sm:$0xff] }
 0x115   : > { %10207 = vmatpush3.bf16.msra.mxu1 %v733_v6  ;;  %v693_v22 = vpack.c.bf16 %v684_v20, %v683_v19  ;;  %v685_v26 = vld [vmem:[%s11591_s30 + $0x70] sm:$0xff]  ;;  %v686_v27 = vld [vmem:[%s11591_s30 + $0x78] sm:$0xff]  ;;  %v690_v29 = vpack.c.bf16 %v678_v24, %v677_v23  ;;  %10182 = vmatprep.subr.bf16.mxu0 %v10378_v33  ;;  %s13400_s30 = sld [smem:[#allocation30_spill]] }
 0x116   : > { %10150 = vmatprep.mubr.msk.bf16.mxu1 %vm703_vm2, %v691_v17  ;;  %10158 = vmatprep.subr.bf16.mxu1 %v10374_v25  ;;  %v694_v30 = vpack.c.bf16 %v686_v27, %v685_v26 }
 0x117   : > { %10143 = vmatmul.mubr.msk.bf16.vlgmr.msra.gmra.mrb[0].mxu0 %vm703_vm2, %v688_v12 }
 0x118   : > { %10146 = vmatprep.mubr.msk.bf16.mxu0 %vm703_vm2, %v689_v16  ;;  %10151 = vmatmul.mubr.msk.bf16.vlgmr.msra.gmra.mrb[0].mxu1 %vm703_vm2, %v692_v21 }
 0x119   : > { %10154 = vmatprep.mubr.msk.bf16.mxu1 %vm703_vm2, %v693_v22  ;;  %10159 = vmatpush3.bf16.msra.mxu1 %v10374_v25 }
 0x11a   : > { %10160 = vmatprep.subr.bf16.mxu1 %v10375_v28  ;;  %10183 = vmatpush3.bf16.msra.mxu0 %v10378_v33 }
 0x11b   : > { %10184 = vmatprep.subr.bf16.mxu0 %v10379_v34 }
 0x11d   : > { %10161 = vmatpush3.bf16.msra.mxu1 %v10375_v28  ;;  %v10380_v28 = vld [vmem:[#allocation8 + $0x10] sm:$0xff]  }
 0x11e   : > { %10162 = vmatprep.subr.bf16.mxu1 %v10376_v31  ;;  %10185 = vmatpush3.bf16.msra.mxu0 %v10379_v34 }
 0x11f   : > { %10147 = vmatmul.mubr.msk.bf16.gmra.mrb[4].mxu0 %vm703_vm2, %v690_v29  ;;  %10186 = vmatprep.subr.bf16.mxu0 %v10380_v28  ;;  %v10381_v29 = vld [vmem:[#allocation8 + $0x18] sm:$0xff]  }
 0x120   : > { %10155 = vmatmul.mubr.msk.bf16.gmra.mrb[4].mxu1 %vm703_vm2, %v694_v30  ;;  %v1225_v30 = vld [vmem:[%s13398_s26] sm:$0xff] }
 0x121   : > { %10163 = vmatpush3.bf16.msra.mxu1 %v10376_v31  ;;  %v1229_v31 = vld [vmem:[%s13398_s26 + $0x20] sm:$0xff] }
 0x122   : > { %10164 = vmatprep.subr.bf16.mxu1 %v10377_v32  ;;  %10187 = vmatpush3.bf16.msra.mxu0 %v10380_v28  ;;  %v9208_v33 = vcombine.low %v1225_v30, %v1229_v31  ;;  %v9209_v34 = vcombine.high %v1225_v30, %v1229_v31  ;;  %v1250_v28 = vld [vmem:[%s13398_s26 + $0xc8] sm:$0xff] }
 0x123   : > { %10188 = vmatprep.subr.bf16.mxu0 %v10381_v29 }
 0x125   : > { %10165 = vmatpush3.bf16.msra.mxu1 %v10377_v32  ;;  %v11637_v32 = vld [vmem:[%s13398_s26 + $0x8] sm:$0xff] }
 0x126   : > { %10189 = vmatpush3.bf16.msra.mxu0 %v10381_v29  ;;  %1651 = vmatprep.subr.bf16.mxu1 %v9209_v34  ;;  %v1254_v29 = vld [vmem:[%s13398_s26 + $0xe8] sm:$0xff] }
 0x1ea   : > { %v10144_v36 = vpop.f32.mrb[0].mxu0 }
 0x1eb   : > { %v778_v37 = vadd.f32 %v10144_v36, %v9173_v35  ;;  %v769_v38 = vpop.f32.mrb[1].mxu0  ;;  %v10152_v39 = vpop.f32.mrb[0].mxu1  ;;  %v1233_v36 = vld [vmem:[%s13398_s26 + $0x40] sm:$0xff] }
 0x1ec   : > { %v770_v40 = vadd.f32 %v9173_v35, %v769_v38  ;;  %v10145_v41 = vpop.f32.mrb[2].mxu0  ;;  %v810_v42 = vadd.f32 %v10152_v39, %v9173_v35  ;;  %v801_v43 = vpop.f32.mrb[1].mxu1 }
 0x1ed   : > { %v781_v44 = vadd.f32 %v10145_v41, %v9173_v35  ;;  %v772_v45 = vpop.f32.mrb[3].mxu0  ;;  %v802_v46 = vadd.f32 %v9173_v35, %v801_v43  ;;  %v10153_v47 = vpop.f32.mrb[2].mxu1  ;;  %v834_v52 = vmax.f32 %v778_v37, 0.0  ;;  %v1237_v37 = vld [vmem:[%s13398_s26 + $0x60] sm:$0xff] }
 0x1ee   : > { %v773_v48 = vadd.f32 %v9173_v35, %v772_v45  ;;  %v842_v49 = vmax.f32 %v810_v42, 0.0  ;;  %v813_v50 = vadd.f32 %v10153_v47, %v9173_v35  ;;  %v804_v51 = vpop.f32.mrb[3].mxu1  ;;  %v832_v56 = vmax.f32 %v770_v40, 0.0  ;;  %v1241_v41 = vld [vmem:[%s13398_s26 + $0x80] sm:$0xff] }
 0x1ef   : > { %v835_v53 = vmax.f32 %v781_v44, 0.0  ;;  %v840_v54 = vmax.f32 %v802_v46, 0.0  ;;  %v805_v55 = vadd.f32 %v9173_v35, %v804_v51  ;;  %v9217_v40 = vcombine.high %v1233_v36, %v1237_v37  ;;  %v1245_v42 = vld [vmem:[%s13398_s26 + $0xa0] sm:$0xff] }
 0x1f0   : > { %v833_v57 = vmax.f32 %v773_v48, 0.0  ;;  %v843_v58 = vmax.f32 %v813_v50, 0.0  ;;  %v9216_v43 = vcombine.low %v1233_v36, %v1237_v37  ;;  %v9225_v44 = vcombine.high %v1241_v41, %v1245_v42  ;;  %v1249_v45 = vld [vmem:[%s13398_s26 + $0xc0] sm:$0xff] }
 0x1f1   : > { %v849_v59 = vpack.c.bf16 %v835_v53, %v834_v52  ;;  %v841_v60 = vmax.f32 %v805_v55, 0.0  ;;  %v1253_v46 = vld [vmem:[%s13398_s26 + $0xe0] sm:$0xff]  ;;  %v9224_v47 = vcombine.low %v1241_v41, %v1245_v42  ;;  %v9235_v36 = vcombine.high %v1250_v28, %v1254_v29 }
 0x1f2   : > { %v848_v61 = vpack.c.bf16 %v833_v57, %v832_v56  ;;  %v10148_v62 = vpop.f32.mrb[4].mxu0  ;;  %v853_v63 = vpack.c.bf16 %v843_v58, %v842_v49  ;;  %v9233_v48 = vcombine.high %v1249_v45, %v1253_v46  ;;  %v1257_v49 = vld [vmem:[%s13398_s26 + $0x100] sm:$0xff]  ;;  %v9232_v51 = vcombine.low %v1249_v45, %v1253_v46 }
 0x1f3   : > { %v794_v0 = vadd.f32 %v10148_v62, %v9173_v35  ;;  %v785_v1 = vpop.f32.mrb[5].mxu0  ;;  %v852_v2 = vpack.c.bf16 %v841_v60, %v840_v54  ;;  %v10156_v3 = vpop.f32.mrb[4].mxu1  ;;  %v1261_v50 = vld [vmem:[%s13398_s26 + $0x120] sm:$0xff]  ;;  %v9234_v46 = vcombine.low %v1250_v28, %v1254_v29  ;;  %v1232_v28 = vld [vmem:[%s13398_s26 + $0x38] sm:$0xff] }
 0x1f4   : > { %v786_v4 = vadd.f32 %v9173_v35, %v785_v1  ;;  %v10149_v5 = vpop.f32.mrb[6].mxu0  ;;  %10166 = vmatprep.mubr.msk.bf16.mxu1 %vm895_vm3, %v848_v61  ;;  %v826_v6 = vadd.f32 %v10156_v3, %v9173_v35  ;;  %v817_v7 = vpop.f32.mrb[5].mxu1  ;;  %v9241_v52 = vcombine.high %v1257_v49, %v1261_v50  ;;  %v1265_v53 = vld [vmem:[%s13398_s26 + $0x140] sm:$0xff]  ;;  %v9240_v55 = vcombine.low %v1257_v49, %v1261_v50  ;;  %v1266_v50 = vld [vmem:[%s13398_s26 + $0x148] sm:$0xff] }
 0x1f5   : > { %v838_v8 = vmax.f32 %v794_v0, 0.0  ;;  %v797_v9 = vadd.f32 %v10149_v5, %v9173_v35  ;;  %v788_v10 = vpop.f32.mrb[7].mxu0  ;;  %10167 = vmatmul.mubr.msk.bf16.vlgmr.msra.gmra.mrb[8].mxu1 %vm895_vm3, %v849_v59  ;;  %v818_v11 = vadd.f32 %v9173_v35, %v817_v7  ;;  %v10157_v12 = vpop.f32.mrb[6].mxu1  ;;  %v1269_v54 = vld [vmem:[%s13398_s26 + $0x160] sm:$0xff]  ;;  %v1234_v7 = vld [vmem:[%s13398_s26 + $0x48] sm:$0xff] }
 0x1f6   : > { %v836_v13 = vmax.f32 %v786_v4, 0.0  ;;  %v789_v14 = vadd.f32 %v9173_v35, %v788_v10  ;;  %v846_v15 = vmax.f32 %v826_v6, 0.0  ;;  %v829_v16 = vadd.f32 %v10157_v12, %v9173_v35  ;;  %v820_v17 = vpop.f32.mrb[7].mxu1  ;;  %1652 = vmatpush1.bf16.msra.mxu1 %v9208_v33  ;;  %v11678_v58 = vld [vmem:[#allocation7] ss:$0 sm:$0xff] }
 0x1f7   : > { %v839_v18 = vmax.f32 %v797_v9, 0.0  ;;  %v844_v19 = vmax.f32 %v818_v11, 0.0  ;;  %v821_v20 = vadd.f32 %v9173_v35, %v820_v17  ;;  %v11642_v35 = vld [vmem:[%s13398_s26 + $0x28] sm:$0xff]  ;;  %1653 = vmatprep.subr.bf16.mxu1 %v9217_v40  ;;  %v9249_v56 = vcombine.high %v1265_v53, %v1269_v54 }
 0x1f8   : > { %v837_v21 = vmax.f32 %v789_v14, 0.0  ;;  %v847_v22 = vmax.f32 %v829_v16, 0.0  ;;  %v9210_v38 = vcombine.low %v11637_v32, %v11642_v35  ;;  %v9211_v39 = vcombine.high %v11637_v32, %v11642_v35  ;;  %v1242_v17 = vld [vmem:[%s13398_s26 + $0x88] sm:$0xff] }
 0x1f9   : > { %v851_v23 = vpack.c.bf16 %v839_v18, %v838_v8  ;;  %v845_v24 = vmax.f32 %v821_v20, 0.0  ;;  %v9248_v57 = vcombine.low %v1265_v53, %v1269_v54  ;;  %v1238_v8 = vld [vmem:[%s13398_s26 + $0x68] sm:$0xff] }
 0x1fa   : > { %v850_v25 = vpack.c.bf16 %v837_v21, %v836_v13  ;;  %v855_v26 = vpack.c.bf16 %v847_v22, %v846_v15  ;;  %1764 = vmatprep.subr.bf16.mxu0 %v9211_v39  ;;  %1654 = vmatpush1.bf16.msra.mxu1 %v9216_v43  ;;  %v9219_v14 = vcombine.high %v1234_v7, %v1238_v8  ;;  %v1246_v18 = vld [vmem:[%s13398_s26 + $0xa8] sm:$0xff] }
 0x1fb   : > { %v854_v27 = vpack.c.bf16 %v845_v24, %v844_v19  ;;  %1655 = vmatprep.subr.bf16.mxu1 %v9225_v44  ;;  %v9218_v24 = vcombine.low %v1234_v7, %v1238_v8  ;;  %v9226_v34 = vcombine.low %v1242_v17, %v1246_v18  ;;  %v1258_v39 = vld [vmem:[%s13398_s26 + $0x108] sm:$0xff]  ;;  %v1273_v8 = vld [vmem:[%s13398_s26 + $0x180] sm:$0xff] }
 0x1fc   : > { %10170 = vmatprep.mubr.msk.bf16.mxu1 %vm895_vm3, %v850_v25  ;;  %v1262_v40 = vld [vmem:[%s13398_s26 + $0x128] sm:$0xff] }
 0x1fd   : > { %10171 = vmatmul.mubr.msk.bf16.gmra.mrb[12].mxu1 %vm895_vm3, %v851_v23 }
 0x1fe   : > { %10174 = vmatprep.mubr.msk.bf16.mxu1 %vm895_vm3, %v852_v2  ;;  %1656 = vmatpush1.bf16.msra.mxu1 %v9224_v47 }
 0x1ff   : > { %1657 = vmatprep.subr.bf16.mxu1 %v9233_v48  ;;  %v9243_v48 = vcombine.high %v1258_v39, %v1262_v40 }
 0x202   : > { %1658 = vmatpush1.bf16.msra.mxu1 %v9232_v51  ;;  %v1270_v51 = vld [vmem:[%s13398_s26 + $0x168] sm:$0xff] }
 0x203   : > { %1659 = vmatprep.subr.bf16.mxu1 %v9241_v52 }
 0x205   : > { %10175 = vmatmul.mubr.msk.bf16.gmra.mrb[16].mxu1 %vm895_vm3, %v853_v63 }
 0x206   : > { %10178 = vmatprep.mubr.msk.bf16.mxu1 %vm895_vm3, %v854_v27  ;;  %1660 = vmatpush1.bf16.msra.mxu1 %v9240_v55  ;;  %v9242_v55 = vcombine.low %v1258_v39, %v1262_v40 }
 0x207   : > { %1661 = vmatprep.subr.bf16.mxu1 %v9249_v56 }
 0x20a   : > { %1662 = vmatpush1.bf16.msra.mxu1 %v9248_v57 }
 0x20d   : > { %10179 = vmatmul.mubr.msk.bf16.gmra.mrb[20].mxu1 %vm895_vm3, %v855_v26  ;;  %v9227_v26 = vcombine.high %v1242_v17, %v1246_v18  ;;  %v1282_v17 = vld [vmem:[%s13398_s26 + $0x1c8] sm:$0xff] }
 0x2c8   : > { %v10168_v59 = vpop.f32.mrb[8].mxu1 }
 0x2c9   : > { %v963_v60 = vadd.f32 %v10168_v59, %v11678_v58  ;;  %v954_v61 = vpop.f32.mrb[9].mxu1  ;;  %v9251_v59 = vcombine.high %v1266_v50, %v1270_v51 }
 0x2ca   : > { %v955_v62 = vadd.f32 %v11678_v58, %v954_v61  ;;  %v10169_v63 = vpop.f32.mrb[10].mxu1 }
 0x2cb   : > { %v966_v0 = vadd.f32 %v10169_v63, %v11678_v58  ;;  %v957_v1 = vpop.f32.mrb[11].mxu1  ;;  %v1019_v3 = vmax.f32 %v963_v60, 0.0 }
 0x2cc   : > { %v958_v2 = vadd.f32 %v11678_v58, %v957_v1  ;;  %v1017_v5 = vmax.f32 %v955_v62, 0.0 }
 0x2cd   : > { %v1020_v4 = vmax.f32 %v966_v0, 0.0 }
 0x2ce   : > { %v1018_v6 = vmax.f32 %v958_v2, 0.0 }
 0x2cf   : > { %v1034_v9 = vpack.c.bf16 %v1020_v4, %v1019_v3  ;;  %v9250_v3 = vcombine.low %v1266_v50, %v1270_v51 }
 0x2d0   : > { %v1033_v10 = vpack.c.bf16 %v1018_v6, %v1017_v5  ;;  %v10172_v11 = vpop.f32.mrb[12].mxu1 }
 0x2d1   : > { %v979_v12 = vadd.f32 %v10172_v11, %v11678_v58  ;;  %v970_v13 = vpop.f32.mrb[13].mxu1  ;;  %v1278_v11 = vld [vmem:[%s13398_s26 + $0x1a8] sm:$0xff] }
 0x2d2   : > { %v971_v15 = vadd.f32 %v11678_v58, %v970_v13  ;;  %v10173_v16 = vpop.f32.mrb[14].mxu1  ;;  %10190 = vmatprep.mubr.msk.bf16.mxu0 %vm895_vm3, %v1033_v10 }
 0x2d3   : > { %v1023_v19 = vmax.f32 %v979_v12, 0.0  ;;  %v982_v20 = vadd.f32 %v10173_v16, %v11678_v58  ;;  %v973_v21 = vpop.f32.mrb[15].mxu1  ;;  %10191 = vmatmul.mubr.msk.bf16.vlgmr.msra.gmra.mrb[8].mxu0 %vm895_vm3, %v1034_v9  ;;  %v1274_v9 = vld [vmem:[%s13398_s26 + $0x188] sm:$0xff]  ;;  %v1285_v16 = vld [vmem:[%s13398_s26 + $0x1e0] sm:$0xff] }
 0x2d4   : > { %v1021_v22 = vmax.f32 %v971_v15, 0.0  ;;  %v974_v23 = vadd.f32 %v11678_v58, %v973_v21  ;;  %1765 = vmatpush1.bf16.msra.mxu0 %v9210_v38  ;;  %v9258_v13 = vcombine.low %v1274_v9, %v1278_v11  ;;  %v1281_v15 = vld [vmem:[%s13398_s26 + $0x1c0] sm:$0xff] }
 0x2d5   : > { %v1024_v25 = vmax.f32 %v982_v20, 0.0  ;;  %1766 = vmatprep.subr.bf16.mxu0 %v9219_v14  ;;  %v9259_v14 = vcombine.high %v1274_v9, %v1278_v11  ;;  %v9265_v18 = vcombine.high %v1281_v15, %v1285_v16  ;;  %v9264_v20 = vcombine.low %v1281_v15, %v1285_v16  ;;  %v1252_v11 = vld [vmem:[%s13398_s26 + $0xd8] sm:$0xff] }
 0x2d6   : > { %v1022_v27 = vmax.f32 %v974_v23, 0.0  ;;  %v11206_v23 = vmov 0  }
 0x2d7   : > { %v1036_v30 = vpack.c.bf16 %v1024_v25, %v1023_v19  ;;  %v1286_v19 = vld [vmem:[%s13398_s26 + $0x1e8] sm:$0xff]  ;;  %1683 = vmatprep.mubr.bf16.mxu1 %v11206_v23  ;;  %v1231_v25 = vld [vmem:[%s13398_s26 + $0x30] sm:$0xff] }
 0x2d8   : > { %v1035_v31 = vpack.c.bf16 %v1022_v27, %v1021_v22  ;;  %v10176_v33 = vpop.f32.mrb[16].mxu1  ;;  %1767 = vmatpush1.bf16.msra.mxu0 %v9218_v24  ;;  %v9266_v21 = vcombine.low %v1282_v17, %v1286_v19  ;;  %v9267_v22 = vcombine.high %v1282_v17, %v1286_v19  ;;  %v1227_v24 = vld [vmem:[%s13398_s26 + $0x10] sm:$0xff] }
 0x2d9   : > { %v995_v32 = vadd.f32 %v10176_v33, %v11678_v58  ;;  %v986_v35 = vpop.f32.mrb[17].mxu1  ;;  %1768 = vmatprep.subr.bf16.mxu0 %v9227_v26  ;;  %v1228_v26 = vld [vmem:[%s13398_s26 + $0x18] sm:$0xff]  ;;  %v9213_v27 = vcombine.high %v1227_v24, %v1231_v25  ;;  %v9212_v29 = vcombine.low %v1227_v24, %v1231_v25  ;;  %v11775_v33 = vld [vmem:[#allocation10] ss:$0 sm:$0xff] }
 0x2da   : > { %10194 = vmatprep.mubr.msk.bf16.mxu0 %vm895_vm3, %v1035_v31  ;;  %v987_v37 = vadd.f32 %v11678_v58, %v986_v35  ;;  %v10177_v38 = vpop.f32.mrb[18].mxu1  ;;  %v9215_v31 = vcombine.high %v1228_v26, %v1232_v28 }
 0x2db   : > { %10195 = vmatmul.mubr.msk.bf16.gmra.mrb[12].mxu0 %vm895_vm3, %v1036_v30  ;;  %v1027_v41 = vmax.f32 %v995_v32, 0.0  ;;  %v998_v42 = vadd.f32 %v10177_v38, %v11678_v58  ;;  %v989_v43 = vpop.f32.mrb[19].mxu1  ;;  %v9214_v30 = vcombine.low %v1228_v26, %v1232_v28  ;;  %v1263_v26 = vld [vmem:[%s13398_s26 + $0x130] sm:$0xff]  ;;  %v1264_v28 = vld [vmem:[%s13398_s26 + $0x138] sm:$0xff] }
 0x2dc   : > { %v1025_v44 = vmax.f32 %v987_v37, 0.0  ;;  %v990_v45 = vadd.f32 %v11678_v58, %v989_v43  ;;  %1769 = vmatpush1.bf16.msra.mxu0 %v9226_v34  ;;  %v1235_v43 = vld [vmem:[%s13398_s26 + $0x50] sm:$0xff] }
 0x2dd   : > { %v1028_v47 = vmax.f32 %v998_v42, 0.0  ;;  %1770 = vmatprep.subr.bf16.mxu0 %v9235_v36 }
 0x2de   : > { %v1026_v49 = vmax.f32 %v990_v45, 0.0 }
 0x2df   : > { %v1038_v52 = vpack.c.bf16 %v1028_v47, %v1027_v41  ;;  %v1236_v47 = vld [vmem:[%s13398_s26 + $0x58] sm:$0xff] }
 0x2e0   : > { %v1037_v53 = vpack.c.bf16 %v1026_v49, %v1025_v44  ;;  %v10180_v54 = vpop.f32.mrb[20].mxu1  ;;  %1771 = vmatpush1.bf16.msra.mxu0 %v9234_v46  ;;  %v1239_v46 = vld [vmem:[%s13398_s26 + $0x70] sm:$0xff] }
 0x2e1   : > { %v1011_v56 = vadd.f32 %v10180_v54, %v11678_v58  ;;  %v1002_v57 = vpop.f32.mrb[21].mxu1  ;;  %1772 = vmatprep.subr.bf16.mxu0 %v9243_v48  ;;  %v1240_v48 = vld [vmem:[%s13398_s26 + $0x78] sm:$0xff]  ;;  %v9221_v54 = vcombine.high %v1235_v43, %v1239_v46 }
 0x2e2   : > { %10198 = vmatprep.mubr.msk.bf16.mxu0 %vm895_vm3, %v1037_v53  ;;  %v1003_v60 = vadd.f32 %v11678_v58, %v1002_v57  ;;  %v10181_v61 = vpop.f32.mrb[22].mxu1 }
 0x2e3   : > { %10199 = vmatmul.mubr.msk.bf16.gmra.mrb[16].mxu0 %vm895_vm3, %v1038_v52  ;;  %v1031_v62 = vmax.f32 %v1011_v56, 0.0  ;;  %v1014_v63 = vadd.f32 %v10181_v61, %v11678_v58  ;;  %v1005_v0 = vpop.f32.mrb[23].mxu1  ;;  %v1243_v56 = vld [vmem:[%s13398_s26 + $0x90] sm:$0xff]  ;;  %v1244_v61 = vld [vmem:[%s13398_s26 + $0x98] sm:$0xff] }
 0x2e4   : > { %v1029_v1 = vmax.f32 %v1003_v60, 0.0  ;;  %v1006_v2 = vadd.f32 %v11678_v58, %v1005_v0  ;;  %1773 = vmatpush1.bf16.msra.mxu0 %v9242_v55  ;;  %v1277_v58 = vld [vmem:[%s13398_s26 + $0x1a0] sm:$0xff]  ;;  %v9223_v55 = vcombine.high %v1236_v47, %v1240_v48  ;;  %v1247_v60 = vld [vmem:[%s13398_s26 + $0xb0] sm:$0xff] }
 0x2e5   : > { %v1032_v4 = vmax.f32 %v1014_v63, 0.0  ;;  %1774 = vmatprep.subr.bf16.mxu0 %v9251_v59  ;;  %v9257_v10 = vcombine.high %v1273_v8, %v1277_v58  ;;  %v9256_v12 = vcombine.low %v1273_v8, %v1277_v58  ;;  %v1251_v8 = vld [vmem:[%s13398_s26 + $0xd0] sm:$0xff]  ;;  %v9228_v16 = vcombine.low %v1243_v56, %v1247_v60 }
 0x2e6   : > { %v1030_v5 = vmax.f32 %v1006_v2, 0.0  ;;  %v9220_v2 = vcombine.low %v1235_v43, %v1239_v46  ;;  %v1268_v43 = vld [vmem:[%s13398_s26 + $0x158] sm:$0xff] }
 0x2e7   : > { %v1040_v6 = vpack.c.bf16 %v1032_v4, %v1031_v62  ;;  %1663 = vmatprep.subr.bf16.mxu1 %v9257_v10  ;;  %v1248_v62 = vld [vmem:[%s13398_s26 + $0xb8] sm:$0xff]  ;;  %v1255_v10 = vld [vmem:[%s13398_s26 + $0xf0] sm:$0xff] }
 0x2e8   : > { %v1039_v7 = vpack.c.bf16 %v1030_v5, %v1029_v1  ;;  %1775 = vmatpush1.bf16.msra.mxu0 %v9250_v3  ;;  %1664 = vmatpush1.bf16.msra.mxu1 %v9256_v12  ;;  %v9222_v3 = vcombine.low %v1236_v47, %v1240_v48  ;;  %v1256_v12 = vld [vmem:[%s13398_s26 + $0xf8] sm:$0xff]  ;;  %v9230_v17 = vcombine.low %v1244_v61, %v1248_v62 }
 0x2e9   : > { %1776 = vmatprep.subr.bf16.mxu0 %v9259_v14  ;;  %1665 = vmatprep.subr.bf16.mxu1 %v9265_v18 }
 0x2ea   : > { %10202 = vmatprep.mubr.msk.bf16.mxu0 %vm895_vm3, %v1039_v7  ;;  %v9231_v7 = vcombine.high %v1244_v61, %v1248_v62  ;;  %v1276_v61 = vld [vmem:[%s13398_s26 + $0x198] sm:$0xff] }
 0x2eb   : > { %10203 = vmatmul.mubr.msk.bf16.gmra.mrb[20].mxu0 %vm895_vm3, %v1040_v6  ;;  %v9229_v6 = vcombine.high %v1243_v56, %v1247_v60  ;;  %v1275_v56 = vld [vmem:[%s13398_s26 + $0x190] sm:$0xff]  ;;  %v1280_v62 = vld [vmem:[%s13398_s26 + $0x1b8] sm:$0xff] }
 0x2ec   : > { %1777 = vmatpush1.bf16.msra.mxu0 %v9258_v13  ;;  %1666 = vmatpush1.bf16.msra.mxu1 %v9264_v20  ;;  %v9237_v20 = vcombine.high %v1251_v8, %v1255_v10  ;;  %v1279_v60 = vld [vmem:[%s13398_s26 + $0x1b0] sm:$0xff] }
 0x2ed   : > { %1778 = vmatprep.subr.bf16.mxu0 %v9267_v22  ;;  %1796 = vmatprep.mubr.bf16.mxu0 %v11206_v23  ;;  %v1259_v22 = vld [vmem:[%s13398_s26 + $0x110] sm:$0xff] }
 0x2ee   : > { %1877 = vmatprep.subr.bf16.mxu1 %v9213_v27  ;;  %v1260_v27 = vld [vmem:[%s13398_s26 + $0x118] sm:$0xff]  ;;  %v9244_v48 = vcombine.low %v1259_v22, %v1263_v26 }
 0x2f0   : > { %1779 = vmatpush1.bf16.msra.mxu0 %v9266_v21  ;;  %v9239_v21 = vcombine.high %v1252_v11, %v1256_v12 }
 0x2f1   : > { %1990 = vmatprep.subr.bf16.mxu0 %v9215_v31 }
 0x3a6   : > { %v10192_v34 = vpop.f32.mrb[8].mxu0 }
 0x3a7   : > { %v1147_v32 = vadd.f32 %v10192_v34, %v11775_v33  ;;  %v1138_v35 = vpop.f32.mrb[9].mxu0 }
 0x3a8   : > { %v1139_v36 = vadd.f32 %v11775_v33, %v1138_v35  ;;  %v10193_v37 = vpop.f32.mrb[10].mxu0  ;;  %v9236_v35 = vcombine.low %v1251_v8, %v1255_v10  ;;  %v9263_v8 = vcombine.high %v1276_v61, %v1280_v62  ;;  %v1287_v10 = vld [vmem:[%s13398_s26 + $0x1f0] sm:$0xff] }
 0x3a9   : > { %v1150_v38 = vadd.f32 %v10193_v37, %v11775_v33  ;;  %v1141_v39 = vpop.f32.mrb[11].mxu0  ;;  %v1203_v41 = vmax.f32 %v1147_v32, 0.0 }
 0x3aa   : > { %v1142_v40 = vadd.f32 %v11775_v33, %v1141_v39  ;;  %v1201_v44 = vmax.f32 %v1139_v36, 0.0  ;;  %v9238_v36 = vcombine.low %v1252_v11, %v1256_v12  ;;  %v9247_v39 = vcombine.high %v1260_v27, %v1264_v28  ;;  %v1288_v11 = vld [vmem:[%s13398_s26 + $0x1f8] sm:$0xff] }
 0x3ab   : > { %v1204_v42 = vmax.f32 %v1150_v38, 0.0  ;;  %v9245_v38 = vcombine.high %v1259_v22, %v1263_v26  ;;  %v10390_v22 = vld [vmem:[%s13399_s29 + $0x24] ss:$16 sps:$4 sm:$0xff]   ;;  %v10391_v26 = vld [vmem:[%s13399_s29 + $0x28] ss:$16 sps:$4 sm:$0xff]  }
 0x3ac   : > { %v1202_v45 = vmax.f32 %v1142_v40, 0.0  ;;  %v1267_v40 = vld [vmem:[%s13398_s26 + $0x150] sm:$0xff] }
 0x3ad   : > { %v11793_v49 = vpack.c.bf16 %v1204_v42, %v1203_v41  ;;  %v1271_v42 = vld [vmem:[%s13398_s26 + $0x170] sm:$0xff] }
 0x3ae   : > { %v11795_v50 = vpack.c.bf16 %v1202_v45, %v1201_v44  ;;  %v10196_v51 = vpop.f32.mrb[12].mxu0  ;;  %v1272_v44 = vld [vmem:[%s13398_s26 + $0x178] sm:$0xff] }
 0x3af   : > { %v1163_v52 = vadd.f32 %v10196_v51, %v11775_v33  ;;  %v1154_v53 = vpop.f32.mrb[13].mxu0  ;;  %v9246_v51 = vcombine.low %v1260_v27, %v1264_v28  ;;  %v10396_v27 = vld [vmem:[%s13399_s29 + $0x44] ss:$16 sps:$4 sm:$0xff]   ;;  %v10399_v28 = vld [vmem:[%s13399_s29 + $0x4c] ss:$16 sps:$4 sm:$0xff]  }
 0x3b0   : > { %v1155_v57 = vadd.f32 %v11775_v33, %v1154_v53  ;;  %v10197_v59 = vpop.f32.mrb[14].mxu0  ;;  %1684 = vmatmul.mubr.bf16.vlgmr.msra.gmra.mrb[24].mxu1 %v11795_v50  ;;  %1797 = vmatmul.mubr.bf16.vlgmr.msra.gmra.mrb[24].mxu0 %v11795_v50 }
 0x3b1   : > { %v1166_v63 = vadd.f32 %v10197_v59, %v11775_v33  ;;  %v1157_v0 = vpop.f32.mrb[15].mxu0  ;;  %1693 = vmatprep.mubr.bf16.mxu1 %v11206_v23  ;;  %1806 = vmatprep.mubr.bf16.mxu0 %v11206_v23  ;;  %v1207_v4 = vmax.f32 %v1163_v52, 0.0 }
 0x3b2   : > { %v1158_v1 = vadd.f32 %v11775_v33, %v1157_v0  ;;  %1878 = vmatpush1.bf16.msra.mxu1 %v9212_v29  ;;  %1991 = vmatpush1.bf16.msra.mxu0 %v9214_v30  ;;  %v1205_v58 = vmax.f32 %v1155_v57, 0.0 }
 0x3b3   : > { %v1208_v5 = vmax.f32 %v1166_v63, 0.0  ;;  %1879 = vmatprep.subr.bf16.mxu1 %v9221_v54  ;;  %1992 = vmatprep.subr.bf16.mxu0 %v9223_v55  ;;  %v9253_v54 = vcombine.high %v1267_v40, %v1271_v42  ;;  %v9255_v55 = vcombine.high %v1268_v43, %v1272_v44 }
 0x3b4   : > { %v1206_v9 = vmax.f32 %v1158_v1, 0.0 }
 0x3b5   : > { %v11829_v13 = vpack.c.bf16 %v1208_v5, %v1207_v4  ;;  %v9252_v4 = vcombine.low %v1267_v40, %v1271_v42  ;;  %v9254_v5 = vcombine.low %v1268_v43, %v1272_v44  ;;  %v10417_v40 = vld [vmem:[%s13399_s29 + $0xac] ss:$16 sps:$4 sm:$0xff]   ;;  %v10415_v42 = vld [vmem:[%s13399_s29 + $0xa8] ss:$16 sps:$4 sm:$0xff]   ;;  %v10420_v43 = vld [vmem:[%s13399_s29 + $0xc4] ss:$16 sps:$4 sm:$0xff]  }
 0x3b6   : > { %v11831_v14 = vpack.c.bf16 %v1206_v9, %v1205_v58  ;;  %v10200_v15 = vpop.f32.mrb[16].mxu0  ;;  %1880 = vmatpush1.bf16.msra.mxu1 %v9220_v2  ;;  %1993 = vmatpush1.bf16.msra.mxu0 %v9222_v3  ;;  %v1283_v58 = vld [vmem:[%s13398_s26 + $0x1d0] sm:$0xff]  ;;  %v10423_v44 = vld [vmem:[%s13399_s29 + $0xcc] ss:$16 sps:$4 sm:$0xff]  }
 0x3b7   : > { %v1179_v18 = vadd.f32 %v10200_v15, %v11775_v33  ;;  %v1170_v19 = vpop.f32.mrb[17].mxu0  ;;  %1881 = vmatprep.subr.bf16.mxu1 %v9229_v6  ;;  %1994 = vmatprep.subr.bf16.mxu0 %v9231_v7  ;;  %v9261_v7 = vcombine.high %v1275_v56, %v1279_v60 }
 0x3b8   : > { %1694 = vmatmul.mubr.bf16.gmra.mrb[28].mxu1 %v11793_v49  ;;  %1807 = vmatmul.mubr.bf16.gmra.mrb[28].mxu0 %v11793_v49  ;;  %v1171_v24 = vadd.f32 %v11775_v33, %v1170_v19  ;;  %v10201_v25 = vpop.f32.mrb[18].mxu0 }
 0x3b9   : > { %v1211_v29 = vmax.f32 %v1179_v18, 0.0  ;;  %v1182_v30 = vadd.f32 %v10201_v25, %v11775_v33  ;;  %v1173_v31 = vpop.f32.mrb[19].mxu0  ;;  %1703 = vmatprep.mubr.bf16.mxu1 %v11206_v23  ;;  %1816 = vmatprep.mubr.bf16.mxu0 %v11206_v23  ;;  %v9269_v18 = vcombine.high %v1283_v58, %v1287_v10  ;;  %v10388_v25 = vld [vmem:[%s13399_s29 + $0x20] ss:$16 sps:$4 sm:$0xff]  }
 0x3ba   : > { %v1209_v34 = vmax.f32 %v1171_v24, 0.0  ;;  %v1174_v32 = vadd.f32 %v11775_v33, %v1173_v31  ;;  %1882 = vmatpush1.bf16.msra.mxu1 %v9228_v16  ;;  %1995 = vmatpush1.bf16.msra.mxu0 %v9230_v17  ;;  %v9260_v16 = vcombine.low %v1275_v56, %v1279_v60  ;;  %v9262_v17 = vcombine.low %v1276_v61, %v1280_v62  ;;  %v10393_v24 = vld [vmem:[%s13399_s29 + $0x2c] ss:$16 sps:$4 sm:$0xff]   ;;  %v10402_v31 = vld [vmem:[%s13399_s29 + $0x64] ss:$16 sps:$4 sm:$0xff]  }
 0x3bb   : > { %v1212_v37 = vmax.f32 %v1182_v30, 0.0  ;;  %1883 = vmatprep.subr.bf16.mxu1 %v9237_v20  ;;  %1996 = vmatprep.subr.bf16.mxu0 %v9239_v21  ;;  %v9268_v20 = vcombine.low %v1283_v58, %v1287_v10  ;;  %v10397_v30 = vld [vmem:[%s13399_s29 + $0x48] ss:$16 sps:$4 sm:$0xff]   ;;  %v10436_v60 = vld [vmem:[%s13399_s29 + $0x120] ss:$16 sps:$4 sm:$0xff]  }
 0x3bc   : > { %v1210_v41 = vmax.f32 %v1174_v32, 0.0  ;;  %v10400_v32 = vld [vmem:[%s13399_s29 + $0x60] ss:$16 sps:$4 sm:$0xff]   ;;  %v10433_v56 = vld [vmem:[%s13399_s29 + $0x108] ss:$16 sps:$4 sm:$0xff]  }
 0x3bd   : > { %v11865_v45 = vpack.c.bf16 %v1212_v37, %v1211_v29  ;;  %v10394_v29 = vld [vmem:[%s13399_s29 + $0x40] ss:$16 sps:$4 sm:$0xff]   ;;  %v10411_v37 = vld [vmem:[%s13399_s29 + $0x8c] ss:$16 sps:$4 sm:$0xff]   ;;  %v10439_v61 = vld [vmem:[%s13399_s29 + $0x128] ss:$16 sps:$4 sm:$0xff]  }
 0x3be   : > { %v11867_v46 = vpack.c.bf16 %v1210_v41, %v1209_v34  ;;  %v10204_v47 = vpop.f32.mrb[20].mxu0  ;;  %1884 = vmatpush1.bf16.msra.mxu1 %v9236_v35  ;;  %1997 = vmatpush1.bf16.msra.mxu0 %v9238_v36  ;;  %v10405_v34 = vld [vmem:[%s13399_s29 + $0x6c] ss:$16 sps:$4 sm:$0xff]   ;;  %v10403_v35 = vld [vmem:[%s13399_s29 + $0x68] ss:$16 sps:$4 sm:$0xff]  }
 0x3bf   : > { %v1195_v52 = vadd.f32 %v10204_v47, %v11775_v33  ;;  %v1186_v53 = vpop.f32.mrb[21].mxu0  ;;  %1885 = vmatprep.subr.bf16.mxu1 %v9245_v38  ;;  %1998 = vmatprep.subr.bf16.mxu0 %v9247_v39  ;;  %v10408_v36 = vld [vmem:[%s13399_s29 + $0x84] ss:$16 sps:$4 sm:$0xff]   ;;  %v10406_v38 = vld [vmem:[%s13399_s29 + $0x80] ss:$16 sps:$4 sm:$0xff]  }
 0x3c0   : > { %1704 = vmatmul.mubr.bf16.gmra.mrb[32].mxu1 %v11831_v14  ;;  %1817 = vmatmul.mubr.bf16.gmra.mrb[32].mxu0 %v11831_v14  ;;  %v1187_v57 = vadd.f32 %v11775_v33, %v1186_v53  ;;  %v10205_v59 = vpop.f32.mrb[22].mxu0  ;;  %v10409_v39 = vld [vmem:[%s13399_s29 + $0x88] ss:$16 sps:$4 sm:$0xff]   ;;  %v10412_v41 = vld [vmem:[%s13399_s29 + $0xa0] ss:$16 sps:$4 sm:$0xff]  }
 0x3c1   : > { %1713 = vmatprep.mubr.bf16.mxu1 %v11206_v23  ;;  %1826 = vmatprep.mubr.bf16.mxu0 %v11206_v23  ;;  %v1215_v63 = vmax.f32 %v1195_v52, 0.0  ;;  %v1198_v0 = vadd.f32 %v10205_v59, %v11775_v33  ;;  %v1189_v1 = vpop.f32.mrb[23].mxu0  ;;  %v10426_v47 = vld [vmem:[%s13399_s29 + $0xe4] ss:$16 sps:$4 sm:$0xff]   ;;  %v10427_v52 = vld [vmem:[%s13399_s29 + $0xe8] ss:$16 sps:$4 sm:$0xff]  }
 0x3c2   : > { %v1213_v2 = vmax.f32 %v1187_v57, 0.0  ;;  %v1190_v3 = vadd.f32 %v11775_v33, %v1189_v1  ;;  %1886 = vmatpush1.bf16.msra.mxu1 %v9244_v48  ;;  %1999 = vmatpush1.bf16.msra.mxu0 %v9246_v51  ;;  %v1284_v33 = vld [vmem:[%s13398_s26 + $0x1d8] sm:$0xff]  ;;  %v10424_v51 = vld [vmem:[%s13399_s29 + $0xe0] ss:$16 sps:$4 sm:$0xff]   ;;  %v10432_v53 = vld [vmem:[%s13399_s29 + $0x104] ss:$16 sps:$4 sm:$0xff]  }
 0x3c3   : > { %v1216_v6 = vmax.f32 %v1198_v0, 0.0  ;;  %1887 = vmatprep.subr.bf16.mxu1 %v9253_v54  ;;  %2000 = vmatprep.subr.bf16.mxu0 %v9255_v55  ;;  %v9271_v19 = vcombine.high %v1284_v33, %v1288_v11  ;;  %v9270_v21 = vcombine.low %v1284_v33, %v1288_v11  ;;  %v10429_v48 = vld [vmem:[%s13399_s29 + $0xec] ss:$16 sps:$4 sm:$0xff]   ;;  %v10430_v55 = vld [vmem:[%s13399_s29 + $0x100] ss:$16 sps:$4 sm:$0xff]  }
 0x3c4   : > { %v1214_v9 = vmax.f32 %v1190_v3, 0.0  ;;  %v10435_v54 = vld [vmem:[%s13399_s29 + $0x10c] ss:$16 sps:$4 sm:$0xff]   ;;  %v10438_v57 = vld [vmem:[%s13399_s29 + $0x124] ss:$16 sps:$4 sm:$0xff]  }
 0x3c5   : > { %v11901_v12 = vpack.c.bf16 %v1216_v6, %v1215_v63  ;;  %v10441_v59 = vld [vmem:[%s13399_s29 + $0x12c] ss:$16 sps:$4 sm:$0xff]   ;;  %v10444_v62 = vld [vmem:[%s13399_s29 + $0x144] ss:$16 sps:$4 sm:$0xff]   ;;  %v10442_v0 = vld [vmem:[%s13399_s29 + $0x140] ss:$16 sps:$4 sm:$0xff]  }
 0x3c6   : > { %v11903_v15 = vpack.c.bf16 %v1214_v9, %v1213_v2  ;;  %1888 = vmatpush1.bf16.msra.mxu1 %v9252_v4  ;;  %2001 = vmatpush1.bf16.msra.mxu0 %v9254_v5  ;;  %v10447_v63 = vld [vmem:[%s13399_s29 + $0x14c] ss:$16 sps:$4 sm:$0xff]   ;;  %v10445_v1 = vld [vmem:[%s13399_s29 + $0x148] ss:$16 sps:$4 sm:$0xff]   ;;  %v10450_v2 = vld [vmem:[%s13399_s29 + $0x164] ss:$16 sps:$4 sm:$0xff]  }
 0x3c7   : > { %1889 = vmatprep.subr.bf16.mxu1 %v9261_v7  ;;  %2002 = vmatprep.subr.bf16.mxu0 %v9263_v8  ;;  %v10453_v3 = vld [vmem:[%s13399_s29 + $0x16c] ss:$16 sps:$4 sm:$0xff]   ;;  %v10448_v4 = vld [vmem:[%s13399_s29 + $0x160] ss:$16 sps:$4 sm:$0xff]   ;;  %v10451_v5 = vld [vmem:[%s13399_s29 + $0x168] ss:$16 sps:$4 sm:$0xff]  }
 0x3c8   : > { %1714 = vmatmul.mubr.bf16.gmra.mrb[36].mxu1 %v11829_v13  ;;  %1827 = vmatmul.mubr.bf16.gmra.mrb[36].mxu0 %v11829_v13  ;;  %v10456_v6 = vld [vmem:[%s13399_s29 + $0x184] ss:$16 sps:$4 sm:$0xff]   ;;  %v10459_v7 = vld [vmem:[%s13399_s29 + $0x18c] ss:$16 sps:$4 sm:$0xff]   ;;  %v10454_v8 = vld [vmem:[%s13399_s29 + $0x180] ss:$16 sps:$4 sm:$0xff]  }
 0x3c9   : > { %1723 = vmatprep.mubr.bf16.mxu1 %v11206_v23  ;;  %1836 = vmatprep.mubr.bf16.mxu0 %v11206_v23  ;;  %v10457_v58 = vld [vmem:[%s13399_s29 + $0x188] ss:$16 sps:$4 sm:$0xff]   ;;  %v10462_v9 = vld [vmem:[%s13399_s29 + $0x1a4] ss:$16 sps:$4 sm:$0xff]   ;;  %v10465_v10 = vld [vmem:[%s13399_s29 + $0x1ac] ss:$16 sps:$4 sm:$0xff]  }
 0x3ca   : > { %1890 = vmatpush1.bf16.msra.mxu1 %v9260_v16  ;;  %2003 = vmatpush1.bf16.msra.mxu0 %v9262_v17  ;;  %v10460_v33 = vld [vmem:[%s13399_s29 + $0x1a0] ss:$16 sps:$4 sm:$0xff]   ;;  %v10463_v11 = vld [vmem:[%s13399_s29 + $0x1a8] ss:$16 sps:$4 sm:$0xff]  }
 0x3cb   : > { %1891 = vmatprep.subr.bf16.mxu1 %v9269_v18  ;;  %2004 = vmatprep.subr.bf16.mxu0 %v9271_v19  ;;  %v10466_v16 = vld [vmem:[%s13399_s29 + $0x1c0] ss:$16 sps:$4 sm:$0xff]   ;;  %v10469_v17 = vld [vmem:[%s13399_s29 + $0x1c8] ss:$16 sps:$4 sm:$0xff]   ;;  %v10474_v18 = vld [vmem:[%s13399_s29 + $0x1e4] ss:$16 sps:$4 sm:$0xff]  }
 0x3cc   : > { %v10477_v19 = vld [vmem:[%s13399_s29 + $0x1ec] ss:$16 sps:$4 sm:$0xff]  }
 0x3ce   : > { %1892 = vmatpush1.bf16.msra.mxu1 %v9268_v20  ;;  %2005 = vmatpush1.bf16.msra.mxu0 %v9270_v21  ;;  %v10472_v20 = vld [vmem:[%s13399_s29 + $0x1e0] ss:$16 sps:$4 sm:$0xff]   ;;  %v10475_v21 = vld [vmem:[%s13399_s29 + $0x1e8] ss:$16 sps:$4 sm:$0xff]  }
 0x3d0   : > { %1724 = vmatmul.mubr.bf16.gmra.mrb[40].mxu1 %v11867_v46  ;;  %1837 = vmatmul.mubr.bf16.gmra.mrb[40].mxu0 %v11867_v46 }
 0x3d1   : > { %1733 = vmatprep.mubr.bf16.mxu1 %v11206_v23  ;;  %1846 = vmatprep.mubr.bf16.mxu0 %v11206_v23 }
 0x3d8   : > { %1734 = vmatmul.mubr.bf16.gmra.mrb[44].mxu1 %v11865_v45  ;;  %1847 = vmatmul.mubr.bf16.gmra.mrb[44].mxu0 %v11865_v45 }
 0x3d9   : > { %1743 = vmatprep.mubr.bf16.mxu1 %v11206_v23  ;;  %1856 = vmatprep.mubr.bf16.mxu0 %v11206_v23 }
 0x3e0   : > { %1744 = vmatmul.mubr.bf16.gmra.mrb[48].mxu1 %v11903_v15  ;;  %1857 = vmatmul.mubr.bf16.gmra.mrb[48].mxu0 %v11903_v15 }
 0x3e1   : > { %1753 = vmatprep.mubr.bf16.mxu1 %v11206_v23  ;;  %1866 = vmatprep.mubr.bf16.mxu0 %v11206_v23 }
 0x3e8   : > { %1754 = vmatmul.mubr.bf16.gmra.mrb[52].mxu1 %v11901_v12  ;;  %1867 = vmatmul.mubr.bf16.gmra.mrb[52].mxu0 %v11901_v12 }
 0x3e9   : > { %1909 = vmatprep.mubr.bf16.mxu1 %v11206_v23  ;;  %2022 = vmatprep.mubr.bf16.mxu0 %v11206_v23 }
 0x3f0   : > { %1910 = vmatmul.mubr.bf16.vlgmr.msra.gmra.mrb[56].mxu1 %v11795_v50  ;;  %2023 = vmatmul.mubr.bf16.vlgmr.msra.gmra.mrb[56].mxu0 %v11795_v50  ;;  %v10387_v50 = vld [vmem:[%s13399_s29 + $0xc] ss:$16 sps:$4 sm:$0xff]  }
 0x3f1   : > { %1919 = vmatprep.mubr.bf16.mxu1 %v11206_v23  ;;  %2032 = vmatprep.mubr.bf16.mxu0 %v11206_v23 }
 0x3f2   : > { %4180 = vmatprep.subr.bf16.mxu0 %v10387_v50  ;;  %v10483_v50 = vld [vmem:[%s13399_s29 + $0x20c] ss:$16 sps:$4 sm:$0xff]  }
 0x3f8   : > { %1920 = vmatmul.mubr.bf16.gmra.mrb[60].mxu1 %v11793_v49  ;;  %2033 = vmatmul.mubr.bf16.gmra.mrb[60].mxu0 %v11793_v49  ;;  %v10384_v49 = vld [vmem:[%s13399_s29 + $0x4] ss:$16 sps:$4 sm:$0xff]  }
 0x3f9   : > { %1929 = vmatprep.mubr.bf16.mxu1 %v11206_v23  ;;  %2042 = vmatprep.mubr.bf16.mxu0 %v11206_v23 }
 0x3fa   : > { %4016 = vmatprep.subr.bf16.mxu1 %v10384_v49  ;;  %v10480_v49 = vld [vmem:[%s13399_s29 + $0x204] ss:$16 sps:$4 sm:$0xff]  }
 0x400   : > { %1930 = vmatmul.mubr.bf16.gmra.mrb[64].mxu1 %v11831_v14  ;;  %2043 = vmatmul.mubr.bf16.gmra.mrb[64].mxu0 %v11831_v14  ;;  %v10385_v14 = vld [vmem:[%s13399_s29 + $0x8] ss:$16 sps:$4 sm:$0xff]  }
 0x401   : > { %1939 = vmatprep.mubr.bf16.mxu1 %v11206_v23  ;;  %2052 = vmatprep.mubr.bf16.mxu0 %v11206_v23 }
 0x402   : > { %4181 = vmatpush1.bf16.msra.mxu0 %v10385_v14 }
 0x403   : > { %4182 = vmatprep.subr.bf16.mxu0 %v10393_v24 }
 0x406   : > { %4183 = vmatpush1.bf16.msra.mxu0 %v10391_v26 }
 0x407   : > { %4184 = vmatprep.subr.bf16.mxu0 %v10399_v28 }
 0x408   : > { %1940 = vmatmul.mubr.bf16.gmra.mrb[68].mxu1 %v11829_v13  ;;  %2053 = vmatmul.mubr.bf16.gmra.mrb[68].mxu0 %v11829_v13  ;;  %v10382_v13 = vld [vmem:[%s13399_s29] ss:$16 sps:$4 sm:$0xff]  }
 0x409   : > { %1949 = vmatprep.mubr.bf16.mxu1 %v11206_v23  ;;  %2062 = vmatprep.mubr.bf16.mxu0 %v11206_v23 }
 0x40a   : > { %4017 = vmatpush1.bf16.msra.mxu1 %v10382_v13  ;;  %4185 = vmatpush1.bf16.msra.mxu0 %v10397_v30  ;;  %v1291_v13 = vlaneseq }
 0x40b   : > { %4018 = vmatprep.subr.bf16.mxu1 %v10390_v22  ;;  %4186 = vmatprep.subr.bf16.mxu0 %v10405_v34 }
 0x40c   : > { %v12153_v14 = vshrl.u32 %v1291_v13, 7 }
 0x40e   : > { %4019 = vmatpush1.bf16.msra.mxu1 %v10388_v25  ;;  %4187 = vmatpush1.bf16.msra.mxu0 %v10403_v35  ;;  %v12156_v22 = vsub.s32 0, %v12153_v14  ;;  %v12159_v24 = vsub.s32 2, %v12153_v14  ;;  %v12161_v25 = vld [vmem:[#allocation11] sm:$0xff]  ;;  %v12164_v26 = vsub.s32 1, %v12153_v14 }
 0x40f   : > { %4020 = vmatprep.subr.bf16.mxu1 %v10396_v27  ;;  %4188 = vmatprep.subr.bf16.mxu0 %v10411_v37  ;;  %v12167_v27 = vsub.s32 3, %v12153_v14 }
 0x410   : > { %1950 = vmatmul.mubr.bf16.gmra.mrb[72].mxu1 %v11867_v46  ;;  %2063 = vmatmul.mubr.bf16.gmra.mrb[72].mxu0 %v11867_v46  ;;  %v10421_v46 = vld [vmem:[%s13399_s29 + $0xc8] ss:$16 sps:$4 sm:$0xff]   ;;  %v12171_v28 = vrot.slane %v12161_v25, %v12156_v22  ;;  %v12179_v30 = vrot.slane %v12161_v25, %v12164_v26 }
 0x411   : > { %1959 = vmatprep.mubr.bf16.mxu1 %v11206_v23  ;;  %2072 = vmatprep.mubr.bf16.mxu0 %v11206_v23 }
 0x412   : > { %4021 = vmatpush1.bf16.msra.mxu1 %v10394_v29  ;;  %4189 = vmatpush1.bf16.msra.mxu0 %v10409_v39  ;;  %v12175_v29 = vrot.slane %v12161_v25, %v12159_v24 }
 0x413   : > { %4022 = vmatprep.subr.bf16.mxu1 %v10402_v31  ;;  %4190 = vmatprep.subr.bf16.mxu0 %v10417_v40  ;;  %v12183_v31 = vrot.slane %v12161_v25, %v12167_v27 }
 0x416   : > { %4023 = vmatpush1.bf16.msra.mxu1 %v10400_v32  ;;  %4191 = vmatpush1.bf16.msra.mxu0 %v10415_v42 }
 0x417   : > { %4024 = vmatprep.subr.bf16.mxu1 %v10408_v36  ;;  %4192 = vmatprep.subr.bf16.mxu0 %v10423_v44 }
 0x418   : > { %1960 = vmatmul.mubr.bf16.gmra.mrb[76].mxu1 %v11865_v45  ;;  %2073 = vmatmul.mubr.bf16.gmra.mrb[76].mxu0 %v11865_v45  ;;  %v10418_v45 = vld [vmem:[%s13399_s29 + $0xc0] ss:$16 sps:$4 sm:$0xff]  }
 0x419   : > { %1969 = vmatprep.mubr.bf16.mxu1 %v11206_v23  ;;  %2082 = vmatprep.mubr.bf16.mxu0 %v11206_v23 }
 0x41a   : > { %4025 = vmatpush1.bf16.msra.mxu1 %v10406_v38  ;;  %4193 = vmatpush1.bf16.msra.mxu0 %v10421_v46 }
 0x41b   : > { %4194 = vmatprep.subr.bf16.mxu0 %v10429_v48 }
 0x41e   : > { %4195 = vmatpush1.bf16.msra.mxu0 %v10427_v52 }
 0x41f   : > { %4196 = vmatprep.subr.bf16.mxu0 %v10435_v54 }
 0x420   : > { %1970 = vmatmul.mubr.bf16.gmra.mrb[80].mxu1 %v11903_v15  ;;  %2083 = vmatmul.mubr.bf16.gmra.mrb[80].mxu0 %v11903_v15  ;;  %v10471_v15 = vld [vmem:[%s13399_s29 + $0x1cc] ss:$16 sps:$4 sm:$0xff]  }
 0x421   : > { %1979 = vmatprep.mubr.bf16.mxu1 %v11206_v23  ;;  %2092 = vmatprep.mubr.bf16.mxu0 %v11206_v23  ;;  %v10414_v23 = vld [vmem:[%s13399_s29 + $0xa4] ss:$16 sps:$4 sm:$0xff]  }
 0x422   : > { %4026 = vmatprep.subr.bf16.mxu1 %v10414_v23  ;;  %4197 = vmatpush1.bf16.msra.mxu0 %v10433_v56 }
 0x423   : > { %4027 = vmatpush1.bf16.msra.mxu1 %v10412_v41  ;;  %4198 = vmatprep.subr.bf16.mxu0 %v10441_v59 }
 0x424   : > { %4028 = vmatprep.subr.bf16.mxu1 %v10420_v43 }
 0x426   : > { %4199 = vmatpush1.bf16.msra.mxu0 %v10439_v61 }
 0x427   : > { %4029 = vmatpush1.bf16.msra.mxu1 %v10418_v45  ;;  %4200 = vmatprep.subr.bf16.mxu0 %v10447_v63 }
 0x428   : > { %1980 = vmatmul.mubr.bf16.gmra.mrb[84].mxu1 %v11901_v12  ;;  %2093 = vmatmul.mubr.bf16.gmra.mrb[84].mxu0 %v11901_v12  ;;  %v10468_v12 = vld [vmem:[%s13399_s29 + $0x1c4] ss:$16 sps:$4 sm:$0xff]  }
 0x429   : > { %4030 = vmatprep.subr.bf16.mxu1 %v10426_v47 }
 0x42a   : > { %4201 = vmatpush1.bf16.msra.mxu0 %v10445_v1 }
 0x42b   : > { %4031 = vmatpush1.bf16.msra.mxu1 %v10424_v51  ;;  %4202 = vmatprep.subr.bf16.mxu0 %v10453_v3 }
 0x42c   : > { %4032 = vmatprep.subr.bf16.mxu1 %v10432_v53 }
 0x42e   : > { %4203 = vmatpush1.bf16.msra.mxu0 %v10451_v5 }
 0x42f   : > { %4033 = vmatpush1.bf16.msra.mxu1 %v10430_v55  ;;  %4204 = vmatprep.subr.bf16.mxu0 %v10459_v7 }
 0x430   : > { %4034 = vmatprep.subr.bf16.mxu1 %v10438_v57 }
 0x432   : > { %4205 = vmatpush1.bf16.msra.mxu0 %v10457_v58 }
 0x433   : > { %4035 = vmatpush1.bf16.msra.mxu1 %v10436_v60  ;;  %4206 = vmatprep.subr.bf16.mxu0 %v10465_v10 }
 0x434   : > { %4036 = vmatprep.subr.bf16.mxu1 %v10444_v62 }
 0x436   : > { %4207 = vmatpush1.bf16.msra.mxu0 %v10463_v11 }
 0x437   : > { %4037 = vmatpush1.bf16.msra.mxu1 %v10442_v0  ;;  %4208 = vmatprep.subr.bf16.mxu0 %v10471_v15 }
 0x438   : > { %4038 = vmatprep.subr.bf16.mxu1 %v10450_v2 }
 0x43a   : > { %4209 = vmatpush1.bf16.msra.mxu0 %v10469_v17 }
 0x43b   : > { %4039 = vmatpush1.bf16.msra.mxu1 %v10448_v4  ;;  %4210 = vmatprep.subr.bf16.mxu0 %v10477_v19 }
 0x43c   : > { %4040 = vmatprep.subr.bf16.mxu1 %v10456_v6 }
 0x43e   : > { %4211 = vmatpush1.bf16.msra.mxu0 %v10475_v21 }
 0x43f   : > { %4041 = vmatpush1.bf16.msra.mxu1 %v10454_v8  ;;  %4221 = vmatprep.subr.bf16.mxu0 %v10483_v50 }
 0x440   : > { %4042 = vmatprep.subr.bf16.mxu1 %v10462_v9 }
 0x443   : > { %4043 = vmatpush1.bf16.msra.mxu1 %v10460_v33 }
 0x444   : > { %4044 = vmatprep.subr.bf16.mxu1 %v10468_v12 }
 0x447   : > { %4045 = vmatpush1.bf16.msra.mxu1 %v10466_v16 }
 0x448   : > { %4046 = vmatprep.subr.bf16.mxu1 %v10474_v18 }
 0x44b   : > { %4047 = vmatpush1.bf16.msra.mxu1 %v10472_v20 }
 0x44c   : > { %4057 = vmatprep.subr.bf16.mxu1 %v10480_v49 }
 0x483   : > { %v1685_v34 = vpop.f32.mrb[24].mxu1  ;;  %v1798_v32 = vpop.f32.mrb[24].mxu0 }
 0x484   : > { %v1686_v35 = vadd.f32 %v1685_v34, %v12171_v28  ;;  %v1799_v36 = vadd.f32 %v1798_v32, %v12175_v29  ;;  %v1687_v37 = vpop.f32.mrb[25].mxu1  ;;  %v1800_v38 = vpop.f32.mrb[25].mxu0 }
 0x485   : > { %v1688_v39 = vadd.f32 %v1687_v37, %v12179_v30  ;;  %v1801_v23 = vadd.f32 %v1800_v38, %v12183_v31  ;;  %v1689_v40 = vpop.f32.mrb[26].mxu1  ;;  %v1802_v41 = vpop.f32.mrb[26].mxu0 }
 0x486   : > { %v1690_v42 = vadd.f32 %v1689_v40, %v12171_v28  ;;  %v1803_v43 = vadd.f32 %v1802_v41, %v12175_v29  ;;  %v1691_v44 = vpop.f32.mrb[27].mxu1  ;;  %v1804_v45 = vpop.f32.mrb[27].mxu0  ;;  %v2103_v48 = vmax.f32 %v1686_v35, 0.0  ;;  %v2105_v51 = vmax.f32 %v1799_v36, 0.0 }
 0x487   : > { %v1692_v46 = vadd.f32 %v1691_v44, %v12179_v30  ;;  %v1805_v47 = vadd.f32 %v1804_v45, %v12183_v31  ;;  %v2104_v54 = vmax.f32 %v1688_v39, 0.0  ;;  %v2106_v55 = vmax.f32 %v1801_v23, 0.0 }
 0x488   : > { %v2111_v52 = vmax.f32 %v1690_v42, 0.0  ;;  %v2113_v53 = vmax.f32 %v1803_v43, 0.0 }
 0x489   : > { %v2112_v56 = vmax.f32 %v1692_v46, 0.0  ;;  %v2114_v57 = vmax.f32 %v1805_v47, 0.0 }
 0x48a   : > { %v2231_v59 = vmax.f32 %v2103_v48, %v2111_v52  ;;  %v2261_v60 = vmax.f32 %v2105_v51, %v2113_v53 }
 0x48b   : > { %v2246_v61 = vmax.f32 %v2104_v54, %v2112_v56  ;;  %v2276_v62 = vmax.f32 %v2106_v55, %v2114_v57  ;;  %v1695_v63 = vpop.f32.mrb[28].mxu1  ;;  %v1808_v0 = vpop.f32.mrb[28].mxu0 }
 0x48c   : > { %v1696_v1 = vadd.f32 %v1695_v63, %v12171_v28  ;;  %v1809_v2 = vadd.f32 %v1808_v0, %v12175_v29  ;;  %v1697_v3 = vpop.f32.mrb[29].mxu1  ;;  %v1810_v4 = vpop.f32.mrb[29].mxu0 }
 0x48d   : > { %v1698_v5 = vadd.f32 %v1697_v3, %v12179_v30  ;;  %v1811_v6 = vadd.f32 %v1810_v4, %v12183_v31  ;;  %v1699_v7 = vpop.f32.mrb[30].mxu1  ;;  %v1812_v8 = vpop.f32.mrb[30].mxu0 }
 0x48e   : > { %v2119_v58 = vmax.f32 %v1696_v1, 0.0  ;;  %v2121_v9 = vmax.f32 %v1809_v2, 0.0  ;;  %v1700_v10 = vadd.f32 %v1699_v7, %v12171_v28  ;;  %v1813_v33 = vadd.f32 %v1812_v8, %v12175_v29  ;;  %v1701_v11 = vpop.f32.mrb[31].mxu1  ;;  %v1814_v12 = vpop.f32.mrb[31].mxu0 }
 0x48f   : > { %v2120_v15 = vmax.f32 %v1698_v5, 0.0  ;;  %v2122_v16 = vmax.f32 %v1811_v6, 0.0  ;;  %v1702_v17 = vadd.f32 %v1701_v11, %v12179_v30  ;;  %v1815_v18 = vadd.f32 %v1814_v12, %v12183_v31 }
 0x490   : > { %v2232_v19 = vmax.f32 %v2231_v59, %v2119_v58  ;;  %v2262_v20 = vmax.f32 %v2261_v60, %v2121_v9  ;;  %v2127_v21 = vmax.f32 %v1700_v10, 0.0  ;;  %v2129_v49 = vmax.f32 %v1813_v33, 0.0 }
 0x491   : > { %v2247_v50 = vmax.f32 %v2246_v61, %v2120_v15  ;;  %v2277_v13 = vmax.f32 %v2276_v62, %v2122_v16  ;;  %v2128_v34 = vmax.f32 %v1702_v17, 0.0  ;;  %v2130_v32 = vmax.f32 %v1815_v18, 0.0 }
 0x492   : > { %v2233_v35 = vmax.f32 %v2232_v19, %v2127_v21  ;;  %v2263_v36 = vmax.f32 %v2262_v20, %v2129_v49 }
 0x493   : > { %v2248_v37 = vmax.f32 %v2247_v50, %v2128_v34  ;;  %v2278_v38 = vmax.f32 %v2277_v13, %v2130_v32  ;;  %v1705_v39 = vpop.f32.mrb[32].mxu1  ;;  %v1818_v23 = vpop.f32.mrb[32].mxu0 }
 0x494   : > { %v1706_v40 = vadd.f32 %v1705_v39, %v12171_v28  ;;  %v1819_v41 = vadd.f32 %v1818_v23, %v12175_v29  ;;  %v1707_v42 = vpop.f32.mrb[33].mxu1  ;;  %v1820_v43 = vpop.f32.mrb[33].mxu0 }
 0x495   : > { %v1708_v44 = vadd.f32 %v1707_v42, %v12179_v30  ;;  %v1821_v45 = vadd.f32 %v1820_v43, %v12183_v31  ;;  %v1709_v46 = vpop.f32.mrb[34].mxu1  ;;  %v1822_v47 = vpop.f32.mrb[34].mxu0 }
 0x496   : > { %v2135_v48 = vmax.f32 %v1706_v40, 0.0  ;;  %v2137_v51 = vmax.f32 %v1819_v41, 0.0  ;;  %v1710_v52 = vadd.f32 %v1709_v46, %v12171_v28  ;;  %v1823_v53 = vadd.f32 %v1822_v47, %v12175_v29  ;;  %v1711_v54 = vpop.f32.mrb[35].mxu1  ;;  %v1824_v55 = vpop.f32.mrb[35].mxu0 }
 0x497   : > { %v2136_v56 = vmax.f32 %v1708_v44, 0.0  ;;  %v2138_v57 = vmax.f32 %v1821_v45, 0.0  ;;  %v1712_v59 = vadd.f32 %v1711_v54, %v12179_v30  ;;  %v1825_v60 = vadd.f32 %v1824_v55, %v12183_v31 }
 0x498   : > { %v2234_v61 = vmax.f32 %v2233_v35, %v2135_v48  ;;  %v2264_v62 = vmax.f32 %v2263_v36, %v2137_v51  ;;  %v2143_v63 = vmax.f32 %v1710_v52, 0.0  ;;  %v2145_v0 = vmax.f32 %v1823_v53, 0.0 }
 0x499   : > { %v2249_v1 = vmax.f32 %v2248_v37, %v2136_v56  ;;  %v2279_v2 = vmax.f32 %v2278_v38, %v2138_v57  ;;  %v2144_v3 = vmax.f32 %v1712_v59, 0.0  ;;  %v2146_v4 = vmax.f32 %v1825_v60, 0.0 }
 0x49a   : > { %v2235_v5 = vmax.f32 %v2234_v61, %v2143_v63  ;;  %v2265_v6 = vmax.f32 %v2264_v62, %v2145_v0 }
 0x49b   : > { %v2250_v7 = vmax.f32 %v2249_v1, %v2144_v3  ;;  %v2280_v8 = vmax.f32 %v2279_v2, %v2146_v4  ;;  %v1715_v58 = vpop.f32.mrb[36].mxu1  ;;  %v1828_v9 = vpop.f32.mrb[36].mxu0 }
 0x49c   : > { %v1716_v10 = vadd.f32 %v1715_v58, %v12171_v28  ;;  %v1829_v33 = vadd.f32 %v1828_v9, %v12175_v29  ;;  %v1717_v11 = vpop.f32.mrb[37].mxu1  ;;  %v1830_v12 = vpop.f32.mrb[37].mxu0 }
 0x49d   : > { %v1718_v15 = vadd.f32 %v1717_v11, %v12179_v30  ;;  %v1831_v16 = vadd.f32 %v1830_v12, %v12183_v31  ;;  %v1719_v17 = vpop.f32.mrb[38].mxu1  ;;  %v1832_v18 = vpop.f32.mrb[38].mxu0 }
 0x49e   : > { %v2151_v19 = vmax.f32 %v1716_v10, 0.0  ;;  %v2153_v20 = vmax.f32 %v1829_v33, 0.0  ;;  %v1720_v21 = vadd.f32 %v1719_v17, %v12171_v28  ;;  %v1833_v49 = vadd.f32 %v1832_v18, %v12175_v29  ;;  %v1721_v50 = vpop.f32.mrb[39].mxu1  ;;  %v1834_v13 = vpop.f32.mrb[39].mxu0 }
 0x49f   : > { %v2152_v34 = vmax.f32 %v1718_v15, 0.0  ;;  %v2154_v32 = vmax.f32 %v1831_v16, 0.0  ;;  %v1722_v35 = vadd.f32 %v1721_v50, %v12179_v30  ;;  %v1835_v36 = vadd.f32 %v1834_v13, %v12183_v31 }
 0x4a0   : > { %v2236_v37 = vmax.f32 %v2235_v5, %v2151_v19  ;;  %v2266_v38 = vmax.f32 %v2265_v6, %v2153_v20  ;;  %v2159_v39 = vmax.f32 %v1720_v21, 0.0  ;;  %v2161_v23 = vmax.f32 %v1833_v49, 0.0 }
 0x4a1   : > { %v2251_v40 = vmax.f32 %v2250_v7, %v2152_v34  ;;  %v2281_v41 = vmax.f32 %v2280_v8, %v2154_v32  ;;  %v2160_v42 = vmax.f32 %v1722_v35, 0.0  ;;  %v2162_v43 = vmax.f32 %v1835_v36, 0.0 }
 0x4a2   : > { %v2237_v44 = vmax.f32 %v2236_v37, %v2159_v39  ;;  %v2267_v45 = vmax.f32 %v2266_v38, %v2161_v23 }
 0x4a3   : > { %v2252_v46 = vmax.f32 %v2251_v40, %v2160_v42  ;;  %v2282_v47 = vmax.f32 %v2281_v41, %v2162_v43  ;;  %v1725_v48 = vpop.f32.mrb[40].mxu1  ;;  %v1838_v51 = vpop.f32.mrb[40].mxu0 }
 0x4a4   : > { %v1726_v52 = vadd.f32 %v1725_v48, %v12171_v28  ;;  %v1839_v53 = vadd.f32 %v1838_v51, %v12175_v29  ;;  %v1727_v54 = vpop.f32.mrb[41].mxu1  ;;  %v1840_v55 = vpop.f32.mrb[41].mxu0 }
 0x4a5   : > { %v1728_v56 = vadd.f32 %v1727_v54, %v12179_v30  ;;  %v1841_v57 = vadd.f32 %v1840_v55, %v12183_v31  ;;  %v1729_v59 = vpop.f32.mrb[42].mxu1  ;;  %v1842_v60 = vpop.f32.mrb[42].mxu0 }
 0x4a6   : > { %v2167_v61 = vmax.f32 %v1726_v52, 0.0  ;;  %v2169_v62 = vmax.f32 %v1839_v53, 0.0  ;;  %v1730_v63 = vadd.f32 %v1729_v59, %v12171_v28  ;;  %v1843_v0 = vadd.f32 %v1842_v60, %v12175_v29  ;;  %v1731_v1 = vpop.f32.mrb[43].mxu1  ;;  %v1844_v2 = vpop.f32.mrb[43].mxu0 }
 0x4a7   : > { %v2168_v3 = vmax.f32 %v1728_v56, 0.0  ;;  %v2170_v4 = vmax.f32 %v1841_v57, 0.0  ;;  %v1732_v5 = vadd.f32 %v1731_v1, %v12179_v30  ;;  %v1845_v6 = vadd.f32 %v1844_v2, %v12183_v31 }
 0x4a8   : > { %v2238_v7 = vmax.f32 %v2237_v44, %v2167_v61  ;;  %v2268_v8 = vmax.f32 %v2267_v45, %v2169_v62  ;;  %v2175_v58 = vmax.f32 %v1730_v63, 0.0  ;;  %v2177_v9 = vmax.f32 %v1843_v0, 0.0 }
 0x4a9   : > { %v2253_v10 = vmax.f32 %v2252_v46, %v2168_v3  ;;  %v2283_v33 = vmax.f32 %v2282_v47, %v2170_v4  ;;  %v2176_v11 = vmax.f32 %v1732_v5, 0.0  ;;  %v2178_v12 = vmax.f32 %v1845_v6, 0.0 }
 0x4aa   : > { %v2239_v15 = vmax.f32 %v2238_v7, %v2175_v58  ;;  %v2269_v16 = vmax.f32 %v2268_v8, %v2177_v9  ;;  %v12238_v7 = vsub.s32 4, %v12153_v14 }
 0x4ab   : > { %v2254_v17 = vmax.f32 %v2253_v10, %v2176_v11  ;;  %v2284_v18 = vmax.f32 %v2283_v33, %v2178_v12  ;;  %v1735_v19 = vpop.f32.mrb[44].mxu1  ;;  %v1848_v20 = vpop.f32.mrb[44].mxu0 }
 0x4ac   : > { %v1736_v21 = vadd.f32 %v1735_v19, %v12171_v28  ;;  %v1849_v49 = vadd.f32 %v1848_v20, %v12175_v29  ;;  %v1737_v50 = vpop.f32.mrb[45].mxu1  ;;  %v1850_v13 = vpop.f32.mrb[45].mxu0 }
 0x4ad   : > { %v1738_v34 = vadd.f32 %v1737_v50, %v12179_v30  ;;  %v1851_v32 = vadd.f32 %v1850_v13, %v12183_v31  ;;  %v1739_v35 = vpop.f32.mrb[46].mxu1  ;;  %v1852_v36 = vpop.f32.mrb[46].mxu0 }
 0x4ae   : > { %v2183_v37 = vmax.f32 %v1736_v21, 0.0  ;;  %v2185_v38 = vmax.f32 %v1849_v49, 0.0  ;;  %v1740_v39 = vadd.f32 %v1739_v35, %v12171_v28  ;;  %v1853_v23 = vadd.f32 %v1852_v36, %v12175_v29  ;;  %v1741_v40 = vpop.f32.mrb[47].mxu1  ;;  %v1854_v41 = vpop.f32.mrb[47].mxu0 }
 0x4af   : > { %v2184_v42 = vmax.f32 %v1738_v34, 0.0  ;;  %v2186_v43 = vmax.f32 %v1851_v32, 0.0  ;;  %v1742_v44 = vadd.f32 %v1741_v40, %v12179_v30  ;;  %v1855_v45 = vadd.f32 %v1854_v41, %v12183_v31 }
 0x4b0   : > { %v2240_v46 = vmax.f32 %v2239_v15, %v2183_v37  ;;  %v2270_v47 = vmax.f32 %v2269_v16, %v2185_v38  ;;  %v2191_v48 = vmax.f32 %v1740_v39, 0.0  ;;  %v2193_v51 = vmax.f32 %v1853_v23, 0.0 }
 0x4b1   : > { %v2255_v52 = vmax.f32 %v2254_v17, %v2184_v42  ;;  %v2285_v53 = vmax.f32 %v2284_v18, %v2186_v43  ;;  %v2192_v54 = vmax.f32 %v1742_v44, 0.0  ;;  %v2194_v55 = vmax.f32 %v1855_v45, 0.0 }
 0x4b2   : > { %v2241_v56 = vmax.f32 %v2240_v46, %v2191_v48  ;;  %v2271_v57 = vmax.f32 %v2270_v47, %v2193_v51  ;;  %v12247_v43 = vsub.s32 6, %v12153_v14  ;;  %v12250_v44 = vsub.s32 5, %v12153_v14 }
 0x4b3   : > { %v2256_v59 = vmax.f32 %v2255_v52, %v2192_v54  ;;  %v2286_v60 = vmax.f32 %v2285_v53, %v2194_v55  ;;  %v1745_v61 = vpop.f32.mrb[48].mxu1  ;;  %v1858_v62 = vpop.f32.mrb[48].mxu0  ;;  %v12256_v51 = vrot.slane %v12161_v25, %v12238_v7  ;;  %v12259_v52 = vsub.s32 7, %v12153_v14 }
 0x4b4   : > { %v1746_v63 = vadd.f32 %v1745_v61, %v12171_v28  ;;  %v1859_v0 = vadd.f32 %v1858_v62, %v12175_v29  ;;  %v1747_v1 = vpop.f32.mrb[49].mxu1  ;;  %v1860_v2 = vpop.f32.mrb[49].mxu0 }
 0x4b5   : > { %v1748_v3 = vadd.f32 %v1747_v1, %v12179_v30  ;;  %v1861_v4 = vadd.f32 %v1860_v2, %v12183_v31  ;;  %v1749_v5 = vpop.f32.mrb[50].mxu1  ;;  %v1862_v6 = vpop.f32.mrb[50].mxu0 }
 0x4b6   : > { %v2199_v8 = vmax.f32 %v1746_v63, 0.0  ;;  %v2201_v58 = vmax.f32 %v1859_v0, 0.0  ;;  %v1750_v9 = vadd.f32 %v1749_v5, %v12171_v28  ;;  %v1863_v10 = vadd.f32 %v1862_v6, %v12175_v29  ;;  %v1751_v33 = vpop.f32.mrb[51].mxu1  ;;  %v1864_v11 = vpop.f32.mrb[51].mxu0 }
 0x4b7   : > { %v2200_v12 = vmax.f32 %v1748_v3, 0.0  ;;  %v2202_v15 = vmax.f32 %v1861_v4, 0.0  ;;  %v1752_v16 = vadd.f32 %v1751_v33, %v12179_v30  ;;  %v1865_v17 = vadd.f32 %v1864_v11, %v12183_v31 }
 0x4b8   : > { %v2242_v18 = vmax.f32 %v2241_v56, %v2199_v8  ;;  %v2272_v19 = vmax.f32 %v2271_v57, %v2201_v58  ;;  %v2207_v20 = vmax.f32 %v1750_v9, 0.0  ;;  %v2209_v21 = vmax.f32 %v1863_v10, 0.0 }
 0x4b9   : > { %v2257_v49 = vmax.f32 %v2256_v59, %v2200_v12  ;;  %v2287_v50 = vmax.f32 %v2286_v60, %v2202_v15  ;;  %v2208_v13 = vmax.f32 %v1752_v16, 0.0  ;;  %v2210_v34 = vmax.f32 %v1865_v17, 0.0 }
 0x4ba   : > { %v2243_v32 = vmax.f32 %v2242_v18, %v2207_v20  ;;  %v2273_v35 = vmax.f32 %v2272_v19, %v2209_v21  ;;  %v12277_v11 = vrot.slane %v12161_v25, %v12259_v52 }
 0x4bb   : > { %v2258_v36 = vmax.f32 %v2257_v49, %v2208_v13  ;;  %v2288_v37 = vmax.f32 %v2287_v50, %v2210_v34  ;;  %v1755_v38 = vpop.f32.mrb[52].mxu1  ;;  %v1868_v39 = vpop.f32.mrb[52].mxu0 }
 0x4bc   : > { %v1756_v23 = vadd.f32 %v1755_v38, %v12171_v28  ;;  %v1869_v40 = vadd.f32 %v1868_v39, %v12175_v29  ;;  %v1757_v41 = vpop.f32.mrb[53].mxu1  ;;  %v1870_v42 = vpop.f32.mrb[53].mxu0 }
 0x4bd   : > { %v1758_v45 = vadd.f32 %v1757_v41, %v12179_v30  ;;  %v1871_v46 = vadd.f32 %v1870_v42, %v12183_v31  ;;  %v1759_v47 = vpop.f32.mrb[54].mxu1  ;;  %v1872_v48 = vpop.f32.mrb[54].mxu0 }
 0x4be   : > { %v2215_v53 = vmax.f32 %v1756_v23, 0.0  ;;  %v2217_v54 = vmax.f32 %v1869_v40, 0.0  ;;  %v1760_v55 = vadd.f32 %v1759_v47, %v12171_v28  ;;  %v1873_v56 = vadd.f32 %v1872_v48, %v12175_v29  ;;  %v1761_v57 = vpop.f32.mrb[55].mxu1  ;;  %v1874_v59 = vpop.f32.mrb[55].mxu0 }
 0x4bf   : > { %v2216_v60 = vmax.f32 %v1758_v45, 0.0  ;;  %v2218_v61 = vmax.f32 %v1871_v46, 0.0  ;;  %v1762_v62 = vadd.f32 %v1761_v57, %v12179_v30  ;;  %v1875_v63 = vadd.f32 %v1874_v59, %v12183_v31 }
 0x4c0   : > { %v2244_v0 = vmax.f32 %v2243_v32, %v2215_v53  ;;  %v2274_v1 = vmax.f32 %v2273_v35, %v2217_v54  ;;  %v2223_v2 = vmax.f32 %v1760_v55, 0.0  ;;  %v2225_v3 = vmax.f32 %v1873_v56, 0.0 }
 0x4c1   : > { %v2259_v4 = vmax.f32 %v2258_v36, %v2216_v60  ;;  %v2289_v5 = vmax.f32 %v2288_v37, %v2218_v61  ;;  %v2224_v6 = vmax.f32 %v1762_v62, 0.0  ;;  %v2226_v8 = vmax.f32 %v1875_v63, 0.0 }
 0x4c2   : > { %v2245_v58 = vmax.f32 %v2244_v0, %v2223_v2  ;;  %v12265_v28 = vmax.f32 %v2274_v1, %v2225_v3  ;;  %v12269_v29 = vrot.slane %v12161_v25, %v12247_v43  ;;  %v12273_v31 = vrot.slane %v12161_v25, %v12250_v44 }
 0x4c3   : > { %v2260_v9 = vmax.f32 %v2259_v4, %v2224_v6  ;;  %v2290_v10 = vmax.f32 %v2289_v5, %v2226_v8  ;;  %v1911_v30 = vpop.f32.mrb[56].mxu1  ;;  %v2024_v33 = vpop.f32.mrb[56].mxu0 }
 0x4c4   : > { %v2402_v12 = vrot.slane %v2245_v58, 4  ;;  %v1912_v15 = vadd.f32 %v1911_v30, %v12256_v51  ;;  %v1913_v16 = vpop.f32.mrb[57].mxu1  ;;  %v2026_v17 = vpop.f32.mrb[57].mxu0  ;;  %v2025_v50 = vadd.f32 %v2024_v33, %v12269_v29 }
 0x4c5   : > { %v2408_v18 = vrot.slane %v2260_v9, 4  ;;  %v2420_v19 = vrot.slane %v2290_v10, 4  ;;  %v1915_v20 = vpop.f32.mrb[58].mxu1  ;;  %v2028_v21 = vpop.f32.mrb[58].mxu0  ;;  %v1914_v36 = vadd.f32 %v1913_v16, %v12273_v31  ;;  %v2027_v25 = vadd.f32 %v2026_v17, %v12277_v11 }
 0x4c6   : > { %v2403_v49 = vmax.f32 %v2245_v58, %v2402_v12  ;;  %v1917_v13 = vpop.f32.mrb[59].mxu1  ;;  %v2030_v34 = vpop.f32.mrb[59].mxu0  ;;  %v2107_v38 = vmax.f32 %v1912_v15, 0.0  ;;  %v1916_v39 = vadd.f32 %v1915_v20, %v12256_v51  ;;  %v2029_v23 = vadd.f32 %v2028_v21, %v12269_v29 }
 0x4c7   : > { %v2409_v32 = vmax.f32 %v2260_v9, %v2408_v18  ;;  %v2421_v35 = vmax.f32 %v2290_v10, %v2420_v19  ;;  %v1918_v42 = vadd.f32 %v1917_v13, %v12273_v31  ;;  %v2031_v45 = vadd.f32 %v2030_v34, %v12277_v11 }
 0x4c8   : > { %v2404_v37 = vrot.slane %v2403_v49, 2  ;;  %v2109_v47 = vmax.f32 %v2025_v50, 0.0  ;;  %v2115_v48 = vmax.f32 %v1916_v39, 0.0  ;;  %v2117_v53 = vmax.f32 %v2029_v23, 0.0 }
 0x4c9   : > { %v2410_v40 = vrot.slane %v2409_v32, 2  ;;  %v2422_v41 = vrot.slane %v2421_v35, 2  ;;  %v2108_v54 = vmax.f32 %v1914_v36, 0.0  ;;  %v2110_v55 = vmax.f32 %v2027_v25, 0.0 }
 0x4ca   : > { %v2405_v46 = vmax.f32 %v2403_v49, %v2404_v37  ;;  %v2116_v56 = vmax.f32 %v1918_v42, 0.0  ;;  %v2118_v57 = vmax.f32 %v2031_v45, 0.0  ;;  %v2291_v61 = vmax.f32 %v2107_v38, %v2115_v48 }
 0x4cb   : > { %v1921_v59 = vpop.f32.mrb[60].mxu1  ;;  %v2034_v60 = vpop.f32.mrb[60].mxu0  ;;  %v2321_v62 = vmax.f32 %v2109_v47, %v2117_v53  ;;  %v2411_v1 = vmax.f32 %v2409_v32, %v2410_v40  ;;  %v2423_v2 = vmax.f32 %v2421_v35, %v2422_v41 }
 0x4cc   : > { %v1923_v63 = vpop.f32.mrb[61].mxu1  ;;  %v2036_v0 = vpop.f32.mrb[61].mxu0  ;;  %v2306_v3 = vmax.f32 %v2108_v54, %v2116_v56  ;;  %v2336_v4 = vmax.f32 %v2110_v55, %v2118_v57  ;;  %v1922_v5 = vadd.f32 %v1921_v59, %v12256_v51  ;;  %v2035_v6 = vadd.f32 %v2034_v60, %v12269_v29 }
 0x4cd   : > { %v1925_v8 = vpop.f32.mrb[62].mxu1  ;;  %v2038_v58 = vpop.f32.mrb[62].mxu0  ;;  %v2406_v9 = vrot.slane %v2405_v46, 1  ;;  %v1924_v10 = vadd.f32 %v1923_v63, %v12273_v31  ;;  %v2037_v30 = vadd.f32 %v2036_v0, %v12277_v11  ;;  %v2412_v37 = vrot.slane %v2411_v1, 1 }
 0x4ce   : > { %v1926_v33 = vadd.f32 %v1925_v8, %v12256_v51  ;;  %v1927_v12 = vpop.f32.mrb[63].mxu1  ;;  %v2040_v15 = vpop.f32.mrb[63].mxu0  ;;  %v2123_v16 = vmax.f32 %v1922_v5, 0.0  ;;  %v2125_v17 = vmax.f32 %v2035_v6, 0.0  ;;  %v2039_v18 = vadd.f32 %v2038_v58, %v12269_v29  ;;  %v10478_v8 = vld [vmem:[%s13399_s29 + $0x200] ss:$16 sps:$4 sm:$0xff]  }
 0x4cf   : > { %v1928_v19 = vadd.f32 %v1927_v12, %v12273_v31  ;;  %v2124_v20 = vmax.f32 %v1924_v10, 0.0  ;;  %v2126_v21 = vmax.f32 %v2037_v30, 0.0  ;;  %v2041_v25 = vadd.f32 %v2040_v15, %v12277_v11 }
 0x4d0   : > { %v2131_v49 = vmax.f32 %v1926_v33, 0.0  ;;  %v2292_v50 = vmax.f32 %v2291_v61, %v2123_v16  ;;  %v2322_v13 = vmax.f32 %v2321_v62, %v2125_v17  ;;  %v2133_v34 = vmax.f32 %v2039_v18, 0.0 }
 0x4d1   : > { %v2132_v32 = vmax.f32 %v1928_v19, 0.0  ;;  %v2307_v35 = vmax.f32 %v2306_v3, %v2124_v20  ;;  %v2337_v36 = vmax.f32 %v2336_v4, %v2126_v21  ;;  %v2407_v38 = vmax.f32 %v2405_v46, %v2406_v9  ;;  %v10486_v19 = vld [vmem:[%s13399_s29 + $0x224] ss:$16 sps:$4 sm:$0xff]   ;;  %v10489_v20 = vld [vmem:[%s13399_s29 + $0x22c] ss:$16 sps:$4 sm:$0xff]  }
 0x4d2   : > { %v2293_v39 = vmax.f32 %v2292_v50, %v2131_v49  ;;  %v2323_v23 = vmax.f32 %v2322_v13, %v2133_v34  ;;  %v2424_v42 = vrot.slane %v2423_v2, 1  ;;  %v2134_v47 = vmax.f32 %v2041_v25, 0.0  ;;  %v10484_v13 = vld [vmem:[%s13399_s29 + $0x220] ss:$16 sps:$4 sm:$0xff]   ;;  %v10487_v34 = vld [vmem:[%s13399_s29 + $0x228] ss:$16 sps:$4 sm:$0xff]  }
 0x4d3   : > { %v1931_v40 = vpop.f32.mrb[64].mxu1  ;;  %v2044_v41 = vpop.f32.mrb[64].mxu0  ;;  %v2308_v45 = vmax.f32 %v2307_v35, %v2132_v32  ;;  %v2413_v56 = vmax.f32 %v2411_v1, %v2412_v37  ;;  %v10481_v1 = vld [vmem:[%s13399_s29 + $0x208] ss:$16 sps:$4 sm:$0xff]   ;;  %v2450_v10 = vpack.c.bf16 %v2407_v38, %v2407_v38  ;;  %v10492_v37 = vld [vmem:[%s13399_s29 + $0x244] ss:$16 sps:$4 sm:$0xff]  }
 0x4d4   : > { %v1932_v48 = vadd.f32 %v1931_v40, %v12256_v51  ;;  %v2045_v53 = vadd.f32 %v2044_v41, %v12269_v29  ;;  %v1933_v54 = vpop.f32.mrb[65].mxu1  ;;  %v2046_v55 = vpop.f32.mrb[65].mxu0  ;;  %v2425_v61 = vmax.f32 %v2423_v2, %v2424_v42  ;;  %v2338_v62 = vmax.f32 %v2337_v36, %v2134_v47  ;;  %v10495_v40 = vld [vmem:[%s13399_s29 + $0x24c] ss:$16 sps:$4 sm:$0xff]  }
 0x4d5   : > { %v1934_v57 = vadd.f32 %v1933_v54, %v12273_v31  ;;  %v2047_v59 = vadd.f32 %v2046_v55, %v12277_v11  ;;  %v1935_v60 = vpop.f32.mrb[66].mxu1  ;;  %v2048_v46 = vpop.f32.mrb[66].mxu0  ;;  %v2451_v6 = vpack.c.bf16 %v2413_v56, %v2413_v56 }
 0x4d6   : > { %v2139_v63 = vmax.f32 %v1932_v48, 0.0  ;;  %v2141_v0 = vmax.f32 %v2045_v53, 0.0  ;;  %v1936_v3 = vadd.f32 %v1935_v60, %v12256_v51  ;;  %v1937_v4 = vpop.f32.mrb[67].mxu1  ;;  %v2050_v5 = vpop.f32.mrb[67].mxu0  ;;  %v2049_v2 = vadd.f32 %v2048_v46, %v12269_v29 }
 0x4d7   : > { %v2140_v58 = vmax.f32 %v1934_v57, 0.0  ;;  %v2142_v9 = vmax.f32 %v2047_v59, 0.0  ;;  %4048 = vmatprep.mubr.bf16.mxu1 %v2451_v6  ;;  %4212 = vmatprep.mubr.bf16.mxu0 %v2451_v6  ;;  %v1938_v18 = vadd.f32 %v1937_v4, %v12273_v31  ;;  %v2453_v49 = vpack.c.bf16 %v2425_v61, %v2425_v61  ;;  %v10490_v61 = vld [vmem:[%s13399_s29 + $0x240] ss:$16 sps:$4 sm:$0xff]  }
 0x4d8   : > { %v2294_v30 = vmax.f32 %v2293_v39, %v2139_v63  ;;  %v2324_v33 = vmax.f32 %v2323_v23, %v2141_v0  ;;  %v2147_v12 = vmax.f32 %v1936_v3, 0.0  ;;  %v2149_v17 = vmax.f32 %v2049_v2, 0.0  ;;  %4049 = vmatmul.mubr.bf16.vlgmr.msra.gmra.mrb[88].mxu1 %v2450_v10  ;;  %4213 = vmatmul.mubr.bf16.vlgmr.msra.gmra.mrb[88].mxu0 %v2450_v10 }
 0x4d9   : > { %v2309_v15 = vmax.f32 %v2308_v45, %v2140_v58  ;;  %v2339_v16 = vmax.f32 %v2338_v62, %v2142_v9  ;;  %v2051_v50 = vadd.f32 %v2050_v5, %v12277_v11  ;;  %4058 = vmatpush1.bf16.msra.mxu1 %v10478_v8  ;;  %4222 = vmatpush1.bf16.msra.mxu0 %v10481_v1  ;;  %v2148_v35 = vmax.f32 %v1938_v18, 0.0  ;;  %v10493_v62 = vld [vmem:[%s13399_s29 + $0x248] ss:$16 sps:$4 sm:$0xff]   ;;  %v10498_v58 = vld [vmem:[%s13399_s29 + $0x264] ss:$16 sps:$4 sm:$0xff]  }
 0x4da   : > { %v2295_v21 = vmax.f32 %v2294_v30, %v2147_v12  ;;  %v2325_v32 = vmax.f32 %v2324_v33, %v2149_v17  ;;  %4089 = vmatprep.mubr.bf16.mxu1 %v2453_v49  ;;  %4253 = vmatprep.mubr.bf16.mxu0 %v2453_v49  ;;  %v10501_v9 = vld [vmem:[%s13399_s29 + $0x26c] ss:$16 sps:$4 sm:$0xff]   ;;  %v10496_v18 = vld [vmem:[%s13399_s29 + $0x260] ss:$16 sps:$4 sm:$0xff]  }
 0x4db   : > { %v1941_v36 = vpop.f32.mrb[68].mxu1  ;;  %v2054_v25 = vpop.f32.mrb[68].mxu0  ;;  %v2150_v38 = vmax.f32 %v2051_v50, 0.0  ;;  %v2310_v45 = vmax.f32 %v2309_v15, %v2148_v35  ;;  %4059 = vmatprep.subr.bf16.mxu1 %v10486_v19  ;;  %4223 = vmatprep.subr.bf16.mxu0 %v10489_v20  ;;  %v10499_v19 = vld [vmem:[%s13399_s29 + $0x268] ss:$16 sps:$4 sm:$0xff]  }
 0x4dc   : > { %v1942_v39 = vadd.f32 %v1941_v36, %v12256_v51  ;;  %v2055_v23 = vadd.f32 %v2054_v25, %v12269_v29  ;;  %v1943_v41 = vpop.f32.mrb[69].mxu1  ;;  %v2056_v42 = vpop.f32.mrb[69].mxu0 }
 0x4dd   : > { %v1944_v47 = vadd.f32 %v1943_v41, %v12273_v31  ;;  %v2057_v48 = vadd.f32 %v2056_v42, %v12277_v11  ;;  %v1945_v53 = vpop.f32.mrb[70].mxu1  ;;  %v2058_v54 = vpop.f32.mrb[70].mxu0  ;;  %v2340_v55 = vmax.f32 %v2339_v16, %v2150_v38  ;;  %4060 = vmatpush1.bf16.msra.mxu1 %v10484_v13  ;;  %4224 = vmatpush1.bf16.msra.mxu0 %v10487_v34  ;;  %v10504_v34 = vld [vmem:[%s13399_s29 + $0x284] ss:$16 sps:$4 sm:$0xff]  }
 0x4de   : > { %v2155_v56 = vmax.f32 %v1942_v39, 0.0  ;;  %v2157_v57 = vmax.f32 %v2055_v23, 0.0  ;;  %v1946_v59 = vadd.f32 %v1945_v53, %v12256_v51  ;;  %v1947_v60 = vpop.f32.mrb[71].mxu1  ;;  %v2060_v46 = vpop.f32.mrb[71].mxu0  ;;  %v2059_v3 = vadd.f32 %v2058_v54, %v12269_v29  ;;  %4061 = vmatprep.subr.bf16.mxu1 %v10492_v37  ;;  %4225 = vmatprep.subr.bf16.mxu0 %v10495_v40  ;;  %v10505_v53 = vld [vmem:[%s13399_s29 + $0x288] ss:$16 sps:$4 sm:$0xff]  }
 0x4df   : > { %v2156_v63 = vmax.f32 %v1944_v47, 0.0  ;;  %v2158_v0 = vmax.f32 %v2057_v48, 0.0  ;;  %v1948_v4 = vadd.f32 %v1947_v60, %v12273_v31  ;;  %v2061_v1 = vadd.f32 %v2060_v46, %v12277_v11  ;;  %v10502_v48 = vld [vmem:[%s13399_s29 + $0x280] ss:$16 sps:$4 sm:$0xff]  }
 0x4e0   : > { %v2296_v5 = vmax.f32 %v2295_v21, %v2155_v56  ;;  %v2326_v6 = vmax.f32 %v2325_v32, %v2157_v57  ;;  %v2163_v8 = vmax.f32 %v1946_v59, 0.0  ;;  %v2165_v30 = vmax.f32 %v2059_v3, 0.0  ;;  %v10507_v32 = vld [vmem:[%s13399_s29 + $0x28c] ss:$16 sps:$4 sm:$0xff]  }
 0x4e1   : > { %v2311_v2 = vmax.f32 %v2310_v45, %v2156_v63  ;;  %v2341_v10 = vmax.f32 %v2340_v55, %v2158_v0  ;;  %v2164_v33 = vmax.f32 %v1948_v4, 0.0  ;;  %v2166_v15 = vmax.f32 %v2061_v1, 0.0  ;;  %4062 = vmatpush1.bf16.msra.mxu1 %v10490_v61  ;;  %4226 = vmatpush1.bf16.msra.mxu0 %v10493_v62  ;;  %v10510_v62 = vld [vmem:[%s13399_s29 + $0x2a4] ss:$16 sps:$4 sm:$0xff]   ;;  %v10513_v63 = vld [vmem:[%s13399_s29 + $0x2ac] ss:$16 sps:$4 sm:$0xff]  }
 0x4e2   : > { %v2297_v12 = vmax.f32 %v2296_v5, %v2163_v8  ;;  %v2327_v16 = vmax.f32 %v2326_v6, %v2165_v30  ;;  %4063 = vmatprep.subr.bf16.mxu1 %v10498_v58  ;;  %4227 = vmatprep.subr.bf16.mxu0 %v10501_v9  ;;  %v10508_v9 = vld [vmem:[%s13399_s29 + $0x2a0] ss:$16 sps:$4 sm:$0xff]  }
 0x4e3   : > { %v2312_v17 = vmax.f32 %v2311_v2, %v2164_v33  ;;  %v1951_v20 = vpop.f32.mrb[72].mxu1  ;;  %v2064_v21 = vpop.f32.mrb[72].mxu0  ;;  %v2342_v49 = vmax.f32 %v2341_v10, %v2166_v15  ;;  %v10511_v2 = vld [vmem:[%s13399_s29 + $0x2a8] ss:$16 sps:$4 sm:$0xff]   ;;  %v10516_v15 = vld [vmem:[%s13399_s29 + $0x2c4] ss:$16 sps:$4 sm:$0xff]  }
 0x4e4   : > { %v1952_v50 = vadd.f32 %v1951_v20, %v12256_v51  ;;  %v2065_v13 = vadd.f32 %v2064_v21, %v12269_v29  ;;  %v1953_v35 = vpop.f32.mrb[73].mxu1  ;;  %v2066_v36 = vpop.f32.mrb[73].mxu0 }
 0x4e5   : > { %v1954_v25 = vadd.f32 %v1953_v35, %v12273_v31  ;;  %v2067_v37 = vadd.f32 %v2066_v36, %v12277_v11  ;;  %v1955_v38 = vpop.f32.mrb[74].mxu1  ;;  %v2068_v39 = vpop.f32.mrb[74].mxu0  ;;  %4064 = vmatpush1.bf16.msra.mxu1 %v10496_v18  ;;  %4228 = vmatpush1.bf16.msra.mxu0 %v10499_v19 }
 0x4e6   : > { %v2171_v23 = vmax.f32 %v1952_v50, 0.0  ;;  %v2173_v40 = vmax.f32 %v2065_v13, 0.0  ;;  %v1956_v41 = vadd.f32 %v1955_v38, %v12256_v51  ;;  %v2069_v42 = vadd.f32 %v2068_v39, %v12269_v29  ;;  %v1957_v45 = vpop.f32.mrb[75].mxu1  ;;  %v2070_v47 = vpop.f32.mrb[75].mxu0  ;;  %4065 = vmatprep.subr.bf16.mxu1 %v10504_v34  ;;  %4229 = vmatprep.subr.bf16.mxu0 %v10507_v32 }
 0x4e7   : > { %v2172_v54 = vmax.f32 %v1954_v25, 0.0  ;;  %v2174_v55 = vmax.f32 %v2067_v37, 0.0  ;;  %v1958_v56 = vadd.f32 %v1957_v45, %v12273_v31  ;;  %v2071_v57 = vadd.f32 %v2070_v47, %v12277_v11  ;;  %v10514_v25 = vld [vmem:[%s13399_s29 + $0x2c0] ss:$16 sps:$4 sm:$0xff]   ;;  %v10517_v37 = vld [vmem:[%s13399_s29 + $0x2c8] ss:$16 sps:$4 sm:$0xff]  }
 0x4e8   : > { %v2298_v59 = vmax.f32 %v2297_v12, %v2171_v23  ;;  %v2328_v60 = vmax.f32 %v2327_v16, %v2173_v40  ;;  %v2179_v46 = vmax.f32 %v1956_v41, 0.0  ;;  %v2181_v61 = vmax.f32 %v2069_v42, 0.0  ;;  %v10519_v16 = vld [vmem:[%s13399_s29 + $0x2cc] ss:$16 sps:$4 sm:$0xff]  }
 0x4e9   : > { %v2313_v0 = vmax.f32 %v2312_v17, %v2172_v54  ;;  %v2343_v3 = vmax.f32 %v2342_v49, %v2174_v55  ;;  %v2180_v4 = vmax.f32 %v1958_v56, 0.0  ;;  %v2182_v5 = vmax.f32 %v2071_v57, 0.0  ;;  %4066 = vmatpush1.bf16.msra.mxu1 %v10502_v48  ;;  %4230 = vmatpush1.bf16.msra.mxu0 %v10505_v53  ;;  %v10522_v48 = vld [vmem:[%s13399_s29 + $0x2e4] ss:$16 sps:$4 sm:$0xff]   ;;  %v10525_v53 = vld [vmem:[%s13399_s29 + $0x2ec] ss:$16 sps:$4 sm:$0xff]  }
 0x4ea   : > { %v2299_v6 = vmax.f32 %v2298_v59, %v2179_v46  ;;  %v2329_v8 = vmax.f32 %v2328_v60, %v2181_v61  ;;  %4067 = vmatprep.subr.bf16.mxu1 %v10510_v62  ;;  %4231 = vmatprep.subr.bf16.mxu0 %v10513_v63  ;;  %v10520_v62 = vld [vmem:[%s13399_s29 + $0x2e0] ss:$16 sps:$4 sm:$0xff]   ;;  %v10523_v63 = vld [vmem:[%s13399_s29 + $0x2e8] ss:$16 sps:$4 sm:$0xff]  }
 0x4eb   : > { %v2314_v1 = vmax.f32 %v2313_v0, %v2180_v4  ;;  %v2344_v58 = vmax.f32 %v2343_v3, %v2182_v5  ;;  %v1961_v10 = vpop.f32.mrb[76].mxu1  ;;  %v2074_v30 = vpop.f32.mrb[76].mxu0 }
 0x4ec   : > { %v1962_v33 = vadd.f32 %v1961_v10, %v12256_v51  ;;  %v2075_v12 = vadd.f32 %v2074_v30, %v12269_v29  ;;  %v1963_v17 = vpop.f32.mrb[77].mxu1  ;;  %v2076_v18 = vpop.f32.mrb[77].mxu0 }
 0x4ed   : > { %v1964_v19 = vadd.f32 %v1963_v17, %v12273_v31  ;;  %v2077_v20 = vadd.f32 %v2076_v18, %v12277_v11  ;;  %v1965_v21 = vpop.f32.mrb[78].mxu1  ;;  %v2078_v49 = vpop.f32.mrb[78].mxu0  ;;  %4068 = vmatpush1.bf16.msra.mxu1 %v10508_v9  ;;  %4232 = vmatpush1.bf16.msra.mxu0 %v10511_v2 }
 0x4ee   : > { %v2187_v50 = vmax.f32 %v1962_v33, 0.0  ;;  %v2189_v13 = vmax.f32 %v2075_v12, 0.0  ;;  %v1966_v34 = vadd.f32 %v1965_v21, %v12256_v51  ;;  %v2079_v32 = vadd.f32 %v2078_v49, %v12269_v29  ;;  %v1967_v35 = vpop.f32.mrb[79].mxu1  ;;  %v2080_v36 = vpop.f32.mrb[79].mxu0  ;;  %4069 = vmatprep.subr.bf16.mxu1 %v10516_v15  ;;  %4233 = vmatprep.subr.bf16.mxu0 %v10519_v16 }
 0x4ef   : > { %v2188_v38 = vmax.f32 %v1964_v19, 0.0  ;;  %v2190_v39 = vmax.f32 %v2077_v20, 0.0  ;;  %v1968_v23 = vadd.f32 %v1967_v35, %v12273_v31  ;;  %v2081_v40 = vadd.f32 %v2080_v36, %v12277_v11  ;;  %v10526_v19 = vld [vmem:[%s13399_s29 + $0x300] ss:$16 sps:$4 sm:$0xff]   ;;  %v10529_v20 = vld [vmem:[%s13399_s29 + $0x308] ss:$16 sps:$4 sm:$0xff]  }
 0x4f0   : > { %v2300_v41 = vmax.f32 %v2299_v6, %v2187_v50  ;;  %v2330_v42 = vmax.f32 %v2329_v8, %v2189_v13  ;;  %v2195_v45 = vmax.f32 %v1966_v34, 0.0  ;;  %v2197_v47 = vmax.f32 %v2079_v32, 0.0  ;;  %v10528_v6 = vld [vmem:[%s13399_s29 + $0x304] ss:$16 sps:$4 sm:$0xff]   ;;  %v10531_v8 = vld [vmem:[%s13399_s29 + $0x30c] ss:$16 sps:$4 sm:$0xff]  }
 0x4f1   : > { %v2315_v54 = vmax.f32 %v2314_v1, %v2188_v38  ;;  %v2345_v55 = vmax.f32 %v2344_v58, %v2190_v39  ;;  %v2196_v56 = vmax.f32 %v1968_v23, 0.0  ;;  %v2198_v57 = vmax.f32 %v2081_v40, 0.0  ;;  %4070 = vmatpush1.bf16.msra.mxu1 %v10514_v25  ;;  %4234 = vmatpush1.bf16.msra.mxu0 %v10517_v37  ;;  %v10534_v25 = vld [vmem:[%s13399_s29 + $0x324] ss:$16 sps:$4 sm:$0xff]   ;;  %v10537_v37 = vld [vmem:[%s13399_s29 + $0x32c] ss:$16 sps:$4 sm:$0xff]  }
 0x4f2   : > { %v2301_v59 = vmax.f32 %v2300_v41, %v2195_v45  ;;  %v2331_v60 = vmax.f32 %v2330_v42, %v2197_v47  ;;  %4071 = vmatprep.subr.bf16.mxu1 %v10522_v48  ;;  %4235 = vmatprep.subr.bf16.mxu0 %v10525_v53  ;;  %v10532_v48 = vld [vmem:[%s13399_s29 + $0x320] ss:$16 sps:$4 sm:$0xff]   ;;  %v10535_v53 = vld [vmem:[%s13399_s29 + $0x328] ss:$16 sps:$4 sm:$0xff]  }
 0x4f3   : > { %v2316_v46 = vmax.f32 %v2315_v54, %v2196_v56  ;;  %v2346_v61 = vmax.f32 %v2345_v55, %v2198_v57  ;;  %v1971_v0 = vpop.f32.mrb[80].mxu1  ;;  %v2084_v3 = vpop.f32.mrb[80].mxu0 }
 0x4f4   : > { %v1972_v4 = vadd.f32 %v1971_v0, %v12256_v51  ;;  %v2085_v5 = vadd.f32 %v2084_v3, %v12269_v29  ;;  %v1973_v1 = vpop.f32.mrb[81].mxu1  ;;  %v2086_v58 = vpop.f32.mrb[81].mxu0 }
 0x4f5   : > { %v1974_v9 = vadd.f32 %v1973_v1, %v12273_v31  ;;  %v2087_v2 = vadd.f32 %v2086_v58, %v12277_v11  ;;  %v1975_v10 = vpop.f32.mrb[82].mxu1  ;;  %v2088_v30 = vpop.f32.mrb[82].mxu0  ;;  %4072 = vmatpush1.bf16.msra.mxu1 %v10520_v62  ;;  %4236 = vmatpush1.bf16.msra.mxu0 %v10523_v63  ;;  %v2414_v62 = vrot.slane %v12265_v28, 4 }
 0x4f6   : > { %v2203_v33 = vmax.f32 %v1972_v4, 0.0  ;;  %v2205_v12 = vmax.f32 %v2085_v5, 0.0  ;;  %v1976_v15 = vadd.f32 %v1975_v10, %v12256_v51  ;;  %v2089_v16 = vadd.f32 %v2088_v30, %v12269_v29  ;;  %v1977_v17 = vpop.f32.mrb[83].mxu1  ;;  %v2090_v18 = vpop.f32.mrb[83].mxu0  ;;  %4073 = vmatprep.subr.bf16.mxu1 %v10528_v6  ;;  %4237 = vmatprep.subr.bf16.mxu0 %v10531_v8  ;;  %v10541_v10 = vld [vmem:[%s13399_s29 + $0x348] ss:$16 sps:$4 sm:$0xff]  }
 0x4f7   : > { %v2204_v21 = vmax.f32 %v1974_v9, 0.0  ;;  %v2206_v49 = vmax.f32 %v2087_v2, 0.0  ;;  %v1978_v50 = vadd.f32 %v1977_v17, %v12273_v31  ;;  %v2091_v13 = vadd.f32 %v2090_v18, %v12277_v11  ;;  %v10538_v2 = vld [vmem:[%s13399_s29 + $0x340] ss:$16 sps:$4 sm:$0xff]   ;;  %v10546_v18 = vld [vmem:[%s13399_s29 + $0x364] ss:$16 sps:$4 sm:$0xff]  }
 0x4f8   : > { %v2302_v34 = vmax.f32 %v2301_v59, %v2203_v33  ;;  %v2332_v32 = vmax.f32 %v2331_v60, %v2205_v12  ;;  %v2211_v35 = vmax.f32 %v1976_v15, 0.0  ;;  %v2213_v36 = vmax.f32 %v2089_v16, 0.0  ;;  %v10540_v59 = vld [vmem:[%s13399_s29 + $0x344] ss:$16 sps:$4 sm:$0xff]   ;;  %v10543_v60 = vld [vmem:[%s13399_s29 + $0x34c] ss:$16 sps:$4 sm:$0xff]  }
 0x4f9   : > { %v2317_v38 = vmax.f32 %v2316_v46, %v2204_v21  ;;  %v2347_v39 = vmax.f32 %v2346_v61, %v2206_v49  ;;  %v2212_v23 = vmax.f32 %v1978_v50, 0.0  ;;  %v2214_v40 = vmax.f32 %v2091_v13, 0.0  ;;  %4074 = vmatpush1.bf16.msra.mxu1 %v10526_v19  ;;  %4238 = vmatpush1.bf16.msra.mxu0 %v10529_v20  ;;  %v10549_v19 = vld [vmem:[%s13399_s29 + $0x36c] ss:$16 sps:$4 sm:$0xff]  }
 0x4fa   : > { %v2303_v41 = vmax.f32 %v2302_v34, %v2211_v35  ;;  %v2333_v42 = vmax.f32 %v2332_v32, %v2213_v36  ;;  %4075 = vmatprep.subr.bf16.mxu1 %v10534_v25  ;;  %4239 = vmatprep.subr.bf16.mxu0 %v10537_v37  ;;  %v10544_v32 = vld [vmem:[%s13399_s29 + $0x360] ss:$16 sps:$4 sm:$0xff]   ;;  %v10547_v35 = vld [vmem:[%s13399_s29 + $0x368] ss:$16 sps:$4 sm:$0xff]   ;;  %v2415_v36 = vmax.f32 %v12265_v28, %v2414_v62  ;;  %v10552_v25 = vld [vmem:[%s13399_s29 + $0x384] ss:$16 sps:$4 sm:$0xff]  }
 0x4fb   : > { %v2318_v45 = vmax.f32 %v2317_v38, %v2212_v23  ;;  %v2348_v47 = vmax.f32 %v2347_v39, %v2214_v40  ;;  %v1981_v54 = vpop.f32.mrb[84].mxu1  ;;  %v2094_v55 = vpop.f32.mrb[84].mxu0  ;;  %v10555_v37 = vld [vmem:[%s13399_s29 + $0x38c] ss:$16 sps:$4 sm:$0xff]   ;;  %v10550_v23 = vld [vmem:[%s13399_s29 + $0x380] ss:$16 sps:$4 sm:$0xff]  }
 0x4fc   : > { %v1982_v56 = vadd.f32 %v1981_v54, %v12256_v51  ;;  %v2095_v57 = vadd.f32 %v2094_v55, %v12269_v29  ;;  %v1983_v46 = vpop.f32.mrb[85].mxu1  ;;  %v2096_v61 = vpop.f32.mrb[85].mxu0  ;;  %v10553_v28 = vld [vmem:[%s13399_s29 + $0x388] ss:$16 sps:$4 sm:$0xff]   ;;  %v2416_v40 = vrot.slane %v2415_v36, 2 }
 0x4fd   : > { %v1984_v63 = vadd.f32 %v1983_v46, %v12273_v31  ;;  %v2097_v0 = vadd.f32 %v2096_v61, %v12277_v11  ;;  %v1985_v3 = vpop.f32.mrb[86].mxu1  ;;  %v2098_v4 = vpop.f32.mrb[86].mxu0  ;;  %4076 = vmatpush1.bf16.msra.mxu1 %v10532_v48  ;;  %4240 = vmatpush1.bf16.msra.mxu0 %v10535_v53  ;;  %v10559_v48 = vld [vmem:[%s13399_s29 + $0x3a8] ss:$16 sps:$4 sm:$0xff]   ;;  %v10564_v55 = vld [vmem:[%s13399_s29 + $0x3c4] ss:$16 sps:$4 sm:$0xff]  }
 0x4fe   : > { %v2219_v5 = vmax.f32 %v1982_v56, 0.0  ;;  %v2221_v6 = vmax.f32 %v2095_v57, 0.0  ;;  %v1986_v8 = vadd.f32 %v1985_v3, %v12256_v51  ;;  %v2099_v1 = vadd.f32 %v2098_v4, %v12269_v29  ;;  %v1987_v58 = vpop.f32.mrb[87].mxu1  ;;  %v2100_v9 = vpop.f32.mrb[87].mxu0  ;;  %4077 = vmatprep.subr.bf16.mxu1 %v10540_v59  ;;  %4241 = vmatprep.subr.bf16.mxu0 %v10543_v60  ;;  %v10567_v56 = vld [vmem:[%s13399_s29 + $0x3cc] ss:$16 sps:$4 sm:$0xff]  }
 0x4ff   : > { %v2220_v30 = vmax.f32 %v1984_v63, 0.0  ;;  %v2222_v33 = vmax.f32 %v2097_v0, 0.0  ;;  %v1988_v12 = vadd.f32 %v1987_v58, %v12273_v31  ;;  %v2101_v51 = vadd.f32 %v2100_v9, %v12277_v11  ;;  %v10562_v57 = vld [vmem:[%s13399_s29 + $0x3c0] ss:$16 sps:$4 sm:$0xff]   ;;  %v10565_v59 = vld [vmem:[%s13399_s29 + $0x3c8] ss:$16 sps:$4 sm:$0xff]  }
 0x500   : > { %v2304_v15 = vmax.f32 %v2303_v41, %v2219_v5  ;;  %v2334_v29 = vmax.f32 %v2333_v42, %v2221_v6  ;;  %v2227_v16 = vmax.f32 %v1986_v8, 0.0  ;;  %v2229_v17 = vmax.f32 %v2099_v1, 0.0  ;;  %v10558_v41 = vld [vmem:[%s13399_s29 + $0x3a4] ss:$16 sps:$4 sm:$0xff]   ;;  %v10561_v42 = vld [vmem:[%s13399_s29 + $0x3ac] ss:$16 sps:$4 sm:$0xff]  }
 0x501   : > { %v2319_v20 = vmax.f32 %v2318_v45, %v2220_v30  ;;  %v2349_v21 = vmax.f32 %v2348_v47, %v2222_v33  ;;  %v2228_v49 = vmax.f32 %v1988_v12, 0.0  ;;  %v2230_v31 = vmax.f32 %v2101_v51, 0.0  ;;  %4078 = vmatpush1.bf16.msra.mxu1 %v10538_v2  ;;  %4242 = vmatpush1.bf16.msra.mxu0 %v10541_v10  ;;  %v10556_v47 = vld [vmem:[%s13399_s29 + $0x3a0] ss:$16 sps:$4 sm:$0xff]   ;;  %v10570_v61 = vld [vmem:[%s13399_s29 + $0x3e4] ss:$16 sps:$4 sm:$0xff]  }
 0x502   : > { %v12476_v50 = vmax.f32 %v2304_v15, %v2227_v16  ;;  %v12478_v11 = vmax.f32 %v2334_v29, %v2229_v17  ;;  %4079 = vmatprep.subr.bf16.mxu1 %v10546_v18  ;;  %4243 = vmatprep.subr.bf16.mxu0 %v10549_v19  ;;  %v2417_v54 = vmax.f32 %v2415_v36, %v2416_v40  ;;  %v10573_v62 = vld [vmem:[%s13399_s29 + $0x3ec] ss:$16 sps:$4 sm:$0xff]   ;;  %v10568_v63 = vld [vmem:[%s13399_s29 + $0x3e0] ss:$16 sps:$4 sm:$0xff]   ;;  %v10571_v0 = vld [vmem:[%s13399_s29 + $0x3e8] ss:$16 sps:$4 sm:$0xff]  }
 0x503   : > { %v2320_v13 = vmax.f32 %v2319_v20, %v2228_v49  ;;  %v12480_v34 = vmax.f32 %v2349_v21, %v2230_v31  ;;  %v10576_v5 = vld [vmem:[%s13399_s29 + $0x404] ss:$16 sps:$4 sm:$0xff]   ;;  %v10579_v6 = vld [vmem:[%s13399_s29 + $0x40c] ss:$16 sps:$4 sm:$0xff]   ;;  %v10574_v8 = vld [vmem:[%s13399_s29 + $0x400] ss:$16 sps:$4 sm:$0xff]  }
 0x504   : > { %v2418_v46 = vrot.slane %v2417_v54, 1  ;;  %v10577_v9 = vld [vmem:[%s13399_s29 + $0x408] ss:$16 sps:$4 sm:$0xff]   ;;  %v10582_v2 = vld [vmem:[%s13399_s29 + $0x424] ss:$16 sps:$4 sm:$0xff]  }
 0x505   : > { %v2432_v38 = vrot.slane %v2320_v13, 4  ;;  %4080 = vmatpush1.bf16.msra.mxu1 %v10544_v32  ;;  %4244 = vmatpush1.bf16.msra.mxu0 %v10547_v35  ;;  %v10585_v10 = vld [vmem:[%s13399_s29 + $0x42c] ss:$16 sps:$4 sm:$0xff]   ;;  %v10580_v30 = vld [vmem:[%s13399_s29 + $0x420] ss:$16 sps:$4 sm:$0xff]  }
 0x506   : > { %4081 = vmatprep.subr.bf16.mxu1 %v10552_v25  ;;  %4245 = vmatprep.subr.bf16.mxu0 %v10555_v37  ;;  %v2419_v4 = vmax.f32 %v2417_v54, %v2418_v46  ;;  %v10583_v33 = vld [vmem:[%s13399_s29 + $0x428] ss:$16 sps:$4 sm:$0xff]   ;;  %v10588_v12 = vld [vmem:[%s13399_s29 + $0x444] ss:$16 sps:$4 sm:$0xff]   ;;  %v10591_v51 = vld [vmem:[%s13399_s29 + $0x44c] ss:$16 sps:$4 sm:$0xff]  }
 0x507   : > { %v2433_v39 = vmax.f32 %v2320_v13, %v2432_v38  ;;  %v10586_v15 = vld [vmem:[%s13399_s29 + $0x440] ss:$16 sps:$4 sm:$0xff]   ;;  %v10589_v29 = vld [vmem:[%s13399_s29 + $0x448] ss:$16 sps:$4 sm:$0xff]   ;;  %v10594_v16 = vld [vmem:[%s13399_s29 + $0x464] ss:$16 sps:$4 sm:$0xff]  }
 0x508   : > { %v2452_v58 = vpack.c.bf16 %v2419_v4, %v2419_v4  ;;  %v10597_v17 = vld [vmem:[%s13399_s29 + $0x46c] ss:$16 sps:$4 sm:$0xff]   ;;  %v10592_v18 = vld [vmem:[%s13399_s29 + $0x460] ss:$16 sps:$4 sm:$0xff]   ;;  %v10595_v19 = vld [vmem:[%s13399_s29 + $0x468] ss:$16 sps:$4 sm:$0xff]  }
 0x509   : > { %v2434_v45 = vrot.slane %v2433_v39, 2  ;;  %4082 = vmatpush1.bf16.msra.mxu1 %v10550_v23  ;;  %4246 = vmatpush1.bf16.msra.mxu0 %v10553_v28  ;;  %v10600_v20 = vld [vmem:[%s13399_s29 + $0x484] ss:$16 sps:$4 sm:$0xff]   ;;  %v10603_v21 = vld [vmem:[%s13399_s29 + $0x48c] ss:$16 sps:$4 sm:$0xff]   ;;  %v2426_v46 = vrot.slane %v12476_v50, 4 }
 0x50a   : > { %4083 = vmatprep.subr.bf16.mxu1 %v10558_v41  ;;  %4247 = vmatprep.subr.bf16.mxu0 %v10561_v42  ;;  %v10598_v49 = vld [vmem:[%s13399_s29 + $0x480] ss:$16 sps:$4 sm:$0xff]   ;;  %v10601_v31 = vld [vmem:[%s13399_s29 + $0x488] ss:$16 sps:$4 sm:$0xff]   ;;  %v10606_v13 = vld [vmem:[%s13399_s29 + $0x4a4] ss:$16 sps:$4 sm:$0xff]  }
 0x50b   : > { %v2435_v53 = vmax.f32 %v2433_v39, %v2434_v45  ;;  %v10609_v32 = vld [vmem:[%s13399_s29 + $0x4ac] ss:$16 sps:$4 sm:$0xff]   ;;  %v10604_v35 = vld [vmem:[%s13399_s29 + $0x4a0] ss:$16 sps:$4 sm:$0xff]   ;;  %v10607_v36 = vld [vmem:[%s13399_s29 + $0x4a8] ss:$16 sps:$4 sm:$0xff]   ;;  %v2427_v4 = vmax.f32 %v12476_v50, %v2426_v46 }
 0x50c   : > { %v10612_v25 = vld [vmem:[%s13399_s29 + $0x4c4] ss:$16 sps:$4 sm:$0xff]   ;;  %v10615_v37 = vld [vmem:[%s13399_s29 + $0x4cc] ss:$16 sps:$4 sm:$0xff]   ;;  %v10610_v38 = vld [vmem:[%s13399_s29 + $0x4c0] ss:$16 sps:$4 sm:$0xff]  }
 0x50d   : > { %4084 = vmatpush1.bf16.msra.mxu1 %v10556_v47  ;;  %4248 = vmatpush1.bf16.msra.mxu0 %v10559_v48  ;;  %v2436_v60 = vrot.slane %v2435_v53, 1  ;;  %v10613_v39 = vld [vmem:[%s13399_s29 + $0x4c8] ss:$16 sps:$4 sm:$0xff]   ;;  %v10618_v23 = vld [vmem:[%s13399_s29 + $0x4e4] ss:$16 sps:$4 sm:$0xff]  }
 0x50e   : > { %4085 = vmatprep.subr.bf16.mxu1 %v10564_v55  ;;  %4249 = vmatprep.subr.bf16.mxu0 %v10567_v56  ;;  %v10621_v28 = vld [vmem:[%s13399_s29 + $0x4ec] ss:$16 sps:$4 sm:$0xff]   ;;  %v10616_v40 = vld [vmem:[%s13399_s29 + $0x4e0] ss:$16 sps:$4 sm:$0xff]   ;;  %v10619_v41 = vld [vmem:[%s13399_s29 + $0x4e8] ss:$16 sps:$4 sm:$0xff]  }
 0x50f   : > { %v2437_v3 = vmax.f32 %v2435_v53, %v2436_v60  ;;  %v10624_v42 = vld [vmem:[%s13399_s29 + $0x504] ss:$16 sps:$4 sm:$0xff]   ;;  %v10627_v45 = vld [vmem:[%s13399_s29 + $0x50c] ss:$16 sps:$4 sm:$0xff]   ;;  %v10622_v47 = vld [vmem:[%s13399_s29 + $0x500] ss:$16 sps:$4 sm:$0xff]  }
 0x510   : > { %v10625_v48 = vld [vmem:[%s13399_s29 + $0x508] ss:$16 sps:$4 sm:$0xff]   ;;  %v10630_v53 = vld [vmem:[%s13399_s29 + $0x524] ss:$16 sps:$4 sm:$0xff]   ;;  %v10633_v54 = vld [vmem:[%s13399_s29 + $0x52c] ss:$16 sps:$4 sm:$0xff]  }
 0x511   : > { %4086 = vmatpush1.bf16.msra.mxu1 %v10562_v57  ;;  %4250 = vmatpush1.bf16.msra.mxu0 %v10565_v59  ;;  %v2455_v1 = vpack.c.bf16 %v2437_v3, %v2437_v3  ;;  %v10628_v55 = vld [vmem:[%s13399_s29 + $0x520] ss:$16 sps:$4 sm:$0xff]   ;;  %v10631_v56 = vld [vmem:[%s13399_s29 + $0x528] ss:$16 sps:$4 sm:$0xff]   ;;  %v10636_v57 = vld [vmem:[%s13399_s29 + $0x544] ss:$16 sps:$4 sm:$0xff]  }
 0x512   : > { %4087 = vmatprep.subr.bf16.mxu1 %v10570_v61  ;;  %4251 = vmatprep.subr.bf16.mxu0 %v10573_v62  ;;  %v10639_v59 = vld [vmem:[%s13399_s29 + $0x54c] ss:$16 sps:$4 sm:$0xff]   ;;  %v10634_v60 = vld [vmem:[%s13399_s29 + $0x540] ss:$16 sps:$4 sm:$0xff]   ;;  %v10637_v61 = vld [vmem:[%s13399_s29 + $0x548] ss:$16 sps:$4 sm:$0xff]  }
 0x513   : > { %v10642_v62 = vld [vmem:[%s13399_s29 + $0x564] ss:$16 sps:$4 sm:$0xff]   ;;  %v10640_v3 = vld [vmem:[%s13399_s29 + $0x560] ss:$16 sps:$4 sm:$0xff]   ;;  %v10697_v46 = vld [vmem:[%s13399_s29 + $0x688] ss:$16 sps:$4 sm:$0xff]  }
 0x514   : > { %v10646_v50 = vld [vmem:[%s13399_s29 + $0x580] ss:$16 sps:$4 sm:$0xff]  }
 0x515   : > { %4088 = vmatpush1.bf16.msra.mxu1 %v10568_v63  ;;  %4252 = vmatpush1.bf16.msra.mxu0 %v10571_v0  ;;  %v10645_v63 = vld [vmem:[%s13399_s29 + $0x56c] ss:$16 sps:$4 sm:$0xff]   ;;  %v2444_v0 = vrot.slane %v12480_v34, 4 }
 0x516   : > { %4098 = vmatprep.subr.bf16.mxu1 %v10576_v5  ;;  %4262 = vmatprep.subr.bf16.mxu0 %v10579_v6  ;;  %v10643_v5 = vld [vmem:[%s13399_s29 + $0x568] ss:$16 sps:$4 sm:$0xff]   ;;  %v10648_v6 = vld [vmem:[%s13399_s29 + $0x584] ss:$16 sps:$4 sm:$0xff]  }
 0x518   : > { %4090 = vmatmul.mubr.bf16.vlgmr.msra.gmra.mrb[88].mxu1 %v2452_v58  ;;  %4254 = vmatmul.mubr.bf16.vlgmr.msra.gmra.mrb[88].mxu0 %v2452_v58  ;;  %v2428_v58 = vrot.slane %v2427_v4, 2 }
 0x519   : > { %4099 = vmatpush1.bf16.msra.mxu1 %v10574_v8  ;;  %4130 = vmatprep.mubr.bf16.mxu1 %v2455_v1  ;;  %v10651_v8 = vld [vmem:[%s13399_s29 + $0x58c] ss:$16 sps:$4 sm:$0xff]  }
 0x51a   : > { %4263 = vmatpush1.bf16.msra.mxu0 %v10577_v9  ;;  %4294 = vmatprep.mubr.bf16.mxu0 %v2455_v1  ;;  %v2445_v1 = vmax.f32 %v12480_v34, %v2444_v0  ;;  %v10649_v9 = vld [vmem:[%s13399_s29 + $0x588] ss:$16 sps:$4 sm:$0xff]   ;;  %v10657_v34 = vld [vmem:[%s13399_s29 + $0x5ac] ss:$16 sps:$4 sm:$0xff]  }
 0x51b   : > { %4100 = vmatprep.subr.bf16.mxu1 %v10582_v2  ;;  %4264 = vmatprep.subr.bf16.mxu0 %v10585_v10  ;;  %v10654_v2 = vld [vmem:[%s13399_s29 + $0x5a4] ss:$16 sps:$4 sm:$0xff]   ;;  %v10703_v0 = vld [vmem:[%s13399_s29 + $0x6a8] ss:$16 sps:$4 sm:$0xff]  }
 0x51c   : > { %v2446_v10 = vrot.slane %v2445_v1, 2 }
 0x51d   : > { %4101 = vmatpush1.bf16.msra.mxu1 %v10580_v30  ;;  %v10652_v30 = vld [vmem:[%s13399_s29 + $0x5a0] ss:$16 sps:$4 sm:$0xff]  }
 0x51e   : > { %4265 = vmatpush1.bf16.msra.mxu0 %v10583_v33  ;;  %4102 = vmatprep.subr.bf16.mxu1 %v10588_v12  ;;  %v2429_v33 = vmax.f32 %v2427_v4, %v2428_v58  ;;  %v10655_v12 = vld [vmem:[%s13399_s29 + $0x5a8] ss:$16 sps:$4 sm:$0xff]   ;;  %v10711_v4 = vld [vmem:[%s13399_s29 + $0x6cc] ss:$16 sps:$4 sm:$0xff]  }
 0x51f   : > { %4266 = vmatprep.subr.bf16.mxu0 %v10591_v51  ;;  %v10660_v51 = vld [vmem:[%s13399_s29 + $0x5c4] ss:$16 sps:$4 sm:$0xff]   ;;  %v10715_v58 = vld [vmem:[%s13399_s29 + $0x6e8] ss:$16 sps:$4 sm:$0xff]  }
 0x521   : > { %4103 = vmatpush1.bf16.msra.mxu1 %v10586_v15  ;;  %v10663_v15 = vld [vmem:[%s13399_s29 + $0x5cc] ss:$16 sps:$4 sm:$0xff]  }
 0x522   : > { %4267 = vmatpush1.bf16.msra.mxu0 %v10589_v29  ;;  %4104 = vmatprep.subr.bf16.mxu1 %v10594_v16  ;;  %v2447_v29 = vmax.f32 %v2445_v1, %v2446_v10  ;;  %v10658_v16 = vld [vmem:[%s13399_s29 + $0x5c0] ss:$16 sps:$4 sm:$0xff]   ;;  %v10717_v1 = vld [vmem:[%s13399_s29 + $0x6ec] ss:$16 sps:$4 sm:$0xff]   ;;  %v10721_v10 = vld [vmem:[%s13399_s29 + $0x708] ss:$16 sps:$4 sm:$0xff]  }
 0x523   : > { %4268 = vmatprep.subr.bf16.mxu0 %v10597_v17  ;;  %v2430_v17 = vrot.slane %v2429_v33, 1 }
 0x525   : > { %4105 = vmatpush1.bf16.msra.mxu1 %v10592_v18  ;;  %v10661_v18 = vld [vmem:[%s13399_s29 + $0x5c8] ss:$16 sps:$4 sm:$0xff]  }
 0x526   : > { %4269 = vmatpush1.bf16.msra.mxu0 %v10595_v19  ;;  %4106 = vmatprep.subr.bf16.mxu1 %v10600_v20  ;;  %v10666_v19 = vld [vmem:[%s13399_s29 + $0x5e4] ss:$16 sps:$4 sm:$0xff]   ;;  %v10669_v20 = vld [vmem:[%s13399_s29 + $0x5ec] ss:$16 sps:$4 sm:$0xff]  }
 0x527   : > { %4270 = vmatprep.subr.bf16.mxu0 %v10603_v21  ;;  %v2448_v21 = vrot.slane %v2447_v29, 1 }
 0x529   : > { %4107 = vmatpush1.bf16.msra.mxu1 %v10598_v49  ;;  %v10664_v49 = vld [vmem:[%s13399_s29 + $0x5e0] ss:$16 sps:$4 sm:$0xff]  }
 0x52a   : > { %4271 = vmatpush1.bf16.msra.mxu0 %v10601_v31  ;;  %4108 = vmatprep.subr.bf16.mxu1 %v10606_v13  ;;  %v10667_v31 = vld [vmem:[%s13399_s29 + $0x5e8] ss:$16 sps:$4 sm:$0xff]   ;;  %v2431_v13 = vmax.f32 %v2429_v33, %v2430_v17  ;;  %v10729_v33 = vld [vmem:[%s13399_s29 + $0x72c] ss:$16 sps:$4 sm:$0xff]   ;;  %v2438_v17 = vrot.slane %v12478_v11, 4 }
 0x52b   : > { %4272 = vmatprep.subr.bf16.mxu0 %v10609_v32  ;;  %v10672_v32 = vld [vmem:[%s13399_s29 + $0x604] ss:$16 sps:$4 sm:$0xff]  }
 0x52d   : > { %4109 = vmatpush1.bf16.msra.mxu1 %v10604_v35  ;;  %v10675_v35 = vld [vmem:[%s13399_s29 + $0x60c] ss:$16 sps:$4 sm:$0xff]  }
 0x52e   : > { %4273 = vmatpush1.bf16.msra.mxu0 %v10607_v36  ;;  %4110 = vmatprep.subr.bf16.mxu1 %v10612_v25  ;;  %v2449_v36 = vmax.f32 %v2447_v29, %v2448_v21  ;;  %v10670_v25 = vld [vmem:[%s13399_s29 + $0x600] ss:$16 sps:$4 sm:$0xff]   ;;  %v10735_v29 = vld [vmem:[%s13399_s29 + $0x74c] ss:$16 sps:$4 sm:$0xff]  }
 0x52f   : > { %4274 = vmatprep.subr.bf16.mxu0 %v10615_v37  ;;  %v2454_v37 = vpack.c.bf16 %v2431_v13, %v2431_v13  ;;  %v10736_v21 = vld [vmem:[%s13399_s29 + $0x760] ss:$16 sps:$4 sm:$0xff]   ;;  %v10744_v13 = vld [vmem:[%s13399_s29 + $0x784] ss:$16 sps:$4 sm:$0xff]  }
 0x531   : > { %4111 = vmatpush1.bf16.msra.mxu1 %v10610_v38  ;;  %v10673_v38 = vld [vmem:[%s13399_s29 + $0x608] ss:$16 sps:$4 sm:$0xff]  }
 0x532   : > { %4275 = vmatpush1.bf16.msra.mxu0 %v10613_v39  ;;  %4112 = vmatprep.subr.bf16.mxu1 %v10618_v23  ;;  %v10678_v39 = vld [vmem:[%s13399_s29 + $0x624] ss:$16 sps:$4 sm:$0xff]   ;;  %v2457_v23 = vpack.c.bf16 %v2449_v36, %v2449_v36  ;;  %v10745_v36 = vld [vmem:[%s13399_s29 + $0x788] ss:$16 sps:$4 sm:$0xff]  }
 0x533   : > { %4276 = vmatprep.subr.bf16.mxu0 %v10621_v28  ;;  %v10681_v28 = vld [vmem:[%s13399_s29 + $0x62c] ss:$16 sps:$4 sm:$0xff]  }
 0x535   : > { %4113 = vmatpush1.bf16.msra.mxu1 %v10616_v40  ;;  %v10676_v40 = vld [vmem:[%s13399_s29 + $0x620] ss:$16 sps:$4 sm:$0xff]  }
 0x536   : > { %4277 = vmatpush1.bf16.msra.mxu0 %v10619_v41  ;;  %4114 = vmatprep.subr.bf16.mxu1 %v10624_v42  ;;  %v10679_v41 = vld [vmem:[%s13399_s29 + $0x628] ss:$16 sps:$4 sm:$0xff]   ;;  %v10684_v42 = vld [vmem:[%s13399_s29 + $0x644] ss:$16 sps:$4 sm:$0xff]  }
 0x537   : > { %4278 = vmatprep.subr.bf16.mxu0 %v10627_v45  ;;  %v10687_v45 = vld [vmem:[%s13399_s29 + $0x64c] ss:$16 sps:$4 sm:$0xff]  }
 0x539   : > { %4115 = vmatpush1.bf16.msra.mxu1 %v10622_v47  ;;  %v10682_v47 = vld [vmem:[%s13399_s29 + $0x640] ss:$16 sps:$4 sm:$0xff]  }
 0x53a   : > { %4279 = vmatpush1.bf16.msra.mxu0 %v10625_v48  ;;  %4116 = vmatprep.subr.bf16.mxu1 %v10630_v53  ;;  %v10685_v48 = vld [vmem:[%s13399_s29 + $0x648] ss:$16 sps:$4 sm:$0xff]   ;;  %v10690_v53 = vld [vmem:[%s13399_s29 + $0x664] ss:$16 sps:$4 sm:$0xff]  }
 0x53b   : > { %4280 = vmatprep.subr.bf16.mxu0 %v10633_v54  ;;  %v10693_v54 = vld [vmem:[%s13399_s29 + $0x66c] ss:$16 sps:$4 sm:$0xff]  }
 0x53d   : > { %4117 = vmatpush1.bf16.msra.mxu1 %v10628_v55  ;;  %v10688_v55 = vld [vmem:[%s13399_s29 + $0x660] ss:$16 sps:$4 sm:$0xff]  }
 0x53e   : > { %4281 = vmatpush1.bf16.msra.mxu0 %v10631_v56  ;;  %4118 = vmatprep.subr.bf16.mxu1 %v10636_v57  ;;  %v10691_v56 = vld [vmem:[%s13399_s29 + $0x668] ss:$16 sps:$4 sm:$0xff]   ;;  %v10696_v57 = vld [vmem:[%s13399_s29 + $0x684] ss:$16 sps:$4 sm:$0xff]  }
 0x53f   : > { %4282 = vmatprep.subr.bf16.mxu0 %v10639_v59  ;;  %v10699_v59 = vld [vmem:[%s13399_s29 + $0x68c] ss:$16 sps:$4 sm:$0xff]  }
 0x541   : > { %4119 = vmatpush1.bf16.msra.mxu1 %v10634_v60  ;;  %v10694_v60 = vld [vmem:[%s13399_s29 + $0x680] ss:$16 sps:$4 sm:$0xff]  }
 0x542   : > { %4283 = vmatpush1.bf16.msra.mxu0 %v10637_v61  ;;  %4120 = vmatprep.subr.bf16.mxu1 %v10642_v62  ;;  %v10702_v61 = vld [vmem:[%s13399_s29 + $0x6a4] ss:$16 sps:$4 sm:$0xff]   ;;  %v10705_v62 = vld [vmem:[%s13399_s29 + $0x6ac] ss:$16 sps:$4 sm:$0xff]  }
 0x543   : > { %4284 = vmatprep.subr.bf16.mxu0 %v10645_v63  ;;  %v10700_v63 = vld [vmem:[%s13399_s29 + $0x6a0] ss:$16 sps:$4 sm:$0xff]  }
 0x545   : > { %4121 = vmatpush1.bf16.msra.mxu1 %v10640_v3  ;;  %v10708_v3 = vld [vmem:[%s13399_s29 + $0x6c4] ss:$16 sps:$4 sm:$0xff]  }
 0x546   : > { %4285 = vmatpush1.bf16.msra.mxu0 %v10643_v5  ;;  %4122 = vmatprep.subr.bf16.mxu1 %v10648_v6  ;;  %v10706_v5 = vld [vmem:[%s13399_s29 + $0x6c0] ss:$16 sps:$4 sm:$0xff]   ;;  %v10709_v6 = vld [vmem:[%s13399_s29 + $0x6c8] ss:$16 sps:$4 sm:$0xff]  }
 0x547   : > { %4286 = vmatprep.subr.bf16.mxu0 %v10651_v8  ;;  %v10714_v8 = vld [vmem:[%s13399_s29 + $0x6e4] ss:$16 sps:$4 sm:$0xff]  }
 0x549   : > { %4123 = vmatpush1.bf16.msra.mxu1 %v10646_v50  ;;  %v10712_v50 = vld [vmem:[%s13399_s29 + $0x6e0] ss:$16 sps:$4 sm:$0xff]  }
 0x54a   : > { %4287 = vmatpush1.bf16.msra.mxu0 %v10649_v9  ;;  %4124 = vmatprep.subr.bf16.mxu1 %v10654_v2  ;;  %v10720_v9 = vld [vmem:[%s13399_s29 + $0x704] ss:$16 sps:$4 sm:$0xff]   ;;  %v10723_v2 = vld [vmem:[%s13399_s29 + $0x70c] ss:$16 sps:$4 sm:$0xff]  }
 0x54b   : > { %4288 = vmatprep.subr.bf16.mxu0 %v10657_v34  ;;  %v10718_v34 = vld [vmem:[%s13399_s29 + $0x700] ss:$16 sps:$4 sm:$0xff]  }
 0x54d   : > { %4125 = vmatpush1.bf16.msra.mxu1 %v10652_v30  ;;  %v10726_v30 = vld [vmem:[%s13399_s29 + $0x724] ss:$16 sps:$4 sm:$0xff]  }
 0x54e   : > { %4289 = vmatpush1.bf16.msra.mxu0 %v10655_v12  ;;  %4126 = vmatprep.subr.bf16.mxu1 %v10660_v51  ;;  %v10724_v12 = vld [vmem:[%s13399_s29 + $0x720] ss:$16 sps:$4 sm:$0xff]   ;;  %v10727_v51 = vld [vmem:[%s13399_s29 + $0x728] ss:$16 sps:$4 sm:$0xff]  }
 0x54f   : > { %4290 = vmatprep.subr.bf16.mxu0 %v10663_v15  ;;  %v10732_v15 = vld [vmem:[%s13399_s29 + $0x744] ss:$16 sps:$4 sm:$0xff]  }
 0x551   : > { %4127 = vmatpush1.bf16.msra.mxu1 %v10658_v16  ;;  %v10730_v16 = vld [vmem:[%s13399_s29 + $0x740] ss:$16 sps:$4 sm:$0xff]  }
 0x552   : > { %4291 = vmatpush1.bf16.msra.mxu0 %v10661_v18  ;;  %4128 = vmatprep.subr.bf16.mxu1 %v10666_v19  ;;  %v10733_v18 = vld [vmem:[%s13399_s29 + $0x748] ss:$16 sps:$4 sm:$0xff]   ;;  %v10738_v19 = vld [vmem:[%s13399_s29 + $0x764] ss:$16 sps:$4 sm:$0xff]  }
 0x553   : > { %4292 = vmatprep.subr.bf16.mxu0 %v10669_v20  ;;  %v10741_v20 = vld [vmem:[%s13399_s29 + $0x76c] ss:$16 sps:$4 sm:$0xff]  }
 0x555   : > { %4129 = vmatpush1.bf16.msra.mxu1 %v10664_v49  ;;  %v2439_v49 = vmax.f32 %v12478_v11, %v2438_v17  ;;  %v10742_v11 = vld [vmem:[%s13399_s29 + $0x780] ss:$16 sps:$4 sm:$0xff]  }
 0x556   : > { %4293 = vmatpush1.bf16.msra.mxu0 %v10667_v31  ;;  %4139 = vmatprep.subr.bf16.mxu1 %v10672_v32  ;;  %v10739_v31 = vld [vmem:[%s13399_s29 + $0x768] ss:$16 sps:$4 sm:$0xff]   ;;  %v10747_v32 = vld [vmem:[%s13399_s29 + $0x78c] ss:$16 sps:$4 sm:$0xff]  }
 0x557   : > { %4303 = vmatprep.subr.bf16.mxu0 %v10675_v35  ;;  %v2440_v35 = vrot.slane %v2439_v49, 2  ;;  %v10805_v17 = vld [vmem:[%s13400_s30 + $0xd0] ss:$8 sps:$4 sm:$0xff]  }
 0x558   : > { %4131 = vmatmul.mubr.bf16.vlgmr.msra.gmra.mrb[88].mxu1 %v2454_v37 }
 0x559   : > { %4295 = vmatmul.mubr.bf16.vlgmr.msra.gmra.mrb[88].mxu0 %v2454_v37  ;;  %4140 = vmatpush1.bf16.msra.mxu1 %v10670_v25  ;;  %v10750_v25 = vld [vmem:[%s13399_s29 + $0x7a4] ss:$16 sps:$4 sm:$0xff]   ;;  %v10753_v37 = vld [vmem:[%s13399_s29 + $0x7ac] ss:$16 sps:$4 sm:$0xff]  }
 0x55a   : > { %4171 = vmatprep.mubr.bf16.mxu1 %v2457_v23  ;;  %4304 = vmatpush1.bf16.msra.mxu0 %v10673_v38  ;;  %v10748_v38 = vld [vmem:[%s13399_s29 + $0x7a0] ss:$16 sps:$4 sm:$0xff]  }
 0x55b   : > { %4335 = vmatprep.mubr.bf16.mxu0 %v2457_v23  ;;  %4141 = vmatprep.subr.bf16.mxu1 %v10678_v39  ;;  %v2441_v39 = vmax.f32 %v2439_v49, %v2440_v35  ;;  %v10751_v23 = vld [vmem:[%s13399_s29 + $0x7a8] ss:$16 sps:$4 sm:$0xff]   ;;  %v10816_v49 = vld [vmem:[%s13400_s30 + $0x104] ss:$8 sps:$4 sm:$0xff]  }
 0x55c   : > { %4305 = vmatprep.subr.bf16.mxu0 %v10681_v28  ;;  %v10756_v28 = vld [vmem:[%s13399_s29 + $0x7c4] ss:$16 sps:$4 sm:$0xff]  }
 0x55d   : > { %4142 = vmatpush1.bf16.msra.mxu1 %v10676_v40  ;;  %v10759_v40 = vld [vmem:[%s13399_s29 + $0x7cc] ss:$16 sps:$4 sm:$0xff]   ;;  %v4866_v35 = vld [vmem:[#allocation16 + $0x100] sm:$0xff] }
 0x55e   : > { %4306 = vmatpush1.bf16.msra.mxu0 %v10679_v41  ;;  %4143 = vmatprep.subr.bf16.mxu1 %v10684_v42  ;;  %v10754_v41 = vld [vmem:[%s13399_s29 + $0x7c0] ss:$16 sps:$4 sm:$0xff]   ;;  %v2442_v42 = vrot.slane %v2441_v39, 1 }
 0x55f   : > { %4307 = vmatprep.subr.bf16.mxu0 %v10687_v45  ;;  %v10757_v45 = vld [vmem:[%s13399_s29 + $0x7c8] ss:$16 sps:$4 sm:$0xff]  }
 0x561   : > { %4144 = vmatpush1.bf16.msra.mxu1 %v10682_v47  ;;  %v10762_v47 = vld [vmem:[%s13399_s29 + $0x7e4] ss:$16 sps:$4 sm:$0xff]  }
 0x562   : > { %4308 = vmatpush1.bf16.msra.mxu0 %v10685_v48  ;;  %4145 = vmatprep.subr.bf16.mxu1 %v10690_v53  ;;  %v10765_v48 = vld [vmem:[%s13399_s29 + $0x7ec] ss:$16 sps:$4 sm:$0xff]   ;;  %v10760_v53 = vld [vmem:[%s13399_s29 + $0x7e0] ss:$16 sps:$4 sm:$0xff]  }
 0x563   : > { %4309 = vmatprep.subr.bf16.mxu0 %v10693_v54  ;;  %v10763_v54 = vld [vmem:[%s13399_s29 + $0x7e8] ss:$16 sps:$4 sm:$0xff]  }
 0x565   : > { %4146 = vmatpush1.bf16.msra.mxu1 %v10688_v55  ;;  %v2443_v55 = vmax.f32 %v2441_v39, %v2442_v42  ;;  %v4914_v39 = vld [vmem:[#allocation16 + $0x280] sm:$0xff] }
 0x566   : > { %4310 = vmatpush1.bf16.msra.mxu0 %v10691_v56  ;;  %4147 = vmatprep.subr.bf16.mxu1 %v10696_v57  ;;  %v10768_v56 = vld [vmem:[%s13400_s30 + $0x4] ss:$8 sps:$4 sm:$0xff]   ;;  %v10766_v57 = vld [vmem:[%s13400_s30] ss:$8 sps:$4 sm:$0xff]  }
 0x567   : > { %4311 = vmatprep.subr.bf16.mxu0 %v10699_v59  ;;  %v2456_v59 = vpack.c.bf16 %v2443_v55, %v2443_v55  ;;  %v4994_v55 = vld [vmem:[#allocation16 + $0x500] sm:$0xff] }
 0x569   : > { %4148 = vmatpush1.bf16.msra.mxu1 %v10694_v60  ;;  %v10771_v60 = vld [vmem:[%s13400_s30 + $0x14] ss:$8 sps:$4 sm:$0xff]  }
 0x56a   : > { %4312 = vmatpush1.bf16.msra.mxu0 %v10697_v46  ;;  %4149 = vmatprep.subr.bf16.mxu1 %v10702_v61  ;;  %v10769_v46 = vld [vmem:[%s13400_s30 + $0x10] ss:$8 sps:$4 sm:$0xff]   ;;  %v10774_v61 = vld [vmem:[%s13400_s30 + $0x24] ss:$8 sps:$4 sm:$0xff]  }
 0x56b   : > { %4313 = vmatprep.subr.bf16.mxu0 %v10705_v62  ;;  %v10772_v62 = vld [vmem:[%s13400_s30 + $0x20] ss:$8 sps:$4 sm:$0xff]  }
 0x56d   : > { %4150 = vmatpush1.bf16.msra.mxu1 %v10700_v63  ;;  %v10777_v63 = vld [vmem:[%s13400_s30 + $0x34] ss:$8 sps:$4 sm:$0xff]  }
 0x56e   : > { %4314 = vmatpush1.bf16.msra.mxu0 %v10703_v0  ;;  %4151 = vmatprep.subr.bf16.mxu1 %v10708_v3  ;;  %v10775_v0 = vld [vmem:[%s13400_s30 + $0x30] ss:$8 sps:$4 sm:$0xff]   ;;  %v10780_v3 = vld [vmem:[%s13400_s30 + $0x44] ss:$8 sps:$4 sm:$0xff]  }
 0x56f   : > { %4315 = vmatprep.subr.bf16.mxu0 %v10711_v4  ;;  %v10778_v4 = vld [vmem:[%s13400_s30 + $0x40] ss:$8 sps:$4 sm:$0xff]  }
 0x571   : > { %4152 = vmatpush1.bf16.msra.mxu1 %v10706_v5  ;;  %v10783_v5 = vld [vmem:[%s13400_s30 + $0x54] ss:$8 sps:$4 sm:$0xff]  }
 0x572   : > { %4316 = vmatpush1.bf16.msra.mxu0 %v10709_v6  ;;  %4153 = vmatprep.subr.bf16.mxu1 %v10714_v8  ;;  %v10781_v6 = vld [vmem:[%s13400_s30 + $0x50] ss:$8 sps:$4 sm:$0xff]   ;;  %v10786_v8 = vld [vmem:[%s13400_s30 + $0x64] ss:$8 sps:$4 sm:$0xff]  }
 0x573   : > { %4317 = vmatprep.subr.bf16.mxu0 %v10717_v1  ;;  %v10784_v1 = vld [vmem:[%s13400_s30 + $0x60] ss:$8 sps:$4 sm:$0xff]  }
 0x575   : > { %4154 = vmatpush1.bf16.msra.mxu1 %v10712_v50  ;;  %v10789_v50 = vld [vmem:[%s13400_s30 + $0x74] ss:$8 sps:$4 sm:$0xff]  }
 0x576   : > { %4318 = vmatpush1.bf16.msra.mxu0 %v10715_v58  ;;  %4155 = vmatprep.subr.bf16.mxu1 %v10720_v9  ;;  %v10787_v58 = vld [vmem:[%s13400_s30 + $0x70] ss:$8 sps:$4 sm:$0xff]   ;;  %v10792_v9 = vld [vmem:[%s13400_s30 + $0x84] ss:$8 sps:$4 sm:$0xff]  }
 0x577   : > { %4319 = vmatprep.subr.bf16.mxu0 %v10723_v2  ;;  %v10790_v2 = vld [vmem:[%s13400_s30 + $0x80] ss:$8 sps:$4 sm:$0xff]  }
 0x579   : > { %4156 = vmatpush1.bf16.msra.mxu1 %v10718_v34  ;;  %v10795_v34 = vld [vmem:[%s13400_s30 + $0x94] ss:$8 sps:$4 sm:$0xff]  }
 0x57a   : > { %4320 = vmatpush1.bf16.msra.mxu0 %v10721_v10  ;;  %4157 = vmatprep.subr.bf16.mxu1 %v10726_v30  ;;  %v10793_v10 = vld [vmem:[%s13400_s30 + $0x90] ss:$8 sps:$4 sm:$0xff]   ;;  %v10798_v30 = vld [vmem:[%s13400_s30 + $0xa4] ss:$8 sps:$4 sm:$0xff]  }
 0x57b   : > { %4321 = vmatprep.subr.bf16.mxu0 %v10729_v33  ;;  %v10796_v33 = vld [vmem:[%s13400_s30 + $0xa0] ss:$8 sps:$4 sm:$0xff]  }
 0x57d   : > { %4158 = vmatpush1.bf16.msra.mxu1 %v10724_v12  ;;  %v10801_v12 = vld [vmem:[%s13400_s30 + $0xb4] ss:$8 sps:$4 sm:$0xff]  }
 0x57e   : > { %4322 = vmatpush1.bf16.msra.mxu0 %v10727_v51  ;;  %4159 = vmatprep.subr.bf16.mxu1 %v10732_v15  ;;  %v10799_v51 = vld [vmem:[%s13400_s30 + $0xb0] ss:$8 sps:$4 sm:$0xff]   ;;  %v10804_v15 = vld [vmem:[%s13400_s30 + $0xc4] ss:$8 sps:$4 sm:$0xff]  }
 0x57f   : > { %4323 = vmatprep.subr.bf16.mxu0 %v10735_v29  ;;  %v10802_v29 = vld [vmem:[%s13400_s30 + $0xc0] ss:$8 sps:$4 sm:$0xff]  }
 0x581   : > { %4160 = vmatpush1.bf16.msra.mxu1 %v10730_v16  ;;  %v10807_v16 = vld [vmem:[%s13400_s30 + $0xd4] ss:$8 sps:$4 sm:$0xff]  }
 0x582   : > { %4324 = vmatpush1.bf16.msra.mxu0 %v10733_v18  ;;  %4161 = vmatprep.subr.bf16.mxu1 %v10738_v19  ;;  %v10810_v18 = vld [vmem:[%s13400_s30 + $0xe4] ss:$8 sps:$4 sm:$0xff]   ;;  %v10808_v19 = vld [vmem:[%s13400_s30 + $0xe0] ss:$8 sps:$4 sm:$0xff]  }
 0x583   : > { %4325 = vmatprep.subr.bf16.mxu0 %v10741_v20  ;;  %v10813_v20 = vld [vmem:[%s13400_s30 + $0xf4] ss:$8 sps:$4 sm:$0xff]  }
 0x585   : > { %4162 = vmatpush1.bf16.msra.mxu1 %v10736_v21  ;;  %v10811_v21 = vld [vmem:[%s13400_s30 + $0xf0] ss:$8 sps:$4 sm:$0xff]  }
 0x586   : > { %4326 = vmatpush1.bf16.msra.mxu0 %v10739_v31  ;;  %4163 = vmatprep.subr.bf16.mxu1 %v10744_v13  ;;  %v4834_v31 = vld [vmem:[#allocation16] sm:$0xff] }
 0x587   : > { %4327 = vmatprep.subr.bf16.mxu0 %v10747_v32  ;;  %v4850_v13 = vld [vmem:[#allocation16 + $0x80] sm:$0xff] }
 0x588   : > { %v9592_v32 = vcombine.low %v4834_v31, %v4850_v13 }
 0x589   : > { %4164 = vmatpush1.bf16.msra.mxu1 %v10742_v11  ;;  %v9593_v11 = vcombine.high %v4834_v31, %v4850_v13 }
 0x58a   : > { %4328 = vmatpush1.bf16.msra.mxu0 %v10745_v36  ;;  %4165 = vmatprep.subr.bf16.mxu1 %v10750_v25  ;;  %v4882_v36 = vld [vmem:[#allocation16 + $0x180] sm:$0xff] }
 0x58b   : > { %4329 = vmatprep.subr.bf16.mxu0 %v10753_v37  ;;  %v9625_v25 = vcombine.high %v4866_v35, %v4882_v36  ;;  %v9624_v37 = vcombine.low %v4866_v35, %v4882_v36 }
 0x58d   : > { %4166 = vmatpush1.bf16.msra.mxu1 %v10748_v38  ;;  %v4898_v38 = vld [vmem:[#allocation16 + $0x200] sm:$0xff] }
 0x58e   : > { %4330 = vmatpush1.bf16.msra.mxu0 %v10751_v23  ;;  %4167 = vmatprep.subr.bf16.mxu1 %v10756_v28  ;;  %v9657_v23 = vcombine.high %v4898_v38, %v4914_v39  ;;  %v9656_v28 = vcombine.low %v4898_v38, %v4914_v39 }
 0x58f   : > { %4331 = vmatprep.subr.bf16.mxu0 %v10759_v40  ;;  %v4930_v40 = vld [vmem:[#allocation16 + $0x300] sm:$0xff] }
 0x591   : > { %4168 = vmatpush1.bf16.msra.mxu1 %v10754_v41  ;;  %v4946_v41 = vld [vmem:[#allocation16 + $0x380] sm:$0xff] }
 0x592   : > { %4332 = vmatpush1.bf16.msra.mxu0 %v10757_v45  ;;  %4169 = vmatprep.subr.bf16.mxu1 %v10762_v47  ;;  %v9689_v42 = vcombine.high %v4930_v40, %v4946_v41  ;;  %v9688_v45 = vcombine.low %v4930_v40, %v4946_v41  ;;  %v4962_v47 = vld [vmem:[#allocation16 + $0x400] sm:$0xff] }
 0x593   : > { %4333 = vmatprep.subr.bf16.mxu0 %v10765_v48  ;;  %v4978_v48 = vld [vmem:[#allocation16 + $0x480] sm:$0xff] }
 0x595   : > { %4170 = vmatpush1.bf16.msra.mxu1 %v10760_v53  ;;  %v9721_v53 = vcombine.high %v4962_v47, %v4978_v48 }
 0x596   : > { %4334 = vmatpush1.bf16.msra.mxu0 %v10763_v54  ;;  %4748 = vmatprep.subr.bf16.mxu1 %v10768_v56  ;;  %v9720_v54 = vcombine.low %v4962_v47, %v4978_v48  ;;  %v5010_v56 = vld [vmem:[#allocation16 + $0x580] sm:$0xff] }
 0x597   : > { %8074 = vmatprep.subr.bf16.mxu0 %v9593_v11 }
 0x598   : > { %4172 = vmatmul.mubr.bf16.vlgmr.msra.gmra.mrb[88].mxu1 %v2456_v59 }
 0x599   : > { %4336 = vmatmul.mubr.bf16.vlgmr.msra.gmra.mrb[88].mxu0 %v2456_v59  ;;  %4749 = vmatpush1.bf16.msra.mxu1 %v10766_v57  ;;  %v9753_v57 = vcombine.high %v4994_v55, %v5010_v56  ;;  %v9752_v59 = vcombine.low %v4994_v55, %v5010_v56  ;;  %v10814_v55 = vld [vmem:[%s13400_s30 + $0x100] ss:$8 sps:$4 sm:$0xff]  }
 0x59a   : > { %4750 = vmatprep.subr.bf16.mxu1 %v10771_v60  ;;  %8075 = vmatpush1.bf16.msra.mxu0 %v9592_v32  ;;  %v5026_v60 = vld [vmem:[#allocation16 + $0x600] sm:$0xff] }
 0x59b   : > { %8076 = vmatprep.subr.bf16.mxu0 %v9625_v25 }
 0x59d   : > { %4751 = vmatpush1.bf16.msra.mxu1 %v10769_v46  ;;  %v5042_v46 = vld [vmem:[#allocation16 + $0x680] sm:$0xff] }
 0x59e   : > { %4752 = vmatprep.subr.bf16.mxu1 %v10774_v61  ;;  %8077 = vmatpush1.bf16.msra.mxu0 %v9624_v37  ;;  %v9785_v61 = vcombine.high %v5026_v60, %v5042_v46 }
 0x59f   : > { %8078 = vmatprep.subr.bf16.mxu0 %v9657_v23 }
 0x5a1   : > { %4753 = vmatpush1.bf16.msra.mxu1 %v10772_v62  ;;  %v9784_v62 = vcombine.low %v5026_v60, %v5042_v46  ;;  %v10817_v60 = vld [vmem:[%s13400_s30 + $0x110] ss:$8 sps:$4 sm:$0xff]   ;;  %v10822_v46 = vld [vmem:[%s13400_s30 + $0x124] ss:$8 sps:$4 sm:$0xff]  }
 0x5a2   : > { %4754 = vmatprep.subr.bf16.mxu1 %v10777_v63  ;;  %8079 = vmatpush1.bf16.msra.mxu0 %v9656_v28  ;;  %v5058_v63 = vld [vmem:[#allocation16 + $0x700] sm:$0xff] }
 0x5a3   : > { %8080 = vmatprep.subr.bf16.mxu0 %v9689_v42 }
 0x5a5   : > { %4755 = vmatpush1.bf16.msra.mxu1 %v10775_v0  ;;  %v5074_v0 = vld [vmem:[#allocation16 + $0x780] sm:$0xff] }
 0x5a6   : > { %4756 = vmatprep.subr.bf16.mxu1 %v10780_v3  ;;  %8081 = vmatpush1.bf16.msra.mxu0 %v9688_v45  ;;  %v9817_v3 = vcombine.high %v5058_v63, %v5074_v0 }
 0x5a7   : > { %8082 = vmatprep.subr.bf16.mxu0 %v9721_v53 }
 0x5a9   : > { %4757 = vmatpush1.bf16.msra.mxu1 %v10778_v4  ;;  %v9816_v4 = vcombine.low %v5058_v63, %v5074_v0  ;;  %v10823_v63 = vld [vmem:[%s13400_s30 + $0x130] ss:$8 sps:$4 sm:$0xff]   ;;  %v10828_v0 = vld [vmem:[%s13400_s30 + $0x144] ss:$8 sps:$4 sm:$0xff]  }
 0x5aa   : > { %4758 = vmatprep.subr.bf16.mxu1 %v10783_v5  ;;  %8083 = vmatpush1.bf16.msra.mxu0 %v9720_v54  ;;  %v5090_v5 = vld [vmem:[#allocation16 + $0x800] sm:$0xff] }
 0x5ab   : > { %8084 = vmatprep.subr.bf16.mxu0 %v9753_v57  ;;  %v10819_v57 = vld [vmem:[%s13400_s30 + $0x114] ss:$8 sps:$4 sm:$0xff]  }
 0x5ad   : > { %4759 = vmatpush1.bf16.msra.mxu1 %v10781_v6  ;;  %v5106_v6 = vld [vmem:[#allocation16 + $0x880] sm:$0xff] }
 0x5ae   : > { %4760 = vmatprep.subr.bf16.mxu1 %v10786_v8  ;;  %8085 = vmatpush1.bf16.msra.mxu0 %v9752_v59  ;;  %v9849_v8 = vcombine.high %v5090_v5, %v5106_v6 }
 0x5af   : > { %8086 = vmatprep.subr.bf16.mxu0 %v9785_v61  ;;  %v10820_v61 = vld [vmem:[%s13400_s30 + $0x120] ss:$8 sps:$4 sm:$0xff]  }
 0x5b1   : > { %4761 = vmatpush1.bf16.msra.mxu1 %v10784_v1  ;;  %v9848_v1 = vcombine.low %v5090_v5, %v5106_v6  ;;  %v10829_v5 = vld [vmem:[%s13400_s30 + $0x150] ss:$8 sps:$4 sm:$0xff]   ;;  %v10834_v6 = vld [vmem:[%s13400_s30 + $0x164] ss:$8 sps:$4 sm:$0xff]  }
 0x5b2   : > { %4762 = vmatprep.subr.bf16.mxu1 %v10789_v50  ;;  %8087 = vmatpush1.bf16.msra.mxu0 %v9784_v62  ;;  %v5122_v50 = vld [vmem:[#allocation16 + $0x900] sm:$0xff] }
 0x5b3   : > { %8088 = vmatprep.subr.bf16.mxu0 %v9817_v3  ;;  %v10825_v62 = vld [vmem:[%s13400_s30 + $0x134] ss:$8 sps:$4 sm:$0xff]   ;;  %v10826_v3 = vld [vmem:[%s13400_s30 + $0x140] ss:$8 sps:$4 sm:$0xff]  }
 0x5b5   : > { %4763 = vmatpush1.bf16.msra.mxu1 %v10787_v58  ;;  %v5138_v58 = vld [vmem:[#allocation16 + $0x980] sm:$0xff] }
 0x5b6   : > { %4764 = vmatprep.subr.bf16.mxu1 %v10792_v9  ;;  %8089 = vmatpush1.bf16.msra.mxu0 %v9816_v4  ;;  %v9881_v9 = vcombine.high %v5122_v50, %v5138_v58  ;;  %v10831_v4 = vld [vmem:[%s13400_s30 + $0x154] ss:$8 sps:$4 sm:$0xff]  }
 0x5b7   : > { %8090 = vmatprep.subr.bf16.mxu0 %v9849_v8  ;;  %v10832_v8 = vld [vmem:[%s13400_s30 + $0x160] ss:$8 sps:$4 sm:$0xff]  }
 0x5b9   : > { %4765 = vmatpush1.bf16.msra.mxu1 %v10790_v2  ;;  %v9880_v2 = vcombine.low %v5122_v50, %v5138_v58  ;;  %v10835_v50 = vld [vmem:[%s13400_s30 + $0x170] ss:$8 sps:$4 sm:$0xff]   ;;  %v10840_v58 = vld [vmem:[%s13400_s30 + $0x184] ss:$8 sps:$4 sm:$0xff]  }
 0x5ba   : > { %4766 = vmatprep.subr.bf16.mxu1 %v10795_v34  ;;  %8091 = vmatpush1.bf16.msra.mxu0 %v9848_v1  ;;  %v5154_v34 = vld [vmem:[#allocation16 + $0xa00] sm:$0xff] }
 0x5bb   : > { %8092 = vmatprep.subr.bf16.mxu0 %v9881_v9  ;;  %v10837_v1 = vld [vmem:[%s13400_s30 + $0x174] ss:$8 sps:$4 sm:$0xff]   ;;  %v10838_v9 = vld [vmem:[%s13400_s30 + $0x180] ss:$8 sps:$4 sm:$0xff]  }
 0x5bd   : > { %4767 = vmatpush1.bf16.msra.mxu1 %v10793_v10  ;;  %v5170_v10 = vld [vmem:[#allocation16 + $0xa80] sm:$0xff] }
 0x5be   : > { %4768 = vmatprep.subr.bf16.mxu1 %v10798_v30  ;;  %v9913_v30 = vcombine.high %v5154_v34, %v5170_v10  ;;  %8093 = vmatpush1.bf16.msra.mxu0 %v9880_v2  ;;  %v10843_v2 = vld [vmem:[%s13400_s30 + $0x194] ss:$8 sps:$4 sm:$0xff]  }
 0x5c0   : > { %8094 = vmatprep.subr.bf16.mxu0 %v9913_v30  ;;  %v10844_v30 = vld [vmem:[%s13400_s30 + $0x1a0] ss:$8 sps:$4 sm:$0xff]  }
 0x5c1   : > { %4769 = vmatpush1.bf16.msra.mxu1 %v10796_v33  ;;  %v9912_v33 = vcombine.low %v5154_v34, %v5170_v10  ;;  %v10841_v34 = vld [vmem:[%s13400_s30 + $0x190] ss:$8 sps:$4 sm:$0xff]   ;;  %v10846_v10 = vld [vmem:[%s13400_s30 + $0x1a4] ss:$8 sps:$4 sm:$0xff]  }
 0x5c2   : > { %4770 = vmatprep.subr.bf16.mxu1 %v10801_v12  ;;  %v5186_v12 = vld [vmem:[#allocation16 + $0xb00] sm:$0xff] }
 0x5c3   : > { %8095 = vmatpush1.bf16.msra.mxu0 %v9912_v33  ;;  %v10849_v33 = vld [vmem:[%s13400_s30 + $0x1b4] ss:$8 sps:$4 sm:$0xff]  }
 0x5c5   : > { %4771 = vmatpush1.bf16.msra.mxu1 %v10799_v51  ;;  %v5202_v51 = vld [vmem:[#allocation16 + $0xb80] sm:$0xff] }
 0x5c6   : > { %4772 = vmatprep.subr.bf16.mxu1 %v10804_v15  ;;  %v9945_v15 = vcombine.high %v5186_v12, %v5202_v51 }
 0x5c8   : > { %8096 = vmatprep.subr.bf16.mxu0 %v9945_v15  ;;  %v10850_v15 = vld [vmem:[%s13400_s30 + $0x1c0] ss:$8 sps:$4 sm:$0xff]  }
 0x5c9   : > { %4773 = vmatpush1.bf16.msra.mxu1 %v10802_v29  ;;  %v9944_v29 = vcombine.low %v5186_v12, %v5202_v51  ;;  %v10847_v12 = vld [vmem:[%s13400_s30 + $0x1b0] ss:$8 sps:$4 sm:$0xff]   ;;  %v10852_v51 = vld [vmem:[%s13400_s30 + $0x1c4] ss:$8 sps:$4 sm:$0xff]  }
 0x5ca   : > { %4774 = vmatprep.subr.bf16.mxu1 %v10807_v16  ;;  %v5218_v16 = vld [vmem:[#allocation16 + $0xc00] sm:$0xff] }
 0x5cb   : > { %8097 = vmatpush1.bf16.msra.mxu0 %v9944_v29  ;;  %v10855_v29 = vld [vmem:[%s13400_s30 + $0x1d4] ss:$8 sps:$4 sm:$0xff]  }
 0x5cd   : > { %4775 = vmatpush1.bf16.msra.mxu1 %v10805_v17  ;;  %v5234_v17 = vld [vmem:[#allocation16 + $0xc80] sm:$0xff] }
 0x5ce   : > { %4776 = vmatprep.subr.bf16.mxu1 %v10810_v18  ;;  %v9977_v18 = vcombine.high %v5218_v16, %v5234_v17 }
 0x5d0   : > { %8098 = vmatprep.subr.bf16.mxu0 %v9977_v18  ;;  %v10858_v18 = vld [vmem:[%s13400_s30 + $0x1e4] ss:$8 sps:$4 sm:$0xff]  }
 0x5d1   : > { %4777 = vmatpush1.bf16.msra.mxu1 %v10808_v19  ;;  %v9976_v19 = vcombine.low %v5218_v16, %v5234_v17  ;;  %v10853_v16 = vld [vmem:[%s13400_s30 + $0x1d0] ss:$8 sps:$4 sm:$0xff]  }
 0x5d2   : > { %4778 = vmatprep.subr.bf16.mxu1 %v10813_v20  ;;  %v13026_v20 = vld [vmem:[#allocation13] sm:$0xf] }
 0x5d3   : > { %v3999_v13 = vrot.slane %v13026_v20, %v12156_v22  ;;  %8099 = vmatpush1.bf16.msra.mxu0 %v9976_v19  ;;  %v4003_v11 = vrot.slane %v13026_v20, %v12164_v26  ;;  %v4011_v35 = vrot.slane %v13026_v20, %v12167_v27  ;;  %v4007_v17 = vrot.slane %v13026_v20, %v12159_v24  ;;  %v10856_v19 = vld [vmem:[%s13400_s30 + $0x1e0] ss:$8 sps:$4 sm:$0xff]   ;;  %v10859_v20 = vld [vmem:[%s13400_s30 + $0x1f0] ss:$8 sps:$4 sm:$0xff]  }
 0x5d5   : > { %4779 = vmatpush1.bf16.msra.mxu1 %v10811_v21  ;;  %v5250_v21 = vld [vmem:[#allocation16 + $0xd00] sm:$0xff] }
 0x5d6   : > { %4789 = vmatprep.subr.bf16.mxu1 %v10816_v49  ;;  %v5266_v49 = vld [vmem:[#allocation16 + $0xd80] sm:$0xff] }
 0x5d7   : > { %v10009_v31 = vcombine.high %v5250_v21, %v5266_v49  ;;  %v10008_v32 = vcombine.low %v5250_v21, %v5266_v49  ;;  %v10861_v49 = vld [vmem:[%s13400_s30 + $0x1f4] ss:$8 sps:$4 sm:$0xff]  }
 0x5d9   : > { %8100 = vmatprep.subr.bf16.mxu0 %v10009_v31  ;;  %v4836_v31 = vld [vmem:[#allocation16 + $0x10] sm:$0xff] }
 0x5da   : > { %8101 = vmatpush1.bf16.msra.mxu0 %v10008_v32 }
 0x66b   : > { %v4173_v36 = vpop.f32.mrb[88].mxu1 }
 0x66c   : > { %v10208_v25 = vadd.f32 %v4173_v36, %v3999_v13  ;;  %v13034_v37 = vpop.f32.mrb[88].mxu0  ;;  %v4175_v38 = vpop.f32.mrb[89].mxu1  ;;  %v4852_v13 = vld [vmem:[#allocation16 + $0x90] sm:$0xff] }
 0x66d   : > { %v10209_v39 = vadd.f32 %v4175_v38, %v4003_v11  ;;  %v4339_v23 = vpop.f32.mrb[89].mxu0  ;;  %v4177_v28 = vpop.f32.mrb[90].mxu1  ;;  %v10210_v21 = vadd.f32 %v13034_v37, %v4007_v17  ;;  %v9597_v11 = vcombine.high %v4836_v31, %v4852_v13  ;;  %v4884_v36 = vld [vmem:[#allocation16 + $0x190] sm:$0xff] }
 0x66e   : > { %v4344_v40 = vmax.f32 %v10208_v25, 0.0  ;;  %v10211_v41 = vadd.f32 %v4339_v23, %v4011_v35  ;;  %v4341_v42 = vpop.f32.mrb[90].mxu0  ;;  %v4178_v45 = vpop.f32.mrb[91].mxu1  ;;  %v4868_v35 = vld [vmem:[#allocation16 + $0x110] sm:$0xff]  ;;  %v9596_v25 = vcombine.low %v4836_v31, %v4852_v13 }
 0x66f   : > { %v4345_v47 = vmax.f32 %v10209_v39, 0.0  ;;  %v4342_v48 = vpop.f32.mrb[91].mxu0  ;;  %v4346_v32 = vmax.f32 %v10210_v21, 0.0  ;;  %v9629_v38 = vcombine.high %v4868_v35, %v4884_v36  ;;  %v4900_v39 = vld [vmem:[#allocation16 + $0x210] sm:$0xff]  ;;  %v9628_v28 = vcombine.low %v4868_v35, %v4884_v36  ;;  %v5298_v35 = vld [vmem:[#allocation16 + $0xe80] sm:$0xff] }
 0x670   : > { %v4347_v53 = vmax.f32 %v10211_v41, 0.0  ;;  %v4348_v56 = vpack.c.bf16 %v4344_v40, %v4344_v40  ;;  %v4916_v23 = vld [vmem:[#allocation16 + $0x290] sm:$0xff] }
 0x671   : > { %v4349_v54 = vpack.c.bf16 %v4345_v47, %v4345_v47  ;;  %v4350_v37 = vpack.c.bf16 %v4346_v32, %v4346_v32  ;;  %v9661_v40 = vcombine.high %v4900_v39, %v4916_v23  ;;  %v4932_v41 = vld [vmem:[#allocation16 + $0x310] sm:$0xff]  ;;  %v9660_v45 = vcombine.low %v4900_v39, %v4916_v23 }
 0x672   : > { %v4351_v59 = vpack.c.bf16 %v4347_v53, %v4347_v53  ;;  %v4948_v42 = vld [vmem:[#allocation16 + $0x390] sm:$0xff] }
 0x673   : > { %4780 = vmatprep.mubr.bf16.mxu1 %v4349_v54  ;;  %v9693_v47 = vcombine.high %v4932_v41, %v4948_v42  ;;  %v4964_v48 = vld [vmem:[#allocation16 + $0x410] sm:$0xff]  ;;  %v9692_v54 = vcombine.low %v4932_v41, %v4948_v42 }
 0x674   : > { %4781 = vmatmul.mubr.bf16.vlgmr.msra.gmra.mrb[92].mxu1 %v4348_v56  ;;  %v4980_v53 = vld [vmem:[#allocation16 + $0x490] sm:$0xff] }
 0x675   : > { %4790 = vmatpush1.bf16.msra.mxu1 %v10814_v55  ;;  %4821 = vmatprep.mubr.bf16.mxu1 %v4351_v59  ;;  %v9725_v55 = vcombine.high %v4964_v48, %v4980_v53  ;;  %v4996_v56 = vld [vmem:[#allocation16 + $0x510] sm:$0xff]  ;;  %v9724_v59 = vcombine.low %v4964_v48, %v4980_v53 }
 0x676   : > { %4791 = vmatprep.subr.bf16.mxu1 %v10819_v57  ;;  %v5012_v57 = vld [vmem:[#allocation16 + $0x590] sm:$0xff] }
 0x677   : > { %v5220_v17 = vld [vmem:[#allocation16 + $0xc10] sm:$0xff] }
 0x678   : > { %v5268_v31 = vld [vmem:[#allocation16 + $0xd90] sm:$0xff] }
 0x679   : > { %4792 = vmatpush1.bf16.msra.mxu1 %v10817_v60  ;;  %v9757_v60 = vcombine.high %v4996_v56, %v5012_v57  ;;  %v5284_v36 = vld [vmem:[#allocation16 + $0xe10] sm:$0xff] }
 0x67a   : > { %4793 = vmatprep.subr.bf16.mxu1 %v10822_v46  ;;  %v5028_v46 = vld [vmem:[#allocation16 + $0x610] sm:$0xff] }
 0x67b   : > { %v5316_v41 = vld [vmem:[#allocation16 + $0xf10] sm:$0xff] }
 0x67d   : > { %4794 = vmatpush1.bf16.msra.mxu1 %v10820_v61  ;;  %v5044_v61 = vld [vmem:[#allocation16 + $0x690] sm:$0xff] }
 0x67e   : > { %4795 = vmatprep.subr.bf16.mxu1 %v10825_v62  ;;  %v9756_v62 = vcombine.low %v4996_v56, %v5012_v57  ;;  %v4838_v56 = vld [vmem:[#allocation16 + $0x20] sm:$0xff] }
 0x681   : > { %4796 = vmatpush1.bf16.msra.mxu1 %v10823_v63  ;;  %v9789_v63 = vcombine.high %v5028_v46, %v5044_v61 }
 0x682   : > { %4797 = vmatprep.subr.bf16.mxu1 %v10828_v0  ;;  %v5060_v0 = vld [vmem:[#allocation16 + $0x710] sm:$0xff] }
 0x685   : > { %4798 = vmatpush1.bf16.msra.mxu1 %v10826_v3  ;;  %v5076_v3 = vld [vmem:[#allocation16 + $0x790] sm:$0xff] }
 0x686   : > { %4799 = vmatprep.subr.bf16.mxu1 %v10831_v4  ;;  %v9788_v4 = vcombine.low %v5028_v46, %v5044_v61 }
 0x689   : > { %4800 = vmatpush1.bf16.msra.mxu1 %v10829_v5  ;;  %v9821_v5 = vcombine.high %v5060_v0, %v5076_v3 }
 0x68a   : > { %4801 = vmatprep.subr.bf16.mxu1 %v10834_v6  ;;  %v5092_v6 = vld [vmem:[#allocation16 + $0x810] sm:$0xff] }
 0x68d   : > { %4802 = vmatpush1.bf16.msra.mxu1 %v10832_v8  ;;  %v5108_v8 = vld [vmem:[#allocation16 + $0x890] sm:$0xff] }
 0x68e   : > { %4803 = vmatprep.subr.bf16.mxu1 %v10837_v1  ;;  %v9820_v1 = vcombine.low %v5060_v0, %v5076_v3 }
 0x691   : > { %4804 = vmatpush1.bf16.msra.mxu1 %v10835_v50  ;;  %v9853_v50 = vcombine.high %v5092_v6, %v5108_v8 }
 0x692   : > { %4805 = vmatprep.subr.bf16.mxu1 %v10840_v58  ;;  %v5124_v58 = vld [vmem:[#allocation16 + $0x910] sm:$0xff] }
 0x695   : > { %4806 = vmatpush1.bf16.msra.mxu1 %v10838_v9  ;;  %v5140_v9 = vld [vmem:[#allocation16 + $0x990] sm:$0xff] }
 0x696   : > { %4807 = vmatprep.subr.bf16.mxu1 %v10843_v2  ;;  %v9852_v2 = vcombine.low %v5092_v6, %v5108_v8 }
 0x699   : > { %4808 = vmatpush1.bf16.msra.mxu1 %v10841_v34  ;;  %v9885_v34 = vcombine.high %v5124_v58, %v5140_v9 }
 0x69a   : > { %4809 = vmatprep.subr.bf16.mxu1 %v10846_v10  ;;  %v5156_v10 = vld [vmem:[#allocation16 + $0xa10] sm:$0xff] }
 0x69d   : > { %4810 = vmatpush1.bf16.msra.mxu1 %v10844_v30  ;;  %v5172_v30 = vld [vmem:[#allocation16 + $0xa90] sm:$0xff] }
 0x69e   : > { %4811 = vmatprep.subr.bf16.mxu1 %v10849_v33  ;;  %v9884_v33 = vcombine.low %v5124_v58, %v5140_v9  ;;  %v4867_v9 = vld [vmem:[#allocation16 + $0x108] sm:$0xff] }
 0x6a1   : > { %4812 = vmatpush1.bf16.msra.mxu1 %v10847_v12  ;;  %v9917_v12 = vcombine.high %v5156_v10, %v5172_v30 }
 0x6a2   : > { %4813 = vmatprep.subr.bf16.mxu1 %v10852_v51  ;;  %v5188_v51 = vld [vmem:[#allocation16 + $0xb10] sm:$0xff] }
 0x6a5   : > { %4814 = vmatpush1.bf16.msra.mxu1 %v10850_v15  ;;  %v5204_v15 = vld [vmem:[#allocation16 + $0xb90] sm:$0xff] }
 0x6a6   : > { %4815 = vmatprep.subr.bf16.mxu1 %v10855_v29  ;;  %v9916_v29 = vcombine.low %v5156_v10, %v5172_v30  ;;  %v4886_v10 = vld [vmem:[#allocation16 + $0x1a0] sm:$0xff] }
 0x6a9   : > { %4816 = vmatpush1.bf16.msra.mxu1 %v10853_v16  ;;  %v9949_v16 = vcombine.high %v5188_v51, %v5204_v15 }
 0x6aa   : > { %4817 = vmatprep.subr.bf16.mxu1 %v10858_v18  ;;  %v5236_v18 = vld [vmem:[#allocation16 + $0xc90] sm:$0xff] }
 0x6ab   : > { %v9981_v21 = vcombine.high %v5220_v17, %v5236_v18  ;;  %v9980_v13 = vcombine.low %v5220_v17, %v5236_v18  ;;  %v4918_v17 = vld [vmem:[#allocation16 + $0x2a0] sm:$0xff] }
 0x6ad   : > { %4818 = vmatpush1.bf16.msra.mxu1 %v10856_v19  ;;  %v9948_v19 = vcombine.low %v5188_v51, %v5204_v15 }
 0x6ae   : > { %4819 = vmatprep.subr.bf16.mxu1 %v10861_v49  ;;  %v5252_v49 = vld [vmem:[#allocation16 + $0xd10] sm:$0xff] }
 0x6af   : > { %v10012_v32 = vcombine.low %v5252_v49, %v5268_v31 }
 0x6b1   : > { %4820 = vmatpush1.bf16.msra.mxu1 %v10859_v20  ;;  %v10013_v20 = vcombine.high %v5252_v49, %v5268_v31  ;;  %v4931_v31 = vld [vmem:[#allocation16 + $0x308] sm:$0xff] }
 0x6b2   : > { %8156 = vmatprep.subr.bf16.mxu1 %v9597_v11  ;;  %v5282_v11 = vld [vmem:[#allocation16 + $0xe00] sm:$0xff] }
 0x6b4   : > { %4822 = vmatmul.mubr.bf16.vlgmr.msra.gmra.mrb[92].mxu1 %v4350_v37  ;;  %v5300_v37 = vld [vmem:[#allocation16 + $0xe90] sm:$0xff] }
 0x6b5   : > { %8157 = vmatpush1.bf16.msra.mxu1 %v9596_v25  ;;  %v10041_v25 = vcombine.high %v5282_v11, %v5298_v35  ;;  %v10044_v39 = vcombine.low %v5284_v36, %v5300_v37  ;;  %v10045_v23 = vcombine.high %v5284_v36, %v5300_v37  ;;  %v4963_v37 = vld [vmem:[#allocation16 + $0x408] sm:$0xff] }
 0x6b6   : > { %8158 = vmatprep.subr.bf16.mxu1 %v9629_v38  ;;  %v10040_v38 = vcombine.low %v5282_v11, %v5298_v35 }
 0x6b7   : > { %8102 = vmatprep.subr.bf16.mxu0 %v10041_v25 }
 0x6b8   : > { %8103 = vmatpush1.bf16.msra.mxu0 %v10040_v38  ;;  %v4979_v38 = vld [vmem:[#allocation16 + $0x488] sm:$0xff] }
 0x6b9   : > { %8159 = vmatpush1.bf16.msra.mxu1 %v9628_v28  ;;  %v5314_v28 = vld [vmem:[#allocation16 + $0xf00] sm:$0xff] }
 0x6ba   : > { %8160 = vmatprep.subr.bf16.mxu1 %v9661_v40  ;;  %v5330_v40 = vld [vmem:[#allocation16 + $0xf80] sm:$0xff] }
 0x6bb   : > { %v10073_v42 = vcombine.high %v5314_v28, %v5330_v40 }
 0x6bd   : > { %8161 = vmatpush1.bf16.msra.mxu1 %v9660_v45  ;;  %v5332_v45 = vld [vmem:[#allocation16 + $0xf90] sm:$0xff]  ;;  %8104 = vmatprep.subr.bf16.mxu0 %v10073_v42 }
 0x6be   : > { %8162 = vmatprep.subr.bf16.mxu1 %v9693_v47  ;;  %v10072_v47 = vcombine.low %v5314_v28, %v5330_v40  ;;  %v10076_v48 = vcombine.low %v5316_v41, %v5332_v45  ;;  %v10077_v53 = vcombine.high %v5316_v41, %v5332_v45  ;;  %v9723_v41 = vcombine.high %v4963_v37, %v4979_v38  ;;  %v4995_v45 = vld [vmem:[#allocation16 + $0x508] sm:$0xff] }
 0x6c0   : > { %8105 = vmatpush1.bf16.msra.mxu0 %v10072_v47  ;;  %v5011_v47 = vld [vmem:[#allocation16 + $0x588] sm:$0xff] }
 0x6c1   : > { %8163 = vmatpush1.bf16.msra.mxu1 %v9692_v54  ;;  %v4835_v54 = vld [vmem:[#allocation16 + $0x8] sm:$0xff] }
 0x6c2   : > { %8164 = vmatprep.subr.bf16.mxu1 %v9725_v55  ;;  %v4851_v55 = vld [vmem:[#allocation16 + $0x88] sm:$0xff] }
 0x6c3   : > { %v9594_v57 = vcombine.low %v4835_v54, %v4851_v55 }
 0x6c5   : > { %8165 = vmatpush1.bf16.msra.mxu1 %v9724_v59  ;;  %v9595_v59 = vcombine.high %v4835_v54, %v4851_v55  ;;  %v9722_v54 = vcombine.low %v4963_v37, %v4979_v38 }
 0x6c6   : > { %8166 = vmatprep.subr.bf16.mxu1 %v9757_v60  ;;  %v4854_v60 = vld [vmem:[#allocation16 + $0xa0] sm:$0xff] }
 0x6c7   : > { %v9600_v46 = vcombine.low %v4838_v56, %v4854_v60  ;;  %v9601_v61 = vcombine.high %v4838_v56, %v4854_v60  ;;  %8115 = vmatprep.subr.bf16.mxu0 %v9595_v59  ;;  %v9755_v56 = vcombine.high %v4995_v45, %v5011_v47  ;;  %v5027_v59 = vld [vmem:[#allocation16 + $0x608] sm:$0xff] }
 0x6c8   : > { %v5043_v60 = vld [vmem:[#allocation16 + $0x688] sm:$0xff] }
 0x6c9   : > { %8167 = vmatpush1.bf16.msra.mxu1 %v9756_v62  ;;  %v4416_v62 = vld [vmem:[#allocation14] sm:$0x3] }
 0x6ca   : > { %8168 = vmatprep.subr.bf16.mxu1 %v9789_v63  ;;  %v4741_v63 = vrot.slane %v4416_v62, %v12156_v22  ;;  %v4745_v0 = vrot.slane %v4416_v62, %v12164_v26  ;;  %v9754_v62 = vcombine.low %v4995_v45, %v5011_v47 }
 0x6cd   : > { %8169 = vmatpush1.bf16.msra.mxu1 %v9788_v4 }
 0x6ce   : > { %8170 = vmatprep.subr.bf16.mxu1 %v9821_v5 }
 0x6d1   : > { %8171 = vmatpush1.bf16.msra.mxu1 %v9820_v1 }
 0x6d2   : > { %8172 = vmatprep.subr.bf16.mxu1 %v9853_v50 }
 0x6d5   : > { %8173 = vmatpush1.bf16.msra.mxu1 %v9852_v2  ;;  %v4883_v2 = vld [vmem:[#allocation16 + $0x188] sm:$0xff] }
 0x6d6   : > { %8174 = vmatprep.subr.bf16.mxu1 %v9885_v34  ;;  %v4870_v34 = vld [vmem:[#allocation16 + $0x120] sm:$0xff]  ;;  %v9627_v51 = vcombine.high %v4867_v9, %v4883_v2  ;;  %v9626_v18 = vcombine.low %v4867_v9, %v4883_v2  ;;  %v5091_v2 = vld [vmem:[#allocation16 + $0x808] sm:$0xff] }
 0x6d7   : > { %v9633_v15 = vcombine.high %v4870_v34, %v4886_v10 }
 0x6d9   : > { %8175 = vmatpush1.bf16.msra.mxu1 %v9884_v33 }
 0x6da   : > { %8176 = vmatprep.subr.bf16.mxu1 %v9917_v12  ;;  %v4899_v12 = vld [vmem:[#allocation16 + $0x208] sm:$0xff] }
 0x6dd   : > { %8177 = vmatpush1.bf16.msra.mxu1 %v9916_v29  ;;  %v4915_v29 = vld [vmem:[#allocation16 + $0x288] sm:$0xff] }
 0x6de   : > { %8178 = vmatprep.subr.bf16.mxu1 %v9949_v16  ;;  %v4902_v16 = vld [vmem:[#allocation16 + $0x220] sm:$0xff]  ;;  %v9658_v11 = vcombine.low %v4899_v12, %v4915_v29 }
 0x6df   : > { %v9665_v49 = vcombine.high %v4902_v16, %v4918_v17  ;;  %v9664_v35 = vcombine.low %v4902_v16, %v4918_v17  ;;  %v5123_v17 = vld [vmem:[#allocation16 + $0x908] sm:$0xff] }
 0x6e1   : > { %8179 = vmatpush1.bf16.msra.mxu1 %v9948_v19  ;;  %v9632_v19 = vcombine.low %v4870_v34, %v4886_v10  ;;  %v5107_v34 = vld [vmem:[#allocation16 + $0x888] sm:$0xff]  ;;  %v5094_v10 = vld [vmem:[#allocation16 + $0x820] sm:$0xff] }
 0x6e2   : > { %8180 = vmatprep.subr.bf16.mxu1 %v9981_v21  ;;  %v9659_v21 = vcombine.high %v4899_v12, %v4915_v29  ;;  %v5110_v12 = vld [vmem:[#allocation16 + $0x8a0] sm:$0xff]  ;;  %v9851_v29 = vcombine.high %v5091_v2, %v5107_v34 }
 0x6e3   : > { %v9857_v16 = vcombine.high %v5094_v10, %v5110_v12 }
 0x6e5   : > { %8181 = vmatpush1.bf16.msra.mxu1 %v9980_v13  ;;  %v4947_v13 = vld [vmem:[#allocation16 + $0x388] sm:$0xff] }
 0x6e6   : > { %8182 = vmatprep.subr.bf16.mxu1 %v10013_v20  ;;  %v4934_v20 = vld [vmem:[#allocation16 + $0x320] sm:$0xff]  ;;  %v9691_v36 = vcombine.high %v4931_v31, %v4947_v13  ;;  %v9690_v28 = vcombine.low %v4931_v31, %v4947_v13  ;;  %v9856_v31 = vcombine.low %v5094_v10, %v5110_v12  ;;  %v5315_v12 = vld [vmem:[#allocation16 + $0xf08] sm:$0xff] }
 0x6e9   : > { %8183 = vmatpush1.bf16.msra.mxu1 %v10012_v32  ;;  %v4950_v32 = vld [vmem:[#allocation16 + $0x3a0] sm:$0xff] }
 0x6ea   : > { %8184 = vmatprep.subr.bf16.mxu1 %v10045_v23  ;;  %v9697_v25 = vcombine.high %v4934_v20, %v4950_v32  ;;  %v4982_v23 = vld [vmem:[#allocation16 + $0x4a0] sm:$0xff]  ;;  %v9696_v40 = vcombine.low %v4934_v20, %v4950_v32  ;;  %v5155_v32 = vld [vmem:[#allocation16 + $0xa08] sm:$0xff] }
 0x6ed   : > { %8185 = vmatpush1.bf16.msra.mxu1 %v10044_v39  ;;  %v4966_v39 = vld [vmem:[#allocation16 + $0x420] sm:$0xff] }
 0x6ee   : > { %8186 = vmatprep.subr.bf16.mxu1 %v10077_v53  ;;  %v9729_v42 = vcombine.high %v4966_v39, %v4982_v23  ;;  %v5014_v53 = vld [vmem:[#allocation16 + $0x5a0] sm:$0xff]  ;;  %v9728_v55 = vcombine.low %v4966_v39, %v4982_v23  ;;  %v5187_v23 = vld [vmem:[#allocation16 + $0xb08] sm:$0xff] }
 0x6f1   : > { %8187 = vmatpush1.bf16.msra.mxu1 %v10076_v48  ;;  %v4998_v48 = vld [vmem:[#allocation16 + $0x520] sm:$0xff] }
 0x6f2   : > { %8238 = vmatprep.subr.bf16.mxu1 %v9601_v61  ;;  %v5046_v61 = vld [vmem:[#allocation16 + $0x6a0] sm:$0xff] }
 0x787   : > { %v4823_v3 = vpop.f32.mrb[92].mxu1 }
 0x788   : > { %v10212_v4 = vadd.f32 %v4823_v3, %v4741_v63  ;;  %v4825_v5 = vpop.f32.mrb[93].mxu1  ;;  %v9760_v63 = vcombine.low %v4998_v48, %v5014_v53 }
 0x789   : > { %v10213_v6 = vadd.f32 %v4825_v5, %v4745_v0  ;;  %v4827_v8 = vpop.f32.mrb[94].mxu1  ;;  %v9787_v0 = vcombine.high %v5027_v59, %v5043_v60  ;;  %v5075_v5 = vld [vmem:[#allocation16 + $0x788] sm:$0xff] }
 0x78a   : > { %v4830_v1 = vmax.f32 %v10212_v4, 0.0  ;;  %v4828_v50 = vpop.f32.mrb[95].mxu1  ;;  %v5059_v4 = vld [vmem:[#allocation16 + $0x708] sm:$0xff]  ;;  %v5078_v8 = vld [vmem:[#allocation16 + $0x7a0] sm:$0xff] }
 0x78b   : > { %v4831_v58 = vmax.f32 %v10213_v6, 0.0  ;;  %v5062_v6 = vld [vmem:[#allocation16 + $0x720] sm:$0xff] }
 0x78c   : > { %v13136_v33 = vpack.c.bf16 %v4830_v1, %v4830_v1  ;;  %v9786_v1 = vcombine.low %v5027_v59, %v5043_v60  ;;  %v9825_v9 = vcombine.high %v5062_v6, %v5078_v8 }
 0x78d   : > { %v13134_v30 = vpack.c.bf16 %v4831_v58, %v4831_v58  ;;  %v9819_v58 = vcombine.high %v5059_v4, %v5075_v5 }
 0x78f   : > { %8106 = vmatprep.mubr.bf16.mxu0 %v13134_v30  ;;  %8188 = vmatprep.mubr.bf16.mxu1 %v13134_v30 }
 0x790   : > { %8107 = vmatmul.mubr.bf16.vlgmr.msra.gmra.mrb[92].mxu0 %v13136_v33  ;;  %8189 = vmatmul.mubr.bf16.vlgmr.msra.gmra.mrb[96].mxu1 %v13136_v33 }
 0x791   : > { %8116 = vmatpush1.bf16.msra.mxu0 %v9594_v57  ;;  %8239 = vmatpush1.bf16.msra.mxu1 %v9600_v46  ;;  %v9761_v57 = vcombine.high %v4998_v48, %v5014_v53  ;;  %v5030_v46 = vld [vmem:[#allocation16 + $0x620] sm:$0xff]  ;;  %v5219_v53 = vld [vmem:[#allocation16 + $0xc08] sm:$0xff] }
 0x792   : > { %8147 = vmatprep.mubr.bf16.mxu0 %v13134_v30  ;;  %8270 = vmatprep.mubr.bf16.mxu1 %v13134_v30  ;;  %v9793_v3 = vcombine.high %v5030_v46, %v5046_v61  ;;  %v9792_v50 = vcombine.low %v5030_v46, %v5046_v61  ;;  %v5251_v61 = vld [vmem:[#allocation16 + $0xd08] sm:$0xff] }
 0x793   : > { %8117 = vmatprep.subr.bf16.mxu0 %v9627_v51  ;;  %8240 = vmatprep.subr.bf16.mxu1 %v9633_v15  ;;  %v9818_v51 = vcombine.low %v5059_v4, %v5075_v5  ;;  %v9824_v15 = vcombine.low %v5062_v6, %v5078_v8  ;;  %v5283_v8 = vld [vmem:[#allocation16 + $0xe08] sm:$0xff] }
 0x795   : > { %8118 = vmatpush1.bf16.msra.mxu0 %v9626_v18  ;;  %8241 = vmatpush1.bf16.msra.mxu1 %v9632_v19  ;;  %v5139_v18 = vld [vmem:[#allocation16 + $0x988] sm:$0xff]  ;;  %v5126_v19 = vld [vmem:[#allocation16 + $0x920] sm:$0xff] }
 0x796   : > { %8119 = vmatprep.subr.bf16.mxu0 %v9659_v21  ;;  %8242 = vmatprep.subr.bf16.mxu1 %v9665_v49  ;;  %v5142_v21 = vld [vmem:[#allocation16 + $0x9a0] sm:$0xff]  ;;  %v9850_v49 = vcombine.low %v5091_v2, %v5107_v34  ;;  %v9883_v13 = vcombine.high %v5123_v17, %v5139_v18 }
 0x797   : > { %v9889_v20 = vcombine.high %v5126_v19, %v5142_v21  ;;  %v9888_v37 = vcombine.low %v5126_v19, %v5142_v21  ;;  %v4837_v21 = vld [vmem:[#allocation16 + $0x18] sm:$0xff] }
 0x799   : > { %8120 = vmatpush1.bf16.msra.mxu0 %v9658_v11  ;;  %8243 = vmatpush1.bf16.msra.mxu1 %v9664_v35  ;;  %v5171_v11 = vld [vmem:[#allocation16 + $0xa88] sm:$0xff]  ;;  %v5158_v35 = vld [vmem:[#allocation16 + $0xa20] sm:$0xff] }
 0x79a   : > { %8121 = vmatprep.subr.bf16.mxu0 %v9691_v36  ;;  %8244 = vmatprep.subr.bf16.mxu1 %v9697_v25  ;;  %v5174_v36 = vld [vmem:[#allocation16 + $0xaa0] sm:$0xff]  ;;  %v9882_v25 = vcombine.low %v5123_v17, %v5139_v18  ;;  %v9915_v38 = vcombine.high %v5155_v32, %v5171_v11 }
 0x79b   : > { %v9921_v39 = vcombine.high %v5158_v35, %v5174_v36  ;;  %v9920_v45 = vcombine.low %v5158_v35, %v5174_v36  ;;  %v4869_v36 = vld [vmem:[#allocation16 + $0x118] sm:$0xff] }
 0x79d   : > { %8122 = vmatpush1.bf16.msra.mxu0 %v9690_v28  ;;  %8245 = vmatpush1.bf16.msra.mxu1 %v9696_v40  ;;  %v5203_v28 = vld [vmem:[#allocation16 + $0xb88] sm:$0xff]  ;;  %v5190_v40 = vld [vmem:[#allocation16 + $0xb20] sm:$0xff] }
 0x79e   : > { %8123 = vmatprep.subr.bf16.mxu0 %v9723_v41  ;;  %8246 = vmatprep.subr.bf16.mxu1 %v9729_v42  ;;  %v5206_v41 = vld [vmem:[#allocation16 + $0xba0] sm:$0xff]  ;;  %v9914_v42 = vcombine.low %v5155_v32, %v5171_v11  ;;  %v9947_v47 = vcombine.high %v5187_v23, %v5203_v28 }
 0x79f   : > { %v9953_v48 = vcombine.high %v5190_v40, %v5206_v41  ;;  %v9952_v59 = vcombine.low %v5190_v40, %v5206_v41  ;;  %v4901_v41 = vld [vmem:[#allocation16 + $0x218] sm:$0xff] }
 0x7a1   : > { %8124 = vmatpush1.bf16.msra.mxu0 %v9722_v54  ;;  %8247 = vmatpush1.bf16.msra.mxu1 %v9728_v55  ;;  %v5235_v54 = vld [vmem:[#allocation16 + $0xc88] sm:$0xff]  ;;  %v5222_v55 = vld [vmem:[#allocation16 + $0xc20] sm:$0xff] }
 0x7a2   : > { %8125 = vmatprep.subr.bf16.mxu0 %v9755_v56  ;;  %8248 = vmatprep.subr.bf16.mxu1 %v9761_v57  ;;  %v5238_v56 = vld [vmem:[#allocation16 + $0xca0] sm:$0xff]  ;;  %v9946_v57 = vcombine.low %v5187_v23, %v5203_v28  ;;  %v9979_v60 = vcombine.high %v5219_v53, %v5235_v54 }
 0x7a3   : > { %v9985_v46 = vcombine.high %v5222_v55, %v5238_v56  ;;  %v9984_v4 = vcombine.low %v5222_v55, %v5238_v56  ;;  %v4933_v56 = vld [vmem:[#allocation16 + $0x318] sm:$0xff] }
 0x7a5   : > { %8126 = vmatpush1.bf16.msra.mxu0 %v9754_v62  ;;  %8249 = vmatpush1.bf16.msra.mxu1 %v9760_v63  ;;  %v5267_v62 = vld [vmem:[#allocation16 + $0xd88] sm:$0xff]  ;;  %v5254_v63 = vld [vmem:[#allocation16 + $0xd20] sm:$0xff] }
 0x7a6   : > { %8127 = vmatprep.subr.bf16.mxu0 %v9787_v0  ;;  %8250 = vmatprep.subr.bf16.mxu1 %v9793_v3  ;;  %v5270_v0 = vld [vmem:[#allocation16 + $0xda0] sm:$0xff]  ;;  %v9978_v3 = vcombine.low %v5219_v53, %v5235_v54  ;;  %v10011_v5 = vcombine.high %v5251_v61, %v5267_v62 }
 0x7a7   : > { %v10017_v6 = vcombine.high %v5254_v63, %v5270_v0  ;;  %v10016_v2 = vcombine.low %v5254_v63, %v5270_v0  ;;  %v4965_v0 = vld [vmem:[#allocation16 + $0x418] sm:$0xff] }
 0x7a9   : > { %8128 = vmatpush1.bf16.msra.mxu0 %v9786_v1  ;;  %8251 = vmatpush1.bf16.msra.mxu1 %v9792_v50  ;;  %v5299_v1 = vld [vmem:[#allocation16 + $0xe88] sm:$0xff]  ;;  %v5286_v50 = vld [vmem:[#allocation16 + $0xe20] sm:$0xff] }
 0x7aa   : > { %8129 = vmatprep.subr.bf16.mxu0 %v9819_v58  ;;  %8252 = vmatprep.subr.bf16.mxu1 %v9825_v9  ;;  %v5302_v58 = vld [vmem:[#allocation16 + $0xea0] sm:$0xff]  ;;  %v10010_v9 = vcombine.low %v5251_v61, %v5267_v62  ;;  %v10043_v34 = vcombine.high %v5283_v8, %v5299_v1 }
 0x7ab   : > { %v10049_v10 = vcombine.high %v5286_v50, %v5302_v58  ;;  %v10048_v17 = vcombine.low %v5286_v50, %v5302_v58  ;;  %v4997_v58 = vld [vmem:[#allocation16 + $0x518] sm:$0xff] }
 0x7ad   : > { %8130 = vmatpush1.bf16.msra.mxu0 %v9818_v51  ;;  %8253 = vmatpush1.bf16.msra.mxu1 %v9824_v15  ;;  %v5331_v51 = vld [vmem:[#allocation16 + $0xf88] sm:$0xff]  ;;  %v5318_v15 = vld [vmem:[#allocation16 + $0xf20] sm:$0xff] }
 0x7ae   : > { %8131 = vmatprep.subr.bf16.mxu0 %v9851_v29  ;;  %8254 = vmatprep.subr.bf16.mxu1 %v9857_v16  ;;  %v5334_v29 = vld [vmem:[#allocation16 + $0xfa0] sm:$0xff]  ;;  %v10042_v16 = vcombine.low %v5283_v8, %v5299_v1  ;;  %v10075_v18 = vcombine.high %v5315_v12, %v5331_v51 }
 0x7af   : > { %v10081_v19 = vcombine.high %v5318_v15, %v5334_v29  ;;  %v10080_v32 = vcombine.low %v5318_v15, %v5334_v29  ;;  %v5029_v29 = vld [vmem:[#allocation16 + $0x618] sm:$0xff] }
 0x7b1   : > { %8132 = vmatpush1.bf16.msra.mxu0 %v9850_v49  ;;  %8255 = vmatpush1.bf16.msra.mxu1 %v9856_v31  ;;  %v4853_v49 = vld [vmem:[#allocation16 + $0x98] sm:$0xff]  ;;  %v4840_v31 = vld [vmem:[#allocation16 + $0x30] sm:$0xff] }
 0x7b2   : > { %8133 = vmatprep.subr.bf16.mxu0 %v9883_v13  ;;  %8256 = vmatprep.subr.bf16.mxu1 %v9889_v20  ;;  %v4856_v13 = vld [vmem:[#allocation16 + $0xb0] sm:$0xff]  ;;  %v10074_v20 = vcombine.low %v5315_v12, %v5331_v51  ;;  %v9599_v11 = vcombine.high %v4837_v21, %v4853_v49 }
 0x7b3   : > { %v9605_v35 = vcombine.high %v4840_v31, %v4856_v13  ;;  %v9604_v23 = vcombine.low %v4840_v31, %v4856_v13  ;;  %v5061_v13 = vld [vmem:[#allocation16 + $0x718] sm:$0xff] }
 0x7b5   : > { %8134 = vmatpush1.bf16.msra.mxu0 %v9882_v25  ;;  %8257 = vmatpush1.bf16.msra.mxu1 %v9888_v37  ;;  %v4885_v25 = vld [vmem:[#allocation16 + $0x198] sm:$0xff]  ;;  %v4872_v37 = vld [vmem:[#allocation16 + $0x130] sm:$0xff] }
 0x7b6   : > { %8135 = vmatprep.subr.bf16.mxu0 %v9915_v38  ;;  %8258 = vmatprep.subr.bf16.mxu1 %v9921_v39  ;;  %v4888_v38 = vld [vmem:[#allocation16 + $0x1b0] sm:$0xff]  ;;  %v9598_v39 = vcombine.low %v4837_v21, %v4853_v49  ;;  %v9631_v28 = vcombine.high %v4869_v36, %v4885_v25 }
 0x7b7   : > { %v9637_v40 = vcombine.high %v4872_v37, %v4888_v38  ;;  %v9636_v53 = vcombine.low %v4872_v37, %v4888_v38  ;;  %v5093_v38 = vld [vmem:[#allocation16 + $0x818] sm:$0xff] }
 0x7b9   : > { %8136 = vmatpush1.bf16.msra.mxu0 %v9914_v42  ;;  %8259 = vmatpush1.bf16.msra.mxu1 %v9920_v45  ;;  %v4917_v42 = vld [vmem:[#allocation16 + $0x298] sm:$0xff]  ;;  %v4904_v45 = vld [vmem:[#allocation16 + $0x230] sm:$0xff] }
 0x7ba   : > { %8137 = vmatprep.subr.bf16.mxu0 %v9947_v47  ;;  %8260 = vmatprep.subr.bf16.mxu1 %v9953_v48  ;;  %v4920_v47 = vld [vmem:[#allocation16 + $0x2b0] sm:$0xff]  ;;  %v9630_v48 = vcombine.low %v4869_v36, %v4885_v25  ;;  %v9663_v54 = vcombine.high %v4901_v41, %v4917_v42 }
 0x7bb   : > { %v9669_v55 = vcombine.high %v4904_v45, %v4920_v47  ;;  %v9668_v61 = vcombine.low %v4904_v45, %v4920_v47  ;;  %v5125_v47 = vld [vmem:[#allocation16 + $0x918] sm:$0xff] }
 0x7bd   : > { %8138 = vmatpush1.bf16.msra.mxu0 %v9946_v57  ;;  %8261 = vmatpush1.bf16.msra.mxu1 %v9952_v59  ;;  %v4949_v57 = vld [vmem:[#allocation16 + $0x398] sm:$0xff]  ;;  %v4936_v59 = vld [vmem:[#allocation16 + $0x330] sm:$0xff] }
 0x7be   : > { %8139 = vmatprep.subr.bf16.mxu0 %v9979_v60  ;;  %8262 = vmatprep.subr.bf16.mxu1 %v9985_v46  ;;  %v4952_v60 = vld [vmem:[#allocation16 + $0x3b0] sm:$0xff]  ;;  %v9662_v46 = vcombine.low %v4901_v41, %v4917_v42  ;;  %v9695_v62 = vcombine.high %v4933_v56, %v4949_v57 }
 0x7bf   : > { %v9701_v63 = vcombine.high %v4936_v59, %v4952_v60  ;;  %v9700_v8 = vcombine.low %v4936_v59, %v4952_v60  ;;  %v5157_v60 = vld [vmem:[#allocation16 + $0xa18] sm:$0xff] }
 0x7c1   : > { %8140 = vmatpush1.bf16.msra.mxu0 %v9978_v3  ;;  %8263 = vmatpush1.bf16.msra.mxu1 %v9984_v4  ;;  %v4981_v3 = vld [vmem:[#allocation16 + $0x498] sm:$0xff]  ;;  %v4968_v4 = vld [vmem:[#allocation16 + $0x430] sm:$0xff] }
 0x7c2   : > { %8141 = vmatprep.subr.bf16.mxu0 %v10011_v5  ;;  %8264 = vmatprep.subr.bf16.mxu1 %v10017_v6  ;;  %v4984_v5 = vld [vmem:[#allocation16 + $0x4b0] sm:$0xff]  ;;  %v9694_v6 = vcombine.low %v4933_v56, %v4949_v57  ;;  %v9727_v1 = vcombine.high %v4965_v0, %v4981_v3 }
 0x7c3   : > { %v9733_v50 = vcombine.high %v4968_v4, %v4984_v5  ;;  %v9732_v12 = vcombine.low %v4968_v4, %v4984_v5  ;;  %v5189_v5 = vld [vmem:[#allocation16 + $0xb18] sm:$0xff] }
 0x7c5   : > { %8142 = vmatpush1.bf16.msra.mxu0 %v10010_v9  ;;  %8265 = vmatpush1.bf16.msra.mxu1 %v10016_v2  ;;  %v5013_v9 = vld [vmem:[#allocation16 + $0x598] sm:$0xff]  ;;  %v5000_v2 = vld [vmem:[#allocation16 + $0x530] sm:$0xff] }
 0x7c6   : > { %8143 = vmatprep.subr.bf16.mxu0 %v10043_v34  ;;  %8266 = vmatprep.subr.bf16.mxu1 %v10049_v10  ;;  %v5016_v34 = vld [vmem:[#allocation16 + $0x5b0] sm:$0xff]  ;;  %v9726_v10 = vcombine.low %v4965_v0, %v4981_v3  ;;  %v9759_v51 = vcombine.high %v4997_v58, %v5013_v9 }
 0x7c7   : > { %v9765_v15 = vcombine.high %v5000_v2, %v5016_v34  ;;  %v9764_v21 = vcombine.low %v5000_v2, %v5016_v34  ;;  %v5221_v34 = vld [vmem:[#allocation16 + $0xc18] sm:$0xff] }
 0x7c9   : > { %8144 = vmatpush1.bf16.msra.mxu0 %v10042_v16  ;;  %8267 = vmatpush1.bf16.msra.mxu1 %v10048_v17  ;;  %v5045_v16 = vld [vmem:[#allocation16 + $0x698] sm:$0xff]  ;;  %v5032_v17 = vld [vmem:[#allocation16 + $0x630] sm:$0xff] }
 0x7ca   : > { %8145 = vmatprep.subr.bf16.mxu0 %v10075_v18  ;;  %8268 = vmatprep.subr.bf16.mxu1 %v10081_v19  ;;  %v5048_v18 = vld [vmem:[#allocation16 + $0x6b0] sm:$0xff]  ;;  %v9758_v19 = vcombine.low %v4997_v58, %v5013_v9  ;;  %v9791_v49 = vcombine.high %v5029_v29, %v5045_v16 }
 0x7cb   : > { %v9797_v31 = vcombine.high %v5032_v17, %v5048_v18  ;;  %v9796_v36 = vcombine.low %v5032_v17, %v5048_v18  ;;  %v5253_v18 = vld [vmem:[#allocation16 + $0xd18] sm:$0xff] }
 0x7cd   : > { %8146 = vmatpush1.bf16.msra.mxu0 %v10074_v20  ;;  %8269 = vmatpush1.bf16.msra.mxu1 %v10080_v32  ;;  %v5077_v20 = vld [vmem:[#allocation16 + $0x798] sm:$0xff]  ;;  %v5064_v32 = vld [vmem:[#allocation16 + $0x730] sm:$0xff] }
 0x7ce   : > { %8197 = vmatprep.subr.bf16.mxu0 %v9599_v11  ;;  %8320 = vmatprep.subr.bf16.mxu1 %v9605_v35  ;;  %v5080_v11 = vld [vmem:[#allocation16 + $0x7b0] sm:$0xff]  ;;  %v9790_v35 = vcombine.low %v5029_v29, %v5045_v16  ;;  %v9823_v25 = vcombine.high %v5061_v13, %v5077_v20 }
 0x7cf   : > { %v9829_v37 = vcombine.high %v5064_v32, %v5080_v11  ;;  %v9828_v41 = vcombine.low %v5064_v32, %v5080_v11  ;;  %v5285_v11 = vld [vmem:[#allocation16 + $0xe18] sm:$0xff] }
 0x7d0   : > { %8148 = vmatmul.mubr.bf16.vlgmr.msra.gmra.mrb[96].mxu0 %v13136_v33  ;;  %8271 = vmatmul.mubr.bf16.vlgmr.msra.gmra.mrb[100].mxu1 %v13136_v33 }
 0x7d1   : > { %8198 = vmatpush1.bf16.msra.mxu0 %v9598_v39  ;;  %8229 = vmatprep.mubr.bf16.mxu0 %v13134_v30  ;;  %v5109_v39 = vld [vmem:[#allocation16 + $0x898] sm:$0xff] }
 0x7d2   : > { %8321 = vmatpush1.bf16.msra.mxu1 %v9604_v23  ;;  %8352 = vmatprep.mubr.bf16.mxu1 %v13134_v30  ;;  %v5096_v23 = vld [vmem:[#allocation16 + $0x830] sm:$0xff]  ;;  %v9855_v42 = vcombine.high %v5093_v38, %v5109_v39 }
 0x7d3   : > { %8199 = vmatprep.subr.bf16.mxu0 %v9631_v28  ;;  %8322 = vmatprep.subr.bf16.mxu1 %v9637_v40  ;;  %v5112_v28 = vld [vmem:[#allocation16 + $0x8b0] sm:$0xff]  ;;  %v9822_v40 = vcombine.low %v5061_v13, %v5077_v20 }
 0x7d4   : > { %v9861_v45 = vcombine.high %v5096_v23, %v5112_v28  ;;  %v9860_v56 = vcombine.low %v5096_v23, %v5112_v28  ;;  %v5317_v28 = vld [vmem:[#allocation16 + $0xf18] sm:$0xff] }
 0x7d5   : > { %8200 = vmatpush1.bf16.msra.mxu0 %v9630_v48  ;;  %v5141_v48 = vld [vmem:[#allocation16 + $0x998] sm:$0xff] }
 0x7d6   : > { %8323 = vmatpush1.bf16.msra.mxu1 %v9636_v53  ;;  %8201 = vmatprep.subr.bf16.mxu0 %v9663_v54  ;;  %v5128_v53 = vld [vmem:[#allocation16 + $0x930] sm:$0xff]  ;;  %v9887_v57 = vcombine.high %v5125_v47, %v5141_v48 }
 0x7d7   : > { %8324 = vmatprep.subr.bf16.mxu1 %v9669_v55  ;;  %v5144_v54 = vld [vmem:[#allocation16 + $0x9b0] sm:$0xff]  ;;  %v9854_v55 = vcombine.low %v5093_v38, %v5109_v39 }
 0x7d8   : > { %v9893_v59 = vcombine.high %v5128_v53, %v5144_v54  ;;  %v9892_v0 = vcombine.low %v5128_v53, %v5144_v54  ;;  %v4839_v54 = vld [vmem:[#allocation16 + $0x28] sm:$0xff] }
 0x7d9   : > { %8202 = vmatpush1.bf16.msra.mxu0 %v9662_v46  ;;  %v5173_v46 = vld [vmem:[#allocation16 + $0xa98] sm:$0xff] }
 0x7da   : > { %8325 = vmatpush1.bf16.msra.mxu1 %v9668_v61  ;;  %8203 = vmatprep.subr.bf16.mxu0 %v9695_v62  ;;  %v5160_v61 = vld [vmem:[#allocation16 + $0xa30] sm:$0xff]  ;;  %v9919_v3 = vcombine.high %v5157_v60, %v5173_v46 }
 0x7db   : > { %8326 = vmatprep.subr.bf16.mxu1 %v9701_v63  ;;  %v5176_v62 = vld [vmem:[#allocation16 + $0xab0] sm:$0xff]  ;;  %v9886_v63 = vcombine.low %v5125_v47, %v5141_v48 }
 0x7dc   : > { %v9925_v4 = vcombine.high %v5160_v61, %v5176_v62  ;;  %v9924_v58 = vcombine.low %v5160_v61, %v5176_v62  ;;  %v4871_v62 = vld [vmem:[#allocation16 + $0x128] sm:$0xff] }
 0x7dd   : > { %8204 = vmatpush1.bf16.msra.mxu0 %v9694_v6  ;;  %v5205_v6 = vld [vmem:[#allocation16 + $0xb98] sm:$0xff] }
 0x7de   : > { %8327 = vmatpush1.bf16.msra.mxu1 %v9700_v8  ;;  %8205 = vmatprep.subr.bf16.mxu0 %v9727_v1  ;;  %v5192_v8 = vld [vmem:[#allocation16 + $0xb30] sm:$0xff]  ;;  %v9951_v9 = vcombine.high %v5189_v5, %v5205_v6 }
 0x7df   : > { %8328 = vmatprep.subr.bf16.mxu1 %v9733_v50  ;;  %v5208_v1 = vld [vmem:[#allocation16 + $0xbb0] sm:$0xff]  ;;  %v9918_v50 = vcombine.low %v5157_v60, %v5173_v46 }
 0x7e0   : > { %v9957_v2 = vcombine.high %v5192_v8, %v5208_v1  ;;  %v9956_v29 = vcombine.low %v5192_v8, %v5208_v1  ;;  %v4903_v8 = vld [vmem:[#allocation16 + $0x228] sm:$0xff] }
 0x7e1   : > { %8206 = vmatpush1.bf16.msra.mxu0 %v9726_v10  ;;  %v5237_v10 = vld [vmem:[#allocation16 + $0xc98] sm:$0xff]  ;;  %v4919_v1 = vld [vmem:[#allocation16 + $0x2a8] sm:$0xff] }
 0x7e2   : > { %8329 = vmatpush1.bf16.msra.mxu1 %v9732_v12  ;;  %8207 = vmatprep.subr.bf16.mxu0 %v9759_v51  ;;  %v5224_v12 = vld [vmem:[#allocation16 + $0xc30] sm:$0xff]  ;;  %v9983_v16 = vcombine.high %v5221_v34, %v5237_v10 }
 0x7e3   : > { %8330 = vmatprep.subr.bf16.mxu1 %v9765_v15  ;;  %v5240_v51 = vld [vmem:[#allocation16 + $0xcb0] sm:$0xff]  ;;  %v9950_v15 = vcombine.low %v5189_v5, %v5205_v6 }
 0x7e4   : > { %v9989_v17 = vcombine.high %v5224_v12, %v5240_v51  ;;  %v9988_v13 = vcombine.low %v5224_v12, %v5240_v51  ;;  %v4935_v51 = vld [vmem:[#allocation16 + $0x328] sm:$0xff] }
 0x7e5   : > { %8208 = vmatpush1.bf16.msra.mxu0 %v9758_v19  ;;  %v5269_v19 = vld [vmem:[#allocation16 + $0xd98] sm:$0xff] }
 0x7e6   : > { %8331 = vmatpush1.bf16.msra.mxu1 %v9764_v21  ;;  %8209 = vmatprep.subr.bf16.mxu0 %v9791_v49  ;;  %v5256_v21 = vld [vmem:[#allocation16 + $0xd30] sm:$0xff]  ;;  %v10015_v20 = vcombine.high %v5253_v18, %v5269_v19 }
 0x7e7   : > { %8332 = vmatprep.subr.bf16.mxu1 %v9797_v31  ;;  %v5272_v49 = vld [vmem:[#allocation16 + $0xdb0] sm:$0xff]  ;;  %v9982_v31 = vcombine.low %v5221_v34, %v5237_v10  ;;  %v9667_v10 = vcombine.high %v4903_v8, %v4919_v1 }
 0x7e8   : > { %v10021_v32 = vcombine.high %v5256_v21, %v5272_v49  ;;  %v10020_v38 = vcombine.low %v5256_v21, %v5272_v49  ;;  %v4967_v49 = vld [vmem:[#allocation16 + $0x428] sm:$0xff] }
 0x7e9   : > { %8210 = vmatpush1.bf16.msra.mxu0 %v9790_v35  ;;  %v5301_v35 = vld [vmem:[#allocation16 + $0xe98] sm:$0xff] }
 0x7ea   : > { %8333 = vmatpush1.bf16.msra.mxu1 %v9796_v36  ;;  %8211 = vmatprep.subr.bf16.mxu0 %v9823_v25  ;;  %v5288_v36 = vld [vmem:[#allocation16 + $0xe30] sm:$0xff]  ;;  %v10047_v39 = vcombine.high %v5285_v11, %v5301_v35 }
 0x7eb   : > { %8334 = vmatprep.subr.bf16.mxu1 %v9829_v37  ;;  %v5304_v25 = vld [vmem:[#allocation16 + $0xeb0] sm:$0xff]  ;;  %v10014_v37 = vcombine.low %v5253_v18, %v5269_v19 }
 0x7ec   : > { %v10053_v23 = vcombine.high %v5288_v36, %v5304_v25  ;;  %v10052_v47 = vcombine.low %v5288_v36, %v5304_v25  ;;  %v4999_v25 = vld [vmem:[#allocation16 + $0x528] sm:$0xff] }
 0x7ed   : > { %8212 = vmatpush1.bf16.msra.mxu0 %v9822_v40  ;;  %v5333_v40 = vld [vmem:[#allocation16 + $0xf98] sm:$0xff] }
 0x7ee   : > { %8335 = vmatpush1.bf16.msra.mxu1 %v9828_v41  ;;  %8213 = vmatprep.subr.bf16.mxu0 %v9855_v42  ;;  %v5320_v41 = vld [vmem:[#allocation16 + $0xf30] sm:$0xff]  ;;  %v10079_v48 = vcombine.high %v5317_v28, %v5333_v40 }
 0x7ef   : > { %8336 = vmatprep.subr.bf16.mxu1 %v9861_v45  ;;  %v5336_v42 = vld [vmem:[#allocation16 + $0xfb0] sm:$0xff]  ;;  %v10046_v45 = vcombine.low %v5285_v11, %v5301_v35 }
 0x7f0   : > { %v10085_v53 = vcombine.high %v5320_v41, %v5336_v42  ;;  %v10084_v60 = vcombine.low %v5320_v41, %v5336_v42  ;;  %v5031_v42 = vld [vmem:[#allocation16 + $0x628] sm:$0xff] }
 0x7f1   : > { %8214 = vmatpush1.bf16.msra.mxu0 %v9854_v55  ;;  %v4855_v55 = vld [vmem:[#allocation16 + $0xa8] sm:$0xff] }
 0x7f2   : > { %8337 = vmatpush1.bf16.msra.mxu1 %v9860_v56  ;;  %8215 = vmatprep.subr.bf16.mxu0 %v9887_v57  ;;  %v4842_v56 = vld [vmem:[#allocation16 + $0x40] sm:$0xff]  ;;  %v9603_v46 = vcombine.high %v4839_v54, %v4855_v55 }
 0x7f3   : > { %8338 = vmatprep.subr.bf16.mxu1 %v9893_v59  ;;  %v4858_v57 = vld [vmem:[#allocation16 + $0xc0] sm:$0xff]  ;;  %v10078_v59 = vcombine.low %v5317_v28, %v5333_v40 }
 0x7f4   : > { %v9609_v61 = vcombine.high %v4842_v56, %v4858_v57  ;;  %v9608_v5 = vcombine.low %v4842_v56, %v4858_v57  ;;  %v5063_v57 = vld [vmem:[#allocation16 + $0x728] sm:$0xff] }
 0x7f5   : > { %8216 = vmatpush1.bf16.msra.mxu0 %v9886_v63  ;;  %v4887_v63 = vld [vmem:[#allocation16 + $0x1a8] sm:$0xff] }
 0x7f6   : > { %8339 = vmatpush1.bf16.msra.mxu1 %v9892_v0  ;;  %8217 = vmatprep.subr.bf16.mxu0 %v9919_v3  ;;  %v9602_v0 = vcombine.low %v4839_v54, %v4855_v55  ;;  %v4874_v3 = vld [vmem:[#allocation16 + $0x140] sm:$0xff]  ;;  %v9635_v6 = vcombine.high %v4871_v62, %v4887_v63 }
 0x7f7   : > { %8340 = vmatprep.subr.bf16.mxu1 %v9925_v4  ;;  %v4890_v4 = vld [vmem:[#allocation16 + $0x1c0] sm:$0xff] }
 0x7f8   : > { %v9640_v34 = vcombine.low %v4874_v3, %v4890_v4 }
 0x7f9   : > { %8218 = vmatpush1.bf16.msra.mxu0 %v9918_v50  ;;  %v9641_v50 = vcombine.high %v4874_v3, %v4890_v4  ;;  %v5095_v3 = vld [vmem:[#allocation16 + $0x828] sm:$0xff] }
 0x7fa   : > { %8341 = vmatpush1.bf16.msra.mxu1 %v9924_v58  ;;  %8219 = vmatprep.subr.bf16.mxu0 %v9951_v9  ;;  %v4906_v58 = vld [vmem:[#allocation16 + $0x240] sm:$0xff]  ;;  %v5111_v4 = vld [vmem:[#allocation16 + $0x8a8] sm:$0xff] }
 0x7fb   : > { %8342 = vmatprep.subr.bf16.mxu1 %v9957_v2  ;;  %v4922_v9 = vld [vmem:[#allocation16 + $0x2c0] sm:$0xff]  ;;  %v9634_v2 = vcombine.low %v4871_v62, %v4887_v63 }
 0x7fc   : > { %v9673_v12 = vcombine.high %v4906_v58, %v4922_v9  ;;  %v9672_v18 = vcombine.low %v4906_v58, %v4922_v9  ;;  %v5127_v9 = vld [vmem:[#allocation16 + $0x928] sm:$0xff] }
 0x7fd   : > { %8220 = vmatpush1.bf16.msra.mxu0 %v9950_v15  ;;  %v4951_v15 = vld [vmem:[#allocation16 + $0x3a8] sm:$0xff] }
 0x7fe   : > { %8343 = vmatpush1.bf16.msra.mxu1 %v9956_v29  ;;  %8221 = vmatprep.subr.bf16.mxu0 %v9983_v16  ;;  %v4938_v29 = vld [vmem:[#allocation16 + $0x340] sm:$0xff]  ;;  %v9699_v19 = vcombine.high %v4935_v51, %v4951_v15 }
 0x7ff   : > { %8344 = vmatprep.subr.bf16.mxu1 %v9989_v17  ;;  %v4954_v16 = vld [vmem:[#allocation16 + $0x3c0] sm:$0xff]  ;;  %v9666_v17 = vcombine.low %v4903_v8, %v4919_v1 }
 0x800   : > { %v9705_v21 = vcombine.high %v4938_v29, %v4954_v16  ;;  %v9704_v11 = vcombine.low %v4938_v29, %v4954_v16  ;;  %v5159_v16 = vld [vmem:[#allocation16 + $0xa28] sm:$0xff] }
 0x801   : > { %8222 = vmatpush1.bf16.msra.mxu0 %v9982_v31  ;;  %v4983_v31 = vld [vmem:[#allocation16 + $0x4a8] sm:$0xff] }
 0x802   : > { %8345 = vmatpush1.bf16.msra.mxu1 %v9988_v13  ;;  %8223 = vmatprep.subr.bf16.mxu0 %v10015_v20  ;;  %v4970_v13 = vld [vmem:[#allocation16 + $0x440] sm:$0xff]  ;;  %v9731_v35 = vcombine.high %v4967_v49, %v4983_v31 }
 0x803   : > { %8346 = vmatprep.subr.bf16.mxu1 %v10021_v32  ;;  %v4986_v20 = vld [vmem:[#allocation16 + $0x4c0] sm:$0xff]  ;;  %v9698_v32 = vcombine.low %v4935_v51, %v4951_v15 }
 0x804   : > { %v9737_v36 = vcombine.high %v4970_v13, %v4986_v20  ;;  %v9736_v28 = vcombine.low %v4970_v13, %v4986_v20  ;;  %v5191_v20 = vld [vmem:[#allocation16 + $0xb28] sm:$0xff] }
 0x805   : > { %8224 = vmatpush1.bf16.msra.mxu0 %v10014_v37  ;;  %v5015_v37 = vld [vmem:[#allocation16 + $0x5a8] sm:$0xff] }
 0x806   : > { %8347 = vmatpush1.bf16.msra.mxu1 %v10020_v38  ;;  %8225 = vmatprep.subr.bf16.mxu0 %v10047_v39  ;;  %v5002_v38 = vld [vmem:[#allocation16 + $0x540] sm:$0xff]  ;;  %v9763_v40 = vcombine.high %v4999_v25, %v5015_v37 }
 0x807   : > { %8348 = vmatprep.subr.bf16.mxu1 %v10053_v23  ;;  %v5018_v39 = vld [vmem:[#allocation16 + $0x5c0] sm:$0xff]  ;;  %v9730_v23 = vcombine.low %v4967_v49, %v4983_v31 }
 0x808   : > { %v9769_v41 = vcombine.high %v5002_v38, %v5018_v39  ;;  %v9768_v54 = vcombine.low %v5002_v38, %v5018_v39  ;;  %v5223_v39 = vld [vmem:[#allocation16 + $0xc28] sm:$0xff] }
 0x809   : > { %8226 = vmatpush1.bf16.msra.mxu0 %v10046_v45  ;;  %v5047_v45 = vld [vmem:[#allocation16 + $0x6a8] sm:$0xff] }
 0x80a   : > { %8349 = vmatpush1.bf16.msra.mxu1 %v10052_v47  ;;  %8227 = vmatprep.subr.bf16.mxu0 %v10079_v48  ;;  %v5034_v47 = vld [vmem:[#allocation16 + $0x640] sm:$0xff]  ;;  %v9795_v55 = vcombine.high %v5031_v42, %v5047_v45 }
 0x80b   : > { %8350 = vmatprep.subr.bf16.mxu1 %v10085_v53  ;;  %v5050_v48 = vld [vmem:[#allocation16 + $0x6c0] sm:$0xff]  ;;  %v9762_v53 = vcombine.low %v4999_v25, %v5015_v37 }
 0x80c   : > { %v9801_v56 = vcombine.high %v5034_v47, %v5050_v48  ;;  %v9800_v62 = vcombine.low %v5034_v47, %v5050_v48  ;;  %v5255_v48 = vld [vmem:[#allocation16 + $0xd28] sm:$0xff] }
 0x80d   : > { %8228 = vmatpush1.bf16.msra.mxu0 %v10078_v59  ;;  %v5079_v59 = vld [vmem:[#allocation16 + $0x7a8] sm:$0xff] }
 0x80e   : > { %8351 = vmatpush1.bf16.msra.mxu1 %v10084_v60  ;;  %8279 = vmatprep.subr.bf16.mxu0 %v9603_v46  ;;  %v5066_v60 = vld [vmem:[#allocation16 + $0x740] sm:$0xff]  ;;  %v9827_v63 = vcombine.high %v5063_v57, %v5079_v59  ;;  %v9826_v8 = vcombine.low %v5063_v57, %v5079_v59 }
 0x80f   : > { %8402 = vmatprep.subr.bf16.mxu1 %v9609_v61  ;;  %v5082_v46 = vld [vmem:[#allocation16 + $0x7c0] sm:$0xff]  ;;  %v9794_v61 = vcombine.low %v5031_v42, %v5047_v45 }
 0x810   : > { %8230 = vmatmul.mubr.bf16.vlgmr.msra.gmra.mrb[100].mxu0 %v13136_v33  ;;  %v9832_v1 = vcombine.low %v5066_v60, %v5082_v46 }
 0x811   : > { %8353 = vmatmul.mubr.bf16.vlgmr.msra.gmra.mrb[104].mxu1 %v13136_v33  ;;  %8280 = vmatpush1.bf16.msra.mxu0 %v9602_v0  ;;  %v9833_v0 = vcombine.high %v5066_v60, %v5082_v46  ;;  %v5287_v46 = vld [vmem:[#allocation16 + $0xe28] sm:$0xff] }
 0x812   : > { %8311 = vmatprep.mubr.bf16.mxu0 %v13134_v30  ;;  %8403 = vmatpush1.bf16.msra.mxu1 %v9608_v5  ;;  %v5098_v5 = vld [vmem:[#allocation16 + $0x840] sm:$0xff] }
 0x813   : > { %8434 = vmatprep.mubr.bf16.mxu1 %v13134_v30  ;;  %8281 = vmatprep.subr.bf16.mxu0 %v9635_v6  ;;  %v5114_v6 = vld [vmem:[#allocation16 + $0x8c0] sm:$0xff] }
 0x814   : > { %8404 = vmatprep.subr.bf16.mxu1 %v9641_v50  ;;  %v9859_v50 = vcombine.high %v5095_v3, %v5111_v4  ;;  %v9865_v58 = vcombine.high %v5098_v5, %v5114_v6  ;;  %v9864_v51 = vcombine.low %v5098_v5, %v5114_v6  ;;  %v5319_v6 = vld [vmem:[#allocation16 + $0xf28] sm:$0xff] }
 0x815   : > { %8282 = vmatpush1.bf16.msra.mxu0 %v9634_v2  ;;  %v5143_v2 = vld [vmem:[#allocation16 + $0x9a8] sm:$0xff] }
 0x816   : > { %8405 = vmatpush1.bf16.msra.mxu1 %v9640_v34  ;;  %8283 = vmatprep.subr.bf16.mxu0 %v9667_v10  ;;  %v5130_v34 = vld [vmem:[#allocation16 + $0x940] sm:$0xff]  ;;  %v9891_v15 = vcombine.high %v5127_v9, %v5143_v2 }
 0x817   : > { %8406 = vmatprep.subr.bf16.mxu1 %v9673_v12  ;;  %v5146_v10 = vld [vmem:[#allocation16 + $0x9c0] sm:$0xff]  ;;  %v9858_v12 = vcombine.low %v5095_v3, %v5111_v4 }
 0x818   : > { %v9897_v29 = vcombine.high %v5130_v34, %v5146_v10  ;;  %v9896_v49 = vcombine.low %v5130_v34, %v5146_v10  ;;  %v4841_v10 = vld [vmem:[#allocation16 + $0x38] sm:$0xff] }
 0x819   : > { %8284 = vmatpush1.bf16.msra.mxu0 %v9666_v17  ;;  %v5175_v17 = vld [vmem:[#allocation16 + $0xaa8] sm:$0xff] }
 0x81a   : > { %8407 = vmatpush1.bf16.msra.mxu1 %v9672_v18  ;;  %8285 = vmatprep.subr.bf16.mxu0 %v9699_v19  ;;  %v5162_v18 = vld [vmem:[#allocation16 + $0xa40] sm:$0xff]  ;;  %v9923_v31 = vcombine.high %v5159_v16, %v5175_v17 }
 0x81b   : > { %8408 = vmatprep.subr.bf16.mxu1 %v9705_v21  ;;  %v5178_v19 = vld [vmem:[#allocation16 + $0xac0] sm:$0xff]  ;;  %v9890_v21 = vcombine.low %v5127_v9, %v5143_v2 }
 0x81c   : > { %v9929_v13 = vcombine.high %v5162_v18, %v5178_v19  ;;  %v9928_v25 = vcombine.low %v5162_v18, %v5178_v19  ;;  %v4873_v19 = vld [vmem:[#allocation16 + $0x138] sm:$0xff] }
 0x81d   : > { %8286 = vmatpush1.bf16.msra.mxu0 %v9698_v32  ;;  %v5207_v32 = vld [vmem:[#allocation16 + $0xba8] sm:$0xff] }
 0x81e   : > { %8409 = vmatpush1.bf16.msra.mxu1 %v9704_v11  ;;  %8287 = vmatprep.subr.bf16.mxu0 %v9731_v35  ;;  %v5194_v11 = vld [vmem:[#allocation16 + $0xb40] sm:$0xff]  ;;  %v9955_v37 = vcombine.high %v5191_v20, %v5207_v32 }
 0x81f   : > { %8410 = vmatprep.subr.bf16.mxu1 %v9737_v36  ;;  %v5210_v35 = vld [vmem:[#allocation16 + $0xbc0] sm:$0xff]  ;;  %v9922_v36 = vcombine.low %v5159_v16, %v5175_v17 }
 0x820   : > { %v9961_v38 = vcombine.high %v5194_v11, %v5210_v35  ;;  %v9960_v42 = vcombine.low %v5194_v11, %v5210_v35  ;;  %v4905_v11 = vld [vmem:[#allocation16 + $0x238] sm:$0xff] }
 0x821   : > { %8288 = vmatpush1.bf16.msra.mxu0 %v9730_v23  ;;  %v5239_v23 = vld [vmem:[#allocation16 + $0xca8] sm:$0xff]  ;;  %v4921_v35 = vld [vmem:[#allocation16 + $0x2b8] sm:$0xff] }
 0x822   : > { %8411 = vmatpush1.bf16.msra.mxu1 %v9736_v28  ;;  %8289 = vmatprep.subr.bf16.mxu0 %v9763_v40  ;;  %v5226_v28 = vld [vmem:[#allocation16 + $0xc40] sm:$0xff]  ;;  %v9987_v45 = vcombine.high %v5223_v39, %v5239_v23 }
 0x823   : > { %8412 = vmatprep.subr.bf16.mxu1 %v9769_v41  ;;  %v5242_v40 = vld [vmem:[#allocation16 + $0xcc0] sm:$0xff]  ;;  %v9954_v41 = vcombine.low %v5191_v20, %v5207_v32 }
 0x824   : > { %v9993_v47 = vcombine.high %v5226_v28, %v5242_v40  ;;  %v9992_v57 = vcombine.low %v5226_v28, %v5242_v40  ;;  %v4937_v40 = vld [vmem:[#allocation16 + $0x338] sm:$0xff] }
 0x825   : > { %8290 = vmatpush1.bf16.msra.mxu0 %v9762_v53  ;;  %v5271_v53 = vld [vmem:[#allocation16 + $0xda8] sm:$0xff] }
 0x826   : > { %8413 = vmatpush1.bf16.msra.mxu1 %v9768_v54  ;;  %8291 = vmatprep.subr.bf16.mxu0 %v9795_v55  ;;  %v5258_v54 = vld [vmem:[#allocation16 + $0xd40] sm:$0xff]  ;;  %v10019_v59 = vcombine.high %v5255_v48, %v5271_v53 }
 0x827   : > { %8414 = vmatprep.subr.bf16.mxu1 %v9801_v56  ;;  %v5274_v55 = vld [vmem:[#allocation16 + $0xdc0] sm:$0xff]  ;;  %v9986_v56 = vcombine.low %v5223_v39, %v5239_v23  ;;  %v9671_v23 = vcombine.high %v4905_v11, %v4921_v35 }
 0x828   : > { %v10025_v60 = vcombine.high %v5258_v54, %v5274_v55  ;;  %v10024_v3 = vcombine.low %v5258_v54, %v5274_v55  ;;  %v4969_v55 = vld [vmem:[#allocation16 + $0x438] sm:$0xff] }
 0x829   : > { %8292 = vmatpush1.bf16.msra.mxu0 %v9794_v61  ;;  %v5303_v61 = vld [vmem:[#allocation16 + $0xea8] sm:$0xff] }
 0x82a   : > { %8415 = vmatpush1.bf16.msra.mxu1 %v9800_v62  ;;  %8293 = vmatprep.subr.bf16.mxu0 %v9827_v63  ;;  %v5290_v62 = vld [vmem:[#allocation16 + $0xe40] sm:$0xff]  ;;  %v10051_v4 = vcombine.high %v5287_v46, %v5303_v61 }
 0x82b   : > { %8416 = vmatprep.subr.bf16.mxu1 %v9833_v0  ;;  %v5306_v63 = vld [vmem:[#allocation16 + $0xec0] sm:$0xff]  ;;  %v10018_v0 = vcombine.low %v5255_v48, %v5271_v53 }
 0x82c   : > { %v10057_v5 = vcombine.high %v5290_v62, %v5306_v63  ;;  %v10056_v9 = vcombine.low %v5290_v62, %v5306_v63  ;;  %v5001_v63 = vld [vmem:[#allocation16 + $0x538] sm:$0xff] }
 0x82d   : > { %8294 = vmatpush1.bf16.msra.mxu0 %v9826_v8  ;;  %v5335_v8 = vld [vmem:[#allocation16 + $0xfa8] sm:$0xff] }
 0x82e   : > { %8417 = vmatpush1.bf16.msra.mxu1 %v9832_v1  ;;  %8295 = vmatprep.subr.bf16.mxu0 %v9859_v50  ;;  %v5322_v1 = vld [vmem:[#allocation16 + $0xf40] sm:$0xff]  ;;  %v10083_v2 = vcombine.high %v5319_v6, %v5335_v8 }
 0x82f   : > { %8418 = vmatprep.subr.bf16.mxu1 %v9865_v58  ;;  %v5338_v50 = vld [vmem:[#allocation16 + $0xfc0] sm:$0xff]  ;;  %v10050_v58 = vcombine.low %v5287_v46, %v5303_v61 }
 0x830   : > { %v10089_v34 = vcombine.high %v5322_v1, %v5338_v50  ;;  %v10088_v16 = vcombine.low %v5322_v1, %v5338_v50 }
 0x831   : > { %8296 = vmatpush1.bf16.msra.mxu0 %v9858_v12  ;;  %v4857_v12 = vld [vmem:[#allocation16 + $0xb8] sm:$0xff] }
 0x832   : > { %8419 = vmatpush1.bf16.msra.mxu1 %v9864_v51  ;;  %8297 = vmatprep.subr.bf16.mxu0 %v9891_v15  ;;  %v4844_v51 = vld [vmem:[#allocation16 + $0x50] sm:$0xff]  ;;  %v9607_v17 = vcombine.high %v4841_v10, %v4857_v12 }
 0x833   : > { %8420 = vmatprep.subr.bf16.mxu1 %v9897_v29  ;;  %v4860_v15 = vld [vmem:[#allocation16 + $0xd0] sm:$0xff]  ;;  %v10082_v29 = vcombine.low %v5319_v6, %v5335_v8  ;;  %v13156_v6 = vld [vmem:[#allocation17] sm:$0xff] }
 0x834   : > { %v9613_v18 = vcombine.high %v4844_v51, %v4860_v15  ;;  %v9612_v20 = vcombine.low %v4844_v51, %v4860_v15  ;;  %v7921_v15 = vrot.slane %v13156_v6, %v12164_v26 }
 0x835   : > { %8298 = vmatpush1.bf16.msra.mxu0 %v9890_v21  ;;  %v4889_v21 = vld [vmem:[#allocation16 + $0x1b8] sm:$0xff] }
 0x836   : > { %8421 = vmatpush1.bf16.msra.mxu1 %v9896_v49  ;;  %8299 = vmatprep.subr.bf16.mxu0 %v9923_v31  ;;  %v9606_v49 = vcombine.low %v4841_v10, %v4857_v12  ;;  %v4876_v31 = vld [vmem:[#allocation16 + $0x150] sm:$0xff]  ;;  %v9639_v32 = vcombine.high %v4873_v19, %v4889_v21 }
 0x837   : > { %8422 = vmatprep.subr.bf16.mxu1 %v9929_v13  ;;  %v4892_v13 = vld [vmem:[#allocation16 + $0x1d0] sm:$0xff] }
 0x838   : > { %v9644_v39 = vcombine.low %v4876_v31, %v4892_v13  ;;  %v5036_v10 = vld [vmem:[#allocation16 + $0x650] sm:$0xff] }
 0x839   : > { %8300 = vmatpush1.bf16.msra.mxu0 %v9922_v36  ;;  %v9645_v36 = vcombine.high %v4876_v31, %v4892_v13  ;;  %v5052_v12 = vld [vmem:[#allocation16 + $0x6d0] sm:$0xff]  ;;  %v5081_v31 = vld [vmem:[#allocation16 + $0x7b8] sm:$0xff] }
 0x83a   : > { %8423 = vmatpush1.bf16.msra.mxu1 %v9928_v25  ;;  %8301 = vmatprep.subr.bf16.mxu0 %v9955_v37  ;;  %v4908_v25 = vld [vmem:[#allocation16 + $0x250] sm:$0xff] }
 0x83b   : > { %8424 = vmatprep.subr.bf16.mxu1 %v9961_v38  ;;  %v4924_v37 = vld [vmem:[#allocation16 + $0x2d0] sm:$0xff]  ;;  %v9638_v38 = vcombine.low %v4873_v19, %v4889_v21  ;;  %v9805_v21 = vcombine.high %v5036_v10, %v5052_v12 }
 0x83c   : > { %v9677_v28 = vcombine.high %v4908_v25, %v4924_v37  ;;  %v9676_v48 = vcombine.low %v4908_v25, %v4924_v37 }
 0x83d   : > { %8302 = vmatpush1.bf16.msra.mxu0 %v9954_v41  ;;  %v4953_v41 = vld [vmem:[#allocation16 + $0x3b8] sm:$0xff] }
 0x83e   : > { %8425 = vmatpush1.bf16.msra.mxu1 %v9960_v42  ;;  %8303 = vmatprep.subr.bf16.mxu0 %v9987_v45  ;;  %v4940_v42 = vld [vmem:[#allocation16 + $0x350] sm:$0xff]  ;;  %v9703_v53 = vcombine.high %v4937_v40, %v4953_v41 }
 0x83f   : > { %8426 = vmatprep.subr.bf16.mxu1 %v9993_v47  ;;  %v4956_v45 = vld [vmem:[#allocation16 + $0x3d0] sm:$0xff]  ;;  %v9670_v47 = vcombine.low %v4905_v11, %v4921_v35 }
 0x840   : > { %v9709_v54 = vcombine.high %v4940_v42, %v4956_v45  ;;  %v9708_v46 = vcombine.low %v4940_v42, %v4956_v45  ;;  %v5068_v35 = vld [vmem:[#allocation16 + $0x750] sm:$0xff] }
 0x841   : > { %8304 = vmatpush1.bf16.msra.mxu0 %v9986_v56  ;;  %v4985_v56 = vld [vmem:[#allocation16 + $0x4b8] sm:$0xff] }
 0x842   : > { %8427 = vmatpush1.bf16.msra.mxu1 %v9992_v57  ;;  %8305 = vmatprep.subr.bf16.mxu0 %v10019_v59  ;;  %v4972_v57 = vld [vmem:[#allocation16 + $0x450] sm:$0xff]  ;;  %v9735_v61 = vcombine.high %v4969_v55, %v4985_v56 }
 0x843   : > { %8428 = vmatprep.subr.bf16.mxu1 %v10025_v60  ;;  %v4988_v59 = vld [vmem:[#allocation16 + $0x4d0] sm:$0xff]  ;;  %v9702_v60 = vcombine.low %v4937_v40, %v4953_v41  ;;  %v9804_v41 = vcombine.low %v5036_v10, %v5052_v12 }
 0x844   : > { %v9741_v62 = vcombine.high %v4972_v57, %v4988_v59  ;;  %v9740_v8 = vcombine.low %v4972_v57, %v4988_v59 }
 0x845   : > { %8306 = vmatpush1.bf16.msra.mxu0 %v10018_v0  ;;  %v5017_v0 = vld [vmem:[#allocation16 + $0x5b8] sm:$0xff] }
 0x846   : > { %8429 = vmatpush1.bf16.msra.mxu1 %v10024_v3  ;;  %8307 = vmatprep.subr.bf16.mxu0 %v10051_v4  ;;  %v5004_v3 = vld [vmem:[#allocation16 + $0x550] sm:$0xff]  ;;  %v9767_v1 = vcombine.high %v5001_v63, %v5017_v0  ;;  %v9766_v51 = vcombine.low %v5001_v63, %v5017_v0 }
 0x847   : > { %8430 = vmatprep.subr.bf16.mxu1 %v10057_v5  ;;  %v5020_v4 = vld [vmem:[#allocation16 + $0x5d0] sm:$0xff]  ;;  %v9734_v5 = vcombine.low %v4969_v55, %v4985_v56 }
 0x848   : > { %v9773_v50 = vcombine.high %v5004_v3, %v5020_v4  ;;  %v5100_v55 = vld [vmem:[#allocation16 + $0x850] sm:$0xff] }
 0x849   : > { %8308 = vmatpush1.bf16.msra.mxu0 %v10050_v58  ;;  %v5033_v58 = vld [vmem:[#allocation16 + $0x638] sm:$0xff]  ;;  %v5116_v56 = vld [vmem:[#allocation16 + $0x8d0] sm:$0xff] }
 0x84a   : > { %8431 = vmatpush1.bf16.msra.mxu1 %v10056_v9  ;;  %8309 = vmatprep.subr.bf16.mxu0 %v10083_v2  ;;  %v5049_v9 = vld [vmem:[#allocation16 + $0x6b8] sm:$0xff]  ;;  %v7917_v2 = vrot.slane %v13156_v6, %v12156_v22  ;;  %v5132_v63 = vld [vmem:[#allocation16 + $0x950] sm:$0xff] }
 0x84b   : > { %8432 = vmatprep.subr.bf16.mxu1 %v10089_v34  ;;  %v7933_v34 = vrot.slane %v13156_v6, %v12238_v7  ;;  %v5148_v0 = vld [vmem:[#allocation16 + $0x9d0] sm:$0xff] }
 0x84d   : > { %8310 = vmatpush1.bf16.msra.mxu0 %v10082_v29  ;;  %v7937_v29 = vrot.slane %v13156_v6, %v12250_v44 }
 0x84e   : > { %8433 = vmatpush1.bf16.msra.mxu1 %v10088_v16  ;;  %8361 = vmatprep.subr.bf16.mxu0 %v9607_v17  ;;  %v9772_v16 = vcombine.low %v5004_v3, %v5020_v4  ;;  %v9799_v17 = vcombine.high %v5033_v58, %v5049_v9  ;;  %v9868_v4 = vcombine.low %v5100_v55, %v5116_v56 }
 0x84f   : > { %8484 = vmatprep.subr.bf16.mxu1 %v9613_v18 }
 0x850   : > { %8312 = vmatmul.mubr.bf16.vlgmr.msra.gmra.mrb[104].mxu0 %v13136_v33 }
 0x851   : > { %8435 = vmatmul.mubr.bf16.vlgmr.msra.gmra.mrb[108].mxu1 %v13136_v33  ;;  %8362 = vmatpush1.bf16.msra.mxu0 %v9606_v49  ;;  %v5065_v49 = vld [vmem:[#allocation16 + $0x738] sm:$0xff] }
 0x852   : > { %8393 = vmatprep.mubr.bf16.mxu0 %v13134_v30  ;;  %8485 = vmatpush1.bf16.msra.mxu1 %v9612_v20  ;;  %v9831_v42 = vcombine.high %v5065_v49, %v5081_v31  ;;  %v9830_v57 = vcombine.low %v5065_v49, %v5081_v31  ;;  %v5225_v49 = vld [vmem:[#allocation16 + $0xc38] sm:$0xff] }
 0x853   : > { %8516 = vmatprep.mubr.bf16.mxu1 %v13134_v30  ;;  %8363 = vmatprep.subr.bf16.mxu0 %v9639_v32  ;;  %v5241_v31 = vld [vmem:[#allocation16 + $0xcb8] sm:$0xff] }
 0x854   : > { %8486 = vmatprep.subr.bf16.mxu1 %v9645_v36  ;;  %v5084_v36 = vld [vmem:[#allocation16 + $0x7d0] sm:$0xff] }
 0x855   : > { %8364 = vmatpush1.bf16.msra.mxu0 %v9638_v38  ;;  %v9836_v59 = vcombine.low %v5068_v35, %v5084_v36 }
 0x856   : > { %8487 = vmatpush1.bf16.msra.mxu1 %v9644_v39  ;;  %8365 = vmatprep.subr.bf16.mxu0 %v9671_v23  ;;  %v9798_v23 = vcombine.low %v5033_v58, %v5049_v9  ;;  %v5164_v58 = vld [vmem:[#allocation16 + $0xa50] sm:$0xff] }
 0x857   : > { %8488 = vmatprep.subr.bf16.mxu1 %v9677_v28  ;;  %v5180_v9 = vld [vmem:[#allocation16 + $0xad0] sm:$0xff] }
 0x858   : > { %v9933_v12 = vcombine.high %v5164_v58, %v5180_v9 }
 0x859   : > { %8366 = vmatpush1.bf16.msra.mxu0 %v9670_v47 }
 0x85a   : > { %8489 = vmatpush1.bf16.msra.mxu1 %v9676_v48  ;;  %8367 = vmatprep.subr.bf16.mxu0 %v9703_v53  ;;  %v9837_v48 = vcombine.high %v5068_v35, %v5084_v36  ;;  %v5097_v53 = vld [vmem:[#allocation16 + $0x838] sm:$0xff] }
 0x85b   : > { %8490 = vmatprep.subr.bf16.mxu1 %v9709_v54  ;;  %v5113_v54 = vld [vmem:[#allocation16 + $0x8b8] sm:$0xff] }
 0x85c   : > { %v9862_v3 = vcombine.low %v5097_v53, %v5113_v54 }
 0x85d   : > { %8368 = vmatpush1.bf16.msra.mxu0 %v9702_v60  ;;  %v9863_v60 = vcombine.high %v5097_v53, %v5113_v54 }
 0x85e   : > { %8491 = vmatpush1.bf16.msra.mxu1 %v9708_v46  ;;  %8369 = vmatprep.subr.bf16.mxu0 %v9735_v61  ;;  %v9869_v46 = vcombine.high %v5100_v55, %v5116_v56  ;;  %v5129_v61 = vld [vmem:[#allocation16 + $0x938] sm:$0xff] }
 0x85f   : > { %8492 = vmatprep.subr.bf16.mxu1 %v9741_v62  ;;  %v5145_v62 = vld [vmem:[#allocation16 + $0x9b8] sm:$0xff] }
 0x860   : > { %v5289_v55 = vld [vmem:[#allocation16 + $0xe38] sm:$0xff] }
 0x861   : > { %8370 = vmatpush1.bf16.msra.mxu0 %v9734_v5  ;;  %v9895_v5 = vcombine.high %v5129_v61, %v5145_v62  ;;  %v5305_v56 = vld [vmem:[#allocation16 + $0xeb8] sm:$0xff] }
 0x862   : > { %8493 = vmatpush1.bf16.msra.mxu1 %v9740_v8  ;;  %8371 = vmatprep.subr.bf16.mxu0 %v9767_v1  ;;  %v9901_v8 = vcombine.high %v5132_v63, %v5148_v0  ;;  %v5161_v1 = vld [vmem:[#allocation16 + $0xa38] sm:$0xff] }
 0x863   : > { %v8108_v18 = vpop.f32.mrb[92].mxu0  ;;  %v8190_v19 = vpop.f32.mrb[96].mxu1  ;;  %8494 = vmatprep.subr.bf16.mxu1 %v9773_v50  ;;  %v5177_v50 = vld [vmem:[#allocation16 + $0xab8] sm:$0xff] }
 0x864   : > { %v13166_v13 = vadd.f32 %v8108_v18, %v7917_v2  ;;  %v13168_v20 = vadd.f32 %v8190_v19, %v7933_v34  ;;  %v8110_v32 = vpop.f32.mrb[93].mxu0  ;;  %v8192_v11 = vpop.f32.mrb[97].mxu1  ;;  %v9894_v2 = vcombine.low %v5129_v61, %v5145_v62  ;;  %v9900_v34 = vcombine.low %v5132_v63, %v5148_v0  ;;  %v5321_v63 = vld [vmem:[#allocation16 + $0xf38] sm:$0xff] }
 0x865   : > { %v13170_v25 = vadd.f32 %v8110_v32, %v7921_v15  ;;  %v13172_v37 = vadd.f32 %v8192_v11, %v7937_v29  ;;  %8372 = vmatpush1.bf16.msra.mxu0 %v9766_v51  ;;  %v8112_v38 = vpop.f32.mrb[94].mxu0  ;;  %v8194_v39 = vpop.f32.mrb[98].mxu1  ;;  %v9927_v10 = vcombine.high %v5161_v1, %v5177_v50  ;;  %v5193_v51 = vld [vmem:[#allocation16 + $0xb38] sm:$0xff]  ;;  %v5196_v29 = vld [vmem:[#allocation16 + $0xb50] sm:$0xff]  ;;  %v9932_v18 = vcombine.low %v5164_v58, %v5180_v9  ;;  %v4843_v58 = vld [vmem:[#allocation16 + $0x48] sm:$0xff] }
 0x866   : > { %8495 = vmatpush1.bf16.msra.mxu1 %v9772_v16  ;;  %v8113_v28 = vpop.f32.mrb[95].mxu0  ;;  %v8195_v40 = vpop.f32.mrb[99].mxu1  ;;  %8373 = vmatprep.subr.bf16.mxu0 %v9799_v17  ;;  %v5209_v15 = vld [vmem:[#allocation16 + $0xbb8] sm:$0xff]  ;;  %v5212_v16 = vld [vmem:[#allocation16 + $0xbd0] sm:$0xff]  ;;  %v9926_v17 = vcombine.low %v5161_v1, %v5177_v50  ;;  %v9991_v38 = vcombine.high %v5225_v49, %v5241_v31  ;;  %v10055_v61 = vcombine.high %v5289_v55, %v5305_v56  ;;  %v4859_v9 = vld [vmem:[#allocation16 + $0xc8] sm:$0xff] }
 0x867   : > { %v8762_v45 = vcombine.low %v13166_v13, %v13170_v25  ;;  %v8764_v47 = vcombine.low %v13168_v20, %v13172_v37  ;;  %8496 = vmatprep.subr.bf16.mxu1 %v9805_v21  ;;  %v9959_v19 = vcombine.high %v5193_v51, %v5209_v15  ;;  %v9965_v21 = vcombine.high %v5196_v29, %v5212_v16  ;;  %v5228_v32 = vld [vmem:[#allocation16 + $0xc50] sm:$0xff]  ;;  %v5273_v28 = vld [vmem:[#allocation16 + $0xdb8] sm:$0xff]  ;;  %v5150_v13 = vld [vmem:[#allocation16 + $0x9e0] sm:$0xff] }
 0x868   : > { %v5244_v11 = vld [vmem:[#allocation16 + $0xcd0] sm:$0xff]  ;;  %v9958_v35 = vcombine.low %v5193_v51, %v5209_v15  ;;  %v9964_v36 = vcombine.low %v5196_v29, %v5212_v16  ;;  %v5337_v0 = vld [vmem:[#allocation16 + $0xfb8] sm:$0xff]  ;;  %v9611_v51 = vcombine.high %v4843_v58, %v4859_v9  ;;  %v4875_v29 = vld [vmem:[#allocation16 + $0x148] sm:$0xff] }
 0x869   : > { %8374 = vmatpush1.bf16.msra.mxu0 %v9798_v23  ;;  %v9997_v39 = vcombine.high %v5228_v32, %v5244_v11  ;;  %v5257_v23 = vld [vmem:[#allocation16 + $0xd38] sm:$0xff]  ;;  %v5260_v40 = vld [vmem:[#allocation16 + $0xd50] sm:$0xff]  ;;  %v10087_v1 = vcombine.high %v5321_v63, %v5337_v0  ;;  %v4891_v16 = vld [vmem:[#allocation16 + $0x1c8] sm:$0xff] }
 0x86a   : > { %8497 = vmatpush1.bf16.msra.mxu1 %v9804_v41  ;;  %8375 = vmatprep.subr.bf16.mxu0 %v9831_v42  ;;  %v5276_v41 = vld [vmem:[#allocation16 + $0xdd0] sm:$0xff]  ;;  %v9990_v42 = vcombine.low %v5225_v49, %v5241_v31  ;;  %v10023_v53 = vcombine.high %v5257_v23, %v5273_v28  ;;  %v9643_v49 = vcombine.high %v4875_v29, %v4891_v16  ;;  %v4907_v31 = vld [vmem:[#allocation16 + $0x248] sm:$0xff] }
 0x86b   : > { %8498 = vmatprep.subr.bf16.mxu1 %v9837_v48  ;;  %v9996_v48 = vcombine.low %v5228_v32, %v5244_v11  ;;  %v10029_v54 = vcombine.high %v5260_v40, %v5276_v41  ;;  %v4923_v32 = vld [vmem:[#allocation16 + $0x2c8] sm:$0xff] }
 0x86d   : > { %8376 = vmatpush1.bf16.msra.mxu0 %v9830_v57  ;;  %v5292_v57 = vld [vmem:[#allocation16 + $0xe50] sm:$0xff] }
 0x86e   : > { %8499 = vmatpush1.bf16.msra.mxu1 %v9836_v59  ;;  %8377 = vmatprep.subr.bf16.mxu0 %v9863_v60  ;;  %v5308_v59 = vld [vmem:[#allocation16 + $0xed0] sm:$0xff]  ;;  %v10022_v60 = vcombine.low %v5257_v23, %v5273_v28  ;;  %v9675_v23 = vcombine.high %v4907_v31, %v4923_v32 }
 0x86f   : > { %8500 = vmatprep.subr.bf16.mxu1 %v9869_v46  ;;  %v10028_v46 = vcombine.low %v5260_v40, %v5276_v41  ;;  %v10061_v62 = vcombine.high %v5292_v57, %v5308_v59  ;;  %v4939_v40 = vld [vmem:[#allocation16 + $0x348] sm:$0xff] }
 0x870   : > { %v4955_v41 = vld [vmem:[#allocation16 + $0x3c8] sm:$0xff] }
 0x871   : > { %8378 = vmatpush1.bf16.msra.mxu0 %v9862_v3  ;;  %v5324_v3 = vld [vmem:[#allocation16 + $0xf50] sm:$0xff] }
 0x872   : > { %8501 = vmatpush1.bf16.msra.mxu1 %v9868_v4  ;;  %8379 = vmatprep.subr.bf16.mxu0 %v9895_v5  ;;  %v5340_v4 = vld [vmem:[#allocation16 + $0xfd0] sm:$0xff]  ;;  %v10054_v5 = vcombine.low %v5289_v55, %v5305_v56  ;;  %v9707_v55 = vcombine.high %v4939_v40, %v4955_v41 }
 0x873   : > { %8502 = vmatprep.subr.bf16.mxu1 %v9901_v8  ;;  %v10060_v8 = vcombine.low %v5292_v57, %v5308_v59  ;;  %v10093_v50 = vcombine.high %v5324_v3, %v5340_v4  ;;  %v4971_v57 = vld [vmem:[#allocation16 + $0x448] sm:$0xff] }
 0x874   : > { %v4987_v59 = vld [vmem:[#allocation16 + $0x4c8] sm:$0xff] }
 0x875   : > { %8380 = vmatpush1.bf16.msra.mxu0 %v9894_v2  ;;  %v4846_v2 = vld [vmem:[#allocation16 + $0x60] sm:$0xff] }
 0x876   : > { %8503 = vmatpush1.bf16.msra.mxu1 %v9900_v34  ;;  %8381 = vmatprep.subr.bf16.mxu0 %v9927_v10  ;;  %v4862_v34 = vld [vmem:[#allocation16 + $0xe0] sm:$0xff]  ;;  %v10086_v10 = vcombine.low %v5321_v63, %v5337_v0  ;;  %v9739_v63 = vcombine.high %v4971_v57, %v4987_v59 }
 0x877   : > { %8504 = vmatprep.subr.bf16.mxu1 %v9933_v12  ;;  %v10092_v12 = vcombine.low %v5324_v3, %v5340_v4  ;;  %v9617_v15 = vcombine.high %v4846_v2, %v4862_v34  ;;  %v5003_v3 = vld [vmem:[#allocation16 + $0x548] sm:$0xff] }
 0x878   : > { %v5019_v4 = vld [vmem:[#allocation16 + $0x5c8] sm:$0xff] }
 0x879   : > { %8382 = vmatpush1.bf16.msra.mxu0 %v9926_v17  ;;  %v9610_v17 = vcombine.low %v4843_v58, %v4859_v9  ;;  %v9738_v58 = vcombine.low %v4971_v57, %v4987_v59  ;;  %v13182_v9 = vld [vmem:[#allocation17 + $0x8] sm:$0xff] }
 0x87a   : > { %8505 = vmatpush1.bf16.msra.mxu1 %v9932_v18  ;;  %8383 = vmatprep.subr.bf16.mxu0 %v9959_v19  ;;  %v4878_v18 = vld [vmem:[#allocation16 + $0x160] sm:$0xff] }
 0x87b   : > { %8506 = vmatprep.subr.bf16.mxu1 %v9965_v21  ;;  %v4894_v19 = vld [vmem:[#allocation16 + $0x1e0] sm:$0xff]  ;;  %v9616_v21 = vcombine.low %v4846_v2, %v4862_v34  ;;  %v9771_v34 = vcombine.high %v5003_v3, %v5019_v4 }
 0x87c   : > { %v9649_v11 = vcombine.high %v4878_v18, %v4894_v19 }
 0x87d   : > { %8384 = vmatpush1.bf16.msra.mxu0 %v9958_v35  ;;  %v4910_v35 = vld [vmem:[#allocation16 + $0x260] sm:$0xff] }
 0x87e   : > { %8507 = vmatpush1.bf16.msra.mxu1 %v9964_v36  ;;  %8385 = vmatprep.subr.bf16.mxu0 %v9991_v38  ;;  %v4926_v36 = vld [vmem:[#allocation16 + $0x2e0] sm:$0xff]  ;;  %v9642_v38 = vcombine.low %v4875_v29, %v4891_v16  ;;  %v7949_v29 = vrot.slane %v13182_v9, %v12156_v22 }
 0x87f   : > { %8508 = vmatprep.subr.bf16.mxu1 %v9997_v39  ;;  %v9648_v39 = vcombine.low %v4878_v18, %v4894_v19  ;;  %v9681_v28 = vcombine.high %v4910_v35, %v4926_v36  ;;  %v5038_v16 = vld [vmem:[#allocation16 + $0x660] sm:$0xff]  ;;  %v7929_v19 = vrot.slane %v13156_v6, %v12167_v27 }
 0x881   : > { %8386 = vmatpush1.bf16.msra.mxu0 %v9990_v42  ;;  %v4942_v42 = vld [vmem:[#allocation16 + $0x360] sm:$0xff] }
 0x882   : > { %8509 = vmatpush1.bf16.msra.mxu1 %v9996_v48  ;;  %8387 = vmatprep.subr.bf16.mxu0 %v10023_v53  ;;  %v4958_v48 = vld [vmem:[#allocation16 + $0x3e0] sm:$0xff]  ;;  %v9674_v53 = vcombine.low %v4907_v31, %v4923_v32 }
 0x883   : > { %8510 = vmatprep.subr.bf16.mxu1 %v10029_v54  ;;  %v9680_v54 = vcombine.low %v4910_v35, %v4926_v36  ;;  %v9713_v56 = vcombine.high %v4942_v42, %v4958_v48 }
 0x885   : > { %8388 = vmatpush1.bf16.msra.mxu0 %v10022_v60  ;;  %v4974_v60 = vld [vmem:[#allocation16 + $0x460] sm:$0xff] }
 0x886   : > { %8511 = vmatpush1.bf16.msra.mxu1 %v10028_v46  ;;  %8389 = vmatprep.subr.bf16.mxu0 %v10055_v61  ;;  %v4990_v46 = vld [vmem:[#allocation16 + $0x4e0] sm:$0xff]  ;;  %v9706_v61 = vcombine.low %v4939_v40, %v4955_v41 }
 0x887   : > { %8512 = vmatprep.subr.bf16.mxu1 %v10061_v62  ;;  %v9712_v62 = vcombine.low %v4942_v42, %v4958_v48  ;;  %v9745_v0 = vcombine.high %v4974_v60, %v4990_v46  ;;  %v9744_v2 = vcombine.low %v4974_v60, %v4990_v46  ;;  %v5070_v42 = vld [vmem:[#allocation16 + $0x760] sm:$0xff] }
 0x888   : > { %v5086_v48 = vld [vmem:[#allocation16 + $0x7e0] sm:$0xff] }
 0x889   : > { %8390 = vmatpush1.bf16.msra.mxu0 %v10054_v5  ;;  %v5006_v5 = vld [vmem:[#allocation16 + $0x560] sm:$0xff] }
 0x88a   : > { %8513 = vmatpush1.bf16.msra.mxu1 %v10060_v8  ;;  %8391 = vmatprep.subr.bf16.mxu0 %v10087_v1  ;;  %v5022_v8 = vld [vmem:[#allocation16 + $0x5e0] sm:$0xff]  ;;  %v11207_v1 = vmov 1966171168  }
 0x88b   : > { %8514 = vmatprep.subr.bf16.mxu1 %v10093_v50  ;;  %v8767_v50 = vunpack.c.l.s4 %v11207_v1  ;;  %v9776_v31 = vcombine.low %v5006_v5, %v5022_v8 }
 0x88d   : > { %8392 = vmatpush1.bf16.msra.mxu0 %v10086_v10  ;;  %v9777_v10 = vcombine.high %v5006_v5, %v5022_v8  ;;  %v8768_v18 = vunpack.c.0.s8 %v8767_v50  ;;  %v5102_v5 = vld [vmem:[#allocation16 + $0x860] sm:$0xff] }
 0x88e   : > { %8515 = vmatpush1.bf16.msra.mxu1 %v10092_v12  ;;  %8443 = vmatprep.subr.bf16.mxu0 %v9611_v51  ;;  %v5035_v12 = vld [vmem:[#allocation16 + $0x648] sm:$0xff]  ;;  %v5118_v8 = vld [vmem:[#allocation16 + $0x8e0] sm:$0xff] }
 0x88f   : > { %8566 = vmatprep.subr.bf16.mxu1 %v9617_v15  ;;  %v5051_v51 = vld [vmem:[#allocation16 + $0x6c8] sm:$0xff]  ;;  %v7925_v15 = vrot.slane %v13156_v6, %v12159_v24 }
 0x890   : > { %8394 = vmatmul.mubr.bf16.vlgmr.msra.gmra.mrb[108].mxu0 %v13136_v33  ;;  %v9803_v32 = vcombine.high %v5035_v12, %v5051_v51  ;;  %v9802_v59 = vcombine.low %v5035_v12, %v5051_v51  ;;  %v9873_v12 = vcombine.high %v5102_v5, %v5118_v8  ;;  %v5131_v51 = vld [vmem:[#allocation16 + $0x948] sm:$0xff] }
 0x891   : > { %8517 = vmatmul.mubr.bf16.vlgmr.msra.gmra.mrb[112].mxu1 %v13136_v33  ;;  %8444 = vmatpush1.bf16.msra.mxu0 %v9610_v17  ;;  %v5054_v17 = vld [vmem:[#allocation16 + $0x6e0] sm:$0xff] }
 0x892   : > { %8475 = vmatprep.mubr.bf16.mxu0 %v13134_v30  ;;  %8567 = vmatpush1.bf16.msra.mxu1 %v9616_v21  ;;  %v7953_v21 = vrot.slane %v13182_v9, %v12164_v26  ;;  %v9809_v36 = vcombine.high %v5038_v16, %v5054_v17 }
 0x893   : > { %8598 = vmatprep.mubr.bf16.mxu1 %v13134_v30  ;;  %8445 = vmatprep.subr.bf16.mxu0 %v9643_v49  ;;  %v9770_v49 = vcombine.low %v5003_v3, %v5019_v4  ;;  %v5099_v3 = vld [vmem:[#allocation16 + $0x848] sm:$0xff] }
 0x894   : > { %8568 = vmatprep.subr.bf16.mxu1 %v9649_v11  ;;  %v5115_v4 = vld [vmem:[#allocation16 + $0x8c8] sm:$0xff] }
 0x895   : > { %8446 = vmatpush1.bf16.msra.mxu0 %v9642_v38  ;;  %v5067_v38 = vld [vmem:[#allocation16 + $0x748] sm:$0xff]  ;;  %v9866_v25 = vcombine.low %v5099_v3, %v5115_v4 }
 0x896   : > { %8569 = vmatpush1.bf16.msra.mxu1 %v9648_v39  ;;  %8447 = vmatprep.subr.bf16.mxu0 %v9675_v23  ;;  %v5083_v39 = vld [vmem:[#allocation16 + $0x7c8] sm:$0xff] }
 0x897   : > { %8570 = vmatprep.subr.bf16.mxu1 %v9681_v28 }
 0x899   : > { %8448 = vmatpush1.bf16.msra.mxu0 %v9674_v53  ;;  %v13195_v53 = vsub.s32 %v8768_v18, %v12153_v14  ;;  %v9841_v14 = vcombine.high %v5070_v42, %v5086_v48  ;;  %v5163_v18 = vld [vmem:[#allocation16 + $0xa48] sm:$0xff] }
 0x89a   : > { %8571 = vmatpush1.bf16.msra.mxu1 %v9680_v54  ;;  %8449 = vmatprep.subr.bf16.mxu0 %v9707_v55 }
 0x89b   : > { %8572 = vmatprep.subr.bf16.mxu1 %v9713_v56  ;;  %v13205_v1 = vrot.slane %v8762_v45, %v13195_v53  ;;  %v9872_v45 = vcombine.low %v5102_v5, %v5118_v8 }
 0x89d   : > { %8450 = vmatpush1.bf16.msra.mxu0 %v9706_v61  ;;  %v9808_v61 = vcombine.low %v5038_v16, %v5054_v17 }
 0x89e   : > { %8573 = vmatpush1.bf16.msra.mxu1 %v9712_v62  ;;  %8451 = vmatprep.subr.bf16.mxu0 %v9739_v63  ;;  %v9835_v62 = vcombine.high %v5067_v38, %v5083_v39 }
 0x89f   : > { %8574 = vmatprep.subr.bf16.mxu1 %v9745_v0 }
 0x8a1   : > { %8452 = vmatpush1.bf16.msra.mxu0 %v9738_v58  ;;  %v9834_v58 = vcombine.low %v5067_v38, %v5083_v39  ;;  %v5211_v38 = vld [vmem:[#allocation16 + $0xbc8] sm:$0xff]  ;;  %v5198_v39 = vld [vmem:[#allocation16 + $0xb60] sm:$0xff] }
 0x8a2   : > { %8575 = vmatpush1.bf16.msra.mxu1 %v9744_v2  ;;  %8453 = vmatprep.subr.bf16.mxu0 %v9771_v34  ;;  %v9840_v2 = vcombine.low %v5070_v42, %v5086_v48  ;;  %v9867_v34 = vcombine.high %v5099_v3, %v5115_v4  ;;  %v5262_v3 = vld [vmem:[#allocation16 + $0xd60] sm:$0xff] }
 0x8a3   : > { %v8149_v11 = vpop.f32.mrb[96].mxu0  ;;  %v8272_v35 = vpop.f32.mrb[100].mxu1  ;;  %8576 = vmatprep.subr.bf16.mxu1 %v9777_v10  ;;  %v5278_v4 = vld [vmem:[#allocation16 + $0xde0] sm:$0xff] }
 0x8a4   : > { %v8150_v23 = vadd.f32 %v8149_v11, %v7925_v15  ;;  %v13192_v28 = vadd.f32 %v8272_v35, %v7949_v29  ;;  %v8151_v40 = vpop.f32.mrb[97].mxu0  ;;  %v8274_v41 = vpop.f32.mrb[101].mxu1  ;;  %v5147_v15 = vld [vmem:[#allocation16 + $0x9c8] sm:$0xff]  ;;  %v5134_v29 = vld [vmem:[#allocation16 + $0x960] sm:$0xff] }
 0x8a5   : > { %v8152_v54 = vadd.f32 %v8151_v40, %v7929_v19  ;;  %v13197_v55 = vadd.f32 %v8274_v41, %v7953_v21  ;;  %v8153_v56 = vpop.f32.mrb[98].mxu0  ;;  %v8276_v57 = vpop.f32.mrb[102].mxu1  ;;  %8454 = vmatpush1.bf16.msra.mxu0 %v9770_v49  ;;  %v9899_v16 = vcombine.high %v5131_v51, %v5147_v15  ;;  %v9905_v17 = vcombine.high %v5134_v29, %v5150_v13  ;;  %v5179_v19 = vld [vmem:[#allocation16 + $0xac8] sm:$0xff]  ;;  %v5166_v21 = vld [vmem:[#allocation16 + $0xa60] sm:$0xff] }
 0x8a6   : > { %8577 = vmatpush1.bf16.msra.mxu1 %v9776_v31  ;;  %v8154_v60 = vpop.f32.mrb[99].mxu0  ;;  %v8277_v46 = vpop.f32.mrb[103].mxu1  ;;  %8455 = vmatprep.subr.bf16.mxu0 %v9803_v32  ;;  %v5182_v49 = vld [vmem:[#allocation16 + $0xae0] sm:$0xff]  ;;  %v9898_v31 = vcombine.low %v5131_v51, %v5147_v15  ;;  %v9904_v32 = vcombine.low %v5134_v29, %v5150_v13  ;;  %v9931_v11 = vcombine.high %v5163_v18, %v5179_v19  ;;  %v5243_v56 = vld [vmem:[#allocation16 + $0xcc8] sm:$0xff] }
 0x8a7   : > { %v8763_v63 = vcombine.low %v8150_v23, %v8152_v54  ;;  %v8811_v0 = vcombine.low %v13192_v28, %v13197_v55  ;;  %8578 = vmatprep.subr.bf16.mxu1 %v9809_v36  ;;  %v9937_v35 = vcombine.high %v5166_v21, %v5182_v49  ;;  %v5195_v36 = vld [vmem:[#allocation16 + $0xb48] sm:$0xff]  ;;  %v5214_v23 = vld [vmem:[#allocation16 + $0xbe0] sm:$0xff]  ;;  %v9930_v40 = vcombine.low %v5163_v18, %v5179_v19 }
 0x8a8   : > { %v9936_v41 = vcombine.low %v5166_v21, %v5182_v49  ;;  %v9963_v42 = vcombine.high %v5195_v36, %v5211_v38  ;;  %v9969_v48 = vcombine.high %v5198_v39, %v5214_v23  ;;  %v5227_v54 = vld [vmem:[#allocation16 + $0xc48] sm:$0xff]  ;;  %v5230_v57 = vld [vmem:[#allocation16 + $0xc60] sm:$0xff]  ;;  %v9962_v60 = vcombine.low %v5195_v36, %v5211_v38  ;;  %v4848_v36 = vld [vmem:[#allocation16 + $0x70] sm:$0xff] }
 0x8a9   : > { %v13208_v50 = vrot.slane %v8763_v63, %v13195_v53  ;;  %8456 = vmatpush1.bf16.msra.mxu0 %v9802_v59  ;;  %v5246_v59 = vld [vmem:[#allocation16 + $0xce0] sm:$0xff]  ;;  %v9968_v46 = vcombine.low %v5198_v39, %v5214_v23  ;;  %v5259_v63 = vld [vmem:[#allocation16 + $0xd48] sm:$0xff]  ;;  %v9994_v5 = vcombine.low %v5227_v54, %v5243_v56  ;;  %v10032_v13 = vcombine.low %v5262_v3, %v5278_v4  ;;  %v4864_v38 = vld [vmem:[#allocation16 + $0xf0] sm:$0xff] }
 0x8aa   : > { %8579 = vmatpush1.bf16.msra.mxu1 %v9808_v61  ;;  %8457 = vmatprep.subr.bf16.mxu0 %v9835_v62  ;;  %v9995_v61 = vcombine.high %v5227_v54, %v5243_v56  ;;  %v10001_v62 = vcombine.high %v5230_v57, %v5246_v59  ;;  %v10000_v8 = vcombine.low %v5230_v57, %v5246_v59  ;;  %v5294_v51 = vld [vmem:[#allocation16 + $0xe60] sm:$0xff]  ;;  %v4880_v56 = vld [vmem:[#allocation16 + $0x170] sm:$0xff]  ;;  %v5183_v28 = vld [vmem:[#allocation16 + $0xae8] sm:$0xff] }
 0x8ab   : > { %v8794_v10 = vcombine.low %v13205_v1, %v13208_v50  ;;  %8580 = vmatprep.subr.bf16.mxu1 %v9841_v14  ;;  %v5275_v14 = vld [vmem:[#allocation16 + $0xdc8] sm:$0xff]  ;;  %v5310_v15 = vld [vmem:[#allocation16 + $0xee0] sm:$0xff]  ;;  %v4896_v57 = vld [vmem:[#allocation16 + $0x1f0] sm:$0xff]  ;;  %v9620_v59 = vcombine.low %v4848_v36, %v4864_v38 }
 0x8ac   : > { %v10026_v29 = vcombine.low %v5259_v63, %v5275_v14  ;;  %v5326_v18 = vld [vmem:[#allocation16 + $0xf60] sm:$0xff]  ;;  %v10064_v49 = vcombine.low %v5294_v51, %v5310_v15  ;;  %v5181_v1 = vld [vmem:[#allocation16 + $0xad8] sm:$0xff]  ;;  %v5168_v50 = vld [vmem:[#allocation16 + $0xa70] sm:$0xff] }
 0x8ad   : > { %8458 = vmatpush1.bf16.msra.mxu0 %v9834_v58  ;;  %v10027_v58 = vcombine.high %v5259_v63, %v5275_v14  ;;  %v5342_v19 = vld [vmem:[#allocation16 + $0xfe0] sm:$0xff]  ;;  %v4912_v63 = vld [vmem:[#allocation16 + $0x270] sm:$0xff]  ;;  %v8802_v20 = vrot.slane %v8794_v10, %v13195_v53 }
 0x8ae   : > { %8581 = vmatpush1.bf16.msra.mxu1 %v9840_v2  ;;  %8459 = vmatprep.subr.bf16.mxu0 %v9867_v34  ;;  %v10033_v2 = vcombine.high %v5262_v3, %v5278_v4  ;;  %v5291_v34 = vld [vmem:[#allocation16 + $0xe48] sm:$0xff]  ;;  %v10096_v23 = vcombine.low %v5326_v18, %v5342_v19  ;;  %v4928_v14 = vld [vmem:[#allocation16 + $0x2f0] sm:$0xff]  ;;  %v9652_v4 = vcombine.low %v4880_v56, %v4896_v57 }
 0x8af   : > { %8582 = vmatprep.subr.bf16.mxu1 %v9873_v12  ;;  %v5307_v12 = vld [vmem:[#allocation16 + $0xec8] sm:$0xff]  ;;  %v5184_v10 = vld [vmem:[#allocation16 + $0xaf0] sm:$0xff] }
 0x8b0   : > { %v10058_v21 = vcombine.low %v5291_v34, %v5307_v12 }
 0x8b1   : > { %8460 = vmatpush1.bf16.msra.mxu0 %v9866_v25  ;;  %v10059_v25 = vcombine.high %v5291_v34, %v5307_v12  ;;  %v4944_v34 = vld [vmem:[#allocation16 + $0x370] sm:$0xff] }
 0x8b2   : > { %8583 = vmatpush1.bf16.msra.mxu1 %v9872_v45  ;;  %8461 = vmatprep.subr.bf16.mxu0 %v9899_v16  ;;  %v10065_v45 = vcombine.high %v5294_v51, %v5310_v15  ;;  %v5323_v16 = vld [vmem:[#allocation16 + $0xf48] sm:$0xff]  ;;  %v4960_v12 = vld [vmem:[#allocation16 + $0x3f0] sm:$0xff]  ;;  %v9684_v15 = vcombine.low %v4912_v63, %v4928_v14 }
 0x8b3   : > { %8584 = vmatprep.subr.bf16.mxu1 %v9905_v17  ;;  %v5339_v17 = vld [vmem:[#allocation16 + $0xfc8] sm:$0xff] }
 0x8b4   : > { %v10090_v39 = vcombine.low %v5323_v16, %v5339_v17 }
 0x8b5   : > { %8462 = vmatpush1.bf16.msra.mxu0 %v9898_v31  ;;  %v10091_v31 = vcombine.high %v5323_v16, %v5339_v17  ;;  %v4976_v16 = vld [vmem:[#allocation16 + $0x470] sm:$0xff] }
 0x8b6   : > { %8585 = vmatpush1.bf16.msra.mxu1 %v9904_v32  ;;  %8463 = vmatprep.subr.bf16.mxu0 %v9931_v11  ;;  %v10097_v32 = vcombine.high %v5326_v18, %v5342_v19  ;;  %v4845_v11 = vld [vmem:[#allocation16 + $0x58] sm:$0xff]  ;;  %v4992_v17 = vld [vmem:[#allocation16 + $0x4f0] sm:$0xff]  ;;  %v9716_v19 = vcombine.low %v4944_v34, %v4960_v12 }
 0x8b7   : > { %8586 = vmatprep.subr.bf16.mxu1 %v9937_v35  ;;  %v4861_v35 = vld [vmem:[#allocation16 + $0xd8] sm:$0xff] }
 0x8b8   : > { %v9614_v54 = vcombine.low %v4845_v11, %v4861_v35 }
 0x8b9   : > { %8464 = vmatpush1.bf16.msra.mxu0 %v9930_v40  ;;  %v9615_v40 = vcombine.high %v4845_v11, %v4861_v35  ;;  %v5008_v11 = vld [vmem:[#allocation16 + $0x570] sm:$0xff] }
 0x8ba   : > { %8587 = vmatpush1.bf16.msra.mxu1 %v9936_v41  ;;  %8465 = vmatprep.subr.bf16.mxu0 %v9963_v42  ;;  %v9621_v41 = vcombine.high %v4848_v36, %v4864_v38  ;;  %v4877_v42 = vld [vmem:[#allocation16 + $0x158] sm:$0xff]  ;;  %v5024_v35 = vld [vmem:[#allocation16 + $0x5f0] sm:$0xff]  ;;  %v9748_v38 = vcombine.low %v4976_v16, %v4992_v17 }
 0x8bb   : > { %8588 = vmatprep.subr.bf16.mxu1 %v9969_v48  ;;  %v4893_v48 = vld [vmem:[#allocation16 + $0x1d8] sm:$0xff] }
 0x8bc   : > { %v9646_v3 = vcombine.low %v4877_v42, %v4893_v48 }
 0x8bd   : > { %8466 = vmatpush1.bf16.msra.mxu0 %v9962_v60  ;;  %v9647_v60 = vcombine.high %v4877_v42, %v4893_v48  ;;  %v7941_v42 = vrot.slane %v13156_v6, %v12247_v43  ;;  %v5040_v48 = vld [vmem:[#allocation16 + $0x670] sm:$0xff] }
 0x8be   : > { %8589 = vmatpush1.bf16.msra.mxu1 %v9968_v46  ;;  %8467 = vmatprep.subr.bf16.mxu0 %v9995_v61  ;;  %v4909_v46 = vld [vmem:[#allocation16 + $0x258] sm:$0xff] }
 0x8bf   : > { %8590 = vmatprep.subr.bf16.mxu1 %v10001_v62  ;;  %v4925_v61 = vld [vmem:[#allocation16 + $0x2d8] sm:$0xff]  ;;  %v9653_v62 = vcombine.high %v4880_v56, %v4896_v57  ;;  %v7965_v56 = vrot.slane %v13182_v9, %v12238_v7  ;;  %v7945_v57 = vrot.slane %v13156_v6, %v12259_v52 }
 0x8c0   : > { %v9678_v51 = vcombine.low %v4909_v46, %v4925_v61 }
 0x8c1   : > { %8468 = vmatpush1.bf16.msra.mxu0 %v9994_v5  ;;  %v9679_v5 = vcombine.high %v4909_v46, %v4925_v61  ;;  %v9780_v46 = vcombine.low %v5008_v11, %v5024_v35 }
 0x8c2   : > { %8591 = vmatpush1.bf16.msra.mxu1 %v10000_v8  ;;  %8469 = vmatprep.subr.bf16.mxu0 %v10027_v58  ;;  %v9685_v8 = vcombine.high %v4912_v63, %v4928_v14  ;;  %v4941_v58 = vld [vmem:[#allocation16 + $0x358] sm:$0xff] }
 0x8c3   : > { %8592 = vmatprep.subr.bf16.mxu1 %v10033_v2  ;;  %v4957_v2 = vld [vmem:[#allocation16 + $0x3d8] sm:$0xff] }
 0x8c4   : > { %v9710_v18 = vcombine.low %v4941_v58, %v4957_v2  ;;  %v5069_v14 = vld [vmem:[#allocation16 + $0x758] sm:$0xff] }
 0x8c5   : > { %8470 = vmatpush1.bf16.msra.mxu0 %v10026_v29  ;;  %v9711_v29 = vcombine.high %v4941_v58, %v4957_v2  ;;  %v5072_v58 = vld [vmem:[#allocation16 + $0x770] sm:$0xff] }
 0x8c6   : > { %8593 = vmatpush1.bf16.msra.mxu1 %v10032_v13  ;;  %8471 = vmatprep.subr.bf16.mxu0 %v10059_v25  ;;  %v9717_v13 = vcombine.high %v4944_v34, %v4960_v12  ;;  %v4973_v25 = vld [vmem:[#allocation16 + $0x458] sm:$0xff]  ;;  %v5088_v2 = vld [vmem:[#allocation16 + $0x7f0] sm:$0xff] }
 0x8c7   : > { %8594 = vmatprep.subr.bf16.mxu1 %v10065_v45  ;;  %v4989_v45 = vld [vmem:[#allocation16 + $0x4d8] sm:$0xff] }
 0x8c8   : > { %v9742_v36 = vcombine.low %v4973_v25, %v4989_v45 }
 0x8c9   : > { %8472 = vmatpush1.bf16.msra.mxu0 %v10058_v21  ;;  %v9743_v21 = vcombine.high %v4973_v25, %v4989_v45 }
 0x8ca   : > { %8595 = vmatpush1.bf16.msra.mxu1 %v10064_v49  ;;  %8473 = vmatprep.subr.bf16.mxu0 %v10091_v31  ;;  %v9749_v49 = vcombine.high %v4976_v16, %v4992_v17  ;;  %v5005_v31 = vld [vmem:[#allocation16 + $0x558] sm:$0xff] }
 0x8cb   : > { %8596 = vmatprep.subr.bf16.mxu1 %v10097_v32  ;;  %v5021_v32 = vld [vmem:[#allocation16 + $0x5d8] sm:$0xff] }
 0x8cd   : > { %8474 = vmatpush1.bf16.msra.mxu0 %v10090_v39  ;;  %v9775_v39 = vcombine.high %v5005_v31, %v5021_v32 }
 0x8ce   : > { %8597 = vmatpush1.bf16.msra.mxu1 %v10096_v23  ;;  %8525 = vmatprep.subr.bf16.mxu0 %v9615_v40  ;;  %v9781_v23 = vcombine.high %v5008_v11, %v5024_v35  ;;  %v5037_v40 = vld [vmem:[#allocation16 + $0x658] sm:$0xff]  ;;  %v5120_v11 = vld [vmem:[#allocation16 + $0x8f0] sm:$0xff]  ;;  %v8786_v35 = vrot.slane %v8764_v47, %v13195_v53 }
 0x8cf   : > { %8648 = vmatprep.subr.bf16.mxu1 %v9621_v41  ;;  %v5053_v41 = vld [vmem:[#allocation16 + $0x6d8] sm:$0xff] }
 0x8d0   : > { %8476 = vmatmul.mubr.bf16.vlgmr.msra.gmra.mrb[112].mxu0 %v13136_v33  ;;  %v9807_v61 = vcombine.high %v5037_v40, %v5053_v41 }
 0x8d1   : > { %8599 = vmatmul.mubr.bf16.vlgmr.msra.gmra.mrb[116].mxu1 %v13136_v33  ;;  %8526 = vmatpush1.bf16.msra.mxu0 %v9614_v54  ;;  %v5056_v54 = vld [vmem:[#allocation16 + $0x6f0] sm:$0xff] }
 0x8d2   : > { %8557 = vmatprep.mubr.bf16.mxu0 %v13134_v30  ;;  %8649 = vmatpush1.bf16.msra.mxu1 %v9620_v59  ;;  %v9774_v59 = vcombine.low %v5005_v31, %v5021_v32  ;;  %v9813_v63 = vcombine.high %v5040_v48, %v5056_v54  ;;  %v9812_v45 = vcombine.low %v5040_v48, %v5056_v54  ;;  %v5104_v32 = vld [vmem:[#allocation16 + $0x870] sm:$0xff]  ;;  %v5149_v48 = vld [vmem:[#allocation16 + $0x9d8] sm:$0xff] }
 0x8d3   : > { %8680 = vmatprep.mubr.bf16.mxu1 %v13134_v30  ;;  %8527 = vmatprep.subr.bf16.mxu0 %v9647_v60  ;;  %v7969_v60 = vrot.slane %v13182_v9, %v12250_v44  ;;  %v5136_v54 = vld [vmem:[#allocation16 + $0x970] sm:$0xff] }
 0x8d4   : > { %8650 = vmatprep.subr.bf16.mxu1 %v9653_v62 }
 0x8d5   : > { %8528 = vmatpush1.bf16.msra.mxu0 %v9646_v3  ;;  %v5085_v3 = vld [vmem:[#allocation16 + $0x7d8] sm:$0xff] }
 0x8d6   : > { %8651 = vmatpush1.bf16.msra.mxu1 %v9652_v4  ;;  %8529 = vmatprep.subr.bf16.mxu0 %v9679_v5  ;;  %v9839_v16 = vcombine.high %v5069_v14, %v5085_v3 }
 0x8d7   : > { %8652 = vmatprep.subr.bf16.mxu1 %v9685_v8 }
 0x8d9   : > { %8530 = vmatpush1.bf16.msra.mxu0 %v9678_v51 }
 0x8da   : > { %8653 = vmatpush1.bf16.msra.mxu1 %v9684_v15  ;;  %8531 = vmatprep.subr.bf16.mxu0 %v9711_v29  ;;  %v9806_v15 = vcombine.low %v5037_v40, %v5053_v41  ;;  %v9877_v41 = vcombine.high %v5104_v32, %v5120_v11 }
 0x8db   : > { %8654 = vmatprep.subr.bf16.mxu1 %v9717_v13 }
 0x8dd   : > { %8532 = vmatpush1.bf16.msra.mxu0 %v9710_v18 }
 0x8de   : > { %8655 = vmatpush1.bf16.msra.mxu1 %v9716_v19  ;;  %8533 = vmatprep.subr.bf16.mxu0 %v9743_v21  ;;  %v9845_v19 = vcombine.high %v5072_v58, %v5088_v2  ;;  %v5101_v21 = vld [vmem:[#allocation16 + $0x858] sm:$0xff] }
 0x8df   : > { %8656 = vmatprep.subr.bf16.mxu1 %v9749_v49  ;;  %v5117_v49 = vld [vmem:[#allocation16 + $0x8d8] sm:$0xff] }
 0x8e0   : > { %v9870_v47 = vcombine.low %v5101_v21, %v5117_v49 }
 0x8e1   : > { %8534 = vmatpush1.bf16.msra.mxu0 %v9742_v36 }
 0x8e2   : > { %8657 = vmatpush1.bf16.msra.mxu1 %v9748_v38  ;;  %8535 = vmatprep.subr.bf16.mxu0 %v9775_v39  ;;  %v9838_v38 = vcombine.low %v5069_v14, %v5085_v3  ;;  %v9844_v39 = vcombine.low %v5072_v58, %v5088_v2  ;;  %v9941_v3 = vcombine.high %v5168_v50, %v5184_v10  ;;  %v5216_v58 = vld [vmem:[#allocation16 + $0xbf0] sm:$0xff] }
 0x8e3   : > { %v8231_v62 = vpop.f32.mrb[100].mxu0  ;;  %8658 = vmatprep.subr.bf16.mxu1 %v9781_v23  ;;  %v9871_v23 = vcombine.high %v5101_v21, %v5117_v49  ;;  %v5261_v21 = vld [vmem:[#allocation16 + $0xd58] sm:$0xff] }
 0x8e4   : > { %v8232_v4 = vadd.f32 %v8231_v62, %v7941_v42  ;;  %v8354_v5 = vpop.f32.mrb[104].mxu1  ;;  %v8233_v8 = vpop.f32.mrb[101].mxu0  ;;  %v5133_v42 = vld [vmem:[#allocation16 + $0x958] sm:$0xff] }
 0x8e5   : > { %v13224_v34 = vadd.f32 %v8354_v5, %v7965_v56  ;;  %v8234_v6 = vadd.f32 %v8233_v8, %v7945_v57  ;;  %v8356_v12 = vpop.f32.mrb[105].mxu1  ;;  %v8235_v51 = vpop.f32.mrb[102].mxu0  ;;  %8536 = vmatpush1.bf16.msra.mxu0 %v9774_v59  ;;  %v5152_v56 = vld [vmem:[#allocation16 + $0x9f0] sm:$0xff]  ;;  %v9876_v57 = vcombine.low %v5104_v32, %v5120_v11  ;;  %v9903_v59 = vcombine.high %v5133_v42, %v5149_v48  ;;  %v5213_v5 = vld [vmem:[#allocation16 + $0xbd8] sm:$0xff] }
 0x8e6   : > { %v13226_v29 = vadd.f32 %v8356_v12, %v7969_v60  ;;  %v8358_v13 = vpop.f32.mrb[106].mxu1  ;;  %8659 = vmatpush1.bf16.msra.mxu1 %v9780_v46  ;;  %v8236_v25 = vpop.f32.mrb[103].mxu0  ;;  %8537 = vmatprep.subr.bf16.mxu0 %v9807_v61  ;;  %v9909_v46 = vcombine.high %v5136_v54, %v5152_v56  ;;  %v5165_v61 = vld [vmem:[#allocation16 + $0xa58] sm:$0xff]  ;;  %v9902_v62 = vcombine.low %v5133_v42, %v5149_v48  ;;  %v5200_v8 = vld [vmem:[#allocation16 + $0xb70] sm:$0xff] }
 0x8e7   : > { %v8765_v17 = vcombine.low %v8232_v4, %v8234_v6  ;;  %v8359_v18 = vpop.f32.mrb[107].mxu1  ;;  %8660 = vmatprep.subr.bf16.mxu1 %v9813_v63  ;;  %v9908_v63 = vcombine.low %v5136_v54, %v5152_v56  ;;  %v9935_v14 = vcombine.high %v5165_v61, %v5181_v1  ;;  %v5197_v4 = vld [vmem:[#allocation16 + $0xb58] sm:$0xff]  ;;  %v9934_v2 = vcombine.low %v5165_v61, %v5181_v1  ;;  %v5232_v25 = vld [vmem:[#allocation16 + $0xc70] sm:$0xff] }
 0x8e8   : > { %v8813_v31 = vcombine.low %v13224_v34, %v13226_v29  ;;  %v9940_v6 = vcombine.low %v5168_v50, %v5184_v10  ;;  %v9967_v12 = vcombine.high %v5197_v4, %v5213_v5  ;;  %v9973_v51 = vcombine.high %v5200_v8, %v5216_v58  ;;  %v5245_v13 = vld [vmem:[#allocation16 + $0xcd8] sm:$0xff]  ;;  %v5264_v32 = vld [vmem:[#allocation16 + $0xd70] sm:$0xff]  ;;  %v4847_v50 = vld [vmem:[#allocation16 + $0x68] sm:$0xff] }
 0x8e9   : > { %v8793_v36 = vrot.slane %v8765_v17, %v13195_v53  ;;  %8538 = vmatpush1.bf16.msra.mxu0 %v9806_v15  ;;  %v5229_v15 = vld [vmem:[#allocation16 + $0xc58] sm:$0xff]  ;;  %v9972_v17 = vcombine.low %v5200_v8, %v5216_v58  ;;  %v5280_v11 = vld [vmem:[#allocation16 + $0xdf0] sm:$0xff]  ;;  %v4863_v10 = vld [vmem:[#allocation16 + $0xe8] sm:$0xff] }
 0x8ea   : > { %8661 = vmatpush1.bf16.msra.mxu1 %v9812_v45  ;;  %8539 = vmatprep.subr.bf16.mxu0 %v9839_v16  ;;  %v5248_v45 = vld [vmem:[#allocation16 + $0xcf0] sm:$0xff]  ;;  %v9966_v16 = vcombine.low %v5197_v4, %v5213_v5  ;;  %v9999_v18 = vcombine.high %v5229_v15, %v5245_v13  ;;  %v5277_v49 = vld [vmem:[#allocation16 + $0xdd8] sm:$0xff]  ;;  %v10036_v54 = vcombine.low %v5264_v32, %v5280_v11  ;;  %v4895_v4 = vld [vmem:[#allocation16 + $0x1e8] sm:$0xff] }
 0x8eb   : > { %v8795_v40 = vcombine.low %v8786_v35, %v8793_v36  ;;  %8662 = vmatprep.subr.bf16.mxu1 %v9845_v19  ;;  %v10005_v19 = vcombine.high %v5232_v25, %v5248_v45  ;;  %v9998_v35 = vcombine.low %v5229_v15, %v5245_v13  ;;  %v10004_v36 = vcombine.low %v5232_v25, %v5248_v45  ;;  %v5312_v42 = vld [vmem:[#allocation16 + $0xef0] sm:$0xff]  ;;  %v4911_v58 = vld [vmem:[#allocation16 + $0x268] sm:$0xff] }
 0x8ec   : > { %v10030_v48 = vcombine.low %v5261_v21, %v5277_v49  ;;  %v9618_v5 = vcombine.low %v4847_v50, %v4863_v10  ;;  %v4959_v15 = vld [vmem:[#allocation16 + $0x3e8] sm:$0xff] }
 0x8ed   : > { %v8809_v37 = vrot.slane %v8795_v40, %v13195_v53  ;;  %8540 = vmatpush1.bf16.msra.mxu0 %v9838_v38  ;;  %v10031_v38 = vcombine.high %v5261_v21, %v5277_v49  ;;  %v5309_v40 = vld [vmem:[#allocation16 + $0xed8] sm:$0xff]  ;;  %v4975_v45 = vld [vmem:[#allocation16 + $0x468] sm:$0xff] }
 0x8ee   : > { %8663 = vmatpush1.bf16.msra.mxu1 %v9844_v39  ;;  %8541 = vmatprep.subr.bf16.mxu0 %v9871_v23  ;;  %v10037_v39 = vcombine.high %v5264_v32, %v5280_v11  ;;  %v5293_v23 = vld [vmem:[#allocation16 + $0xe58] sm:$0xff]  ;;  %v5023_v21 = vld [vmem:[#allocation16 + $0x5e8] sm:$0xff]  ;;  %v13250_v32 = vld [vmem:[#allocation17 + $0x10] sm:$0xff] }
 0x8ef   : > { %v8810_v60 = vcombine.low %v8802_v20, %v8809_v37  ;;  %8664 = vmatprep.subr.bf16.mxu1 %v9877_v41  ;;  %v5296_v41 = vld [vmem:[#allocation16 + $0xe70] sm:$0xff]  ;;  %v10063_v56 = vcombine.high %v5293_v23, %v5309_v40  ;;  %v5325_v37 = vld [vmem:[#allocation16 + $0xf58] sm:$0xff] }
 0x8f0   : > { %v10069_v20 = vcombine.high %v5296_v41, %v5312_v42 }
 0x8f1   : > { %8962 = vst [vmem:[%s13244_s18] sm:$0xff] %v8810_v60  ;;  %8542 = vmatpush1.bf16.msra.mxu0 %v9870_v47  ;;  %v5341_v47 = vld [vmem:[#allocation16 + $0xfd8] sm:$0xff]  ;;  %v10062_v60 = vcombine.low %v5293_v23, %v5309_v40  ;;  %v7961_v23 = vrot.slane %v13182_v9, %v12167_v27 }
 0x8f2   : > { %8665 = vmatpush1.bf16.msra.mxu1 %v9876_v57  ;;  %8543 = vmatprep.subr.bf16.mxu0 %v9903_v59  ;;  %v5328_v57 = vld [vmem:[#allocation16 + $0xf70] sm:$0xff]  ;;  %v10095_v61 = vcombine.high %v5325_v37, %v5341_v47 }
 0x8f3   : > { %8666 = vmatprep.subr.bf16.mxu1 %v9909_v46  ;;  %v5344_v59 = vld [vmem:[#allocation16 + $0xff0] sm:$0xff]  ;;  %v10068_v46 = vcombine.low %v5296_v41, %v5312_v42  ;;  %v7985_v41 = vrot.slane %v13250_v32, %v12164_v26 }
 0x8f4   : > { %v10101_v1 = vcombine.high %v5328_v57, %v5344_v59 }
 0x8f5   : > { %8544 = vmatpush1.bf16.msra.mxu0 %v9902_v62  ;;  %v10094_v62 = vcombine.low %v5325_v37, %v5341_v47 }
 0x8f6   : > { %8667 = vmatpush1.bf16.msra.mxu1 %v9908_v63  ;;  %8545 = vmatprep.subr.bf16.mxu0 %v9935_v14  ;;  %v10100_v63 = vcombine.low %v5328_v57, %v5344_v59  ;;  %v9619_v14 = vcombine.high %v4847_v50, %v4863_v10 }
 0x8f7   : > { %8668 = vmatprep.subr.bf16.mxu1 %v9941_v3  ;;  %v4879_v3 = vld [vmem:[#allocation16 + $0x168] sm:$0xff] }
 0x8f8   : > { %v9651_v8 = vcombine.high %v4879_v3, %v4895_v4 }
 0x8f9   : > { %8546 = vmatpush1.bf16.msra.mxu0 %v9934_v2  ;;  %v4927_v2 = vld [vmem:[#allocation16 + $0x2e8] sm:$0xff] }
 0x8fa   : > { %8669 = vmatpush1.bf16.msra.mxu1 %v9940_v6  ;;  %8547 = vmatprep.subr.bf16.mxu0 %v9967_v12  ;;  %v9650_v6 = vcombine.low %v4879_v3, %v4895_v4  ;;  %v9683_v12 = vcombine.high %v4911_v58, %v4927_v2  ;;  %v9682_v13 = vcombine.low %v4911_v58, %v4927_v2  ;;  %v5119_v3 = vld [vmem:[#allocation16 + $0x8e8] sm:$0xff] }
 0x8fb   : > { %8670 = vmatprep.subr.bf16.mxu1 %v9973_v51  ;;  %v4943_v51 = vld [vmem:[#allocation16 + $0x368] sm:$0xff] }
 0x8fc   : > { %v9715_v25 = vcombine.high %v4943_v51, %v4959_v15 }
 0x8fd   : > { %8548 = vmatpush1.bf16.msra.mxu0 %v9966_v16  ;;  %v4991_v16 = vld [vmem:[#allocation16 + $0x4e8] sm:$0xff] }
 0x8fe   : > { %8671 = vmatpush1.bf16.msra.mxu1 %v9972_v17  ;;  %8549 = vmatprep.subr.bf16.mxu0 %v9999_v18  ;;  %v9714_v17 = vcombine.low %v4943_v51, %v4959_v15  ;;  %v9747_v18 = vcombine.high %v4975_v45, %v4991_v16  ;;  %v9746_v49 = vcombine.low %v4975_v45, %v4991_v16  ;;  %v5151_v51 = vld [vmem:[#allocation16 + $0x9e8] sm:$0xff] }
 0x8ff   : > { %8672 = vmatprep.subr.bf16.mxu1 %v10005_v19  ;;  %v5007_v19 = vld [vmem:[#allocation16 + $0x568] sm:$0xff] }
 0x900   : > { %v9779_v11 = vcombine.high %v5007_v19, %v5023_v21  ;;  %v9778_v40 = vcombine.low %v5007_v19, %v5023_v21  ;;  %v5199_v45 = vld [vmem:[#allocation16 + $0xb68] sm:$0xff] }
 0x901   : > { %8550 = vmatpush1.bf16.msra.mxu0 %v9998_v35  ;;  %v5039_v35 = vld [vmem:[#allocation16 + $0x668] sm:$0xff] }
 0x902   : > { %8673 = vmatpush1.bf16.msra.mxu1 %v10004_v36  ;;  %8551 = vmatprep.subr.bf16.mxu0 %v10031_v38  ;;  %v5055_v36 = vld [vmem:[#allocation16 + $0x6e8] sm:$0xff]  ;;  %v7957_v38 = vrot.slane %v13182_v9, %v12159_v24 }
 0x903   : > { %8674 = vmatprep.subr.bf16.mxu1 %v10037_v39  ;;  %v7981_v39 = vrot.slane %v13250_v32, %v12156_v22  ;;  %v9811_v42 = vcombine.high %v5039_v35, %v5055_v36  ;;  %v5215_v16 = vld [vmem:[#allocation16 + $0xbe8] sm:$0xff] }
 0x904   : > { %v5231_v19 = vld [vmem:[#allocation16 + $0xc68] sm:$0xff] }
 0x905   : > { %8552 = vmatpush1.bf16.msra.mxu0 %v10030_v48  ;;  %v5247_v21 = vld [vmem:[#allocation16 + $0xce8] sm:$0xff] }
 0x906   : > { %8675 = vmatpush1.bf16.msra.mxu1 %v10036_v54  ;;  %8553 = vmatprep.subr.bf16.mxu0 %v10063_v56  ;;  %v5071_v54 = vld [vmem:[#allocation16 + $0x768] sm:$0xff] }
 0x907   : > { %8676 = vmatprep.subr.bf16.mxu1 %v10069_v20  ;;  %v5087_v56 = vld [vmem:[#allocation16 + $0x7e8] sm:$0xff] }
 0x908   : > { %v9843_v10 = vcombine.high %v5071_v54, %v5087_v56  ;;  %v9842_v58 = vcombine.low %v5071_v54, %v5087_v56  ;;  %v5343_v54 = vld [vmem:[#allocation16 + $0xfe8] sm:$0xff] }
 0x909   : > { %8554 = vmatpush1.bf16.msra.mxu0 %v10062_v60 }
 0x90a   : > { %8677 = vmatpush1.bf16.msra.mxu1 %v10068_v46  ;;  %8555 = vmatprep.subr.bf16.mxu0 %v10095_v61  ;;  %v9810_v61 = vcombine.low %v5039_v35, %v5055_v36  ;;  %v5263_v35 = vld [vmem:[#allocation16 + $0xd68] sm:$0xff] }
 0x90b   : > { %8678 = vmatprep.subr.bf16.mxu1 %v10101_v1  ;;  %v5279_v36 = vld [vmem:[#allocation16 + $0xde8] sm:$0xff] }
 0x90d   : > { %8556 = vmatpush1.bf16.msra.mxu0 %v10094_v62 }
 0x90e   : > { %8679 = vmatpush1.bf16.msra.mxu1 %v10100_v63  ;;  %8607 = vmatprep.subr.bf16.mxu0 %v9619_v14  ;;  %v5103_v14 = vld [vmem:[#allocation16 + $0x868] sm:$0xff] }
 0x90f   : > { %v9875_v2 = vcombine.high %v5103_v14, %v5119_v3  ;;  %v9874_v15 = vcombine.low %v5103_v14, %v5119_v3  ;;  %v4945_v3 = vld [vmem:[#allocation16 + $0x378] sm:$0xff] }
 0x910   : > { %8558 = vmatmul.mubr.bf16.vlgmr.msra.gmra.mrb[116].mxu0 %v13136_v33 }
 0x911   : > { %8681 = vmatmul.mubr.bf16.vlgmr.msra.gmra.mrb[120].mxu1 %v13136_v33  ;;  %8608 = vmatpush1.bf16.msra.mxu0 %v9618_v5  ;;  %v13270_v5 = vrot.slane %v8811_v0, %v13195_v53 }
 0x912   : > { %8639 = vmatprep.mubr.bf16.mxu0 %v13134_v30  ;;  %8609 = vmatprep.subr.bf16.mxu0 %v9651_v8 }
 0x915   : > { %8610 = vmatpush1.bf16.msra.mxu0 %v9650_v6 }
 0x916   : > { %8611 = vmatprep.subr.bf16.mxu0 %v9683_v12  ;;  %v5135_v12 = vld [vmem:[#allocation16 + $0x968] sm:$0xff] }
 0x917   : > { %v9906_v55 = vcombine.low %v5135_v12, %v5151_v51 }
 0x919   : > { %8612 = vmatpush1.bf16.msra.mxu0 %v9682_v13  ;;  %v9907_v13 = vcombine.high %v5135_v12, %v5151_v51  ;;  %v4977_v51 = vld [vmem:[#allocation16 + $0x478] sm:$0xff] }
 0x91a   : > { %8613 = vmatprep.subr.bf16.mxu0 %v9715_v25  ;;  %v5167_v25 = vld [vmem:[#allocation16 + $0xa68] sm:$0xff] }
 0x91b   : > { %v9939_v0 = vcombine.high %v5167_v25, %v5183_v28 }
 0x91d   : > { %8614 = vmatpush1.bf16.msra.mxu0 %v9714_v17  ;;  %v9938_v17 = vcombine.low %v5167_v25, %v5183_v28  ;;  %v5009_v28 = vld [vmem:[#allocation16 + $0x578] sm:$0xff] }
 0x91e   : > { %8615 = vmatprep.subr.bf16.mxu0 %v9747_v18  ;;  %v9971_v18 = vcombine.high %v5199_v45, %v5215_v16 }
 0x921   : > { %8616 = vmatpush1.bf16.msra.mxu0 %v9746_v49  ;;  %v9970_v49 = vcombine.low %v5199_v45, %v5215_v16  ;;  %v5041_v45 = vld [vmem:[#allocation16 + $0x678] sm:$0xff] }
 0x922   : > { %8617 = vmatprep.subr.bf16.mxu0 %v9779_v11  ;;  %v10003_v11 = vcombine.high %v5231_v19, %v5247_v21  ;;  %v5057_v16 = vld [vmem:[#allocation16 + $0x6f8] sm:$0xff] }
 0x923   : > { %v8313_v48 = vpop.f32.mrb[104].mxu0 }
 0x924   : > { %v8314_v20 = vadd.f32 %v8313_v48, %v7957_v38  ;;  %v8436_v37 = vpop.f32.mrb[108].mxu1  ;;  %v8315_v47 = vpop.f32.mrb[105].mxu0  ;;  %v10002_v38 = vcombine.low %v5231_v19, %v5247_v21  ;;  %v5327_v48 = vld [vmem:[#allocation16 + $0xf68] sm:$0xff]  ;;  %v7997_v19 = vrot.slane %v13250_v32, %v12238_v7 }
 0x925   : > { %v13260_v57 = vadd.f32 %v8436_v37, %v7981_v39  ;;  %v8316_v59 = vadd.f32 %v8315_v47, %v7961_v23  ;;  %v8438_v60 = vpop.f32.mrb[109].mxu1  ;;  %v8317_v46 = vpop.f32.mrb[106].mxu0  ;;  %8618 = vmatpush1.bf16.msra.mxu0 %v9778_v40  ;;  %v10035_v39 = vcombine.high %v5263_v35, %v5279_v36  ;;  %v5295_v23 = vld [vmem:[#allocation16 + $0xe68] sm:$0xff]  ;;  %v4849_v37 = vld [vmem:[#allocation16 + $0x78] sm:$0xff] }
 0x926   : > { %v13262_v9 = vadd.f32 %v8438_v60, %v7985_v41  ;;  %v8440_v1 = vpop.f32.mrb[110].mxu1  ;;  %v8318_v50 = vpop.f32.mrb[107].mxu0  ;;  %8619 = vmatprep.subr.bf16.mxu0 %v9811_v42  ;;  %v5311_v40 = vld [vmem:[#allocation16 + $0xee8] sm:$0xff]  ;;  %v10034_v41 = vcombine.low %v5263_v35, %v5279_v36  ;;  %v4865_v47 = vld [vmem:[#allocation16 + $0xf8] sm:$0xff]  ;;  %v9815_v35 = vcombine.high %v5041_v45, %v5057_v16 }
 0x927   : > { %v8812_v62 = vcombine.low %v8314_v20, %v8316_v59  ;;  %v8441_v63 = vpop.f32.mrb[111].mxu1  ;;  %v10067_v42 = vcombine.high %v5295_v23, %v5311_v40  ;;  %v10066_v56 = vcombine.low %v5295_v23, %v5311_v40  ;;  %v10099_v20 = vcombine.high %v5327_v48, %v5343_v54  ;;  %v4881_v46 = vld [vmem:[#allocation16 + $0x178] sm:$0xff] }
 0x928   : > { %v8860_v4 = vcombine.low %v13260_v57, %v13262_v9  ;;  %v10098_v59 = vcombine.low %v5327_v48, %v5343_v54  ;;  %v9623_v60 = vcombine.high %v4849_v37, %v4865_v47  ;;  %v9622_v1 = vcombine.low %v4849_v37, %v4865_v47 }
 0x929   : > { %v13273_v8 = vrot.slane %v8812_v62, %v13195_v53  ;;  %8620 = vmatpush1.bf16.msra.mxu0 %v9810_v61  ;;  %v4897_v61 = vld [vmem:[#allocation16 + $0x1f8] sm:$0xff] }
 0x92a   : > { %8621 = vmatprep.subr.bf16.mxu0 %v9843_v10  ;;  %v9655_v50 = vcombine.high %v4881_v46, %v4897_v61  ;;  %v4913_v10 = vld [vmem:[#allocation16 + $0x278] sm:$0xff]  ;;  %v9654_v63 = vcombine.low %v4881_v46, %v4897_v61 }
 0x92b   : > { %v8843_v6 = vcombine.low %v13270_v5, %v13273_v8  ;;  %v4929_v62 = vld [vmem:[#allocation16 + $0x2f8] sm:$0xff] }
 0x92c   : > { %v9687_v14 = vcombine.high %v4913_v10, %v4929_v62  ;;  %v5233_v8 = vld [vmem:[#allocation16 + $0xc78] sm:$0xff] }
 0x92d   : > { %8622 = vmatpush1.bf16.msra.mxu0 %v9842_v58  ;;  %v4961_v58 = vld [vmem:[#allocation16 + $0x3f8] sm:$0xff] }
 0x92e   : > { %8623 = vmatprep.subr.bf16.mxu0 %v9875_v2  ;;  %v9686_v2 = vcombine.low %v4913_v10, %v4929_v62  ;;  %v9719_v12 = vcombine.high %v4945_v3, %v4961_v58  ;;  %v8835_v62 = vrot.slane %v8813_v31, %v13195_v53 }
 0x931   : > { %8624 = vmatpush1.bf16.msra.mxu0 %v9874_v15  ;;  %v4993_v15 = vld [vmem:[#allocation16 + $0x4f8] sm:$0xff] }
 0x932   : > { %8625 = vmatprep.subr.bf16.mxu0 %v9907_v13  ;;  %v9718_v13 = vcombine.low %v4945_v3, %v4961_v58  ;;  %v9751_v25 = vcombine.high %v4977_v51, %v4993_v15 }
 0x935   : > { %8626 = vmatpush1.bf16.msra.mxu0 %v9906_v55  ;;  %v5025_v55 = vld [vmem:[#allocation16 + $0x5f8] sm:$0xff] }
 0x936   : > { %8627 = vmatprep.subr.bf16.mxu0 %v9939_v0  ;;  %v9750_v0 = vcombine.low %v4977_v51, %v4993_v15  ;;  %v8851_v51 = vrot.slane %v8843_v6, %v13195_v53  ;;  %v5249_v6 = vld [vmem:[#allocation16 + $0xcf8] sm:$0xff] }
 0x939   : > { %8628 = vmatpush1.bf16.msra.mxu0 %v9938_v17  ;;  %v10862_v17 = vld [vmem:[#allocation17 + $0x8] sm:$0xff] }
 0x93a   : > { %8629 = vmatprep.subr.bf16.mxu0 %v9971_v18  ;;  %v7973_v18 = vrot.slane %v10862_v17, %v12247_v43  ;;  %v7977_v21 = vrot.slane %v10862_v17, %v12259_v52  ;;  %v10007_v17 = vcombine.high %v5233_v8, %v5249_v6 }
 0x93d   : > { %8630 = vmatpush1.bf16.msra.mxu0 %v9970_v49  ;;  %v9782_v49 = vcombine.low %v5009_v28, %v5025_v55 }
 0x93e   : > { %8631 = vmatprep.subr.bf16.mxu0 %v10003_v11  ;;  %v8001_v11 = vrot.slane %v13250_v32, %v12250_v44 }
 0x941   : > { %8632 = vmatpush1.bf16.msra.mxu0 %v10002_v38  ;;  %v5073_v38 = vld [vmem:[#allocation16 + $0x778] sm:$0xff] }
 0x942   : > { %8633 = vmatprep.subr.bf16.mxu0 %v10035_v39  ;;  %v5089_v39 = vld [vmem:[#allocation16 + $0x7f8] sm:$0xff] }
 0x945   : > { %8634 = vmatpush1.bf16.msra.mxu0 %v10034_v41 }
 0x946   : > { %8635 = vmatprep.subr.bf16.mxu0 %v10067_v42 }
 0x949   : > { %8636 = vmatpush1.bf16.msra.mxu0 %v10066_v56 }
 0x94a   : > { %8637 = vmatprep.subr.bf16.mxu0 %v10099_v20  ;;  %v9814_v20 = vcombine.low %v5041_v45, %v5057_v16 }
 0x94d   : > { %8638 = vmatpush1.bf16.msra.mxu0 %v10098_v59 }
 0x94e   : > { %8689 = vmatprep.subr.bf16.mxu0 %v9623_v60  ;;  %v9847_v60 = vcombine.high %v5073_v38, %v5089_v39 }
 0x950   : > { %8640 = vmatmul.mubr.bf16.vlgmr.msra.gmra.mrb[120].mxu0 %v13136_v33 }
 0x951   : > { %8690 = vmatpush1.bf16.msra.mxu0 %v9622_v1  ;;  %8721 = vmatprep.mubr.bf16.mxu0 %v13134_v30  ;;  %v9783_v30 = vcombine.high %v5009_v28, %v5025_v55  ;;  %v5105_v1 = vld [vmem:[#allocation16 + $0x878] sm:$0xff] }
 0x952   : > { %8691 = vmatprep.subr.bf16.mxu0 %v9655_v50  ;;  %v5121_v50 = vld [vmem:[#allocation16 + $0x8f8] sm:$0xff] }
 0x953   : > { %v9879_v3 = vcombine.high %v5105_v1, %v5121_v50  ;;  %v9878_v34 = vcombine.low %v5105_v1, %v5121_v50 }
 0x955   : > { %8692 = vmatpush1.bf16.msra.mxu0 %v9654_v63 }
 0x956   : > { %8693 = vmatprep.subr.bf16.mxu0 %v9687_v14  ;;  %v9846_v14 = vcombine.low %v5073_v38, %v5089_v39  ;;  %v5329_v39 = vld [vmem:[#allocation16 + $0xf78] sm:$0xff] }
 0x959   : > { %8694 = vmatpush1.bf16.msra.mxu0 %v9686_v2  ;;  %v5137_v2 = vld [vmem:[#allocation16 + $0x978] sm:$0xff] }
 0x95a   : > { %8695 = vmatprep.subr.bf16.mxu0 %v9719_v12  ;;  %v5153_v12 = vld [vmem:[#allocation16 + $0x9f8] sm:$0xff] }
 0x95b   : > { %v9911_v29 = vcombine.high %v5137_v2, %v5153_v12  ;;  %v9910_v28 = vcombine.low %v5137_v2, %v5153_v12 }
 0x95d   : > { %8696 = vmatpush1.bf16.msra.mxu0 %v9718_v13  ;;  %v5169_v13 = vld [vmem:[#allocation16 + $0xa78] sm:$0xff] }
 0x95e   : > { %8697 = vmatprep.subr.bf16.mxu0 %v9751_v25  ;;  %v5185_v25 = vld [vmem:[#allocation16 + $0xaf8] sm:$0xff] }
 0x95f   : > { %v9943_v55 = vcombine.high %v5169_v13, %v5185_v25  ;;  %v9942_v45 = vcombine.low %v5169_v13, %v5185_v25 }
 0x961   : > { %8698 = vmatpush1.bf16.msra.mxu0 %v9750_v0  ;;  %v5201_v0 = vld [vmem:[#allocation16 + $0xb78] sm:$0xff] }
 0x962   : > { %8699 = vmatprep.subr.bf16.mxu0 %v9783_v30  ;;  %v5217_v30 = vld [vmem:[#allocation16 + $0xbf8] sm:$0xff] }
 0x963   : > { %v8395_v36 = vpop.f32.mrb[108].mxu0  ;;  %v9975_v5 = vcombine.high %v5201_v0, %v5217_v30  ;;  %v9974_v16 = vcombine.low %v5201_v0, %v5217_v30 }
 0x964   : > { %v8396_v23 = vadd.f32 %v8395_v36, %v7973_v18  ;;  %v8518_v40 = vpop.f32.mrb[112].mxu1  ;;  %v8397_v41 = vpop.f32.mrb[109].mxu0  ;;  %v5265_v18 = vld [vmem:[#allocation16 + $0xd78] sm:$0xff] }
 0x965   : > { %v13285_v42 = vadd.f32 %v8518_v40, %v7997_v19  ;;  %v8398_v48 = vadd.f32 %v8397_v41, %v7977_v21  ;;  %v8520_v54 = vpop.f32.mrb[113].mxu1  ;;  %v8399_v56 = vpop.f32.mrb[110].mxu0  ;;  %8700 = vmatpush1.bf16.msra.mxu0 %v9782_v49  ;;  %v5281_v19 = vld [vmem:[#allocation16 + $0xdf8] sm:$0xff]  ;;  %v10006_v21 = vcombine.low %v5233_v8, %v5249_v6 }
 0x966   : > { %v13287_v37 = vadd.f32 %v8520_v54, %v8001_v11  ;;  %v8522_v47 = vpop.f32.mrb[114].mxu1  ;;  %v8400_v59 = vpop.f32.mrb[111].mxu0  ;;  %8701 = vmatprep.subr.bf16.mxu0 %v9815_v35  ;;  %v10039_v49 = vcombine.high %v5265_v18, %v5281_v19  ;;  %v5297_v11 = vld [vmem:[#allocation16 + $0xe78] sm:$0xff]  ;;  %v10038_v36 = vcombine.low %v5265_v18, %v5281_v19  ;;  %v7989_v56 = vrot.slane %v13250_v32, %v12159_v24 }
 0x967   : > { %v8814_v46 = vcombine.low %v8396_v23, %v8398_v48  ;;  %v8523_v61 = vpop.f32.mrb[115].mxu1  ;;  %v5313_v35 = vld [vmem:[#allocation16 + $0xef8] sm:$0xff]  ;;  %v7993_v47 = vrot.slane %v13250_v32, %v12167_v27 }
 0x968   : > { %v8862_v10 = vcombine.low %v13285_v42, %v13287_v37  ;;  %v10071_v38 = vcombine.high %v5297_v11, %v5313_v35  ;;  %v5345_v23 = vld [vmem:[#allocation16 + $0xff8] sm:$0xff]  ;;  %v10070_v40 = vcombine.low %v5297_v11, %v5313_v35 }
 0x969   : > { %v8842_v63 = vrot.slane %v8814_v46, %v13195_v53  ;;  %8702 = vmatpush1.bf16.msra.mxu0 %v9814_v20  ;;  %v10103_v41 = vcombine.high %v5329_v39, %v5345_v23  ;;  %v10102_v48 = vcombine.low %v5329_v39, %v5345_v23  ;;  %v13303_v54 = vld [vmem:[#allocation17 + $0x18] sm:$0xff] }
 0x96a   : > { %8703 = vmatprep.subr.bf16.mxu0 %v9847_v60  ;;  %v8013_v20 = vrot.slane %v13303_v54, %v12156_v22  ;;  %v8017_v59 = vrot.slane %v13303_v54, %v12164_v26  ;;  %v8033_v13 = vrot.slane %v13303_v54, %v12250_v44  ;;  %v8884_v44 = vrot.slane %v8862_v10, %v13195_v53 }
 0x96b   : > { %v8844_v58 = vcombine.low %v8835_v62, %v8842_v63  ;;  %v8025_v11 = vrot.slane %v13303_v54, %v12167_v27 }
 0x96d   : > { %v8858_v15 = vrot.slane %v8844_v58, %v13195_v53  ;;  %8704 = vmatpush1.bf16.msra.mxu0 %v9846_v14 }
 0x96e   : > { %8705 = vmatprep.subr.bf16.mxu0 %v9879_v3 }
 0x96f   : > { %v8859_v31 = vcombine.low %v8851_v51, %v8858_v15  ;;  %v8870_v51 = vrot.slane %v8860_v4, %v13195_v53 }
 0x971   : > { %8963 = vst [vmem:[%s13244_s18 + $0x8] sm:$0xff] %v8859_v31  ;;  %8706 = vmatpush1.bf16.msra.mxu0 %v9878_v34  ;;  %v8005_v34 = vrot.slane %v13250_v32, %v12247_v43  ;;  %v8009_v31 = vrot.slane %v13250_v32, %v12259_v52 }
 0x972   : > { %8707 = vmatprep.subr.bf16.mxu0 %v9911_v29  ;;  %v8029_v29 = vrot.slane %v13303_v54, %v12238_v7 }
 0x975   : > { %8708 = vmatpush1.bf16.msra.mxu0 %v9910_v28 }
 0x976   : > { %8709 = vmatprep.subr.bf16.mxu0 %v9943_v55 }
 0x979   : > { %8710 = vmatpush1.bf16.msra.mxu0 %v9942_v45 }
 0x97a   : > { %8711 = vmatprep.subr.bf16.mxu0 %v9975_v5 }
 0x97d   : > { %8712 = vmatpush1.bf16.msra.mxu0 %v9974_v16 }
 0x97e   : > { %8713 = vmatprep.subr.bf16.mxu0 %v10007_v17 }
 0x981   : > { %8714 = vmatpush1.bf16.msra.mxu0 %v10006_v21 }
 0x982   : > { %8715 = vmatprep.subr.bf16.mxu0 %v10039_v49  ;;  %v8021_v49 = vrot.slane %v13303_v54, %v12159_v24  ;;  %v8041_v24 = vrot.slane %v13303_v54, %v12259_v52 }
 0x985   : > { %8716 = vmatpush1.bf16.msra.mxu0 %v10038_v36 }
 0x986   : > { %8717 = vmatprep.subr.bf16.mxu0 %v10071_v38 }
 0x989   : > { %8718 = vmatpush1.bf16.msra.mxu0 %v10070_v40 }
 0x98a   : > { %8719 = vmatprep.subr.bf16.mxu0 %v10103_v41 }
 0x98d   : > { %8720 = vmatpush1.bf16.msra.mxu0 %v10102_v48  ;;  %v8037_v48 = vrot.slane %v13303_v54, %v12247_v43 }
 0x990   : > { %8722 = vmatmul.mubr.bf16.vlgmr.msra.gmra.mrb[124].mxu0 %v13136_v33 }
 0x9a3   : > { %v8477_v60 = vpop.f32.mrb[112].mxu0 }
 0x9a4   : > { %v8478_v46 = vadd.f32 %v8477_v60, %v7989_v56  ;;  %v8600_v61 = vpop.f32.mrb[116].mxu1  ;;  %v8479_v1 = vpop.f32.mrb[113].mxu0 }
 0x9a5   : > { %v8601_v50 = vadd.f32 %v8600_v61, %v8013_v20  ;;  %v8480_v33 = vadd.f32 %v8479_v1, %v7993_v47  ;;  %v8602_v62 = vpop.f32.mrb[117].mxu1  ;;  %v8481_v63 = vpop.f32.mrb[114].mxu0 }
 0x9a6   : > { %v8603_v14 = vadd.f32 %v8602_v62, %v8017_v59  ;;  %v8604_v3 = vpop.f32.mrb[118].mxu1  ;;  %v8482_v58 = vpop.f32.mrb[115].mxu0 }
 0x9a7   : > { %v8861_v2 = vcombine.low %v8478_v46, %v8480_v33  ;;  %v8605_v12 = vpop.f32.mrb[119].mxu1 }
 0x9a8   : > { %v8909_v22 = vcombine.low %v8601_v50, %v8603_v14 }
 0x9a9   : > { %v8877_v26 = vrot.slane %v8861_v2, %v13195_v53 }
 0x9aa   : > { %v8919_v23 = vrot.slane %v8909_v22, %v13195_v53 }
 0x9ab   : > { %v8892_v15 = vcombine.low %v8870_v51, %v8877_v26 }
 0x9ad   : > { %v8900_v18 = vrot.slane %v8892_v15, %v13195_v53 }
 0x9e3   : > { %v8559_v25 = vpop.f32.mrb[116].mxu0 }
 0x9e4   : > { %v8560_v28 = vadd.f32 %v8559_v25, %v8005_v34  ;;  %v8682_v55 = vpop.f32.mrb[120].mxu1  ;;  %v8561_v57 = vpop.f32.mrb[117].mxu0 }
 0x9e5   : > { %v8683_v9 = vadd.f32 %v8682_v55, %v8029_v29  ;;  %v8562_v4 = vadd.f32 %v8561_v57, %v8009_v31  ;;  %v8684_v0 = vpop.f32.mrb[121].mxu1  ;;  %v8563_v30 = vpop.f32.mrb[118].mxu0 }
 0x9e6   : > { %v8685_v45 = vadd.f32 %v8684_v0, %v8033_v13  ;;  %v8686_v5 = vpop.f32.mrb[122].mxu1  ;;  %v8564_v8 = vpop.f32.mrb[119].mxu0 }
 0x9e7   : > { %v8863_v6 = vcombine.low %v8560_v28, %v8562_v4  ;;  %v8687_v7 = vpop.f32.mrb[123].mxu1 }
 0x9e8   : > { %v8911_v16 = vcombine.low %v8683_v9, %v8685_v45 }
 0x9e9   : > { %v8891_v32 = vrot.slane %v8863_v6, %v13195_v53 }
 0x9ea   : > { %v8933_v61 = vrot.slane %v8911_v16, %v13195_v53 }
 0x9eb   : > { %v8893_v17 = vcombine.low %v8884_v44, %v8891_v32 }
 0x9ed   : > { %v8907_v19 = vrot.slane %v8893_v17, %v13195_v53 }
 0x9ef   : > { %v8908_v21 = vcombine.low %v8900_v18, %v8907_v19 }
 0x9f1   : > { %8964 = vst [vmem:[%s13244_s18 + $0x10] sm:$0xff] %v8908_v21 }
 0xa23   : > { %v8641_v35 = vpop.f32.mrb[120].mxu0 }
 0xa24   : > { %v8642_v36 = vadd.f32 %v8641_v35, %v8021_v49  ;;  %v8643_v38 = vpop.f32.mrb[121].mxu0 }
 0xa25   : > { %v8644_v42 = vadd.f32 %v8643_v38, %v8025_v11  ;;  %v8645_v37 = vpop.f32.mrb[122].mxu0 }
 0xa26   : > { %v8646_v10 = vpop.f32.mrb[123].mxu0 }
 0xa27   : > { %v8910_v39 = vcombine.low %v8642_v36, %v8644_v42 }
 0xa29   : > { %v8926_v40 = vrot.slane %v8910_v39, %v13195_v53 }
 0xa2b   : > { %v8941_v41 = vcombine.low %v8919_v23, %v8926_v40 }
 0xa2d   : > { %v8949_v33 = vrot.slane %v8941_v41, %v13195_v53 }
 0xa63   : > { %v8723_v27 = vpop.f32.mrb[124].mxu0 }
 0xa64   : > { %v8724_v56 = vadd.f32 %v8723_v27, %v8037_v48  ;;  %v8725_v20 = vpop.f32.mrb[125].mxu0 }
 0xa65   : > { %v8726_v47 = vadd.f32 %v8725_v20, %v8041_v24  ;;  %v8727_v59 = vpop.f32.mrb[126].mxu0 }
 0xa66   : > { %v8728_v60 = vpop.f32.mrb[127].mxu0 }
 0xa67   : > { %v8912_v46 = vcombine.low %v8724_v56, %v8726_v47 }
 0xa69   : > { %v8940_v1 = vrot.slane %v8912_v46, %v13195_v53 }
 0xa6b   : > { %v8942_v50 = vcombine.low %v8933_v61, %v8940_v1 }
 0xa6d   : > { %v8956_v62 = vrot.slane %v8942_v50, %v13195_v53 }
 0xa6f   : > { %v8957_v43 = vcombine.low %v8949_v33, %v8956_v62 }
 0xa71   : > { %8965 = vst [vmem:[%s13244_s18 + $0x18] sm:$0xff] %v8957_v43 }
 0xa72 PF: > { %s13402_s1 = sld [smem:[#allocation25_spill]]  ;;  %s13403_s18 = smov %s11185_s19 }
 0xa73   : > { %s13404_s19 = smov %s13406_s15 }
 0xa78   : > { %s31_s20 = sadd.s32 1, %s13402_s1  }
 0xa79   : > { %p28_p7 = scmp.ge.s32.totalorder %s31_s20, 4  }
 0xa7b   :  { %30 = sbr.rel (!%p28_p7) target bundleno = 14 (0xe), region = 166 }
 0xa82   :  { %8985 = vsyncpa [#allocation4], 1 }
 0xa83   :  { %8987 = vsyncpa [#allocation4 + $0x1], 1 }
 0xa84   :  { %8988 = vsyncpa [#allocation6], 1 }
 0xa85   :  { %8989 = vsyncpa [#allocation9], 1 }
 0xa86   :  { %8990 = vsyncpa [#allocation12], 1 }
 0xa87   :  { %8991 = vsyncpa [#allocation15], 1 }
 0xa88   :  { %8992 = vsyncpa [#allocation18], 1 }

</bundles_post_ra>
